<compile_context>
chip_gen: v7x
topology: tpu7x:2x2x1
jax: 0.10.0
libtpu: 0.0.40
codegen_flags: <defaults>
</compile_context>

<pallas_src>
import functools

import jax
import jax.numpy as jnp
from jax.experimental import pallas as pl
from jax.experimental.pallas import tpu as pltpu


def _round_up(x, m):
    return (x + m - 1) // m * m


# ------------------------------ in-kernel helpers -----------------------------

def _groupnorm(xf, gamma, beta, bmat, eps):
    """GroupNorm for a single sample. xf: [HW, C] f32, gamma/beta: [1, C] f32,
    bmat: [C, C] f32 group-averaging matrix (includes the 1/(HW*cg) factor)."""
    s = jnp.sum(xf, axis=0, keepdims=True)                 # [1, C]
    ss = jnp.sum(xf * xf, axis=0, keepdims=True)           # [1, C]
    mean = jnp.dot(s, bmat, preferred_element_type=jnp.float32)
    meansq = jnp.dot(ss, bmat, preferred_element_type=jnp.float32)
    var = jnp.maximum(meansq - mean * mean, 0.0)           # clamp: single-pass form
    scale = gamma * jax.lax.rsqrt(var + eps)
    shift = beta - mean * scale
    return xf * scale + shift


def _zero_margins(buf_ref, margin, hw):
    """Zero the front/back margin strips of a flat shift buffer (interior rows
    [margin, margin+hw) are fully overwritten before every tap read)."""
    rows, c = buf_ref.shape
    back = rows - margin - hw
    buf_ref[pl.ds(0, margin), :] = jnp.zeros((margin, c), jnp.bfloat16)
    buf_ref[pl.ds(margin + hw, back), :] = jnp.zeros((back, c), jnp.bfloat16)


def _tap_view(buf_ref, t, m0, m2, *, W, HW, margin):
    """Shifted bf16 view for 3x3 tap t (di=t//3, dj=t%3) plus wrap masking."""
    di, dj = t // 3, t % 3
    v = buf_ref[pl.ds(margin + (di - 1) * W + (dj - 1), HW), :]
    if dj == 0:
        v = v * m0            # zero the column that wrapped from the previous row
    elif dj == 2:
        v = v * m2            # zero the column that wrapped from the next row
    return v


def _conv3x3(buf_ref, patches_ref, w_ref, b_ref, m0, m2, *, hw, margin):
    """3x3 / pad=1 conv from a flat zero-margined bf16 shift buffer.

    buf_ref:     [rows, cin] bf16, activation in rows [margin, margin+H*W).
    patches_ref: [H*W, 9*cin] bf16 im2col scratch (used only when cin % 128 == 0).
    w_ref:       [9*cin, cout] bf16, tap-major (di, dj, cin) rows.
    b_ref:       [1, cout] f32.
    """
    H, W = hw
    HW = H * W
    cin = buf_ref.shape[-1]
    if cin % 128 == 0:
        # Lane-dense: pack taps with tile-aligned stores, run ONE deep-K GEMM.
        for t in range(9):
            patches_ref[:, t * cin:(t + 1) * cin] = _tap_view(
                buf_ref, t, m0, m2, W=W, HW=HW, margin=margin)
        acc = jnp.dot(patches_ref[...], w_ref[...],
                      preferred_element_type=jnp.float32)
    else:
        # Narrow channels: chain of dots straight off the shifted views.
        acc = None
        for t in range(9):
            v = _tap_view(buf_ref, t, m0, m2, W=W, HW=HW, margin=margin)
            d = jnp.dot(v, w_ref[t * cin:(t + 1) * cin, :],
                        preferred_element_type=jnp.float32)
            acc = d if acc is None else acc + d
    return acc + b_ref[...]


def _resblock_kernel(*refs, hw, margin, skip_mode, eps):
    (x_ref, colmask_ref,
     bmat1_ref, gn1g_ref, gn1b_ref, w1_ref, b1_ref,
     bmat2_ref, gn2g_ref, gn2b_ref, w2_ref, b2_ref) = refs[:12]
    rest = list(refs[12:])
    if skip_mode == "identity":
        skipw_ref = skipb_ref = None
    else:
        skipw_ref, skipb_ref = rest[0], rest[1]
        rest = rest[2:]
    out_ref, buf_in, patches_in, buf_mid, patches_mid = rest

    H, W = hw
    HW = H * W
    cin = x_ref.shape[-1]
    cout = out_ref.shape[-1]

    # Zero only the small margin strips (not whole buffers); done every step so
    # correctness does not depend on scratch persistence under megacore sharding.
    _zero_margins(buf_in, margin, HW)
    _zero_margins(buf_mid, margin, HW)

    m0 = colmask_ref[:, 0:1]      # [HW, 1] bf16 mask for left-shifted taps
    m2 = colmask_ref[:, 1:2]      # [HW, 1] bf16 mask for right-shifted taps

    x = x_ref[0].reshape(HW, cin)                      # [HW, cin] f32

    # ---- skip connection (raw x); runs first so buf_in can be reused ----
    if skip_mode == "conv3x3":
        buf_in[pl.ds(margin, HW), :] = x.astype(jnp.bfloat16)
        skip = _conv3x3(buf_in, patches_in, skipw_ref, skipb_ref, m0, m2,
                        hw=hw, margin=margin)
    elif skip_mode == "conv1x1":
        skip = jnp.dot(x.astype(jnp.bfloat16), skipw_ref[...],
                       preferred_element_type=jnp.float32) + skipb_ref[...]
    else:  # identity (out_channels == channels)
        skip = x

    # ---- in_layers: GroupNorm -> SiLU -> 3x3 conv ----
    h = _groupnorm(x, gn1g_ref[...], gn1b_ref[...], bmat1_ref[...], eps)
    h = jax.nn.silu(h)
    buf_in[pl.ds(margin, HW), :] = h.astype(jnp.bfloat16)
    h = _conv3x3(buf_in, patches_in, w1_ref, b1_ref, m0, m2, hw=hw, margin=margin)

    # ---- out_layers: GroupNorm -> SiLU -> Dropout -> 3x3 conv ----
    # TODO(synk): nn.Dropout is a no-op in eval mode; train-mode dropout would need pltpu PRNG.
    h = _groupnorm(h, gn2g_ref[...], gn2b_ref[...], bmat2_ref[...], eps)
    h = jax.nn.silu(h)
    buf_mid[pl.ds(margin, HW), :] = h.astype(jnp.bfloat16)
    h = _conv3x3(buf_mid, patches_mid, w2_ref, b2_ref, m0, m2, hw=hw, margin=margin)

    out_ref[0] = (skip + h).reshape(H, W, cout)


# ------------------------------ host-side wrapper -----------------------------

def _group_mean_matrix(c, groups, hw):
    cg = c // groups
    gid = jnp.arange(c, dtype=jnp.int32) // cg
    return jnp.where(gid[:, None] == gid[None, :], 1.0 / (hw * cg), 0.0
                     ).astype(jnp.float32)


def resblock_pallas(x_nchw, p, cfg):
    """Fused ResBlock forward. x_nchw: [N, C, H, W] f32 -> [N, Cout, H, W] f32."""
    N, C, H, W = x_nchw.shape
    cout = cfg["out_channels"]
    skip_mode = p["skip_mode"]
    if skip_mode == "identity":
        assert C == cout
    HW = H * W
    assert HW % 8 == 0, "flat shift-buffer layout assumes H*W % 8 == 0"

    x = jnp.transpose(x_nchw, (0, 2, 3, 1))            # NHWC: channels on lanes

    # Flat shift-buffer geometry: aligned front margin >= W+1 zeros, back margin
    # covers the largest forward tap shift (+W+1) plus slice overrun.
    margin = _round_up(W + 1, 8)
    rows = _round_up(margin + HW + W + 1, 8)

    # Host-precomputed constants (hoisted out of the per-step kernel path).
    bmat1 = _group_mean_matrix(C, cfg["group_in"], HW)
    bmat2 = _group_mean_matrix(cout, cfg["group_out"], HW)
    j = jnp.arange(HW, dtype=jnp.int32) % W
    colmask = jnp.stack([j != 0, j != W - 1], axis=1).astype(jnp.bfloat16)  # [HW, 2]

    kernel = functools.partial(_resblock_kernel, hw=(H, W), margin=margin,
                               skip_mode=skip_mode, eps=1e-5)

    def const_spec(shape):
        nd = len(shape)
        return pl.BlockSpec(shape, lambda n, _nd=nd: (0,) * _nd)

    in_specs = [
        pl.BlockSpec((1, H, W, C), lambda n: (n, 0, 0, 0)),       # x
        const_spec((HW, 2)),                                       # column wrap masks
        const_spec((C, C)),                                        # bmat1 (f32)
        const_spec((1, C)), const_spec((1, C)),                    # gn1 gamma/beta
        const_spec((9 * C, cout)), const_spec((1, cout)),          # conv1 w (bf16), b
        const_spec((cout, cout)),                                  # bmat2 (f32)
        const_spec((1, cout)), const_spec((1, cout)),              # gn2 gamma/beta
        const_spec((9 * cout, cout)), const_spec((1, cout)),       # conv2 w (bf16), b
    ]
    operands = [x, colmask, bmat1, p["gn1_g"], p["gn1_b"], p["w1"], p["b1"],
                bmat2, p["gn2_g"], p["gn2_b"], p["w2"], p["b2"]]
    if skip_mode != "identity":
        in_specs += [const_spec(p["skip_w"].shape), const_spec((1, cout))]
        operands += [p["skip_w"], p["skip_b"]]

    out = pl.pallas_call(
        kernel,
        grid=(N,),
        in_specs=in_specs,
        out_specs=pl.BlockSpec((1, H, W, cout), lambda n: (n, 0, 0, 0)),
        out_shape=jax.ShapeDtypeStruct((N, H, W, cout), jnp.float32),
        scratch_shapes=[
            pltpu.VMEM((rows, C), jnp.bfloat16),       # flat shift buffer (conv1/skip)
            pltpu.VMEM((HW, 9 * C), jnp.bfloat16),     # im2col patches (conv1/skip)
            pltpu.VMEM((rows, cout), jnp.bfloat16),    # flat shift buffer (conv2)
            pltpu.VMEM((HW, 9 * cout), jnp.bfloat16),  # im2col patches (conv2)
        ],
        compiler_params=pltpu.CompilerParams(dimension_semantics=("parallel",)),
    )(*operands)
    return jnp.transpose(out, (0, 3, 1, 2))            # back to NCHW


# ------------------------------ parameter helpers ------------------------------

class _PG:
    def __init__(self, key):
        self.key = key

    def normal(self, shape, scale=0.05):
        self.key, sub = jax.random.split(self.key)
        return scale * jax.random.normal(sub, shape, jnp.float32)


def _conv_to_mm(w_oikk, groups):
    """PyTorch conv weight [Cout, Cin//g, kh, kw] -> dense matmul layout
    [kh*kw*Cin, Cout] (bf16), block-diagonal over groups (== grouped conv)."""
    cout, cin_g, kh, kw = w_oikk.shape
    cin = cin_g * groups
    cog = cout // groups
    w_t = jnp.transpose(w_oikk, (2, 3, 1, 0))            # [kh, kw, cin_g, cout]
    dense = jnp.zeros((kh, kw, cin, cout), jnp.float32)
    for g in range(groups):
        dense = dense.at[:, :, g * cin_g:(g + 1) * cin_g, g * cog:(g + 1) * cog].set(
            w_t[:, :, :, g * cog:(g + 1) * cog])
    return dense.reshape(kh * kw * cin, cout).astype(jnp.bfloat16)


def init_resblock_params(key, cfg):
    channels, cout, g = cfg["channels"], cfg["out_channels"], cfg["conv_group"]
    pg = _PG(key)
    p = {
        "gn1_g": 1.0 + pg.normal((1, channels)),
        "gn1_b": pg.normal((1, channels)),
        "w1": _conv_to_mm(pg.normal((cout, channels // g, 3, 3)), g),
        "b1": pg.normal((1, cout)),
        "gn2_g": 1.0 + pg.normal((1, cout)),
        "gn2_b": pg.normal((1, cout)),
        # TODO(synk): PyTorch zero_module() zero-inits conv2; nonzero init here so the path is exercised.
        "w2": _conv_to_mm(pg.normal((cout, cout // g, 3, 3)), g),
        "b2": pg.normal((1, cout)),
    }
    if cout == channels:
        p["skip_mode"] = "identity"
    elif cfg["use_conv"]:
        p["skip_mode"] = "conv3x3"
        p["skip_w"] = _conv_to_mm(pg.normal((cout, channels // g, 3, 3)), g)
        p["skip_b"] = pg.normal((1, cout))
    else:
        p["skip_mode"] = "conv1x1"
        p["skip_w"] = _conv_to_mm(pg.normal((cout, channels // g, 1, 1)), g)
        p["skip_b"] = pg.normal((1, cout))
    return p


# ------------------------------ pure-JAX reference -----------------------------

def _ref_groupnorm(x, gamma, beta, groups, eps=1e-5):
    N, H, W, C = x.shape
    cg = C // groups
    xg = x.reshape(N, H * W, groups, cg)
    mean = jnp.mean(xg, axis=(1, 3), keepdims=True)
    var = jnp.mean((xg - mean) ** 2, axis=(1, 3), keepdims=True)
    y = ((xg - mean) * jax.lax.rsqrt(var + eps)).reshape(N, H, W, C)
    return y * gamma + beta


def _ref_conv3x3(x, w_mm, b):
    N, H, W, C = x.shape
    xp = jnp.pad(x, ((0, 0), (1, 1), (1, 1), (0, 0)))
    cols = [xp[:, i:i + H, j:j + W, :] for i in range(3) for j in range(3)]
    patches = jnp.concatenate(cols, axis=-1).reshape(N * H * W, 9 * C)
    patches = patches.astype(jnp.bfloat16).astype(jnp.float32)
    y = patches @ w_mm.astype(jnp.float32) + b
    return y.reshape(N, H, W, -1)


def resblock_ref(x_nchw, p, cfg):
    x = jnp.transpose(x_nchw, (0, 2, 3, 1)).astype(jnp.float32)
    h = jax.nn.silu(_ref_groupnorm(x, p["gn1_g"], p["gn1_b"], cfg["group_in"]))
    h = _ref_conv3x3(h, p["w1"], p["b1"][0])
    h = jax.nn.silu(_ref_groupnorm(h, p["gn2_g"], p["gn2_b"], cfg["group_out"]))
    h = _ref_conv3x3(h, p["w2"], p["b2"][0])
    mode = p["skip_mode"]
    if mode == "identity":
        s = x
    elif mode == "conv1x1":
        N, H, W, C = x.shape
        xf = x.reshape(-1, C).astype(jnp.bfloat16).astype(jnp.float32)
        s = (xf @ p["skip_w"].astype(jnp.float32) + p["skip_b"][0]).reshape(N, H, W, -1)
    else:
        s = _ref_conv3x3(x, p["skip_w"], p["skip_b"][0])
    return jnp.transpose(s + h, (0, 3, 1, 2))


# ------------------------------------ main -------------------------------------

if __name__ == "__main__":
    key = jax.random.PRNGKey(0)
    kx1, kx2, kx3, kp1, kp2, kp3 = jax.random.split(key, 6)

    configs = [
        # ResBlock(32, 0.0, out_channels=128)                    -> 1x1-conv skip
        (dict(channels=32, out_channels=128, use_conv=False,
              group_in=32, group_out=32, conv_group=1), kx1, kp1),
        # ResBlock(128, 0.0, out_channels=128, conv_group=2)     -> identity skip, grouped convs
        (dict(channels=128, out_channels=128, use_conv=False,
              group_in=32, group_out=32, conv_group=2), kx2, kp2),
        # ResBlock(64, 0.0, out_channels=128, use_conv=True)     -> 3x3-conv skip
        (dict(channels=64, out_channels=128, use_conv=True,
              group_in=32, group_out=32, conv_group=1), kx3, kp3),
    ]

    B, H, W = 2, 16, 16
    for cfg, kx, kp in configs:
        x = jax.random.normal(kx, (B, cfg["channels"], H, W), jnp.float32)
        p = init_resblock_params(kp, cfg)
        fwd = jax.jit(functools.partial(resblock_pallas, p=p, cfg=cfg))
        out = fwd(x)
        jax.block_until_ready(out)
        assert out.shape == (B, cfg["out_channels"], H, W), out.shape
        assert bool(jnp.all(jnp.isfinite(out)))
        ref = resblock_ref(x, p, cfg)
        err = float(jnp.max(jnp.abs(out - ref)))
        assert err < 5e-2, f"max abs err {err} (skip_mode={p['skip_mode']})"

    print("KERNEL_OK")
</pallas_src>

<mosaic_0001>
module attributes {stable_mosaic.version = 11 : i64} {
  func.func @_resblock_kernel(%arg0: i32, %arg1: memref<1x16x16x32xf32, #tpu.memory_space<vmem>>, %arg2: memref<256x2xbf16, #tpu.memory_space<vmem>>, %arg3: memref<32x32xf32, #tpu.memory_space<vmem>>, %arg4: memref<1x32xf32, #tpu.memory_space<vmem>>, %arg5: memref<1x32xf32, #tpu.memory_space<vmem>>, %arg6: memref<288x128xbf16, #tpu.memory_space<vmem>>, %arg7: memref<1x128xf32, #tpu.memory_space<vmem>>, %arg8: memref<128x128xf32, #tpu.memory_space<vmem>>, %arg9: memref<1x128xf32, #tpu.memory_space<vmem>>, %arg10: memref<1x128xf32, #tpu.memory_space<vmem>>, %arg11: memref<1152x128xbf16, #tpu.memory_space<vmem>>, %arg12: memref<1x128xf32, #tpu.memory_space<vmem>>, %arg13: memref<32x128xbf16, #tpu.memory_space<vmem>>, %arg14: memref<1x128xf32, #tpu.memory_space<vmem>>, %arg15: memref<1x16x16x128xf32, #tpu.memory_space<vmem>>, %arg16: memref<304x32xbf16, #tpu.memory_space<vmem>>, %arg17: memref<256x288xbf16, #tpu.memory_space<vmem>>, %arg18: memref<304x128xbf16, #tpu.memory_space<vmem>>, %arg19: memref<256x1152xbf16, #tpu.memory_space<vmem>>) attributes {dimension_semantics = [#tpu.dimension_semantics<parallel>], iteration_bounds = array<i64: 2>, scalar_prefetch = 0 : i64, scratch_operands = 4 : i64, tpu.core_type = #tpu.core_type<tc>, window_params = [{transform_indices = @transform_0, window_bounds = array<i64: 1, 16, 16, 32>}, {pipeline_mode = #tpu.pipeline_mode<synchronous>, transform_indices = @transform_1, window_bounds = array<i64: 256, 2>}, {pipeline_mode = #tpu.pipeline_mode<synchronous>, transform_indices = @transform_2, window_bounds = array<i64: 32, 32>}, {pipeline_mode = #tpu.pipeline_mode<synchronous>, transform_indices = @transform_3, window_bounds = array<i64: 1, 32>}, {pipeline_mode = #tpu.pipeline_mode<synchronous>, transform_indices = @transform_4, window_bounds = array<i64: 1, 32>}, {pipeline_mode = #tpu.pipeline_mode<synchronous>, transform_indices = @transform_5, window_bounds = array<i64: 288, 128>}, {pipeline_mode = #tpu.pipeline_mode<synchronous>, transform_indices = @transform_6, window_bounds = array<i64: 1, 128>}, {pipeline_mode = #tpu.pipeline_mode<synchronous>, transform_indices = @transform_7, window_bounds = array<i64: 128, 128>}, {pipeline_mode = #tpu.pipeline_mode<synchronous>, transform_indices = @transform_8, window_bounds = array<i64: 1, 128>}, {pipeline_mode = #tpu.pipeline_mode<synchronous>, transform_indices = @transform_9, window_bounds = array<i64: 1, 128>}, {pipeline_mode = #tpu.pipeline_mode<synchronous>, transform_indices = @transform_10, window_bounds = array<i64: 1152, 128>}, {pipeline_mode = #tpu.pipeline_mode<synchronous>, transform_indices = @transform_11, window_bounds = array<i64: 1, 128>}, {pipeline_mode = #tpu.pipeline_mode<synchronous>, transform_indices = @transform_12, window_bounds = array<i64: 32, 128>}, {pipeline_mode = #tpu.pipeline_mode<synchronous>, transform_indices = @transform_13, window_bounds = array<i64: 1, 128>}, {transform_indices = @transform_14, window_bounds = array<i64: 1, 16, 16, 128>}]} {
    %cst = arith.constant 0.000000e+00 : bf16
    %0 = vector.broadcast %cst : bf16 to vector<24x32xbf16>
    %c0 = arith.constant 0 : index
    %c0_0 = arith.constant 0 : index
    %1 = vector.load %arg16[%c0, %c0_0] : memref<304x32xbf16, #tpu.memory_space<vmem>>, vector<24x32xbf16>
    tpu.vector_store %arg16[%c0, %c0_0], %0 {strides = array<i32>} : memref<304x32xbf16, #tpu.memory_space<vmem>>, vector<24x32xbf16>,
    %cst_1 = arith.constant 0.000000e+00 : bf16
    %2 = vector.broadcast %cst_1 : bf16 to vector<24x32xbf16>
    %c280 = arith.constant 280 : index
    %c0_2 = arith.constant 0 : index
    %3 = vector.load %arg16[%c280, %c0_2] : memref<304x32xbf16, #tpu.memory_space<vmem>>, vector<24x32xbf16>
    tpu.vector_store %arg16[%c280, %c0_2], %2 {strides = array<i32>} : memref<304x32xbf16, #tpu.memory_space<vmem>>, vector<24x32xbf16>,
    %cst_3 = arith.constant 0.000000e+00 : bf16
    %4 = vector.broadcast %cst_3 : bf16 to vector<24x128xbf16>
    %c0_4 = arith.constant 0 : index
    %c0_5 = arith.constant 0 : index
    %5 = vector.load %arg18[%c0_4, %c0_5] : memref<304x128xbf16, #tpu.memory_space<vmem>>, vector<24x128xbf16>
    tpu.vector_store %arg18[%c0_4, %c0_5], %4 {strides = array<i32>} : memref<304x128xbf16, #tpu.memory_space<vmem>>, vector<24x128xbf16>,
    %cst_6 = arith.constant 0.000000e+00 : bf16
    %6 = vector.broadcast %cst_6 : bf16 to vector<24x128xbf16>
    %c280_7 = arith.constant 280 : index
    %c0_8 = arith.constant 0 : index
    %7 = vector.load %arg18[%c280_7, %c0_8] : memref<304x128xbf16, #tpu.memory_space<vmem>>, vector<24x128xbf16>
    tpu.vector_store %arg18[%c280_7, %c0_8], %6 {strides = array<i32>} : memref<304x128xbf16, #tpu.memory_space<vmem>>, vector<24x128xbf16>,
    %c0_9 = arith.constant 0 : index
    %c0_10 = arith.constant 0 : index
    %8 = vector.load %arg2[%c0_9, %c0_10] : memref<256x2xbf16, #tpu.memory_space<vmem>>, vector<256x1xbf16>
    %c0_11 = arith.constant 0 : index
    %c1 = arith.constant 1 : index
    %9 = vector.load %arg2[%c0_11, %c1] : memref<256x2xbf16, #tpu.memory_space<vmem>>, vector<256x1xbf16>
    %c0_12 = arith.constant 0 : index
    %c0_13 = arith.constant 0 : index
    %c0_14 = arith.constant 0 : index
    %c0_15 = arith.constant 0 : index
    %10 = vector.load %arg1[%c0_12, %c0_13, %c0_14, %c0_15] : memref<1x16x16x32xf32, #tpu.memory_space<vmem>>, vector<1x16x16x32xf32>
    %11 = vector.shape_cast %10 : vector<1x16x16x32xf32> to vector<16x16x32xf32>
    %12 = vector.shape_cast %11 : vector<16x16x32xf32> to vector<256x32xf32>
    %13 = arith.truncf %12 : vector<256x32xf32> to vector<256x32xbf16>
    %c0_16 = arith.constant 0 : index
    %c0_17 = arith.constant 0 : index
    %14 = vector.load %arg13[%c0_16, %c0_17] : memref<32x128xbf16, #tpu.memory_space<vmem>>, vector<32x128xbf16>
    %cst_18 = arith.constant dense<0.000000e+00> : vector<256x128xf32>
    %15 = tpu.matmul %13, %14, %cst_18 {dimension_numbers = #tpu.dot_dimension_numbers<[1], [0], [0], [1], [0, 0, 1, 1], [], []>} : vector<256x32xbf16>, vector<32x128xbf16>, vector<256x128xf32> -> vector<256x128xf32>
    %c0_19 = arith.constant 0 : index
    %c0_20 = arith.constant 0 : index
    %16 = vector.load %arg14[%c0_19, %c0_20] : memref<1x128xf32, #tpu.memory_space<vmem>>, vector<1x128xf32>
    %17 = vector.broadcast %16 : vector<1x128xf32> to vector<256x128xf32>
    %18 = arith.addf %15, %17 : vector<256x128xf32>
    %c0_21 = arith.constant 0 : index
    %c0_22 = arith.constant 0 : index
    %19 = vector.load %arg4[%c0_21, %c0_22] : memref<1x32xf32, #tpu.memory_space<vmem>>, vector<1x32xf32>
    %c0_23 = arith.constant 0 : index
    %c0_24 = arith.constant 0 : index
    %20 = vector.load %arg5[%c0_23, %c0_24] : memref<1x32xf32, #tpu.memory_space<vmem>>, vector<1x32xf32>
    %c0_25 = arith.constant 0 : index
    %c0_26 = arith.constant 0 : index
    %21 = vector.load %arg3[%c0_25, %c0_26] : memref<32x32xf32, #tpu.memory_space<vmem>>, vector<32x32xf32>
    %cst_27 = arith.constant dense<0.000000e+00> : vector<32xf32>
    %22 = vector.multi_reduction <add>, %12, %cst_27 [0] : vector<256x32xf32> to vector<32xf32>
    %23 = vector.shape_cast %22 : vector<32xf32> to vector<1x32xf32>
    %24 = arith.mulf %12, %12 : vector<256x32xf32>
    %cst_28 = arith.constant dense<0.000000e+00> : vector<32xf32>
    %25 = vector.multi_reduction <add>, %24, %cst_28 [0] : vector<256x32xf32> to vector<32xf32>
    %26 = vector.shape_cast %25 : vector<32xf32> to vector<1x32xf32>
    %cst_29 = arith.constant dense<0.000000e+00> : vector<1x32xf32>
    %27 = tpu.matmul %23, %21, %cst_29 {dimension_numbers = #tpu.dot_dimension_numbers<[1], [0], [0], [1], [0, 0, 1, 1], [], []>} : vector<1x32xf32>, vector<32x32xf32>, vector<1x32xf32> -> vector<1x32xf32>
    %cst_30 = arith.constant dense<0.000000e+00> : vector<1x32xf32>
    %28 = tpu.matmul %26, %21, %cst_30 {dimension_numbers = #tpu.dot_dimension_numbers<[1], [0], [0], [1], [0, 0, 1, 1], [], []>} : vector<1x32xf32>, vector<32x32xf32>, vector<1x32xf32> -> vector<1x32xf32>
    %29 = arith.mulf %27, %27 : vector<1x32xf32>
    %30 = arith.subf %28, %29 : vector<1x32xf32>
    %cst_31 = arith.constant 0.000000e+00 : f32
    %31 = vector.broadcast %cst_31 : f32 to vector<1x32xf32>
    %32 = arith.maximumf %30, %31 : vector<1x32xf32>
    %cst_32 = arith.constant 9.99999974E-6 : f32
    %33 = vector.broadcast %cst_32 : f32 to vector<1x32xf32>
    %34 = arith.addf %32, %33 : vector<1x32xf32>
    %35 = math.rsqrt %34 : vector<1x32xf32>
    %36 = arith.mulf %19, %35 : vector<1x32xf32>
    %37 = arith.mulf %27, %36 : vector<1x32xf32>
    %38 = arith.subf %20, %37 : vector<1x32xf32>
    %39 = vector.broadcast %36 : vector<1x32xf32> to vector<256x32xf32>
    %40 = arith.mulf %12, %39 : vector<256x32xf32>
    %41 = vector.broadcast %38 : vector<1x32xf32> to vector<256x32xf32>
    %42 = arith.addf %40, %41 : vector<256x32xf32>
    %43 = arith.negf %42 : vector<256x32xf32>
    %44 = math.exp %43 : vector<256x32xf32>
    %cst_33 = arith.constant 1.000000e+00 : f32
    %45 = vector.broadcast %cst_33 : f32 to vector<256x32xf32>
    %46 = arith.addf %45, %44 : vector<256x32xf32>
    %47 = arith.divf %45, %46 : vector<256x32xf32>
    %48 = arith.mulf %42, %47 : vector<256x32xf32>
    %49 = arith.truncf %48 : vector<256x32xf32> to vector<256x32xbf16>
    %c24 = arith.constant 24 : index
    %c0_34 = arith.constant 0 : index
    %50 = vector.load %arg16[%c24, %c0_34] : memref<304x32xbf16, #tpu.memory_space<vmem>>, vector<256x32xbf16>
    tpu.vector_store %arg16[%c24, %c0_34], %49 {strides = array<i32>} : memref<304x32xbf16, #tpu.memory_space<vmem>>, vector<256x32xbf16>,
    %c7 = arith.constant 7 : index
    %c0_35 = arith.constant 0 : index
    %51 = vector.load %arg16[%c7, %c0_35] : memref<304x32xbf16, #tpu.memory_space<vmem>>, vector<256x32xbf16>
    %52 = vector.broadcast %8 : vector<256x1xbf16> to vector<256x32xbf16>
    %53 = arith.mulf %51, %52 : vector<256x32xbf16>
    %c0_36 = arith.constant 0 : index
    %c0_37 = arith.constant 0 : index
    %54 = vector.load %arg6[%c0_36, %c0_37] : memref<288x128xbf16, #tpu.memory_space<vmem>>, vector<32x128xbf16>
    %cst_38 = arith.constant dense<0.000000e+00> : vector<256x128xf32>
    %55 = tpu.matmul %53, %54, %cst_38 {dimension_numbers = #tpu.dot_dimension_numbers<[1], [0], [0], [1], [0, 0, 1, 1], [], []>} : vector<256x32xbf16>, vector<32x128xbf16>, vector<256x128xf32> -> vector<256x128xf32>
    %c8 = arith.constant 8 : index
    %c0_39 = arith.constant 0 : index
    %56 = vector.load %arg16[%c8, %c0_39] : memref<304x32xbf16, #tpu.memory_space<vmem>>, vector<256x32xbf16>
    %c32 = arith.constant 32 : index
    %c0_40 = arith.constant 0 : index
    %57 = vector.load %arg6[%c32, %c0_40] : memref<288x128xbf16, #tpu.memory_space<vmem>>, vector<32x128xbf16>
    %cst_41 = arith.constant dense<0.000000e+00> : vector<256x128xf32>
    %58 = tpu.matmul %56, %57, %cst_41 {dimension_numbers = #tpu.dot_dimension_numbers<[1], [0], [0], [1], [0, 0, 1, 1], [], []>} : vector<256x32xbf16>, vector<32x128xbf16>, vector<256x128xf32> -> vector<256x128xf32>
    %59 = arith.addf %55, %58 : vector<256x128xf32>
    %c9 = arith.constant 9 : index
    %c0_42 = arith.constant 0 : index
    %60 = vector.load %arg16[%c9, %c0_42] : memref<304x32xbf16, #tpu.memory_space<vmem>>, vector<256x32xbf16>
    %61 = vector.broadcast %9 : vector<256x1xbf16> to vector<256x32xbf16>
    %62 = arith.mulf %60, %61 : vector<256x32xbf16>
    %c64 = arith.constant 64 : index
    %c0_43 = arith.constant 0 : index
    %63 = vector.load %arg6[%c64, %c0_43] : memref<288x128xbf16, #tpu.memory_space<vmem>>, vector<32x128xbf16>
    %cst_44 = arith.constant dense<0.000000e+00> : vector<256x128xf32>
    %64 = tpu.matmul %62, %63, %cst_44 {dimension_numbers = #tpu.dot_dimension_numbers<[1], [0], [0], [1], [0, 0, 1, 1], [], []>} : vector<256x32xbf16>, vector<32x128xbf16>, vector<256x128xf32> -> vector<256x128xf32>
    %65 = arith.addf %59, %64 : vector<256x128xf32>
    %c23 = arith.constant 23 : index
    %c0_45 = arith.constant 0 : index
    %66 = vector.load %arg16[%c23, %c0_45] : memref<304x32xbf16, #tpu.memory_space<vmem>>, vector<256x32xbf16>
    %67 = vector.broadcast %8 : vector<256x1xbf16> to vector<256x32xbf16>
    %68 = arith.mulf %66, %67 : vector<256x32xbf16>
    %c96 = arith.constant 96 : index
    %c0_46 = arith.constant 0 : index
    %69 = vector.load %arg6[%c96, %c0_46] : memref<288x128xbf16, #tpu.memory_space<vmem>>, vector<32x128xbf16>
    %cst_47 = arith.constant dense<0.000000e+00> : vector<256x128xf32>
    %70 = tpu.matmul %68, %69, %cst_47 {dimension_numbers = #tpu.dot_dimension_numbers<[1], [0], [0], [1], [0, 0, 1, 1], [], []>} : vector<256x32xbf16>, vector<32x128xbf16>, vector<256x128xf32> -> vector<256x128xf32>
    %71 = arith.addf %65, %70 : vector<256x128xf32>
    %c24_48 = arith.constant 24 : index
    %c0_49 = arith.constant 0 : index
    %72 = vector.load %arg16[%c24_48, %c0_49] : memref<304x32xbf16, #tpu.memory_space<vmem>>, vector<256x32xbf16>
    %c128 = arith.constant 128 : index
    %c0_50 = arith.constant 0 : index
    %73 = vector.load %arg6[%c128, %c0_50] : memref<288x128xbf16, #tpu.memory_space<vmem>>, vector<32x128xbf16>
    %cst_51 = arith.constant dense<0.000000e+00> : vector<256x128xf32>
    %74 = tpu.matmul %72, %73, %cst_51 {dimension_numbers = #tpu.dot_dimension_numbers<[1], [0], [0], [1], [0, 0, 1, 1], [], []>} : vector<256x32xbf16>, vector<32x128xbf16>, vector<256x128xf32> -> vector<256x128xf32>
    %75 = arith.addf %71, %74 : vector<256x128xf32>
    %c25 = arith.constant 25 : index
    %c0_52 = arith.constant 0 : index
    %76 = vector.load %arg16[%c25, %c0_52] : memref<304x32xbf16, #tpu.memory_space<vmem>>, vector<256x32xbf16>
    %77 = vector.broadcast %9 : vector<256x1xbf16> to vector<256x32xbf16>
    %78 = arith.mulf %76, %77 : vector<256x32xbf16>
    %c160 = arith.constant 160 : index
    %c0_53 = arith.constant 0 : index
    %79 = vector.load %arg6[%c160, %c0_53] : memref<288x128xbf16, #tpu.memory_space<vmem>>, vector<32x128xbf16>
    %cst_54 = arith.constant dense<0.000000e+00> : vector<256x128xf32>
    %80 = tpu.matmul %78, %79, %cst_54 {dimension_numbers = #tpu.dot_dimension_numbers<[1], [0], [0], [1], [0, 0, 1, 1], [], []>} : vector<256x32xbf16>, vector<32x128xbf16>, vector<256x128xf32> -> vector<256x128xf32>
    %81 = arith.addf %75, %80 : vector<256x128xf32>
    %c39 = arith.constant 39 : index
    %c0_55 = arith.constant 0 : index
    %82 = vector.load %arg16[%c39, %c0_55] : memref<304x32xbf16, #tpu.memory_space<vmem>>, vector<256x32xbf16>
    %83 = vector.broadcast %8 : vector<256x1xbf16> to vector<256x32xbf16>
    %84 = arith.mulf %82, %83 : vector<256x32xbf16>
    %c192 = arith.constant 192 : index
    %c0_56 = arith.constant 0 : index
    %85 = vector.load %arg6[%c192, %c0_56] : memref<288x128xbf16, #tpu.memory_space<vmem>>, vector<32x128xbf16>
    %cst_57 = arith.constant dense<0.000000e+00> : vector<256x128xf32>
    %86 = tpu.matmul %84, %85, %cst_57 {dimension_numbers = #tpu.dot_dimension_numbers<[1], [0], [0], [1], [0, 0, 1, 1], [], []>} : vector<256x32xbf16>, vector<32x128xbf16>, vector<256x128xf32> -> vector<256x128xf32>
    %87 = arith.addf %81, %86 : vector<256x128xf32>
    %c40 = arith.constant 40 : index
    %c0_58 = arith.constant 0 : index
    %88 = vector.load %arg16[%c40, %c0_58] : memref<304x32xbf16, #tpu.memory_space<vmem>>, vector<256x32xbf16>
    %c224 = arith.constant 224 : index
    %c0_59 = arith.constant 0 : index
    %89 = vector.load %arg6[%c224, %c0_59] : memref<288x128xbf16, #tpu.memory_space<vmem>>, vector<32x128xbf16>
    %cst_60 = arith.constant dense<0.000000e+00> : vector<256x128xf32>
    %90 = tpu.matmul %88, %89, %cst_60 {dimension_numbers = #tpu.dot_dimension_numbers<[1], [0], [0], [1], [0, 0, 1, 1], [], []>} : vector<256x32xbf16>, vector<32x128xbf16>, vector<256x128xf32> -> vector<256x128xf32>
    %91 = arith.addf %87, %90 : vector<256x128xf32>
    %c41 = arith.constant 41 : index
    %c0_61 = arith.constant 0 : index
    %92 = vector.load %arg16[%c41, %c0_61] : memref<304x32xbf16, #tpu.memory_space<vmem>>, vector<256x32xbf16>
    %93 = vector.broadcast %9 : vector<256x1xbf16> to vector<256x32xbf16>
    %94 = arith.mulf %92, %93 : vector<256x32xbf16>
    %c256 = arith.constant 256 : index
    %c0_62 = arith.constant 0 : index
    %95 = vector.load %arg6[%c256, %c0_62] : memref<288x128xbf16, #tpu.memory_space<vmem>>, vector<32x128xbf16>
    %cst_63 = arith.constant dense<0.000000e+00> : vector<256x128xf32>
    %96 = tpu.matmul %94, %95, %cst_63 {dimension_numbers = #tpu.dot_dimension_numbers<[1], [0], [0], [1], [0, 0, 1, 1], [], []>} : vector<256x32xbf16>, vector<32x128xbf16>, vector<256x128xf32> -> vector<256x128xf32>
    %97 = arith.addf %91, %96 : vector<256x128xf32>
    %c0_64 = arith.constant 0 : index
    %c0_65 = arith.constant 0 : index
    %98 = vector.load %arg7[%c0_64, %c0_65] : memref<1x128xf32, #tpu.memory_space<vmem>>, vector<1x128xf32>
    %99 = vector.broadcast %98 : vector<1x128xf32> to vector<256x128xf32>
    %100 = arith.addf %97, %99 : vector<256x128xf32>
    %c0_66 = arith.constant 0 : index
    %c0_67 = arith.constant 0 : index
    %101 = vector.load %arg9[%c0_66, %c0_67] : memref<1x128xf32, #tpu.memory_space<vmem>>, vector<1x128xf32>
    %c0_68 = arith.constant 0 : index
    %c0_69 = arith.constant 0 : index
    %102 = vector.load %arg10[%c0_68, %c0_69] : memref<1x128xf32, #tpu.memory_space<vmem>>, vector<1x128xf32>
    %c0_70 = arith.constant 0 : index
    %c0_71 = arith.constant 0 : index
    %103 = vector.load %arg8[%c0_70, %c0_71] : memref<128x128xf32, #tpu.memory_space<vmem>>, vector<128x128xf32>
    %cst_72 = arith.constant dense<0.000000e+00> : vector<128xf32>
    %104 = vector.multi_reduction <add>, %100, %cst_72 [0] : vector<256x128xf32> to vector<128xf32>
    %105 = vector.shape_cast %104 : vector<128xf32> to vector<1x128xf32>
    %106 = arith.mulf %100, %100 : vector<256x128xf32>
    %cst_73 = arith.constant dense<0.000000e+00> : vector<128xf32>
    %107 = vector.multi_reduction <add>, %106, %cst_73 [0] : vector<256x128xf32> to vector<128xf32>
    %108 = vector.shape_cast %107 : vector<128xf32> to vector<1x128xf32>
    %cst_74 = arith.constant dense<0.000000e+00> : vector<1x128xf32>
    %109 = tpu.matmul %105, %103, %cst_74 {dimension_numbers = #tpu.dot_dimension_numbers<[1], [0], [0], [1], [0, 0, 1, 1], [], []>} : vector<1x128xf32>, vector<128x128xf32>, vector<1x128xf32> -> vector<1x128xf32>
    %cst_75 = arith.constant dense<0.000000e+00> : vector<1x128xf32>
    %110 = tpu.matmul %108, %103, %cst_75 {dimension_numbers = #tpu.dot_dimension_numbers<[1], [0], [0], [1], [0, 0, 1, 1], [], []>} : vector<1x128xf32>, vector<128x128xf32>, vector<1x128xf32> -> vector<1x128xf32>
    %111 = arith.mulf %109, %109 : vector<1x128xf32>
    %112 = arith.subf %110, %111 : vector<1x128xf32>
    %cst_76 = arith.constant 0.000000e+00 : f32
    %113 = vector.broadcast %cst_76 : f32 to vector<1x128xf32>
    %114 = arith.maximumf %112, %113 : vector<1x128xf32>
    %cst_77 = arith.constant 9.99999974E-6 : f32
    %115 = vector.broadcast %cst_77 : f32 to vector<1x128xf32>
    %116 = arith.addf %114, %115 : vector<1x128xf32>
    %117 = math.rsqrt %116 : vector<1x128xf32>
    %118 = arith.mulf %101, %117 : vector<1x128xf32>
    %119 = arith.mulf %109, %118 : vector<1x128xf32>
    %120 = arith.subf %102, %119 : vector<1x128xf32>
    %121 = vector.broadcast %118 : vector<1x128xf32> to vector<256x128xf32>
    %122 = arith.mulf %100, %121 : vector<256x128xf32>
    %123 = vector.broadcast %120 : vector<1x128xf32> to vector<256x128xf32>
    %124 = arith.addf %122, %123 : vector<256x128xf32>
    %125 = arith.negf %124 : vector<256x128xf32>
    %126 = math.exp %125 : vector<256x128xf32>
    %cst_78 = arith.constant 1.000000e+00 : f32
    %127 = vector.broadcast %cst_78 : f32 to vector<256x128xf32>
    %128 = arith.addf %127, %126 : vector<256x128xf32>
    %129 = arith.divf %127, %128 : vector<256x128xf32>
    %130 = arith.mulf %124, %129 : vector<256x128xf32>
    %131 = arith.truncf %130 : vector<256x128xf32> to vector<256x128xbf16>
    %c24_79 = arith.constant 24 : index
    %c0_80 = arith.constant 0 : index
    %132 = vector.load %arg18[%c24_79, %c0_80] : memref<304x128xbf16, #tpu.memory_space<vmem>>, vector<256x128xbf16>
    tpu.vector_store %arg18[%c24_79, %c0_80], %131 {strides = array<i32>} : memref<304x128xbf16, #tpu.memory_space<vmem>>, vector<256x128xbf16>,
    %c7_81 = arith.constant 7 : index
    %c0_82 = arith.constant 0 : index
    %133 = vector.load %arg18[%c7_81, %c0_82] : memref<304x128xbf16, #tpu.memory_space<vmem>>, vector<256x128xbf16>
    %134 = vector.broadcast %8 : vector<256x1xbf16> to vector<256x128xbf16>
    %135 = arith.mulf %133, %134 : vector<256x128xbf16>
    %c0_83 = arith.constant 0 : index
    %c0_84 = arith.constant 0 : index
    %136 = vector.load %arg19[%c0_83, %c0_84] : memref<256x1152xbf16, #tpu.memory_space<vmem>>, vector<256x128xbf16>
    tpu.vector_store %arg19[%c0_83, %c0_84], %135 {strides = array<i32>} : memref<256x1152xbf16, #tpu.memory_space<vmem>>, vector<256x128xbf16>,
    %c8_85 = arith.constant 8 : index
    %c0_86 = arith.constant 0 : index
    %137 = vector.load %arg18[%c8_85, %c0_86] : memref<304x128xbf16, #tpu.memory_space<vmem>>, vector<256x128xbf16>
    %c0_87 = arith.constant 0 : index
    %c128_88 = arith.constant 128 : index
    %138 = vector.load %arg19[%c0_87, %c128_88] : memref<256x1152xbf16, #tpu.memory_space<vmem>>, vector<256x128xbf16>
    tpu.vector_store %arg19[%c0_87, %c128_88], %137 {strides = array<i32>} : memref<256x1152xbf16, #tpu.memory_space<vmem>>, vector<256x128xbf16>,
    %c9_89 = arith.constant 9 : index
    %c0_90 = arith.constant 0 : index
    %139 = vector.load %arg18[%c9_89, %c0_90] : memref<304x128xbf16, #tpu.memory_space<vmem>>, vector<256x128xbf16>
    %140 = vector.broadcast %9 : vector<256x1xbf16> to vector<256x128xbf16>
    %141 = arith.mulf %139, %140 : vector<256x128xbf16>
    %c0_91 = arith.constant 0 : index
    %c256_92 = arith.constant 256 : index
    %142 = vector.load %arg19[%c0_91, %c256_92] : memref<256x1152xbf16, #tpu.memory_space<vmem>>, vector<256x128xbf16>
    tpu.vector_store %arg19[%c0_91, %c256_92], %141 {strides = array<i32>} : memref<256x1152xbf16, #tpu.memory_space<vmem>>, vector<256x128xbf16>,
    %c23_93 = arith.constant 23 : index
    %c0_94 = arith.constant 0 : index
    %143 = vector.load %arg18[%c23_93, %c0_94] : memref<304x128xbf16, #tpu.memory_space<vmem>>, vector<256x128xbf16>
    %144 = vector.broadcast %8 : vector<256x1xbf16> to vector<256x128xbf16>
    %145 = arith.mulf %143, %144 : vector<256x128xbf16>
    %c0_95 = arith.constant 0 : index
    %c384 = arith.constant 384 : index
    %146 = vector.load %arg19[%c0_95, %c384] : memref<256x1152xbf16, #tpu.memory_space<vmem>>, vector<256x128xbf16>
    tpu.vector_store %arg19[%c0_95, %c384], %145 {strides = array<i32>} : memref<256x1152xbf16, #tpu.memory_space<vmem>>, vector<256x128xbf16>,
    %c24_96 = arith.constant 24 : index
    %c0_97 = arith.constant 0 : index
    %147 = vector.load %arg18[%c24_96, %c0_97] : memref<304x128xbf16, #tpu.memory_space<vmem>>, vector<256x128xbf16>
    %c0_98 = arith.constant 0 : index
    %c512 = arith.constant 512 : index
    %148 = vector.load %arg19[%c0_98, %c512] : memref<256x1152xbf16, #tpu.memory_space<vmem>>, vector<256x128xbf16>
    tpu.vector_store %arg19[%c0_98, %c512], %147 {strides = array<i32>} : memref<256x1152xbf16, #tpu.memory_space<vmem>>, vector<256x128xbf16>,
    %c25_99 = arith.constant 25 : index
    %c0_100 = arith.constant 0 : index
    %149 = vector.load %arg18[%c25_99, %c0_100] : memref<304x128xbf16, #tpu.memory_space<vmem>>, vector<256x128xbf16>
    %150 = vector.broadcast %9 : vector<256x1xbf16> to vector<256x128xbf16>
    %151 = arith.mulf %149, %150 : vector<256x128xbf16>
    %c0_101 = arith.constant 0 : index
    %c640 = arith.constant 640 : index
    %152 = vector.load %arg19[%c0_101, %c640] : memref<256x1152xbf16, #tpu.memory_space<vmem>>, vector<256x128xbf16>
    tpu.vector_store %arg19[%c0_101, %c640], %151 {strides = array<i32>} : memref<256x1152xbf16, #tpu.memory_space<vmem>>, vector<256x128xbf16>,
    %c39_102 = arith.constant 39 : index
    %c0_103 = arith.constant 0 : index
    %153 = vector.load %arg18[%c39_102, %c0_103] : memref<304x128xbf16, #tpu.memory_space<vmem>>, vector<256x128xbf16>
    %154 = vector.broadcast %8 : vector<256x1xbf16> to vector<256x128xbf16>
    %155 = arith.mulf %153, %154 : vector<256x128xbf16>
    %c0_104 = arith.constant 0 : index
    %c768 = arith.constant 768 : index
    %156 = vector.load %arg19[%c0_104, %c768] : memref<256x1152xbf16, #tpu.memory_space<vmem>>, vector<256x128xbf16>
    tpu.vector_store %arg19[%c0_104, %c768], %155 {strides = array<i32>} : memref<256x1152xbf16, #tpu.memory_space<vmem>>, vector<256x128xbf16>,
    %c40_105 = arith.constant 40 : index
    %c0_106 = arith.constant 0 : index
    %157 = vector.load %arg18[%c40_105, %c0_106] : memref<304x128xbf16, #tpu.memory_space<vmem>>, vector<256x128xbf16>
    %c0_107 = arith.constant 0 : index
    %c896 = arith.constant 896 : index
    %158 = vector.load %arg19[%c0_107, %c896] : memref<256x1152xbf16, #tpu.memory_space<vmem>>, vector<256x128xbf16>
    tpu.vector_store %arg19[%c0_107, %c896], %157 {strides = array<i32>} : memref<256x1152xbf16, #tpu.memory_space<vmem>>, vector<256x128xbf16>,
    %c41_108 = arith.constant 41 : index
    %c0_109 = arith.constant 0 : index
    %159 = vector.load %arg18[%c41_108, %c0_109] : memref<304x128xbf16, #tpu.memory_space<vmem>>, vector<256x128xbf16>
    %160 = vector.broadcast %9 : vector<256x1xbf16> to vector<256x128xbf16>
    %161 = arith.mulf %159, %160 : vector<256x128xbf16>
    %c0_110 = arith.constant 0 : index
    %c1024 = arith.constant 1024 : index
    %162 = vector.load %arg19[%c0_110, %c1024] : memref<256x1152xbf16, #tpu.memory_space<vmem>>, vector<256x128xbf16>
    tpu.vector_store %arg19[%c0_110, %c1024], %161 {strides = array<i32>} : memref<256x1152xbf16, #tpu.memory_space<vmem>>, vector<256x128xbf16>,
    %c0_111 = arith.constant 0 : index
    %c0_112 = arith.constant 0 : index
    %163 = vector.load %arg19[%c0_111, %c0_112] : memref<256x1152xbf16, #tpu.memory_space<vmem>>, vector<256x1152xbf16>
    %c0_113 = arith.constant 0 : index
    %c0_114 = arith.constant 0 : index
    %164 = vector.load %arg11[%c0_113, %c0_114] : memref<1152x128xbf16, #tpu.memory_space<vmem>>, vector<1152x128xbf16>
    %cst_115 = arith.constant dense<0.000000e+00> : vector<256x128xf32>
    %165 = tpu.matmul %163, %164, %cst_115 {dimension_numbers = #tpu.dot_dimension_numbers<[1], [0], [0], [1], [0, 0, 1, 1], [], []>} : vector<256x1152xbf16>, vector<1152x128xbf16>, vector<256x128xf32> -> vector<256x128xf32>
    %c0_116 = arith.constant 0 : index
    %c0_117 = arith.constant 0 : index
    %166 = vector.load %arg12[%c0_116, %c0_117] : memref<1x128xf32, #tpu.memory_space<vmem>>, vector<1x128xf32>
    %167 = vector.broadcast %166 : vector<1x128xf32> to vector<256x128xf32>
    %168 = arith.addf %165, %167 : vector<256x128xf32>
    %169 = arith.addf %18, %168 : vector<256x128xf32>
    %170 = vector.shape_cast %169 : vector<256x128xf32> to vector<16x16x128xf32>
    %c0_118 = arith.constant 0 : index
    %c0_119 = arith.constant 0 : index
    %c0_120 = arith.constant 0 : index
    %c0_121 = arith.constant 0 : index
    %171 = vector.load %arg15[%c0_118, %c0_119, %c0_120, %c0_121] : memref<1x16x16x128xf32, #tpu.memory_space<vmem>>, vector<1x16x16x128xf32>
    %172 = vector.shape_cast %171 : vector<1x16x16x128xf32> to vector<16x16x128xf32>
    %173 = vector.shape_cast %170 : vector<16x16x128xf32> to vector<1x16x16x128xf32>
    tpu.vector_store %arg15[%c0_118, %c0_119, %c0_120, %c0_121], %173 {strides = array<i32>} : memref<1x16x16x128xf32, #tpu.memory_space<vmem>>, vector<1x16x16x128xf32>,
    return
  }
  func.func @transform_0(%arg0: i32) -> (i32, i32, i32, i32) {
    %c0_i32 = arith.constant 0 : i32
    %c0_i32_0 = arith.constant 0 : i32
    %c0_i32_1 = arith.constant 0 : i32
    %c0_i32_2 = arith.constant 0 : i32
    return %arg0, %c0_i32, %c0_i32_0, %c0_i32_1 : i32, i32, i32, i32
  }
  func.func @transform_1(%arg0: i32) -> (i32, i32) {
    %c0_i32 = arith.constant 0 : i32
    %c0_i32_0 = arith.constant 0 : i32
    %c0_i32_1 = arith.constant 0 : i32
    return %c0_i32, %c0_i32_0 : i32, i32
  }
  func.func @transform_2(%arg0: i32) -> (i32, i32) {
    %c0_i32 = arith.constant 0 : i32
    %c0_i32_0 = arith.constant 0 : i32
    %c0_i32_1 = arith.constant 0 : i32
    return %c0_i32, %c0_i32_0 : i32, i32
  }
  func.func @transform_3(%arg0: i32) -> (i32, i32) {
    %c0_i32 = arith.constant 0 : i32
    %c0_i32_0 = arith.constant 0 : i32
    %c0_i32_1 = arith.constant 0 : i32
    return %c0_i32, %c0_i32_0 : i32, i32
  }
  func.func @transform_4(%arg0: i32) -> (i32, i32) {
    %c0_i32 = arith.constant 0 : i32
    %c0_i32_0 = arith.constant 0 : i32
    %c0_i32_1 = arith.constant 0 : i32
    return %c0_i32, %c0_i32_0 : i32, i32
  }
  func.func @transform_5(%arg0: i32) -> (i32, i32) {
    %c0_i32 = arith.constant 0 : i32
    %c0_i32_0 = arith.constant 0 : i32
    %c0_i32_1 = arith.constant 0 : i32
    return %c0_i32, %c0_i32_0 : i32, i32
  }
  func.func @transform_6(%arg0: i32) -> (i32, i32) {
    %c0_i32 = arith.constant 0 : i32
    %c0_i32_0 = arith.constant 0 : i32
    %c0_i32_1 = arith.constant 0 : i32
    return %c0_i32, %c0_i32_0 : i32, i32
  }
  func.func @transform_7(%arg0: i32) -> (i32, i32) {
    %c0_i32 = arith.constant 0 : i32
    %c0_i32_0 = arith.constant 0 : i32
    %c0_i32_1 = arith.constant 0 : i32
    return %c0_i32, %c0_i32_0 : i32, i32
  }
  func.func @transform_8(%arg0: i32) -> (i32, i32) {
    %c0_i32 = arith.constant 0 : i32
    %c0_i32_0 = arith.constant 0 : i32
    %c0_i32_1 = arith.constant 0 : i32
    return %c0_i32, %c0_i32_0 : i32, i32
  }
  func.func @transform_9(%arg0: i32) -> (i32, i32) {
    %c0_i32 = arith.constant 0 : i32
    %c0_i32_0 = arith.constant 0 : i32
    %c0_i32_1 = arith.constant 0 : i32
    return %c0_i32, %c0_i32_0 : i32, i32
  }
  func.func @transform_10(%arg0: i32) -> (i32, i32) {
    %c0_i32 = arith.constant 0 : i32
    %c0_i32_0 = arith.constant 0 : i32
    %c0_i32_1 = arith.constant 0 : i32
    return %c0_i32, %c0_i32_0 : i32, i32
  }
  func.func @transform_11(%arg0: i32) -> (i32, i32) {
    %c0_i32 = arith.constant 0 : i32
    %c0_i32_0 = arith.constant 0 : i32
    %c0_i32_1 = arith.constant 0 : i32
    return %c0_i32, %c0_i32_0 : i32, i32
  }
  func.func @transform_12(%arg0: i32) -> (i32, i32) {
    %c0_i32 = arith.constant 0 : i32
    %c0_i32_0 = arith.constant 0 : i32
    %c0_i32_1 = arith.constant 0 : i32
    return %c0_i32, %c0_i32_0 : i32, i32
  }
  func.func @transform_13(%arg0: i32) -> (i32, i32) {
    %c0_i32 = arith.constant 0 : i32
    %c0_i32_0 = arith.constant 0 : i32
    %c0_i32_1 = arith.constant 0 : i32
    return %c0_i32, %c0_i32_0 : i32, i32
  }
  func.func @transform_14(%arg0: i32) -> (i32, i32, i32, i32) {
    %c0_i32 = arith.constant 0 : i32
    %c0_i32_0 = arith.constant 0 : i32
    %c0_i32_1 = arith.constant 0 : i32
    %c0_i32_2 = arith.constant 0 : i32
    return %arg0, %c0_i32, %c0_i32_0, %c0_i32_1 : i32, i32, i32, i32
  }
}

</mosaic_0001>

<bundles_post_ra>
// kernel: resblock_pallas.1
= control target key start
LH: loop header
LB: loop body
LE: loop exit
PB: predicated region body
PF: predicated region fallthrough
CT: control target
= control target key end

     0   :  { %s17171_s0 = inlined_call_operand.hbm [shape: f32[2,16,16,32], index: 0, kind: input, shape index: {}]   ;;  %s17172_s1 = inlined_call_operand.vmem [shape: bf16[256,2], index: 1, kind: input, shape index: {}]   ;;  %s17173_s2 = inlined_call_operand.vmem [shape: f32[32,32], index: 2, kind: input, shape index: {}]   ;;  %s17174_s3 = inlined_call_operand.vmem [shape: f32[1,32], index: 3, kind: input, shape index: {}]   ;;  %s17175_s4 = inlined_call_operand.vmem [shape: f32[1,32], index: 4, kind: input, shape index: {}]   ;;  %s17176_s5 = inlined_call_operand.vmem [shape: bf16[288,128], index: 5, kind: input, shape index: {}]   ;;  %s17177_s6 = inlined_call_operand.vmem [shape: f32[1,128], index: 6, kind: input, shape index: {}]   ;;  %s17178_s7 = inlined_call_operand.vmem [shape: f32[128,128], index: 7, kind: input, shape index: {}]   ;;  %s17179_s8 = inlined_call_operand.vmem [shape: f32[1,128], index: 8, kind: input, shape index: {}]   ;;  %s17180_s9 = inlined_call_operand.vmem [shape: f32[1,128], index: 9, kind: input, shape index: {}]   ;;  %s17181_s10 = inlined_call_operand.hbm [shape: bf16[1152,128], index: 10, kind: input, shape index: {}]   ;;  %s17182_s11 = inlined_call_operand.vmem [shape: f32[1,128], index: 11, kind: input, shape index: {}]   ;;  %s17183_s12 = inlined_call_operand.vmem [shape: bf16[32,128], index: 12, kind: input, shape index: {}]   ;;  %s17184_s13 = inlined_call_operand.vmem [shape: f32[1,128], index: 13, kind: input, shape index: {}]   ;;  %s17185_s14 = inlined_call_operand.hbm [shape: f32[2,16,16,128], index: 14, kind: output, shape index: {}]  }
   0x1   :  { %17364 = sst [smem:[#allocation89_spill]] %s17180_s9 }
   0x2   :  { %17365 = sst [smem:[#allocation90_spill]] %s17182_s11 }
   0x3   :  { %17366 = sst [smem:[#allocation91_spill]] %s17184_s13 }
   0x4   :  { %17367 = sst [smem:[#allocation92_spill]] %s17185_s14 }
   0x5   :  { %19 = vsyncpa [#allocation7], 0 }
   0x6   :  { %21 = vsyncpa [#allocation7 + $0x1], 0 }
   0x7   :  { %22 = vsyncpa [#allocation10], 0 }
   0x8   :  { %23 = vsyncpa [#allocation8], 0 }
   0x9   :  { %25 = vsyncpa [#allocation8 + $0x1], 0  ;;  %s12966_s29 = smov 0   ;;  %s12968_s30 = smov 0  }
   0xa   :  { %s12970_s15 = smov 0   ;;  %s12972_s16 = smov 0  }
   0xb LB: > { %17368 = sst [smem:[#allocation15_spill]] %s12862_s29  ;;  %s12987_s17 = sadd.s32 4294967295, %s12874_s16   ;;  %s12874_s16 = sphi %s12972_s16, %s17757_s16   ;;  %s12870_s15 = sphi %s12970_s15, %s17760_s15   ;;  %s12866_s30 = sphi %s12968_s30, %s17759_s30   ;;  %s12862_s29 = sphi %s12966_s29, %s17758_s29  }
   0xc   : > { %s10247_s18 = sadd.s32 4294967294, %s12874_s16   ;;  %p51_p0 = scmp.ne.s32.totalorder %s12866_s30, %s12862_s29 }
   0xd   : > { %p17191_p1 = scmp.eq.s32.totalorder %s12987_s17, 0  ;;  %p354_p3 = scmp.eq.s32.totalorder %s10247_s18, 1 }
   0xe   : > { %p10248_p5 = scmp.ge.s32.totalorder %s12874_s16, 1  ;;  %p361_p7 = scmp.lt.s32.totalorder %s12874_s16, 3 }
   0xf   : > { %p12996_p4 = por %p17191_p1, %p51_p0  ;;  %p13001_p6 = por %p354_p3, %p51_p0 }
  0x10   : > { %p13006_p8 = pnand %p10248_p5, %p361_p7  ;;  %s12876_s22 = smov [#allocation9]  }
  0x11   : > { %s17369_s19 = scalar_select %p12996_p4, 1, 0 }
  0x12   : > { %s17370_s20 = scalar_select %p13001_p6, 1, 0 }
  0x13   : > { %s17372_s21 = scalar_select %p13006_p8, 1, 0 }
  0x14   : > { %17371 = sst [smem:[#allocation16_spill]] %s17370_s20  ;;  %s400_s23 = sshll.u32 %s12876_s22, 4  ;;  %s13010_s23 = int_to_ptr.vmem [resolvable:$true] %s400_s23 }
  0x15   : > { %p12250_p9 = pneg %p13006_p8  ;;  %s13022_s25 = sadd.s32 1, %s12874_s16  }
  0x16   : > { %17374 = sst [smem:[#allocation17_spill]] %s13022_s25  ;;  %s38_s26 = sadd.s32 1, %s12870_s15 }
  0x17   : > { %p13017_p11 = pnand %p12250_p9, %p17191_p1  ;;  %s35_s27 = ssub.s32 %s12874_s16, %s13022_s25 }
  0x18   : > { %s12746_s22 = scalar_lea.hbm %s17181_s10, 9216 }
  0x19   : > { %p12747_p12 = scmp.ne.s32.totalorder %s17181_s10, %s12746_s22  ;;  %p12748_p13 = pneg %p13017_p11 }
  0x1a   : > { %p12753_p5 = scmp.lt.u32.totalorder %s12746_s22, %s17181_s10 }
  0x1b   : > { %p12749_p0 = pnand %p12748_p13, %p12747_p12 }
  0x1d   : > { %p12750_p3 = pneg %p12749_p0 }
  0x1f   : > { %p12755_p7 = pnand %p12753_p5, %p12750_p3 }
  0x21   : > { %12758 = shalt.err (!%p12755_p7)
}
  0x22   : > { %s12759_s25 = scalar_lea.vmem %s13010_s23, 9216  ;;  %p12767_p2 = scmp.lt.s32.totalorder %s13010_s23, %s13010_s23 }
  0x23   : > { %p12760_p9 = scmp.ne.s32.totalorder %s13010_s23, %s12759_s25  ;;  %p12768_p6 = scmp.lt.s32.totalorder %s12759_s25, %s12759_s25 }
  0x25   : > { %p12762_p10 = pnand %p12760_p9, %p12748_p13  ;;  %p12769_p4 = por %p12768_p6, %p12767_p2 }
  0x27   : > { %p12763_p1 = pneg %p12762_p10 }
  0x29   : > { %p12770_p8 = pnand %p12769_p4, %p12763_p1 }
  0x2b   : > { %12773 = shalt.err (!%p12770_p8)
}
  0x2c   : > { %s12877_s29 = smov 64   ;;  %s12878_s13 = smov 4  }
  0x2d   : > { %12253 = dma.hbm_to_vmem [thread:$0]  (!%p13017_p11), %s17181_s10, 9216, %s13010_s23, [#allocation10], %s12877_s29, %s12877_s29, %s12878_s13  }
  0x2e   : > { %p36_p2 = scmp.eq.s32.totalorder %s35_s27, 0  ;;  %p45_p1 = scmp.ne.s32.totalorder %s12870_s15, %s12866_s30 }
  0x2f   : > { %p46_p4 = scmp.eq.s32.totalorder %s12874_s16, 0  ;;  %p12263_p6 = scmp.lt.s32.totalorder %s12874_s16, 2 }
  0x30   : > { %s13053_s25 = scalar_select %p36_p2, %s12870_s15, %s38_s26  }
  0x31   : > { %p47_p8 = por %p46_p4, %p45_p1  ;;  %p17375_p10 = scmp.eq.s32.totalorder %s12987_s17, 1 }
  0x32   : > { %s423_s18 = sand.u32 1, %s12870_s15   ;;  %s10616_s22 = sshll.u32 %s12874_s16, 12 }
  0x33   : > { %p13057_p12 = por %p17375_p10, %p45_p1  ;;  %s10251_s11 = sshll.u32 %s423_s18, 8 }
  0x34   : > { %s13066_s14 = scalar_lea.hbm %s17171_s0, %s10616_s22  ;;  %s427_s23 = scalar_lea.vmem [#allocation6], %s10251_s11 }
  0x35   : > { %s434_s26 = sshll.u32 %s427_s23, 4  ;;  %p13068_p11 = pnand %p12263_p6, %p47_p8  ;;  %s13072_s26 = int_to_ptr.vmem [resolvable:$true] %s434_s26 }
  0x36   : > { %s13074_s29 = scalar_lea.sflag [#allocation7], %s423_s18  ;;  %s12774_s13 = scalar_lea.hbm %s13066_s14, 4096 }
  0x37   : > { %p12775_p13 = scmp.ne.s32.totalorder %s13066_s14, %s12774_s13  ;;  %p12776_p0 = pneg %p13068_p11 }
  0x38   : > { %s12779_s20 = scalar_lea.hbm %s17171_s0, 8192  ;;  %p12780_p7 = scmp.lt.u32.totalorder %s13066_s14, %s17171_s0 }
  0x39   : > { %p12777_p3 = pnand %p12776_p0, %p12775_p13  ;;  %p12781_p9 = scmp.lt.u32.totalorder %s12779_s20, %s12774_s13 }
  0x3a   : > { %p12783_p1 = scmp.lt.u32.totalorder %s12774_s13, %s13066_s14 }
  0x3b   : > { %p12778_p5 = pneg %p12777_p3  ;;  %p12782_p2 = por %p12781_p9, %p12780_p7 }
  0x3d   : > { %p12784_p4 = por %p12783_p1, %p12782_p2 }
  0x3f   : > { %p12785_p6 = pnand %p12784_p4, %p12778_p5 }
  0x41   : > { %12788 = shalt.err (!%p12785_p6)
}
  0x42   : > { %s12789_s18 = scalar_lea.vmem %s13072_s26, 4096  ;;  %s12879_s23 = smov [#allocation6]  }
  0x43   : > { %p12790_p8 = scmp.ne.s32.totalorder %s13072_s26, %s12789_s18  ;;  %s12794_s9 = sshll.u32 %s12879_s23, 4  ;;  %s12795_s9 = int_to_ptr.vmem [resolvable:$false] %s12794_s9 }
  0x44   : > { %s12796_s11 = scalar_lea.vmem %s12795_s9, 8192  ;;  %p12797_p3 = scmp.lt.s32.totalorder %s13072_s26, %s12795_s9 }
  0x45   : > { %p12792_p10 = pnand %p12790_p8, %p12776_p0  ;;  %p12798_p7 = scmp.lt.s32.totalorder %s12796_s11, %s12789_s18 }
  0x47   : > { %p12793_p13 = pneg %p12792_p10  ;;  %p12799_p9 = por %p12798_p7, %p12797_p3 }
  0x49   : > { %p12800_p2 = pnand %p12799_p9, %p12793_p13 }
  0x4b   : > { %12803 = shalt.err (!%p12800_p2)
}
  0x4c   : > { %s12880_s13 = smov 128   ;;  %s12881_s20 = smov 8  }
  0x4d   : > { %12257 = dma.hbm_to_vmem [thread:$0]  (!%p13068_p11), %s13066_s14, 4096, %s13072_s26, %s13074_s29, %s12880_s13, %s12880_s13, %s12881_s20  }
  0x4e   : > { %p17378_p0 = scmp.ne.s32.totalorder %s17372_s21, 0 }
  0x50   : > { %446 = sbr.rel (%p17378_p0) target bundleno = 2416 (0x970), region = 76 }
  0x57   : > { %s13105_s22 = sand.u32 1, %s12866_s30   ;;  %p17379_p5 = scmp.ne.s32.totalorder %s17369_s19, 0 }
  0x58   : > { %s10255_s24 = sshll.u32 %s13105_s22, 8  ;;  %s449_s18 = scalar_lea.sflag [#allocation7], %s13105_s22 }
  0x59   : > { %s13111_s23 = scalar_lea.vmem [#allocation6], %s10255_s24 }
  0x5a   : > { %12849 = dma.done.wait (%p17379_p5), %s449_s18, 4096  }
  0x5b   : > { %12851 = vsyncadd (%p17379_p5), %s449_s18, 4294963200  ;;  %p17380_p11 = scmp.eq.s32.totalorder %s12987_s17, 0 }
  0x5d   : > { %12853 = dma.done.wait (%p17380_p11), [#allocation10], 9216   ;;  %p17381_p1 = pmov %p17380_p11 }
  0x5e   : > { %v17194_v0 = vmov 0.0|0.0   ;;  %vm12883_vm0 = vmmov 0   ;;  %v17196_v1 = vmov 0.0   ;;  %vm502_vm1 = vcmask 261120   ;;  %v827_v3 = vld [vmem:[%s17173_s2] sm:$0xff]  ;;  %v828_v4 = vld [vmem:[%s17173_s2 + $0x8] sm:$0xff] }
  0x5f   : > { %12855 = vsyncadd (%p17381_p1), [#allocation10], 4294958080  ;;  %11814 = vmatprep.subr.bf16.mxu1 %v17194_v0  ;;  %11358 = vmatprep.mubr.msk.f32.mxu1 %vm12883_vm0, %v17196_v1  ;;  %vm504_vm2 = vcmask 257024   ;;  %v12885_v2 = vmov 0   ;;  %v829_v5 = vld [vmem:[%s17173_s2 + $0x10] sm:$0xff]  ;;  %v13136_v6 = vpack.c.bf16 %v828_v4, %v827_v3  ;;  %v830_v7 = vld [vmem:[%s17173_s2 + $0x18] sm:$0xff] }
  0x60   : > { %12312 = vset.pattern.permute.xlu1 %v12885_v2  ;;  %503 = vst.msk [vmem:[#allocation2] sm:$0xff] %vm502_vm1, %v12885_v2  ;;  %508 = vst.msk [vmem:[#allocation2 + $0x90] sm:$0xff] %vm502_vm1, %v12885_v2  ;;  %12311 = vset.pattern.permute.xlu0 %v12885_v2  ;;  %v545_v8 = vld [vmem:[%s13111_s23] sm:$0xff]  ;;  %v546_v9 = vld [vmem:[%s13111_s23 + $0x8] sm:$0xff]  ;;  %v13152_v14 = vpack.c.bf16 %v830_v7, %v829_v5  ;;  %vm506_vm3 = vcmask 261124   ;;  %vm1487_vm4 = vcmask 1043456  }
  0x61   : > { %505 = vst.msk [vmem:[#allocation2 + $0x8] sm:$0xf] %vm504_vm2, %v12885_v2  ;;  %509 = vst [vmem:[#allocation4] sm:$0xff] %v12885_v2  ;;  %v13144_v10 = vld [vmem:[%s13111_s23 + $0x10] sm:$0xff]  ;;  %v13147_v11 = vld [vmem:[%s13111_s23 + $0x18] sm:$0xff]  ;;  %v831_v12 = vsel %vm502_vm1, %v545_v8, 0.0  ;;  %11816 = vmatpush3.bf16.msra.mxu1 %v13136_v6  ;;  %v13227_v43 = vmul.f32 %v545_v8, %v545_v8  ;;  %v901_v57 = vmul.f32 %v546_v9, %v546_v9 }
  0x62   : > { %510 = vst [vmem:[#allocation4 + $0x8] sm:$0xf] %v12885_v2  ;;  %511 = vst [vmem:[#allocation4 + $0x88] sm:$0xf0] %v12885_v2  ;;  %v832_v13 = vsel %vm502_vm1, %v546_v9, 0.0  ;;  %v13155_v15 = vld [vmem:[%s13111_s23 + $0x20] sm:$0xff]  ;;  %11817 = vmatprep.subr.bf16.mxu1 %v17194_v0  ;;  %v902_v8 = vmul.f32 %v13144_v10, %v13144_v10  ;;  %v903_v9 = vmul.f32 %v13147_v11, %v13147_v11 }
  0x63   : > { %512 = vst [vmem:[#allocation4 + $0x90] sm:$0xff] %v12885_v2  ;;  %17382 = vst [vmem:[#allocation18_spill] sm:$0xff] %v13136_v6  ;;  %v833_v16 = vadd.f32 %v832_v13, %v831_v12  ;;  %v834_v17 = vsel %vm502_vm1, %v13144_v10, 0.0  ;;  %v13161_v18 = vld [vmem:[%s13111_s23 + $0x28] sm:$0xff]  ;;  %v13164_v19 = vld [vmem:[%s13111_s23 + $0x30] sm:$0xff]  ;;  %v836_v21 = vsel %vm502_vm1, %v13147_v11, 0.0 }
  0x64   : > { %17383 = vst [vmem:[#allocation19_spill] sm:$0xff] %v13152_v14  ;;  %v13167_v20 = vld [vmem:[%s13111_s23 + $0x38] sm:$0xff]  ;;  %v13172_v22 = vld [vmem:[%s13111_s23 + $0x40] sm:$0xff]  ;;  %v13175_v23 = vld [vmem:[%s13111_s23 + $0x48] sm:$0xff]  ;;  %v838_v29 = vsel %vm502_vm1, %v13155_v15, 0.0  ;;  %v840_v34 = vsel %vm502_vm1, %v13161_v18, 0.0 }
  0x65   : > { %v13178_v24 = vld [vmem:[%s13111_s23 + $0x50] sm:$0xff]  ;;  %v835_v25 = vadd.f32 %v834_v17, %v833_v16  ;;  %v13181_v26 = vld [vmem:[%s13111_s23 + $0x58] sm:$0xff]  ;;  %v13184_v27 = vld [vmem:[%s13111_s23 + $0x60] sm:$0xff]  ;;  %11819 = vmatpush3.bf16.msra.mxu1 %v13152_v14  ;;  %v842_v35 = vsel %vm502_vm1, %v13164_v19, 0.0  ;;  %v844_v36 = vsel %vm502_vm1, %v13167_v20, 0.0  ;;  %v846_v40 = vsel %vm502_vm1, %v13172_v22, 0.0 }
  0x66   : > { %v13187_v28 = vld [vmem:[%s13111_s23 + $0x68] sm:$0xff]  ;;  %v13193_v30 = vld [vmem:[%s13111_s23 + $0x70] sm:$0xff]  ;;  %v13196_v31 = vld [vmem:[%s13111_s23 + $0x78] sm:$0xff]  ;;  %11820 = vmatprep.subr.bf16.mxu1 %v17194_v0  ;;  %v13221_v41 = vsel %vm502_vm1, %v13175_v23, 0.0  ;;  %v13225_v42 = vsel %vm502_vm1, %v13178_v24, 0.0  ;;  %v13240_v48 = vsel %vm502_vm1, %v13181_v26, 0.0  ;;  %v907_v14 = vmul.f32 %v13167_v20, %v13167_v20 }
  0x67   : > { %v13199_v32 = vld [vmem:[%s13111_s23 + $0x80] sm:$0xff]  ;;  %v837_v33 = vadd.f32 %v836_v21, %v835_v25  ;;  %v13209_v37 = vld [vmem:[%s13111_s23 + $0x88] sm:$0xff]  ;;  %v13212_v38 = vld [vmem:[%s13111_s23 + $0x90] sm:$0xff]  ;;  %v13244_v49 = vsel %vm502_vm1, %v13184_v27, 0.0  ;;  %v13248_v50 = vsel %vm502_vm1, %v13187_v28, 0.0  ;;  %v13261_v54 = vsel %vm502_vm1, %v13193_v30, 0.0 }
  0x68   : > { %17384 = vst [vmem:[#allocation20_spill] sm:$0xff] %v13209_v37  ;;  %17385 = vst [vmem:[#allocation21_spill] sm:$0xff] %v13212_v38  ;;  %v13215_v39 = vld [vmem:[%s13111_s23 + $0x98] sm:$0xff]  ;;  %v13230_v44 = vld [vmem:[%s13111_s23 + $0xa0] sm:$0xff]  ;;  %v13265_v55 = vsel %vm502_vm1, %v13196_v31, 0.0  ;;  %v13269_v56 = vsel %vm502_vm1, %v13199_v32, 0.0  ;;  %v908_v6 = vmul.f32 %v13172_v22, %v13172_v22  ;;  %v913_v20 = vmul.f32 %v13187_v28, %v13187_v28 }
  0x69   : > { %17386 = vst [vmem:[#allocation22_spill] sm:$0xff] %v13215_v39  ;;  %17387 = vst [vmem:[#allocation23_spill] sm:$0xff] %v13230_v44  ;;  %v13233_v45 = vld [vmem:[%s13111_s23 + $0xa8] sm:$0xff]  ;;  %v13236_v46 = vld [vmem:[%s13111_s23 + $0xb0] sm:$0xff]  ;;  %v839_v47 = vadd.f32 %v838_v29, %v837_v33  ;;  %v13282_v62 = vsel %vm502_vm1, %v13209_v37, 0.0  ;;  %v13286_v63 = vsel %vm502_vm1, %v13212_v38, 0.0  ;;  %v914_v22 = vmul.f32 %v13193_v30, %v13193_v30 }
  0x6a   : > { %17388 = vst [vmem:[#allocation24_spill] sm:$0xff] %v13233_v45  ;;  %17389 = vst [vmem:[#allocation25_spill] sm:$0xff] %v13236_v46  ;;  %v13251_v51 = vld [vmem:[%s13111_s23 + $0xb8] sm:$0xff]  ;;  %v13254_v52 = vld [vmem:[%s13111_s23 + $0xc0] sm:$0xff]  ;;  %v13290_v2 = vsel %vm502_vm1, %v13215_v39, 0.0  ;;  %v13300_v5 = vsel %vm502_vm1, %v13230_v44, 0.0  ;;  %v917_v28 = vmul.f32 %v13209_v37, %v13209_v37 }
  0x6b   : > { %17390 = vst [vmem:[#allocation26_spill] sm:$0xff] %v13251_v51  ;;  %17391 = vst [vmem:[#allocation27_spill] sm:$0xff] %v13254_v52  ;;  %v13257_v53 = vld [vmem:[%s13111_s23 + $0xc8] sm:$0xff]  ;;  %v13272_v58 = vld [vmem:[%s13111_s23 + $0xd0] sm:$0xff]  ;;  %v841_v61 = vadd.f32 %v840_v34, %v839_v47  ;;  %v13304_v7 = vsel %vm502_vm1, %v13233_v45, 0.0  ;;  %v13320_v17 = vsel %vm502_vm1, %v13236_v46, 0.0  ;;  %v904_v34 = vmul.f32 %v13155_v15, %v13155_v15 }
  0x6c   : > { %17392 = vst [vmem:[#allocation28_spill] sm:$0xff] %v13257_v53  ;;  %17393 = vst [vmem:[#allocation29_spill] sm:$0xff] %v13272_v58  ;;  %v13275_v59 = vld [vmem:[%s13111_s23 + $0xd8] sm:$0xff]  ;;  %v13278_v60 = vld [vmem:[%s13111_s23 + $0xe0] sm:$0xff]  ;;  %v13324_v21 = vsel %vm502_vm1, %v13251_v51, 0.0  ;;  %v13328_v10 = vsel %vm502_vm1, %v13254_v52, 0.0 }
  0x6d   : > { %17394 = vst [vmem:[#allocation30_spill] sm:$0xff] %v13275_v59  ;;  %17395 = vst [vmem:[#allocation31_spill] sm:$0xff] %v13278_v60  ;;  %v13293_v3 = vld [vmem:[%s13111_s23 + $0xe8] sm:$0xff]  ;;  %v13296_v4 = vld [vmem:[%s13111_s23 + $0xf0] sm:$0xff]  ;;  %v843_v16 = vadd.f32 %v842_v35, %v841_v61  ;;  %v13338_v25 = vsel %vm502_vm1, %v13257_v53, 0.0  ;;  %v13342_v29 = vsel %vm502_vm1, %v13272_v58, 0.0 }
  0x6e   : > { %17396 = vst [vmem:[#allocation32_spill] sm:$0xff] %v13296_v4  ;;  %v13313_v12 = vld [vmem:[%s17172_s1 + $0x8] sm:$0xf]  ;;  %v13334_v11 = vld [vmem:[%s17172_s1] sm:$0xf]  ;;  %v13346_v33 = vsel %vm502_vm1, %v13275_v59, 0.0 }
  0x6f   : > { %17397 = vst [vmem:[#allocation33_spill] sm:$0xff] %v13313_v12  ;;  %v13316_v13 = vld [vmem:[%s13111_s23 + $0xf8] sm:$0xff]  ;;  %1596 = vperm.xlu1 %12312, %v13313_v12   ;;  %17399 = vst [vmem:[#allocation35_spill] sm:$0xff] %v13334_v11  ;;  %1572 = vperm.xlu0 %12311, %v13334_v11   ;;  %v845_v47 = vadd.f32 %v844_v36, %v843_v16  ;;  %v13358_v61 = vsel %vm502_vm1, %v13278_v60, 0.0  ;;  %v13362_v0 = vsel %vm502_vm1, %v13293_v3, 0.0  ;;  %v13366_v1 = vsel %vm502_vm1, %v13296_v4, 0.0 }
  0x70   : > { %17398 = vst [vmem:[#allocation34_spill] sm:$0xff] %v13316_v13  ;;  %v13354_v35 = vld [vmem:[%s17172_s1 + $0xc] sm:$0xf]  ;;  %v13371_v15 = vld [vmem:[%s17172_s1 + $0x4] sm:$0xf]  ;;  %v13375_v36 = vsel %vm502_vm1, %v13316_v13, 0.0  ;;  %v905_v16 = vmul.f32 %v13161_v18, %v13161_v18  ;;  %v906_v12 = vmul.f32 %v13164_v19, %v13164_v19  ;;  %v909_v4 = vmul.f32 %v13175_v23, %v13175_v23 }
  0x71   : > { %17400 = vst [vmem:[#allocation36_spill] sm:$0xff] %v13354_v35  ;;  %v847_v11 = vadd.f32 %v846_v40, %v845_v47  ;;  %v910_v13 = vmul.f32 %v13178_v24, %v13178_v24  ;;  %v911_v18 = vmul.f32 %v13181_v26, %v13181_v26  ;;  %v912_v19 = vmul.f32 %v13184_v27, %v13184_v27  ;;  %v13402_v23 = vld [vmem:[%s17172_s1 + $0x14] sm:$0xf]  ;;  %v13414_v30 = vld [vmem:[%s17172_s1 + $0x10] sm:$0xf]  ;;  %s17595_s18 = sld [smem:[#allocation89_spill]] }
  0x72   : > { %v915_v26 = vmul.f32 %v13196_v31, %v13196_v31  ;;  %v916_v27 = vmul.f32 %v13199_v32, %v13199_v32  ;;  %v918_v40 = vmul.f32 %v13212_v38, %v13212_v38  ;;  %v932_v31 = vsel %vm502_vm1, %v13227_v43, 0.0  ;;  %s17702_s14 = sld [smem:[#allocation90_spill]]  ;;  %s17751_s29 = sld [smem:[#allocation91_spill]] }
  0x73   : > { %1608 = vperm.xlu1 %12312, %v13354_v35   ;;  %1584 = vperm.xlu0 %12311, %v13371_v15   ;;  %v849_v24 = vadd.f32 %v13221_v41, %v847_v11  ;;  %v919_v41 = vmul.f32 %v13215_v39, %v13215_v39  ;;  %v933_v11 = vsel %vm502_vm1, %v901_v57, 0.0  ;;  %v920_v47 = vmul.f32 %v13230_v44, %v13230_v44  ;;  %s17030_s9 = scalar_lea.vmem [#allocation11], %s10255_s24  ;;  %s10617_s24 = sshll.u32 %s12987_s17, 12 }
  0x74   : > { %v934_v37 = vadd.f32 %v933_v11, %v932_v31  ;;  %v935_v35 = vsel %vm502_vm1, %v902_v8, 0.0  ;;  %v921_v38 = vmul.f32 %v13233_v45, %v13233_v45  ;;  %v922_v39 = vmul.f32 %v13236_v46, %v13236_v46  ;;  %s17752_s17 = sld [smem:[#allocation92_spill]]  ;;  %s12888_s21 = smov [#allocation11]  }
  0x75   : > { %v851_v32 = vadd.f32 %v13225_v42, %v849_v24  ;;  %v923_v43 = vmul.f32 %v13251_v51, %v13251_v51  ;;  %v937_v57 = vsel %vm502_vm1, %v903_v9, 0.0  ;;  %v13439_v42 = vld [vmem:[%s17172_s1 + $0x1c] sm:$0xf]  ;;  %v924_v24 = vmul.f32 %v13254_v52, %v13254_v52  ;;  %v13449_v9 = vld [vmem:[%s17172_s1 + $0x18] sm:$0xf] }
  0x76   : > { %v925_v31 = vmul.f32 %v13257_v53, %v13257_v53  ;;  %v936_v11 = vadd.f32 %v935_v35, %v934_v37  ;;  %v926_v51 = vmul.f32 %v13272_v58, %v13272_v58  ;;  %v927_v46 = vmul.f32 %v13275_v59, %v13275_v59  ;;  %v13465_v58 = vld [vmem:[%s17172_s1 + $0x24] sm:$0xf] }
  0x77   : > { %1632 = vperm.xlu1 %12312, %v13402_v23   ;;  %1620 = vperm.xlu0 %12311, %v13414_v30   ;;  %v853_v8 = vadd.f32 %v13240_v48, %v851_v32  ;;  %v928_v48 = vmul.f32 %v13278_v60, %v13278_v60  ;;  %v939_v32 = vsel %vm502_vm1, %v904_v34, 0.0  ;;  %v941_v37 = vsel %vm502_vm1, %v905_v16, 0.0  ;;  %v13470_v60 = vld [vmem:[%s17172_s1 + $0x20] sm:$0xf] }
  0x78   : > { %v938_v53 = vadd.f32 %v937_v57, %v936_v11  ;;  %v943_v35 = vsel %vm502_vm1, %v906_v12, 0.0  ;;  %v945_v34 = vsel %vm502_vm1, %v907_v14, 0.0  ;;  %v949_v16 = vsel %vm502_vm1, %v909_v4, 0.0  ;;  %v13487_v4 = vld [vmem:[%s17172_s1 + $0x2c] sm:$0xf] }
  0x79   : > { %v855_v52 = vadd.f32 %v13244_v49, %v853_v8  ;;  %v947_v49 = vsel %vm502_vm1, %v908_v6, 0.0  ;;  %v951_v12 = vsel %vm502_vm1, %v910_v13, 0.0  ;;  %v953_v11 = vsel %vm502_vm1, %v911_v18, 0.0  ;;  %v13498_v18 = vld [vmem:[%s17172_s1 + $0x28] sm:$0xf] }
  0x7a   : > { %v940_v8 = vadd.f32 %v939_v32, %v938_v53  ;;  %v955_v59 = vsel %vm502_vm1, %v912_v19, 0.0  ;;  %v957_v45 = vsel %vm502_vm1, %v913_v20, 0.0  ;;  %v959_v44 = vsel %vm502_vm1, %v914_v22, 0.0  ;;  %s17122_s20 = scalar_lea.hbm %s17752_s17, %s10617_s24 }
  0x7b   : > { %1656 = vperm.xlu1 %12312, %v13439_v42   ;;  %1644 = vperm.xlu0 %12311, %v13449_v9   ;;  %v857_v57 = vadd.f32 %v13248_v50, %v855_v52  ;;  %v961_v14 = vsel %vm502_vm1, %v915_v26, 0.0  ;;  %v963_v6 = vsel %vm502_vm1, %v916_v27, 0.0  ;;  %v965_v53 = vsel %vm502_vm1, %v917_v28, 0.0 }
  0x7c   : > { %v942_v52 = vadd.f32 %v941_v37, %v940_v8  ;;  %v13492_v13 = vsel %vm502_vm1, %v918_v40, 0.0  ;;  %v13501_v19 = vsel %vm502_vm1, %v919_v41, 0.0  ;;  %v13504_v20 = vsel %vm502_vm1, %v920_v47, 0.0  ;;  %v13556_v37 = vld [vmem:[%s17172_s1 + $0x38] sm:$0xf] }
  0x7d   : > { %v859_v50 = vadd.f32 %v13261_v54, %v857_v57  ;;  %v13507_v54 = vsel %vm502_vm1, %v921_v38, 0.0  ;;  %v13510_v22 = vsel %vm502_vm1, %v922_v39, 0.0  ;;  %v13515_v28 = vsel %vm502_vm1, %v923_v43, 0.0  ;;  %v13529_v39 = vld [vmem:[%s17172_s1 + $0x34] sm:$0xf] }
  0x7e   : > { %v944_v27 = vadd.f32 %v943_v35, %v942_v52  ;;  %v13518_v40 = vsel %vm502_vm1, %v924_v24, 0.0  ;;  %v13521_v41 = vsel %vm502_vm1, %v925_v31, 0.0  ;;  %v13524_v38 = vsel %vm502_vm1, %v926_v51, 0.0  ;;  %v13542_v51 = vld [vmem:[%s17172_s1 + $0x30] sm:$0xf] }
  0x7f   : > { %1680 = vperm.xlu1 %12312, %v13465_v58   ;;  %1668 = vperm.xlu0 %12311, %v13470_v60   ;;  %v861_v26 = vadd.f32 %v13265_v55, %v859_v50  ;;  %v13533_v43 = vsel %vm502_vm1, %v927_v46, 0.0  ;;  %v13536_v24 = vsel %vm502_vm1, %v928_v48, 0.0  ;;  %v13549_v46 = vld [vmem:[%s17172_s1 + $0x3c] sm:$0xf]  ;;  %v13577_v57 = vld [vmem:[%s17172_s1 + $0x4c] sm:$0xf] }
  0x80   : > { %v946_v47 = vadd.f32 %v945_v34, %v944_v27  ;;  %v13563_v34 = vld [vmem:[%s17172_s1 + $0x44] sm:$0xf]  ;;  %v13591_v50 = vld [vmem:[%s17172_s1 + $0x54] sm:$0xf]  ;;  %v13598_v52 = vld [vmem:[%s17172_s1 + $0x50] sm:$0xf] }
  0x81   : > { %v863_v55 = vadd.f32 %v13269_v56, %v861_v26  ;;  %v13605_v26 = vld [vmem:[%s17172_s1 + $0x5c] sm:$0xf]  ;;  %v13612_v27 = vld [vmem:[%s17172_s1 + $0x58] sm:$0xf]  ;;  %vm2492_vm5 = vsmask.f32 4352 }
  0x82   : > { %v948_v32 = vadd.f32 %v947_v49, %v946_v47  ;;  %v13628_v47 = vld [vmem:[%s17172_s1 + $0x60] sm:$0xf]  ;;  %vm2034_vm6 = vsmask.f32 3328 }
  0x83   : > { %1704 = vperm.xlu1 %12312, %v13487_v4   ;;  %1692 = vperm.xlu0 %12311, %v13498_v18   ;;  %v865_v31 = vadd.f32 %v13282_v62, %v863_v55  ;;  %v13620_v55 = vld [vmem:[%s17172_s1 + $0x64] sm:$0xf] }
  0x84   : > { %v950_v48 = vadd.f32 %v949_v16, %v948_v32  ;;  %v13570_v16 = vld [vmem:[%s17172_s1 + $0x40] sm:$0xf] }
  0x85   : > { %v867_v56 = vadd.f32 %v13286_v63, %v865_v31  ;;  %v13636_v31 = vld [vmem:[%s17172_s1 + $0x6c] sm:$0xf] }
  0x86   : > { %v952_v35 = vadd.f32 %v951_v12, %v950_v48 }
  0x87   : > { %1728 = vperm.xlu1 %12312, %v13529_v39   ;;  %1716 = vperm.xlu0 %12311, %v13542_v51   ;;  %v869_v62 = vadd.f32 %v13290_v2, %v867_v56 }
  0x88   : > { %v954_v49 = vadd.f32 %v953_v11, %v952_v35  ;;  %v13584_v11 = vld [vmem:[%s17172_s1 + $0x48] sm:$0xf] }
  0x89   : > { %v871_v63 = vadd.f32 %v13300_v5, %v869_v62 }
  0x8a   : > { %v956_v12 = vadd.f32 %v955_v59, %v954_v49 }
  0x8b   : > { %1752 = vperm.xlu1 %12312, %v13549_v46   ;;  %1740 = vperm.xlu0 %12311, %v13556_v37   ;;  %v873_v2 = vadd.f32 %v13304_v7, %v871_v63 }
  0x8c   : > { %v958_v8 = vadd.f32 %v957_v45, %v956_v12  ;;  %v17402_v12 = vld [vmem:[#allocation34_spill] sm:$0xff] }
  0x8d   : > { %v875_v5 = vadd.f32 %v13320_v17, %v873_v2  ;;  %v13671_v2 = vld [vmem:[%s17172_s1 + $0x7c] sm:$0xf] }
  0x8e   : > { %v960_v59 = vadd.f32 %v959_v44, %v958_v8 }
  0x8f   : > { %1776 = vperm.xlu1 %12312, %v13563_v34   ;;  %1764 = vperm.xlu0 %12311, %v13570_v16   ;;  %v877_v7 = vadd.f32 %v13324_v21, %v875_v5  ;;  %v931_v5 = vmul.f32 %v17402_v12, %v17402_v12 }
  0x90   : > { %v962_v45 = vadd.f32 %v961_v14, %v960_v59  ;;  %v543_v59 = vld [vmem:[%s17172_s1 + $0x78] sm:$0xf] }
  0x91   : > { %v879_v17 = vadd.f32 %v13328_v10, %v877_v7 }
  0x92   : > { %v964_v44 = vadd.f32 %v963_v6, %v962_v45 }
  0x93   : > { %1800 = vperm.xlu1 %12312, %v13577_v57   ;;  %1788 = vperm.xlu0 %12311, %v13584_v11   ;;  %v881_v21 = vadd.f32 %v13338_v25, %v879_v17 }
  0x94   : > { %v966_v14 = vadd.f32 %v965_v53, %v964_v44  ;;  %v993_v44 = vsel %vm502_vm1, %v931_v5, 0.0 }
  0x95   : > { %v883_v10 = vadd.f32 %v13342_v29, %v881_v21 }
  0x96   : > { %v968_v6 = vadd.f32 %v13492_v13, %v966_v14 }
  0x97   : > { %1824 = vperm.xlu1 %12312, %v13591_v50   ;;  %1812 = vperm.xlu0 %12311, %v13598_v52   ;;  %v885_v25 = vadd.f32 %v13346_v33, %v883_v10 }
  0x98   : > { %v970_v53 = vadd.f32 %v13501_v19, %v968_v6  ;;  %v929_v19 = vmul.f32 %v13293_v3, %v13293_v3  ;;  %v17403_v6 = vld [vmem:[#allocation18_spill] sm:$0xff] }
  0x99   : > { %v887_v29 = vadd.f32 %v13358_v61, %v885_v25  ;;  %v12886_v25 = vmov 1  }
  0x9a   : > { %v972_v13 = vadd.f32 %v13504_v20, %v970_v53  ;;  %v989_v63 = vsel %vm502_vm1, %v929_v19, 0.0  ;;  %v17406_v53 = vld [vmem:[#allocation35_spill] sm:$0xff]  ;;  %v17409_v19 = vld [vmem:[#allocation36_spill] sm:$0xff] }
  0x9b   : > { %1848 = vperm.xlu1 %12312, %v13605_v26   ;;  %1836 = vperm.xlu0 %12311, %v13612_v27   ;;  %v889_v33 = vadd.f32 %v13362_v0, %v887_v29  ;;  %v13646_v0 = vld [vmem:[%s17172_s1 + $0x68] sm:$0xf]  ;;  %v17404_v29 = vmov 0.0  }
  0x9c   : > { %v974_v32 = vadd.f32 %v13507_v54, %v972_v13  ;;  %v17401_v54 = vld [vmem:[#allocation32_spill] sm:$0xff] }
  0x9d   : > { %v891_v61 = vadd.f32 %v13366_v1, %v889_v33  ;;  %v13654_v1 = vld [vmem:[%s17172_s1 + $0x74] sm:$0xf]  ;;  %v930_v62 = vmul.f32 %v17401_v54, %v17401_v54 }
  0x9e   : > { %v976_v56 = vadd.f32 %v13510_v22, %v974_v32 }
  0x9f   : > { %1872 = vperm.xlu1 %12312, %v13620_v55   ;;  %1860 = vperm.xlu0 %12311, %v13628_v47   ;;  %v893_v20 = vadd.f32 %v13375_v36, %v891_v61  ;;  %v13664_v36 = vld [vmem:[%s17172_s1 + $0x70] sm:$0xf]  ;;  %v991_v7 = vsel %vm502_vm1, %v930_v62, 0.0  ;;  %v17408_v61 = vld [vmem:[#allocation33_spill] sm:$0xff] }
  0xa0   : > { %v978_v35 = vadd.f32 %v13515_v28, %v976_v56 }
  0xa1   : > { %v894_v48 = vrot.slane %v893_v20, 4 }
  0xa2   : > { %v980_v49 = vadd.f32 %v13518_v40, %v978_v35 }
  0xa3   : > { %1896 = vperm.xlu1 %12312, %v13636_v31   ;;  %1884 = vperm.xlu0 %12311, %v13646_v0   ;;  %v895_v22 = vadd.f32 %v894_v48, %v893_v20 }
  0xa4   : > { %v982_v8 = vadd.f32 %v13521_v41, %v980_v49 }
  0xa5   : > { %v896_v28 = vrot.slane %v895_v22, 2 }
  0xa6   : > { %v984_v17 = vadd.f32 %v13524_v38, %v982_v8  ;;  %v17405_v38 = vmov 0.0|0.0  }
  0xa7   : > { %1920 = vperm.xlu1 %12312, %v13654_v1   ;;  %1908 = vperm.xlu0 %12311, %v13664_v36   ;;  %v897_v40 = vadd.f32 %v896_v28, %v895_v22  ;;  %v17411_v28 = vld [vmem:[#allocation20_spill] sm:$0xff] }
  0xa8   : > { %v986_v21 = vadd.f32 %v13533_v43, %v984_v17 }
  0xa9   : > { %v898_v45 = vrot.slane %v897_v40, 1 }
  0xaa   : > { %v988_v10 = vadd.f32 %v13536_v24, %v986_v21  ;;  %v17407_v24 = vld [vmem:[#allocation19_spill] sm:$0xff] }
  0xab   : > { %1944 = vperm.xlu1 %12312, %v13671_v2   ;;  %1932 = vperm.xlu0 %12311, %v543_v59   ;;  %v899_v41 = vadd.f32 %v898_v45, %v897_v40  ;;  %v17413_v40 = vld [vmem:[#allocation22_spill] sm:$0xff]  ;;  %v17414_v45 = vld [vmem:[#allocation23_spill] sm:$0xff] }
  0xac   : > { %v990_v14 = vadd.f32 %v989_v63, %v988_v10 }
  0xad   : > { %11359 = vmatmul.mubr.msk.f32.vlgmr.msra.gmra.mrb[0].mxu1 %vm502_vm1, %v899_v41 }
  0xae   : > { %11822 = vmatpush3.bf16.msra.mxu1 %v17403_v6  ;;  %11369 = vmatprep.mubr.msk.f32.mxu1 %vm12883_vm0, %v17404_v29  ;;  %v992_v43 = vadd.f32 %v991_v7, %v990_v14  ;;  %v17412_v7 = vld [vmem:[#allocation21_spill] sm:$0xff]  ;;  %v17417_v6 = vld [vmem:[#allocation26_spill] sm:$0xff] }
  0xaf   : > { %12314 = vset.pattern.permute.xlu1 %v12886_v25  ;;  %11823 = vmatprep.subr.bf16.mxu1 %v17405_v38  ;;  %v17416_v14 = vld [vmem:[#allocation25_spill] sm:$0xff] }
  0xb0   : > { %12313 = vset.pattern.permute.xlu0 %v12886_v25  ;;  %2879 = vperm.xlu1 %12314, %v13371_v15   ;;  %v994_v33 = vadd.f32 %v993_v44, %v992_v43  ;;  %v17415_v44 = vld [vmem:[#allocation24_spill] sm:$0xff] }
  0xb1   : > { %2868 = vperm.xlu0 %12313, %v17406_v53   ;;  %v17418_v53 = vld [vmem:[#allocation27_spill] sm:$0xff] }
  0xb2   : > { %11825 = vmatpush3.bf16.msra.mxu1 %v17407_v24  ;;  %v995_v13 = vrot.slane %v994_v33, 4 }
  0xb4   : > { %2890 = vperm.xlu1 %12314, %v17408_v61   ;;  %v996_v32 = vadd.f32 %v995_v13, %v994_v33  ;;  %v17420_v13 = vld [vmem:[#allocation28_spill] sm:$0xff] }
  0xb5   : > { %2901 = vperm.xlu0 %12313, %v17409_v19   ;;  %v17421_v19 = vld [vmem:[#allocation29_spill] sm:$0xff] }
  0xb6   : > { %v997_v20 = vrot.slane %v996_v32, 2 }
  0xb8   : > { %2912 = vperm.xlu1 %12314, %v13414_v30   ;;  %v998_v56 = vadd.f32 %v997_v20, %v996_v32  ;;  %v13735_v30 = vld [vmem:[%s17176_s5] sm:$0xff]   ;;  %v17422_v20 = vld [vmem:[#allocation30_spill] sm:$0xff] }
  0xb9   : > { %2923 = vperm.xlu0 %12313, %v13402_v23   ;;  %v12667_v23 = vld [vmem:[#allocation4] sm:$0xff] }
  0xba   : > { %v999_v48 = vrot.slane %v998_v56, 1  ;;  %507 = vst.msk [vmem:[#allocation2 + $0x88] sm:$0xf0] %vm506_vm3, %v12667_v23 }
  0xbc   : > { %2934 = vperm.xlu1 %12314, %v13449_v9   ;;  %v1000_v15 = vadd.f32 %v999_v48, %v998_v56  ;;  %v17423_v48 = vld [vmem:[#allocation31_spill] sm:$0xff] }
  0xbd   : > { %2945 = vperm.xlu0 %12313, %v13439_v42  }
  0xbe   : > { %11370 = vmatmul.mubr.msk.f32.vlgmr.msra.gmra.mrb[2].mxu1 %vm502_vm1, %v1000_v15 }
  0xc0   : > { %2956 = vperm.xlu1 %12314, %v13470_v60   ;;  %v12316_v60 = vld [vmem:[%s17176_s5 + $0x18] sm:$0xff]  }
  0xc1   : > { %2967 = vperm.xlu0 %12313, %v13465_v58   ;;  %v12315_v58 = vld [vmem:[%s17176_s5 + $0x10] sm:$0xff]  }
  0xc2   : > { %11372 = vmatprep.subr.bf16.mxu1 %v12315_v58 }
  0xc3   : > { %11373 = vmatpush3.bf16.msra.mxu1 %v12315_v58 }
  0xc4   : > { %2978 = vperm.xlu1 %12314, %v13498_v18   ;;  %11374 = vmatprep.subr.bf16.mxu1 %v12316_v60 }
  0xc5   : > { %2989 = vperm.xlu0 %12313, %v13487_v4  }
  0xc7   : > { %11375 = vmatpush3.bf16.msra.mxu1 %v12316_v60 }
  0xc8   : > { %3000 = vperm.xlu1 %12314, %v13542_v51   ;;  %11408 = vmatprep.subr.bf16.mxu1 %v13735_v30 }
  0xc9   : > { %3011 = vperm.xlu0 %12313, %v13529_v39  }
  0xcc   : > { %3022 = vperm.xlu1 %12314, %v13556_v37  }
  0xcd   : > { %3033 = vperm.xlu0 %12313, %v13549_v46  }
  0xd0   : > { %3044 = vperm.xlu1 %12314, %v13570_v16  }
  0xd1   : > { %3055 = vperm.xlu0 %12313, %v13563_v34  }
  0xd4   : > { %3066 = vperm.xlu1 %12314, %v13584_v11  }
  0xd5   : > { %3077 = vperm.xlu0 %12313, %v13577_v57  }
  0xd8   : > { %3088 = vperm.xlu1 %12314, %v13598_v52  }
  0xd9   : > { %3099 = vperm.xlu0 %12313, %v13591_v50  }
  0xdc   : > { %3110 = vperm.xlu1 %12314, %v13612_v27  }
  0xdd   : > { %3121 = vperm.xlu0 %12313, %v13605_v26   ;;  %v1156_v26 = vlaneseq }
  0xe0   : > { %3132 = vperm.xlu1 %12314, %v13628_v47  }
  0xe1   : > { %3143 = vperm.xlu0 %12313, %v13620_v55   ;;  %v13752_v55 = vshrl.u32 %v1156_v26, 7 }
  0xe4   : > { %3154 = vperm.xlu1 %12314, %v13646_v0   ;;  %v13760_v0 = vsub.s32 0, %v13752_v55 }
  0xe5   : > { %3165 = vperm.xlu0 %12313, %v13636_v31   ;;  %v825_v31 = vld [vmem:[%s17174_s3] sm:$0x1] }
  0xe6   : > { %17410 = vst [vmem:[#allocation32_spill] sm:$0xff] %v13760_v0 }
  0xe8   : > { %3176 = vperm.xlu1 %12314, %v13664_v36   ;;  %v826_v36 = vld [vmem:[%s17175_s4] sm:$0x1] }
  0xe9   : > { %3187 = vperm.xlu0 %12313, %v13654_v1  }
  0xec   : > { %3198 = vperm.xlu1 %12314, %v543_v59  }
  0xed   : > { %3209 = vperm.xlu0 %12313, %v13671_v2  }
  0xee   : > { %v13738_v4 = vpop.permute.xlu1 %1596  ;;  %v13740_v18 = vpop.permute.xlu0 %1572 }
  0xf2   : > { %v13742_v39 = vpop.permute.xlu1 %1608  ;;  %v13744_v37 = vpop.permute.xlu0 %1584 }
  0xf6   : > { %v13746_v11 = vpop.permute.xlu1 %1632  ;;  %v13748_v52 = vpop.permute.xlu0 %1620 }
  0xfa   : > { %v13750_v27 = vpop.permute.xlu1 %1656  ;;  %v13754_v47 = vpop.permute.xlu0 %1644 }
  0xfe   : > { %v13762_v62 = vpop.permute.xlu1 %1680  ;;  %v13764_v63 = vpop.permute.xlu0 %1668 }
 0x102   : > { %v13774_v8 = vpop.permute.xlu1 %1704  ;;  %v13793_v24 = vpop.permute.xlu0 %1692 }
 0x103   : > { %17419 = vst [vmem:[#allocation34_spill] sm:$0xff] %v13793_v24 }
 0x180   : > { %v1070_v42 = vpop.f32.mrb[0].mxu1 }
 0x181   : > { %v11360_v9 = vpop.f32.mrb[1].mxu1  ;;  %v1147_v51 = vmul.f32 %v1070_v42, %v1070_v42 }
 0x191   : > { %v1143_v46 = vpop.f32.mrb[2].mxu1 }
 0x192   : > { %v1148_v34 = vsub.f32 %v1143_v46, %v1147_v51  ;;  %v11371_v16 = vpop.f32.mrb[3].mxu1 }
 0x194   : > { %v1149_v57 = vmax.f32 %v1148_v34, 0.0 }
 0x196   : > { %v1150_v50 = vadd.f32 1e-05, %v1149_v57  ;;  %v13836_v57 = vpop.permute.xlu1 %1728 }
 0x197   : > { %17424 = vst [vmem:[#allocation18_spill] sm:$0xff] %v13836_v57 }
 0x198   : > { %12407 = vrsqrt.f32 %v1150_v50 }
 0x1a2   : > { %v12408_v1 = vpop.eup %12407 }
 0x1a3   : > { %v1152_v35 = vmul.f32 %v12408_v1, %v825_v31 }
 0x1a5   : > { %v1153_v22 = vmul.f32 %v1152_v35, %v1070_v42  ;;  %v13770_v49 = vrot.slane %v1152_v35, %v13760_v0 }
 0x1a7   : > { %v1154_v2 = vsub.f32 %v826_v36, %v1153_v22  ;;  %v1178_v5 = vmul.f32 %v13770_v49, %v17411_v28  ;;  %v1179_v59 = vmul.f32 %v13770_v49, %v17412_v7  ;;  %v1180_v17 = vmul.f32 %v13770_v49, %v17413_v40  ;;  %v12668_v40 = vld [vmem:[%s13111_s23] sm:$0xff] }
 0x1a8   : > { %v1181_v21 = vmul.f32 %v13770_v49, %v17414_v45  ;;  %v1182_v41 = vmul.f32 %v13770_v49, %v17415_v44  ;;  %v1183_v25 = vmul.f32 %v13770_v49, %v17416_v14  ;;  %v1184_v43 = vmul.f32 %v13770_v49, %v17417_v6 }
 0x1a9   : > { %v13785_v10 = vrot.slane %v1154_v2, %v13760_v0  ;;  %v1185_v33 = vmul.f32 %v13770_v49, %v17418_v53  ;;  %v1186_v61 = vmul.f32 %v13770_v49, %v17420_v13  ;;  %v1187_v32 = vmul.f32 %v13770_v49, %v17421_v19  ;;  %v13857_v2 = vpop.permute.xlu0 %1716  ;;  %v12670_v53 = vld [vmem:[%s13111_s23 + $0x10] sm:$0xff]  ;;  %v12671_v13 = vld [vmem:[%s13111_s23 + $0x18] sm:$0xff]  ;;  %v12672_v19 = vld [vmem:[%s13111_s23 + $0x20] sm:$0xff] }
 0x1aa   : > { %v1188_v56 = vmul.f32 %v13770_v49, %v17422_v20  ;;  %v1189_v15 = vmul.f32 %v13770_v49, %v17423_v48  ;;  %v1190_v58 = vmul.f32 %v13770_v49, %v13293_v3  ;;  %v1191_v60 = vmul.f32 %v13770_v49, %v17401_v54  ;;  %17425 = vst [vmem:[#allocation35_spill] sm:$0xff] %v13857_v2 }
 0x1ab   : > { %v1192_v23 = vmul.f32 %v13770_v49, %v17402_v12  ;;  %v13810_v42 = vadd.f32 %v13785_v10, %v1178_v5  ;;  %v13813_v9 = vadd.f32 %v13785_v10, %v1179_v59  ;;  %v13816_v51 = vadd.f32 %v13785_v10, %v1180_v17 }
 0x1ac   : > { %v13819_v46 = vadd.f32 %v13785_v10, %v1181_v21  ;;  %v13822_v3 = vadd.f32 %v13785_v10, %v1182_v41  ;;  %v13825_v54 = vadd.f32 %v13785_v10, %v1183_v25  ;;  %v13828_v12 = vadd.f32 %v13785_v10, %v1184_v43  ;;  %v13868_v41 = vpop.permute.xlu1 %1752  ;;  %v12669_v25 = vld [vmem:[%s13111_s23 + $0x8] sm:$0xff] }
 0x1ad   : > { %v13831_v34 = vadd.f32 %v13785_v10, %v1185_v33  ;;  %v13834_v16 = vadd.f32 %v13785_v10, %v1186_v61  ;;  %v13839_v50 = vadd.f32 %v13785_v10, %v1187_v32  ;;  %v13842_v26 = vadd.f32 %v13785_v10, %v1188_v56  ;;  %17426 = vst [vmem:[#allocation19_spill] sm:$0xff] %v13868_v41  ;;  %v13882_v20 = vpop.permute.xlu0 %1740  ;;  %v12683_v41 = vld [vmem:[%s13111_s23 + $0x70] sm:$0xff] }
 0x1ae   : > { %v13845_v31 = vadd.f32 %v13785_v10, %v1189_v15  ;;  %v13848_v1 = vadd.f32 %v13785_v10, %v1190_v58  ;;  %v13851_v35 = vadd.f32 %v13785_v10, %v1191_v60  ;;  %v13854_v36 = vadd.f32 %v13785_v10, %v1192_v23  ;;  %17427 = vst [vmem:[#allocation33_spill] sm:$0xff] %v13882_v20  ;;  %v12673_v15 = vld [vmem:[%s13111_s23 + $0x28] sm:$0xff] }
 0x1af   : > { %v10297_v22 = vmul.f32 -1.442695, %v13813_v9  ;;  %v10298_v28 = vmul.f32 -1.442695, %v13816_v51  ;;  %v10299_v5 = vmul.f32 -1.442695, %v13819_v46  ;;  %v1161_v17 = vmul.f32 %v12668_v40, %v13770_v49 }
 0x1b0   : > { %v10300_v7 = vmul.f32 -1.442695, %v13822_v3  ;;  %v10301_v59 = vmul.f32 -1.442695, %v13825_v54  ;;  %v10302_v45 = vmul.f32 -1.442695, %v13828_v12  ;;  %v1162_v6 = vmul.f32 %v12669_v25, %v13770_v49 }
 0x1b1   : > { %12409 = vpow2.f32 %v10297_v22  ;;  %v10303_v21 = vmul.f32 -1.442695, %v13831_v34  ;;  %v10304_v44 = vmul.f32 -1.442695, %v13834_v16  ;;  %v10305_v14 = vmul.f32 -1.442695, %v13839_v50 }
 0x1b2   : > { %12411 = vpow2.f32 %v10298_v28  ;;  %v13874_v43 = vadd.f32 %v13785_v10, %v1161_v17  ;;  %v1163_v33 = vmul.f32 %v12670_v53, %v13770_v49  ;;  %v1164_v61 = vmul.f32 %v12671_v13, %v13770_v49  ;;  %v13906_v17 = vpop.permute.xlu1 %1776  ;;  %v12675_v25 = vld [vmem:[%s13111_s23 + $0x38] sm:$0xff] }
 0x1b3   : > { %12413 = vpow2.f32 %v10299_v5  ;;  %v1165_v32 = vmul.f32 %v12672_v19, %v13770_v49  ;;  %v10306_v56 = vmul.f32 -1.442695, %v13842_v26  ;;  %v13886_v48 = vadd.f32 %v13785_v10, %v1162_v6  ;;  %17428 = vst [vmem:[#allocation36_spill] sm:$0xff] %v13906_v17 }
 0x1b4   : > { %12415 = vpow2.f32 %v10300_v7  ;;  %v1166_v58 = vmul.f32 %v12673_v15, %v13770_v49  ;;  %v13891_v60 = vadd.f32 %v13785_v10, %v1163_v33  ;;  %v13894_v23 = vadd.f32 %v13785_v10, %v1164_v61  ;;  %v12674_v7 = vld [vmem:[%s13111_s23 + $0x30] sm:$0xff]  ;;  %v12676_v33 = vld [vmem:[%s13111_s23 + $0x40] sm:$0xff]  ;;  %v12677_v61 = vld [vmem:[%s13111_s23 + $0x48] sm:$0xff] }
 0x1b5   : > { %12417 = vpow2.f32 %v10301_v59  ;;  %v13897_v22 = vadd.f32 %v13785_v10, %v1165_v32  ;;  %v10307_v28 = vmul.f32 -1.442695, %v13845_v31  ;;  %v1167_v59 = vmul.f32 %v12674_v7, %v13770_v49  ;;  %v13919_v32 = vpop.permute.xlu0 %1764 }
 0x1b6   : > { %12419 = vpow2.f32 %v10302_v45  ;;  %v13901_v5 = vadd.f32 %v13785_v10, %v1166_v58  ;;  %v10308_v40 = vmul.f32 -1.442695, %v13848_v1  ;;  %v10309_v45 = vmul.f32 -1.442695, %v13851_v35  ;;  %17429 = vst [vmem:[#allocation20_spill] sm:$0xff] %v13919_v32  ;;  %v12680_v32 = vld [vmem:[%s13111_s23 + $0x60] sm:$0xff] }
 0x1b7   : > { %12421 = vpow2.f32 %v10303_v21  ;;  %v1168_v6 = vmul.f32 %v12675_v25, %v13770_v49  ;;  %v13912_v21 = vadd.f32 %v13785_v10, %v1167_v59  ;;  %v10310_v53 = vmul.f32 -1.442695, %v13854_v36 }
 0x1b8   : > { %12423 = vpow2.f32 %v10304_v44  ;;  %v1169_v13 = vmul.f32 %v12676_v33, %v13770_v49  ;;  %v1170_v44 = vmul.f32 %v12677_v61, %v13770_v49  ;;  %v12678_v61 = vld [vmem:[%s13111_s23 + $0x50] sm:$0xff] }
 0x1b9   : > { %12425 = vpow2.f32 %v10305_v14  ;;  %v10296_v14 = vmul.f32 -1.442695, %v13810_v42  ;;  %v13923_v15 = vadd.f32 %v13785_v10, %v1168_v6  ;;  %v1171_v0 = vmul.f32 %v12678_v61, %v13770_v49 }
 0x1ba   : > { %12427 = vpow2.f32 %v10306_v56  ;;  %v13926_v7 = vadd.f32 %v13785_v10, %v1169_v13  ;;  %v13929_v59 = vadd.f32 %v13785_v10, %v1170_v44 }
 0x1bb   : > { %v12410_v19 = vpop.eup %12409  ;;  %12429 = vpow2.f32 %v10307_v28  ;;  %v12679_v28 = vld [vmem:[%s13111_s23 + $0x58] sm:$0xff] }
 0x1bc   : > { %v12412_v58 = vpop.eup %12411  ;;  %12431 = vpow2.f32 %v10308_v40  ;;  %v1345_v56 = vadd.f32 1.0, %v12410_v19  ;;  %v1172_v6 = vmul.f32 %v12679_v28, %v13770_v49  ;;  %v13935_v19 = vpop.permute.xlu1 %1800  ;;  %v1173_v28 = vmul.f32 %v12680_v32, %v13770_v49 }
 0x1bd   : > { %v12414_v25 = vpop.eup %12413  ;;  %12433 = vpow2.f32 %v10309_v45  ;;  %v1346_v33 = vadd.f32 1.0, %v12412_v58  ;;  %17430 = vst [vmem:[#allocation21_spill] sm:$0xff] %v13935_v19  ;;  %v13938_v45 = vadd.f32 %v13785_v10, %v1171_v0  ;;  %v13947_v19 = vpop.permute.xlu0 %1788 }
 0x1be   : > { %v12416_v29 = vpop.eup %12415  ;;  %12435 = vpow2.f32 %v10310_v53  ;;  %v1347_v40 = vadd.f32 1.0, %v12414_v25  ;;  %v13941_v58 = vadd.f32 %v13785_v10, %v1172_v6  ;;  %v12681_v53 = vld [vmem:[%s13111_s23 + $0x68] sm:$0xff]  ;;  %17431 = vst [vmem:[#allocation22_spill] sm:$0xff] %v13947_v19  ;;  %v1175_v19 = vmul.f32 %v12683_v41, %v13770_v49 }
 0x1bf   : > { %v12418_v13 = vpop.eup %12417  ;;  %12437 = vpow2.f32 %v10296_v14  ;;  %v1348_v44 = vadd.f32 1.0, %v12416_v29  ;;  %v1174_v25 = vmul.f32 %v12681_v53, %v13770_v49  ;;  %v12682_v29 = vld [vmem:[%s13111_s23 + $0x78] sm:$0xff] }
 0x1c0   : > { %v12420_v61 = vpop.eup %12419  ;;  %v1349_v38 = vadd.f32 1.0, %v12418_v13  ;;  %12439 = vrcp.f32 %v1345_v56  ;;  %v1176_v0 = vmul.f32 %v12682_v29, %v13770_v49  ;;  %v13952_v56 = vadd.f32 %v13785_v10, %v1173_v28  ;;  %v13964_v29 = vpop.permute.xlu1 %1824 }
 0x1c1   : > { %v12422_v17 = vpop.eup %12421  ;;  %v1350_v14 = vadd.f32 1.0, %v12420_v61  ;;  %12441 = vrcp.f32 %v1346_v33  ;;  %v13955_v32 = vadd.f32 %v13785_v10, %v1174_v25  ;;  %v12684_v33 = vld [vmem:[%s13111_s23 + $0x80] sm:$0xff]  ;;  %v13972_v24 = vpop.permute.xlu0 %1812 }
 0x1c2   : > { %v12424_v6 = vpop.eup %12423  ;;  %v1351_v20 = vadd.f32 1.0, %v12422_v17  ;;  %12443 = vrcp.f32 %v1347_v40  ;;  %v13960_v2 = vadd.f32 %v13785_v10, %v1176_v0  ;;  %v1177_v17 = vmul.f32 %v12684_v33, %v13770_v49  ;;  %17432 = vst [vmem:[#allocation23_spill] sm:$0xff] %v13972_v24 }
 0x1c3   : > { %v12426_v13 = vpop.eup %12425  ;;  %v1352_v53 = vadd.f32 1.0, %v12424_v6  ;;  %12445 = vrcp.f32 %v1348_v44  ;;  %v13967_v6 = vadd.f32 %v13785_v10, %v1175_v19  ;;  %v10286_v24 = vmul.f32 -1.442695, %v13923_v15 }
 0x1c4   : > { %v12428_v61 = vpop.eup %12427  ;;  %v1353_v40 = vadd.f32 1.0, %v12426_v13  ;;  %12447 = vrcp.f32 %v1349_v38  ;;  %v13970_v41 = vadd.f32 %v13785_v10, %v1177_v17  ;;  %v10280_v10 = vmul.f32 -1.442695, %v13886_v48 }
 0x1c5   : > { %v12430_v28 = vpop.eup %12429  ;;  %v1354_v25 = vadd.f32 1.0, %v12428_v61  ;;  %12449 = vrcp.f32 %v1350_v14  ;;  %v10279_v61 = vmul.f32 -1.442695, %v13874_v43 }
 0x1c6   : > { %v12432_v44 = vpop.eup %12431  ;;  %v1355_v57 = vadd.f32 1.0, %v12430_v28  ;;  %12451 = vrcp.f32 %v1351_v20  ;;  %v13977_v28 = vpop.permute.xlu1 %1848 }
 0x1c7   : > { %v12434_v0 = vpop.eup %12433  ;;  %v1356_v49 = vadd.f32 1.0, %v12432_v44  ;;  %12453 = vrcp.f32 %v1352_v53  ;;  %17433 = vst [vmem:[#allocation24_spill] sm:$0xff] %v13977_v28  ;;  %v10281_v44 = vmul.f32 -1.442695, %v13891_v60 }
 0x1c8   : > { %v12436_v38 = vpop.eup %12435  ;;  %v1357_v13 = vadd.f32 1.0, %v12434_v0  ;;  %12455 = vrcp.f32 %v1353_v40 }
 0x1c9   : > { %v13974_v33 = vpop.eup %12437  ;;  %v1358_v14 = vadd.f32 1.0, %v12436_v38  ;;  %12457 = vrcp.f32 %v1354_v25  ;;  %v13983_v25 = vpop.permute.xlu0 %1836  ;;  %v10282_v38 = vmul.f32 -1.442695, %v13894_v23 }
 0x1ca   : > { %v12440_v19 = vpop.eup %12439  ;;  %12459 = vrcp.f32 %v1355_v57  ;;  %17434 = vst [vmem:[#allocation25_spill] sm:$0xff] %v13983_v25  ;;  %v10285_v25 = vmul.f32 -1.442695, %v13912_v21 }
 0x1cb   : > { %v12442_v20 = vpop.eup %12441  ;;  %12461 = vrcp.f32 %v1356_v49  ;;  %v1441_v17 = vmul.f32 %v12440_v19, %v13813_v9  ;;  %v10283_v9 = vmul.f32 -1.442695, %v13897_v22 }
 0x1cc   : > { %v12444_v53 = vpop.eup %12443  ;;  %12463 = vrcp.f32 %v1357_v13  ;;  %v1442_v40 = vmul.f32 %v12442_v20, %v13816_v51  ;;  %v10284_v20 = vmul.f32 -1.442695, %v13901_v5 }
 0x1cd   : > { %v12446_v0 = vpop.eup %12445  ;;  %12465 = vrcp.f32 %v1358_v14  ;;  %v1443_v57 = vmul.f32 %v12444_v53, %v13819_v46 }
 0x1ce   : > { %v12448_v49 = vpop.eup %12447  ;;  %v1444_v28 = vmul.f32 %v12446_v0, %v13822_v3  ;;  %12467 = vpow2.f32 %v10279_v61  ;;  %v1464_v13 = vpack.c.bf16 %v1442_v40, %v1441_v17  ;;  %v13994_v61 = vpop.permute.xlu1 %1872 }
 0x1cf   : > { %v12450_v19 = vpop.eup %12449  ;;  %v1445_v51 = vmul.f32 %v12448_v49, %v13825_v54  ;;  %12469 = vpow2.f32 %v10280_v10  ;;  %17435 = vst [vmem:[#allocation26_spill] sm:$0xff] %v13994_v61  ;;  %v10287_v54 = vmul.f32 -1.442695, %v13926_v7 }
 0x1d0   : > { %v12452_v14 = vpop.eup %12451  ;;  %v1446_v46 = vmul.f32 %v12450_v19, %v13828_v12  ;;  %v1465_v53 = vpack.c.bf16 %v1444_v28, %v1443_v57  ;;  %12471 = vpow2.f32 %v10281_v44  ;;  %v13998_v10 = vrot.slane %v1464_v13, 4  ;;  %v14001_v44 = vpop.permute.xlu0 %1860 }
 0x1d1   : > { %v12454_v3 = vpop.eup %12453  ;;  %v1447_v17 = vmul.f32 %v12452_v14, %v13831_v34  ;;  %12473 = vpow2.f32 %v10282_v38  ;;  %v10288_v19 = vmul.f32 -1.442695, %v13929_v59  ;;  %v10289_v34 = vmul.f32 -1.442695, %v13938_v45 }
 0x1d2   : > { %v12456_v40 = vpop.eup %12455  ;;  %v1448_v0 = vmul.f32 %v12454_v3, %v13834_v16  ;;  %v1466_v49 = vpack.c.bf16 %v1446_v46, %v1445_v51  ;;  %12475 = vpow2.f32 %v10283_v9  ;;  %v1507_v12 = vrot.slane %v1465_v53, 4 }
 0x1d3   : > { %v12458_v28 = vpop.eup %12457  ;;  %v1449_v57 = vmul.f32 %v12456_v40, %v13839_v50  ;;  %12477 = vpow2.f32 %v10284_v20  ;;  %v10290_v51 = vmul.f32 -1.442695, %v13941_v58 }
 0x1d4   : > { %v12460_v38 = vpop.eup %12459  ;;  %v1450_v13 = vmul.f32 %v12458_v28, %v13842_v26  ;;  %v1467_v14 = vpack.c.bf16 %v1448_v0, %v1447_v17  ;;  %v1509_v61 = vrot.slane %v1466_v49, 4  ;;  %12479 = vpow2.f32 %v10285_v25  ;;  %v14013_v17 = vpop.permute.xlu1 %1896 }
 0x1d5   : > { %v12462_v16 = vpop.eup %12461  ;;  %v1451_v9 = vmul.f32 %v12460_v38, %v13845_v31  ;;  %12481 = vpow2.f32 %v10286_v24  ;;  %v1508_v50 = vsel %vm1487_vm4, %v13998_v10, %v1507_v12 }
 0x1d6   : > { %v12464_v20 = vpop.eup %12463  ;;  %v1452_v46 = vmul.f32 %v12462_v16, %v13848_v1  ;;  %v1468_v53 = vpack.c.bf16 %v1450_v13, %v1449_v57  ;;  %v1511_v3 = vrot.slane %v1467_v14, 4  ;;  %12483 = vpow2.f32 %v10287_v54  ;;  %1546 = vst.msk [vmem:[#allocation2 + $0x58] sm:$0xff] %vm502_vm1, %v1508_v50  ;;  %v14019_v54 = vpop.permute.xlu0 %1884 }
 0x1d7   : > { %v12466_v26 = vpop.eup %12465  ;;  %v1453_v25 = vmul.f32 %v12464_v20, %v13851_v35  ;;  %12485 = vpow2.f32 %v10288_v19  ;;  %v1510_v24 = vsel %vm1487_vm4, %v1507_v12, %v1509_v61 }
 0x1d8   : > { %v12468_v31 = vpop.eup %12467  ;;  %v1454_v40 = vmul.f32 %v12466_v26, %v13854_v36  ;;  %v1469_v0 = vpack.c.bf16 %v1452_v46, %v1451_v9  ;;  %v1513_v49 = vrot.slane %v1468_v53, 4  ;;  %12487 = vpow2.f32 %v10289_v34  ;;  %1547 = vst.msk [vmem:[#allocation2 + $0x60] sm:$0xff] %vm502_vm1, %v1510_v24  ;;  %v14026_v50 = vpop.permute.xlu1 %1920 }
 0x1d9   : > { %v12470_v1 = vpop.eup %12469  ;;  %v1327_v28 = vadd.f32 1.0, %v12468_v31  ;;  %12489 = vpow2.f32 %v10290_v51  ;;  %v1512_v57 = vsel %vm1487_vm4, %v1509_v61, %v1511_v3 }
 0x1da   : > { %v12472_v38 = vpop.eup %12471  ;;  %v1470_v35 = vpack.c.bf16 %v1454_v40, %v1453_v25  ;;  %v1515_v19 = vrot.slane %v1469_v0, 4  ;;  %v1514_v12 = vsel %vm1487_vm4, %v1511_v3, %v1513_v49  ;;  %v1328_v13 = vadd.f32 1.0, %v12470_v1  ;;  %1548 = vst.msk [vmem:[#allocation2 + $0x68] sm:$0xff] %vm502_vm1, %v1512_v57  ;;  %v14031_v25 = vpop.permute.xlu0 %1908 }
 0x1db   : > { %v12474_v36 = vpop.eup %12473  ;;  %1549 = vst.msk [vmem:[#allocation2 + $0x70] sm:$0xff] %vm502_vm1, %v1514_v12  ;;  %12491 = vrcp.f32 %v1327_v28  ;;  %v1329_v34 = vadd.f32 1.0, %v12472_v38  ;;  %v12887_v40 = vmov 839922192  }
 0x1dc   : > { %v12476_v14 = vpop.eup %12475  ;;  %v1517_v16 = vrot.slane %v1470_v35, 4  ;;  %v1516_v9 = vsel %vm1487_vm4, %v1513_v49, %v1515_v19  ;;  %12493 = vrcp.f32 %v1328_v13  ;;  %v1330_v51 = vadd.f32 1.0, %v12474_v36 }
 0x1dd   : > { %v12478_v61 = vpop.eup %12477  ;;  %1550 = vst.msk [vmem:[#allocation2 + $0x78] sm:$0xff] %vm502_vm1, %v1516_v9  ;;  %12495 = vrcp.f32 %v1329_v34  ;;  %v1331_v20 = vadd.f32 1.0, %v12476_v14  ;;  %v1576_v0 = vunpack.c.l.s4 %v12887_v40  ;;  %v10291_v13 = vmul.f32 -1.442695, %v13952_v56 }
 0x1de   : > { %v12480_v46 = vpop.eup %12479  ;;  %v1518_v53 = vsel %vm1487_vm4, %v1515_v19, %v1517_v16  ;;  %1552 = vst.msk [vmem:[#allocation2 + $0x88] sm:$0xf] %vm504_vm2, %v1517_v16  ;;  %12497 = vrcp.f32 %v1330_v51  ;;  %v1332_v3 = vadd.f32 1.0, %v12478_v61  ;;  %v14034_v19 = vpop.permute.xlu1 %1944  ;;  %v10292_v14 = vmul.f32 -1.442695, %v13955_v32 }
 0x1df   : > { %v12482_v26 = vpop.eup %12481  ;;  %1551 = vst.msk [vmem:[#allocation2 + $0x80] sm:$0xff] %vm502_vm1, %v1518_v53  ;;  %12499 = vrcp.f32 %v1331_v20  ;;  %v1333_v24 = vadd.f32 1.0, %v12480_v46  ;;  %v1577_v36 = vunpack.c.0.s8 %v1576_v0  ;;  %v14038_v9 = vpop.permute.xlu0 %1932  ;;  %v10293_v51 = vmul.f32 -1.442695, %v13967_v6 }
 0x1e0   : > { %v12484_v31 = vpop.eup %12483  ;;  %12501 = vrcp.f32 %v1332_v3  ;;  %v1334_v49 = vadd.f32 1.0, %v12482_v26  ;;  %v10294_v46 = vmul.f32 -1.442695, %v13960_v2  ;;  %v10295_v26 = vmul.f32 -1.442695, %v13970_v41 }
 0x1e1   : > { %v12486_v1 = vpop.eup %12485  ;;  %12503 = vrcp.f32 %v1333_v24  ;;  %v1335_v28 = vadd.f32 1.0, %v12484_v31  ;;  %v14046_v31 = vsub.s32 %v1577_v36, %v13752_v55 }
 0x1e2   : > { %v12488_v57 = vpop.eup %12487  ;;  %12505 = vrcp.f32 %v1334_v49  ;;  %v1336_v38 = vadd.f32 1.0, %v12486_v1  ;;  %v2880_v49 = vpop.permute.xlu1 %2879 }
 0x1e3   : > { %v12490_v35 = vpop.eup %12489  ;;  %12507 = vrcp.f32 %v1335_v28  ;;  %v1337_v12 = vadd.f32 1.0, %v12488_v57 }
 0x1e4   : > { %12509 = vrcp.f32 %v1336_v38  ;;  %v1338_v34 = vadd.f32 1.0, %v12490_v35  ;;  %v2869_v38 = vpop.permute.xlu0 %2868 }
 0x1e5   : > { %v12492_v16 = vpop.eup %12491  ;;  %12511 = vrcp.f32 %v1337_v12  ;;  %v2877_v36 = vrot.slane %v2869_v38, %v14046_v31 }
 0x1e6   : > { %v12494_v61 = vpop.eup %12493  ;;  %v1423_v20 = vmul.f32 %v12492_v16, %v13874_v43  ;;  %12513 = vrcp.f32 %v1338_v34 }
 0x1e7   : > { %v12496_v53 = vpop.eup %12495  ;;  %v1424_v3 = vmul.f32 %v12494_v61, %v13886_v48  ;;  %12515 = vpow2.f32 %v10291_v13  ;;  %v1344_v61 = vadd.f32 1.0, %v13974_v33 }
 0x1e8   : > { %v12498_v24 = vpop.eup %12497  ;;  %v1425_v40 = vmul.f32 %v12496_v53, %v13891_v60  ;;  %12517 = vpow2.f32 %v10292_v14  ;;  %v2888_v60 = vrot.slane %v2880_v49, %v14046_v31  ;;  %v14059_v53 = vld [vmem:[#allocation2] sm:$0xf0] }
 0x1e9   : > { %v12500_v0 = vpop.eup %12499  ;;  %v1455_v1 = vpack.c.bf16 %v1424_v3, %v1423_v20  ;;  %v1426_v43 = vmul.f32 %v12498_v24, %v13894_v23  ;;  %12519 = vpow2.f32 %v10293_v51 }
 0x1ea   : > { %v12502_v28 = vpop.eup %12501  ;;  %v1427_v57 = vmul.f32 %v12500_v0, %v13897_v22  ;;  %12521 = vpow2.f32 %v10294_v46  ;;  %v2891_v46 = vpop.permute.xlu1 %2890  ;;  %v10363_v0 = vcombine.low %v2877_v36, %v2888_v60 }
 0x1eb   : > { %v12504_v48 = vpop.eup %12503  ;;  %v1488_v35 = vrot.slane %v1455_v1, 4  ;;  %v1456_v12 = vpack.c.bf16 %v1426_v43, %v1425_v40  ;;  %v1428_v55 = vmul.f32 %v12502_v28, %v13901_v5  ;;  %12523 = vpow2.f32 %v10295_v26 }
 0x1ec   : > { %v12506_v13 = vpop.eup %12505  ;;  %v1429_v34 = vmul.f32 %v12504_v48, %v13912_v21  ;;  %v2899_v49 = vrot.slane %v2891_v46, %v14046_v31  ;;  %12525 = vrcp.f32 %v1344_v61 }
 0x1ed   : > { %v12508_v23 = vpop.eup %12507  ;;  %1536 = vst.msk [vmem:[#allocation2 + $0x8] sm:$0xf0] %vm506_vm3, %v1488_v35  ;;  %v1489_v14 = vrot.slane %v1456_v12, 4  ;;  %v1457_v22 = vpack.c.bf16 %v1428_v55, %v1427_v57  ;;  %v1430_v16 = vmul.f32 %v12506_v13, %v13923_v15 }
 0x1ee   : > { %v12510_v51 = vpop.eup %12509  ;;  %v1431_v5 = vmul.f32 %v12508_v23, %v13926_v7  ;;  %v2902_v7 = vpop.permute.xlu0 %2901  ;;  %v3303_v23 = vshll.u32 %v10363_v0, 16 }
 0x1ef   : > { %v12512_v20 = vpop.eup %12511  ;;  %v1490_v3 = vsel %vm1487_vm4, %v1488_v35, %v1489_v14  ;;  %v1491_v26 = vrot.slane %v1457_v22, 4  ;;  %v1458_v21 = vpack.c.bf16 %v1430_v16, %v1429_v34  ;;  %v1432_v24 = vmul.f32 %v12510_v51, %v13929_v59 }
 0x1f0   : > { %v12514_v40 = vpop.eup %12513  ;;  %1537 = vst.msk [vmem:[#allocation2 + $0x10] sm:$0xff] %vm502_vm1, %v1490_v3  ;;  %v1433_v15 = vmul.f32 %v12512_v20, %v13938_v45  ;;  %v2910_v38 = vrot.slane %v2902_v7, %v14046_v31  ;;  %v2238_v59 = vrot.slane %v14059_v53, 4  ;;  %v3300_v34 = vshrl.u32 %v10363_v0, 16 }
 0x1f1   : > { %v12516_v33 = vpop.eup %12515  ;;  %v1492_v1 = vsel %vm1487_vm4, %v1489_v14, %v1491_v26  ;;  %v1493_v43 = vrot.slane %v1458_v21, 4  ;;  %v1459_v28 = vpack.c.bf16 %v1432_v24, %v1431_v5  ;;  %v1434_v57 = vmul.f32 %v12514_v40, %v13941_v58 }
 0x1f2   : > { %v12518_v48 = vpop.eup %12517  ;;  %1538 = vst.msk [vmem:[#allocation2 + $0x18] sm:$0xff] %vm502_vm1, %v1492_v1  ;;  %v1339_v35 = vadd.f32 1.0, %v12516_v33  ;;  %v10364_v46 = vcombine.low %v2899_v49, %v2910_v38  ;;  %v3302_v40 = vrot.slane %v3300_v34, 3  ;;  %v3305_v0 = vrot.slane %v3303_v23, 4  ;;  %v12318_v49 = vld [vmem:[%s17176_s5 + $0x8] sm:$0xff]  }
 0x1f3   : > { %v12520_v12 = vpop.eup %12519  ;;  %v1494_v45 = vsel %vm1487_vm4, %v1491_v26, %v1493_v43  ;;  %v1495_v55 = vrot.slane %v1459_v28, 4  ;;  %v1460_v13 = vpack.c.bf16 %v1434_v57, %v1433_v15  ;;  %v1340_v60 = vadd.f32 1.0, %v12518_v48 }
 0x1f4   : > { %v12522_v36 = vpop.eup %12521  ;;  %v14072_v14 = vld [vmem:[#allocation2 + $0x8] sm:$0xff]  ;;  %1539 = vst.msk [vmem:[#allocation2 + $0x20] sm:$0xff] %vm502_vm1, %v1494_v45  ;;  %12527 = vrcp.f32 %v1339_v35  ;;  %v1341_v58 = vadd.f32 1.0, %v12520_v12  ;;  %v3308_v1 = vshrl.u32 %v10364_v46, 16  ;;  %v14100_v38 = vor.u32 %v3305_v0, %v3302_v40  ;;  %v14108_v35 = vld [vmem:[%s17176_s5 + $0x20] sm:$0xff]  }
 0x1f5   : > { %v12524_v22 = vpop.eup %12523  ;;  %v2239_v16 = vrot.slane %v14072_v14, 4  ;;  %v1496_v51 = vsel %vm1487_vm4, %v1493_v43, %v1495_v55  ;;  %v14077_v61 = vrot.slane %v1460_v13, 4  ;;  %12529 = vrcp.f32 %v1340_v60 }
 0x1f6   : > { %1540 = vst.msk [vmem:[#allocation2 + $0x28] sm:$0xff] %vm502_vm1, %v1496_v51  ;;  %v1342_v5 = vadd.f32 1.0, %v12522_v36  ;;  %12531 = vrcp.f32 %v1341_v58  ;;  %v1343_v20 = vadd.f32 1.0, %v12524_v22  ;;  %v3311_v43 = vshll.u32 %v10364_v46, 16  ;;  %v12526_v57 = vpop.eup %12525  ;;  %17436 = vst [vmem:[#allocation27_spill] sm:$0xff] %v14100_v38 }
 0x1f7   : > { %v2240_v3 = vsel %vm1487_vm4, %v2238_v59, %v2239_v16  ;;  %v14081_v26 = vld [vmem:[#allocation2 + $0x10] sm:$0xff]  ;;  %v1498_v21 = vsel %vm1487_vm4, %v1495_v55, %v14077_v61  ;;  %v3310_v13 = vrot.slane %v3308_v1, 3  ;;  %v3459_v58 = vmul.bf16 %v14100_v38, %v14059_v53 }
 0x1f8   : > { %11376 = vmatprep.mubr.msk.bf16.mxu1 %vm502_vm1, %v2240_v3  ;;  %v2241_v24 = vrot.slane %v14081_v26, 4  ;;  %1541 = vst.msk [vmem:[#allocation2 + $0x30] sm:$0xff] %vm502_vm1, %v1498_v21  ;;  %12533 = vrcp.f32 %v1342_v5 }
 0x1f9   : > { %v14088_v15 = vld [vmem:[#allocation2 + $0x18] sm:$0xff]  ;;  %12535 = vrcp.f32 %v1343_v20  ;;  %v1440_v20 = vmul.f32 %v12526_v57, %v13810_v42  ;;  %v3481_v40 = vshrl.u32 %v3459_v58, 16  ;;  %v3484_v42 = vshll.u32 %v3459_v58, 16 }
 0x1fa   : > { %v2242_v33 = vsel %vm1487_vm4, %v2239_v16, %v2241_v24  ;;  %v2243_v7 = vrot.slane %v14088_v15, 4 }
 0x1fb   : > { %11377 = vmatmul.mubr.msk.bf16.vlgmr.msra.gmra.mrb[4].mxu1 %vm502_vm1, %v2242_v33  ;;  %v14096_v28 = vld [vmem:[#allocation2 + $0x20] sm:$0xff]  ;;  %v3486_v57 = vrot.slane %v3484_v42, 5 }
 0x1fc   : > { %11409 = vmatpush3.bf16.msra.mxu1 %v13735_v30  ;;  %v2244_v48 = vsel %vm1487_vm4, %v2241_v24, %v2243_v7  ;;  %v2245_v45 = vrot.slane %v14096_v28, 4  ;;  %v3313_v30 = vrot.slane %v3311_v43, 4  ;;  %v3483_v43 = vrot.slane %v3481_v40, 4 }
 0x1fd   : > { %11380 = vmatprep.mubr.msk.bf16.mxu1 %vm502_vm1, %v2244_v48  ;;  %v14103_v59 = vld [vmem:[#allocation2 + $0x28] sm:$0xff]  ;;  %11410 = vmatprep.subr.bf16.mxu1 %v12318_v49 }
 0x1fe   : > { %v12528_v12 = vpop.eup %12527  ;;  %v2247_v60 = vrot.slane %v14103_v59, 4  ;;  %v2246_v51 = vsel %vm1487_vm4, %v2243_v7, %v2245_v45  ;;  %v14120_v3 = vor.u32 %v3313_v30, %v3310_v13  ;;  %v1617_v13 = vrot.slane %v13742_v39, %v14046_v31 }
 0x1ff   : > { %v12530_v55 = vpop.eup %12529  ;;  %v1435_v36 = vmul.f32 %v12528_v12, %v13952_v56  ;;  %v1581_v30 = vrot.slane %v13740_v18, %v14046_v31  ;;  %v1629_v39 = vrot.slane %v13748_v52, %v14046_v31  ;;  %v3487_v18 = vor.u32 %v3486_v57, %v3483_v43 }
 0x200   : > { %v12532_v34 = vpop.eup %12531  ;;  %v1436_v23 = vmul.f32 %v12530_v55, %v13955_v32  ;;  %11411 = vmatpush3.bf16.msra.mxu1 %v12318_v49  ;;  %v2248_v56 = vsel %vm1487_vm4, %v2245_v45, %v2247_v60  ;;  %v14124_v32 = vld [vmem:[#allocation2 + $0x30] sm:$0xff]  ;;  %v14135_v7 = vsel %vm2492_vm5, %v14100_v38, %v14120_v3  ;;  %v1605_v55 = vrot.slane %v13738_v4, %v14046_v31 }
 0x201   : > { %v1437_v22 = vmul.f32 %v12532_v34, %v13967_v6  ;;  %11444 = vmatprep.subr.bf16.mxu1 %v14108_v35  ;;  %v2249_v0 = vrot.slane %v14124_v32, 4  ;;  %17437 = vst [vmem:[#allocation28_spill] sm:$0xff] %v14135_v7  ;;  %v3460_v45 = vmul.bf16 %v14135_v7, %v14072_v14  ;;  %v1641_v4 = vrot.slane %v13746_v11, %v14046_v31 }
 0x202   : > { %v12534_v16 = vpop.eup %12533  ;;  %v1461_v5 = vpack.c.bf16 %v1436_v23, %v1435_v36  ;;  %v1665_v34 = vrot.slane %v13750_v27, %v14046_v31  ;;  %v1653_v23 = vrot.slane %v13754_v47, %v14046_v31  ;;  %v1689_v11 = vrot.slane %v13762_v62, %v14046_v31 }
 0x203   : > { %v12536_v46 = vpop.eup %12535  ;;  %11381 = vmatmul.mubr.msk.bf16.gmra.mrb[8].mxu1 %vm502_vm1, %v2246_v51  ;;  %v1438_v53 = vmul.f32 %v12534_v16, %v13960_v2  ;;  %v2250_v48 = vsel %vm1487_vm4, %v2247_v60, %v2249_v0  ;;  %v3489_v60 = vshrl.u32 %v3460_v45, 16  ;;  %v3492_v36 = vshll.u32 %v3460_v45, 16  ;;  %v14195_v45 = vpop.permute.xlu1 %2912 }
 0x204   : > { %11384 = vmatprep.mubr.msk.bf16.mxu1 %vm502_vm1, %v2248_v56  ;;  %v1499_v6 = vrot.slane %v1461_v5, 4  ;;  %v1439_v21 = vmul.f32 %v12536_v46, %v13970_v41  ;;  %v1677_v52 = vrot.slane %v13764_v63, %v14046_v31  ;;  %v10313_v46 = vcombine.low %v1629_v39, %v1641_v4  ;;  %v17444_v39 = vld [vmem:[#allocation33_spill] sm:$0xff] }
 0x205   : > { %v1462_v24 = vpack.c.bf16 %v1438_v53, %v1437_v22  ;;  %v3491_v22 = vrot.slane %v3489_v60, 4  ;;  %v3494_v16 = vrot.slane %v3492_v36, 5  ;;  %v10314_v56 = vcombine.low %v1653_v23, %v1665_v34  ;;  %v17443_v36 = vld [vmem:[#allocation19_spill] sm:$0xff] }
 0x206   : > { %v1500_v49 = vsel %vm1487_vm4, %v14077_v61, %v1499_v6  ;;  %v1463_v33 = vpack.c.bf16 %v1440_v20, %v1439_v21  ;;  %v10315_v42 = vcombine.low %v1677_v52, %v1689_v11  ;;  %v2053_v57 = vshrl.u32 %v10313_v46, 16 }
 0x207   : > { %1542 = vst.msk [vmem:[#allocation2 + $0x38] sm:$0xff] %vm502_vm1, %v1500_v49  ;;  %v1501_v2 = vrot.slane %v1462_v24, 4  ;;  %v14172_v20 = vor.u32 %v3494_v16, %v3491_v22  ;;  %v1761_v4 = vrot.slane %v17443_v36, %v14046_v31  ;;  %v1749_v34 = vrot.slane %v17444_v39, %v14046_v31 }
 0x208   : > { %v1503_v1 = vrot.slane %v1463_v33, 4  ;;  %v1713_v33 = vrot.slane %v13774_v8, %v14046_v31  ;;  %v14200_v8 = vld [vmem:[#allocation2 + $0x58] sm:$0xff] }
 0x209   : > { %v1502_v41 = vsel %vm1487_vm4, %v1499_v6, %v1501_v2  ;;  %17438 = vst [vmem:[#allocation29_spill] sm:$0xff] %v14172_v20  ;;  %v14183_v62 = vsel %vm2034_vm6, %v3487_v18, %v14172_v20  ;;  %v2071_v18 = vshrl.u32 %v10315_v42, 16 }
 0x20a   : > { %1543 = vst.msk [vmem:[#allocation2 + $0x40] sm:$0xff] %vm502_vm1, %v1502_v41  ;;  %v1504_v61 = vsel %vm1487_vm4, %v1501_v2, %v1503_v1  ;;  %v1506_v12 = vsel %vm1487_vm4, %v1503_v1, %v13998_v10  ;;  %v1593_v10 = vrot.slane %v13744_v37, %v14046_v31  ;;  %v10312_v37 = vcombine.low %v1605_v55, %v1617_v13  ;;  %v17440_v2 = vld [vmem:[#allocation34_spill] sm:$0xff]  ;;  %v14197_v55 = vpop.permute.xlu0 %2923 }
 0x20b   : > { %11385 = vmatmul.mubr.msk.bf16.gmra.mrb[12].mxu1 %vm502_vm1, %v2250_v48  ;;  %1544 = vst.msk [vmem:[#allocation2 + $0x48] sm:$0xff] %vm502_vm1, %v1504_v61  ;;  %1545 = vst.msk [vmem:[#allocation2 + $0x50] sm:$0xff] %vm502_vm1, %v1506_v12  ;;  %v1701_v1 = vrot.slane %v17440_v2, %v14046_v31  ;;  %v2056_v48 = vshll.u32 %v10313_v46, 16  ;;  %v2062_v61 = vshrl.u32 %v10314_v56, 16  ;;  %v2065_v12 = vshll.u32 %v10314_v56, 16  ;;  %v17441_v13 = vld [vmem:[#allocation18_spill] sm:$0xff] }
 0x20c   : > { %v10311_v5 = vcombine.low %v1581_v30, %v1593_v10  ;;  %17439 = vst [vmem:[#allocation30_spill] sm:$0xff] %v14183_v62  ;;  %v2044_v63 = vshrl.u32 %v10312_v37, 16  ;;  %v2047_v24 = vshll.u32 %v10312_v37, 16  ;;  %v1737_v30 = vrot.slane %v17441_v13, %v14046_v31  ;;  %v17442_v10 = vld [vmem:[#allocation35_spill] sm:$0xff]  ;;  %v17445_v13 = vld [vmem:[#allocation36_spill] sm:$0xff] }
 0x20d   : > { %v1725_v60 = vrot.slane %v17442_v10, %v14046_v31  ;;  %v2074_v37 = vshll.u32 %v10315_v42, 16  ;;  %v2058_v46 = vrot.slane %v2056_v48, 5  ;;  %v2064_v56 = vrot.slane %v2062_v61, 4  ;;  %v17446_v10 = vld [vmem:[#allocation20_spill] sm:$0xff] }
 0x20e   : > { %v14165_v58 = vld [vmem:[#allocation2 + $0x38] sm:$0xff]  ;;  %v2036_v40 = vshrl.u32 %v10311_v5, 16  ;;  %v2039_v49 = vshll.u32 %v10311_v5, 16  ;;  %v2046_v23 = vrot.slane %v2044_v63, 4  ;;  %v2049_v16 = vrot.slane %v2047_v24, 5  ;;  %v14216_v24 = vpop.permute.xlu1 %2934  ;;  %v14218_v42 = vpop.permute.xlu0 %2945  ;;  %v14223_v48 = vld [vmem:[#allocation2 + $0x60] sm:$0xff] }
 0x20f   : > { %v2251_v51 = vrot.slane %v14165_v58, 4  ;;  %v2259_v5 = vrot.slane %v14200_v8, 4  ;;  %v10318_v2 = vcombine.low %v1749_v34, %v1761_v4  ;;  %v1785_v63 = vrot.slane %v17445_v13, %v14046_v31  ;;  %v17449_v4 = vld [vmem:[#allocation22_spill] sm:$0xff] }
 0x210   : > { %v2038_v11 = vrot.slane %v2036_v40, 4  ;;  %v2041_v52 = vrot.slane %v2039_v49, 5  ;;  %v1773_v36 = vrot.slane %v17446_v10, %v14046_v31  ;;  %v2076_v49 = vrot.slane %v2074_v37, 5 }
 0x211   : > { %v2252_v27 = vsel %vm1487_vm4, %v2249_v0, %v2251_v51  ;;  %v14175_v47 = vld [vmem:[#allocation2 + $0x40] sm:$0xff]  ;;  %v2050_v61 = vor.u32 %v2049_v16, %v2046_v23  ;;  %v1797_v39 = vrot.slane %v17449_v4, %v14046_v31  ;;  %v2098_v37 = vshrl.u32 %v10318_v2, 16 }
 0x212   : > { %11388 = vmatprep.mubr.msk.bf16.mxu1 %vm502_vm1, %v2252_v27  ;;  %v2253_v53 = vrot.slane %v14175_v47, 4  ;;  %v14179_v6 = vld [vmem:[#allocation2 + $0x48] sm:$0xff]  ;;  %v14193_v43 = vld [vmem:[#allocation2 + $0x50] sm:$0xff]  ;;  %v2055_v27 = vrot.slane %v2053_v57, 4  ;;  %v10319_v10 = vcombine.low %v1773_v36, %v1785_v63  ;;  %v2261_v23 = vrot.slane %v14223_v48, 4 }
 0x213   : > { %v2255_v21 = vrot.slane %v14179_v6, 4  ;;  %v2257_v22 = vrot.slane %v14193_v43, 4  ;;  %v1833_v4 = vrot.slane %v13964_v29, %v14046_v31  ;;  %v2100_v63 = vrot.slane %v2098_v37, 4 }
 0x214   : > { %v2254_v0 = vsel %vm1487_vm4, %v2251_v51, %v2253_v53  ;;  %v10316_v51 = vcombine.low %v1701_v1, %v1713_v33 }
 0x215   : > { %11389 = vmatmul.mubr.msk.bf16.gmra.mrb[16].mxu1 %vm502_vm1, %v2254_v0  ;;  %v2256_v41 = vsel %vm1487_vm4, %v2253_v53, %v2255_v21  ;;  %v2067_v53 = vrot.slane %v2065_v12, 5  ;;  %v10317_v0 = vcombine.low %v1725_v60, %v1737_v30  ;;  %v2258_v40 = vsel %vm1487_vm4, %v2255_v21, %v2257_v22  ;;  %v17448_v30 = vld [vmem:[#allocation21_spill] sm:$0xff] }
 0x216   : > { %11392 = vmatprep.mubr.msk.bf16.mxu1 %vm502_vm1, %v2256_v41  ;;  %v2073_v41 = vrot.slane %v2071_v18, 4  ;;  %v2080_v33 = vshrl.u32 %v10316_v51, 16  ;;  %v2083_v1 = vshll.u32 %v10316_v51, 16  ;;  %v2260_v57 = vsel %vm1487_vm4, %v2257_v22, %v2259_v5  ;;  %v14232_v21 = vld [vmem:[#allocation2 + $0x68] sm:$0xff] }
 0x217   : > { %v14225_v12 = vor.u32 %v2041_v52, %v2038_v11  ;;  %v1809_v60 = vrot.slane %v17448_v30, %v14046_v31  ;;  %17450 = vst [vmem:[#allocation34_spill] sm:$0xff] %v14232_v21  ;;  %v2089_v34 = vshrl.u32 %v10317_v0, 16  ;;  %v2092_v18 = vshll.u32 %v10317_v0, 16  ;;  %v1553_v30 = vld [vmem:[#allocation2] sm:$0xf8]  ;;  %v17452_v0 = vld [vmem:[#allocation23_spill] sm:$0xff] }
 0x218   : > { %v2101_v51 = vshll.u32 %v10318_v2, 16  ;;  %v2059_v22 = vor.u32 %v2058_v46, %v2055_v27  ;;  %v2068_v13 = vor.u32 %v2067_v53, %v2064_v56  ;;  %v14235_v16 = vor.u32 %v2076_v49, %v2073_v41  ;;  %v14244_v27 = vpop.permute.xlu1 %2956  ;;  %v14246_v46 = vpop.permute.xlu0 %2967 }
 0x219   : > { %17447 = vst [vmem:[#allocation31_spill] sm:$0xff] %v14225_v12  ;;  %v2082_v11 = vrot.slane %v2080_v33, 4  ;;  %v2085_v52 = vrot.slane %v2083_v1, 5  ;;  %v1821_v2 = vrot.slane %v17452_v0, %v14046_v31  ;;  %v14250_v56 = vsel %vm2034_vm6, %v14225_v12, %v2050_v61  ;;  %v14260_v0 = vld [vmem:[#allocation2 + $0x70] sm:$0xff] }
 0x21a   : > { %17453 = vst [vmem:[#allocation35_spill] sm:$0xff] %v14250_v56  ;;  %v2091_v53 = vrot.slane %v2089_v34, 4  ;;  %v2094_v41 = vrot.slane %v2092_v18, 5  ;;  %v2103_v36 = vrot.slane %v2101_v51, 5  ;;  %v2107_v49 = vshrl.u32 %v10319_v10, 16  ;;  %17455 = vst [vmem:[#allocation33_spill] sm:$0xff] %v14260_v0 }
 0x21b   : > { %v2262_v33 = vsel %vm1487_vm4, %v2259_v5, %v2261_v23  ;;  %v2195_v29 = vmul.bf16 %v14225_v12, %v1553_v30  ;;  %v14255_v1 = vsel %vm2034_vm6, %v2050_v61, %v2059_v22  ;;  %v2196_v34 = vmul.bf16 %v14250_v56, %v14072_v14  ;;  %v14268_v61 = vld [vmem:[#allocation2 + $0x78] sm:$0xff] }
 0x21c   : > { %17454 = vst [vmem:[#allocation19_spill] sm:$0xff] %v14255_v1  ;;  %v14265_v18 = vsel %vm2034_vm6, %v2059_v22, %v2068_v13  ;;  %v10321_v51 = vcombine.low %v1821_v2, %v1833_v4  ;;  %17457 = vst [vmem:[#allocation20_spill] sm:$0xff] %v14268_v61  ;;  %v2095_v30 = vor.u32 %v2094_v41, %v2091_v53  ;;  %v2109_v38 = vrot.slane %v2107_v49, 4  ;;  %v14274_v7 = vpop.permute.xlu1 %2978  ;;  %v14276_v14 = vpop.permute.xlu0 %2989  ;;  %v17462_v49 = vld [vmem:[#allocation26_spill] sm:$0xff] }
 0x21d   : > { %11393 = vmatmul.mubr.msk.bf16.gmra.mrb[20].mxu1 %vm502_vm1, %v2258_v40  ;;  %v14238_v40 = vrot.slane %v14232_v21, 4  ;;  %17456 = vst [vmem:[#allocation36_spill] sm:$0xff] %v14265_v18  ;;  %v2265_v22 = vrot.slane %v14260_v0, 4  ;;  %v2497_v4 = vshll.u32 %v2195_v29, 16  ;;  %v2502_v56 = vshrl.u32 %v2196_v34, 16 }
 0x21e   : > { %11396 = vmatprep.mubr.msk.bf16.mxu1 %vm502_vm1, %v2260_v57  ;;  %v10320_v57 = vcombine.low %v1797_v39, %v1809_v60  ;;  %v2110_v60 = vshll.u32 %v10319_v10, 16  ;;  %v14272_v10 = vsel %vm2034_vm6, %v2068_v13, %v14235_v16  ;;  %v2505_v12 = vshll.u32 %v2196_v34, 16 }
 0x21f   : > { %17451 = vst [vmem:[#allocation18_spill] sm:$0xff] %v14238_v40  ;;  %v2264_v39 = vsel %vm1487_vm4, %v2261_v23, %v14238_v40  ;;  %17458 = vst [vmem:[#allocation21_spill] sm:$0xff] %v14272_v10  ;;  %v2086_v23 = vor.u32 %v2085_v52, %v2082_v11  ;;  %v2125_v11 = vshrl.u32 %v10321_v51, 16  ;;  %v17460_v52 = vld [vmem:[#allocation24_spill] sm:$0xff]  ;;  %v2128_v41 = vshll.u32 %v10321_v51, 16 }
 0x220   : > { %v2116_v5 = vshrl.u32 %v10320_v57, 16  ;;  %v2119_v37 = vshll.u32 %v10320_v57, 16  ;;  %v2494_v57 = vshrl.u32 %v2195_v29, 16  ;;  %v2112_v2 = vrot.slane %v2110_v60, 5 }
 0x221   : > { %v1857_v53 = vrot.slane %v17460_v52, %v14046_v31  ;;  %v1881_v62 = vrot.slane %v17462_v49, %v14046_v31  ;;  %v1869_v29 = vrot.slane %v14001_v44, %v14046_v31  ;;  %v2197_v60 = vmul.bf16 %v14255_v1, %v14081_v26  ;;  %v14302_v52 = vld [vmem:[#allocation2 + $0x80] sm:$0xf] }
 0x222   : > { %v2118_v13 = vrot.slane %v2116_v5, 4  ;;  %v2121_v20 = vrot.slane %v2119_v37, 5  ;;  %v14294_v34 = vsel %vm1487_vm4, %v14238_v40, %v2265_v22  ;;  %v2496_v5 = vrot.slane %v2494_v57, 3  ;;  %v14318_v40 = vpop.permute.xlu0 %3011 }
 0x223   : > { %17463 = vst [vmem:[#allocation23_spill] sm:$0xff] %v14294_v34  ;;  %v2499_v37 = vrot.slane %v2497_v4, 4  ;;  %v2507_v44 = vrot.slane %v2505_v12, 4  ;;  %v2198_v26 = vmul.bf16 %v14265_v18, %v14088_v15  ;;  %v14308_v49 = vsel %vm2034_vm6, %v14235_v16, %v2086_v23 }
 0x224   : > { %v14311_v57 = vsel %vm2034_vm6, %v2086_v23, %v2095_v30  ;;  %v14322_v12 = vor.u32 %v2121_v20, %v2118_v13  ;;  %v2127_v15 = vrot.slane %v2125_v11, 4  ;;  %v10323_v16 = vcombine.low %v1869_v29, %v1881_v62 }
 0x225   : > { %11397 = vmatmul.mubr.msk.bf16.gmra.mrb[24].mxu1 %vm502_vm1, %v2262_v33  ;;  %v2104_v33 = vor.u32 %v2103_v36, %v2100_v63  ;;  %v17461_v63 = vld [vmem:[#allocation25_spill] sm:$0xff]  ;;  %17466 = vst [vmem:[#allocation26_spill] sm:$0xff] %v14311_v57  ;;  %v2130_v18 = vrot.slane %v2128_v41, 5  ;;  %v2269_v23 = vrot.slane %v14302_v52, 4  ;;  %v2511_v1 = vshrl.u32 %v2197_v60, 16 }
 0x226   : > { %11400 = vmatprep.mubr.msk.bf16.mxu1 %vm502_vm1, %v2264_v39  ;;  %v14280_v39 = vrot.slane %v14268_v61, 4  ;;  %v1845_v36 = vrot.slane %v17461_v63, %v14046_v31  ;;  %v2504_v63 = vrot.slane %v2502_v56, 3  ;;  %17465 = vst [vmem:[#allocation25_spill] sm:$0xff] %v14308_v49  ;;  %v2514_v61 = vshll.u32 %v2197_v60, 16  ;;  %v14338_v29 = vpop.permute.xlu0 %3033 }
 0x227   : > { %v14314_v4 = vsel %vm2034_vm6, %v2095_v30, %v2104_v33  ;;  %v2500_v30 = vor.u32 %v2499_v37, %v2496_v5  ;;  %v1905_v21 = vrot.slane %v14013_v17, %v14046_v31  ;;  %v1929_v20 = vrot.slane %v14026_v50, %v14046_v31 }
 0x228   : > { %17459 = vst [vmem:[#allocation22_spill] sm:$0xff] %v14280_v39  ;;  %v14300_v51 = vsel %vm1487_vm4, %v2265_v22, %v14280_v39  ;;  %17467 = vst [vmem:[#allocation37_spill] sm:$0xff] %v14314_v4  ;;  %v14316_v22 = vpop.permute.xlu1 %3000  ;;  %v10322_v56 = vcombine.low %v1845_v36, %v1857_v53  ;;  %v2508_v0 = vor.u32 %v2507_v44, %v2504_v63  ;;  %v2143_v41 = vshrl.u32 %v10323_v16, 16 }
 0x229   : > { %17464 = vst [vmem:[#allocation24_spill] sm:$0xff] %v14300_v51  ;;  %v1917_v62 = vrot.slane %v14031_v25, %v14046_v31  ;;  %v2270_v17 = vsel %vm1487_vm4, %v14280_v39, %v2269_v23  ;;  %v2516_v60 = vrot.slane %v2514_v61, 4  ;;  %v2199_v50 = vmul.bf16 %v14272_v10, %v14096_v28 }
 0x22a   : > { %v2134_v11 = vshrl.u32 %v10322_v56, 16  ;;  %v2137_v53 = vshll.u32 %v10322_v56, 16  ;;  %v2509_v25 = vsel %vm2492_vm5, %v2500_v30, %v2508_v0  ;;  %v2200_v37 = vmul.bf16 %v14308_v49, %v14103_v59 }
 0x22b   : > { %v14352_v44 = vor.u32 %v2130_v18, %v2127_v15  ;;  %v10325_v61 = vcombine.low %v1917_v62, %v1929_v20  ;;  %v2921_v56 = vrot.slane %v14195_v45, %v14046_v31  ;;  %v2932_v23 = vrot.slane %v14197_v55, %v14046_v31 }
 0x22c   : > { %v14336_v36 = vpop.permute.xlu1 %3022  ;;  %v2136_v28 = vrot.slane %v2134_v11, 4  ;;  %v2139_v30 = vrot.slane %v2137_v53, 5  ;;  %v2538_v18 = vshrl.u32 %v2200_v37, 16  ;;  %v2541_v15 = vshll.u32 %v2200_v37, 16 }
 0x22d   : > { %11401 = vmatmul.mubr.msk.bf16.gmra.mrb[28].mxu1 %vm502_vm1, %v14294_v34  ;;  %v2113_v34 = vor.u32 %v2112_v2, %v2109_v38  ;;  %v2520_v38 = vshrl.u32 %v2198_v26, 16  ;;  %v2523_v2 = vshll.u32 %v2198_v26, 16  ;;  %v2146_v26 = vshll.u32 %v10323_v16, 16  ;;  %v14361_v16 = vpop.permute.xlu0 %3055 }
 0x22e   : > { %11404 = vmatprep.mubr.msk.bf16.mxu1 %vm502_vm1, %v14300_v51  ;;  %v1893_v51 = vrot.slane %v14019_v54, %v14046_v31  ;;  %v2513_v54 = vrot.slane %v2511_v1, 3  ;;  %v2161_v20 = vshrl.u32 %v10325_v61, 16  ;;  %v2164_v62 = vshll.u32 %v10325_v61, 16 }
 0x22f   : > { %v14334_v13 = vsel %vm2034_vm6, %v2104_v33, %v2113_v34  ;;  %v2522_v33 = vrot.slane %v2520_v38, 3  ;;  %v2525_v5 = vrot.slane %v2523_v2, 4  ;;  %v14350_v63 = vsel %vm2034_vm6, %v2113_v34, %v14322_v12 }
 0x230   : > { %17468 = vst [vmem:[#allocation38_spill] sm:$0xff] %v14334_v13  ;;  %17469 = vst [vmem:[#allocation39_spill] sm:$0xff] %v14350_v63  ;;  %v10324_v1 = vcombine.low %v1893_v51, %v1905_v21  ;;  %v2517_v59 = vor.u32 %v2516_v60, %v2513_v54  ;;  %v2529_v38 = vshrl.u32 %v2199_v50, 16  ;;  %v2532_v2 = vshll.u32 %v2199_v50, 16  ;;  %v14359_v11 = vpop.permute.xlu1 %3044 }
 0x231   : > { %v2145_v34 = vrot.slane %v2143_v41, 4  ;;  %v2148_v45 = vrot.slane %v2146_v26, 5  ;;  %v1953_v55 = vrot.slane %v14034_v19, %v14046_v31  ;;  %v1941_v53 = vrot.slane %v14038_v9, %v14046_v31  ;;  %v12320_v41 = vld [vmem:[%s17176_s5 + $0x28] sm:$0xff]  }
 0x232   : > { %v2152_v21 = vshrl.u32 %v10324_v1, 16  ;;  %v2155_v51 = vshll.u32 %v10324_v1, 16  ;;  %v10365_v54 = vcombine.low %v2921_v56, %v2932_v23  ;;  %v2518_v60 = vsel %vm2492_vm5, %v2508_v0, %v2517_v59 }
 0x233   : > { %v2531_v50 = vrot.slane %v2529_v38, 3  ;;  %v2540_v19 = vrot.slane %v2538_v18, 3  ;;  %v2543_v37 = vrot.slane %v2541_v15, 4  ;;  %v2202_v9 = vmul.bf16 %v14314_v4, %v14165_v58  ;;  %v14387_v38 = vld [vmem:[%s17176_s5 + $0x30] sm:$0xff]  }
 0x234   : > { %v2154_v1 = vrot.slane %v2152_v21, 4  ;;  %v2157_v61 = vrot.slane %v2155_v51, 5  ;;  %v2163_v26 = vrot.slane %v2161_v20, 4  ;;  %v2166_v56 = vrot.slane %v2164_v62, 5  ;;  %v14389_v18 = vpop.permute.xlu1 %3066 }
 0x235   : > { %11405 = vmatmul.mubr.msk.bf16.gmra.mrb[32].mxu1 %vm502_vm1, %v2270_v17  ;;  %v2526_v17 = vor.u32 %v2525_v5, %v2522_v33  ;;  %v2201_v33 = vmul.bf16 %v14311_v57, %v14124_v32  ;;  %v14382_v32 = vsel %vm2034_vm6, %v14322_v12, %v14352_v44  ;;  %v10326_v0 = vcombine.low %v1941_v53, %v1953_v55 }
 0x236   : > { %11412 = vmatprep.mubr.msk.bf16.mxu1 %vm502_vm1, %v2509_v25  ;;  %v2534_v25 = vrot.slane %v2532_v2, 4  ;;  %17470 = vst [vmem:[#allocation40_spill] sm:$0xff] %v14382_v32  ;;  %v3317_v23 = vshrl.u32 %v10365_v54, 16  ;;  %v2140_v2 = vor.u32 %v2139_v30, %v2136_v28  ;;  %v2149_v20 = vor.u32 %v2148_v45, %v2145_v34 }
 0x237   : > { %v2527_v5 = vsel %vm2492_vm5, %v2517_v59, %v2526_v17  ;;  %v3320_v59 = vshll.u32 %v10365_v54, 16  ;;  %v2547_v21 = vshrl.u32 %v2201_v33, 16  ;;  %v2550_v51 = vshll.u32 %v2201_v33, 16 }
 0x238   : > { %v2535_v15 = vor.u32 %v2534_v25, %v2531_v50  ;;  %v2544_v12 = vor.u32 %v2543_v37, %v2540_v19  ;;  %v2556_v62 = vshrl.u32 %v2202_v9, 16  ;;  %v2559_v55 = vshll.u32 %v2202_v9, 16 }
 0x239   : > { %v2158_v53 = vor.u32 %v2157_v61, %v2154_v1  ;;  %v14393_v54 = vor.u32 %v2166_v56, %v2163_v26  ;;  %v2954_v28 = vrot.slane %v14218_v42, %v14046_v31  ;;  %v2170_v30 = vshrl.u32 %v10326_v0, 16  ;;  %v14417_v61 = vpop.permute.xlu1 %3088 }
 0x23a   : > { %v3319_v39 = vrot.slane %v3317_v23, 3  ;;  %v3322_v50 = vrot.slane %v3320_v59, 4  ;;  %v2536_v34 = vsel %vm2492_vm5, %v2526_v17, %v2535_v15  ;;  %v2549_v45 = vrot.slane %v2547_v21, 3 }
 0x23b   : > { %v2552_v25 = vrot.slane %v2550_v51, 4  ;;  %v2203_v33 = vmul.bf16 %v14334_v13, %v14175_v47  ;;  %v2558_v19 = vrot.slane %v2556_v62, 3  ;;  %v2561_v42 = vrot.slane %v2559_v55, 4 }
 0x23c   : > { %v14409_v37 = vsel %vm2034_vm6, %v14352_v44, %v2140_v2  ;;  %v14412_v17 = vsel %vm2034_vm6, %v2140_v2, %v2149_v20  ;;  %v14415_v9 = vsel %vm2034_vm6, %v2149_v20, %v2158_v53  ;;  %v14424_v56 = vsel %vm2034_vm6, %v2158_v53, %v14393_v54 }
 0x23d   : > { %11413 = vmatmul.mubr.msk.bf16.vlgmr.msra.gmra.mrb[4].mxu1 %vm502_vm1, %v2518_v60  ;;  %v2943_v60 = vrot.slane %v14216_v24, %v14046_v31  ;;  %v2545_v24 = vsel %vm2492_vm5, %v2535_v15, %v2544_v12  ;;  %17471 = vst [vmem:[#allocation41_spill] sm:$0xff] %v14409_v37  ;;  %17472 = vst [vmem:[#allocation42_spill] sm:$0xff] %v14412_v17  ;;  %v2965_v44 = vrot.slane %v14244_v27, %v14046_v31 }
 0x23e   : > { %11445 = vmatpush3.bf16.msra.mxu1 %v14108_v35  ;;  %11416 = vmatprep.mubr.msk.bf16.mxu1 %vm502_vm1, %v2527_v5  ;;  %v14391_v35 = vpop.permute.xlu0 %3077  ;;  %v2173_v5 = vshll.u32 %v10326_v0, 16  ;;  %17473 = vst [vmem:[#allocation43_spill] sm:$0xff] %v14415_v9  ;;  %17474 = vst [vmem:[#allocation44_spill] sm:$0xff] %v14424_v56  ;;  %v2172_v0 = vrot.slane %v2170_v30, 4  ;;  %v2976_v23 = vrot.slane %v14246_v46, %v14046_v31  ;;  %v2565_v15 = vshrl.u32 %v2203_v33, 16 }
 0x23f   : > { %11446 = vmatprep.subr.bf16.mxu1 %v12320_v41  ;;  %v10366_v1 = vcombine.low %v2943_v60, %v2954_v28  ;;  %v2553_v2 = vor.u32 %v2552_v25, %v2549_v45  ;;  %v2568_v21 = vshll.u32 %v2203_v33, 16  ;;  %v3323_v51 = vor.u32 %v3322_v50, %v3319_v39  ;;  %v14440_v50 = vpop.permute.xlu1 %3110 }
 0x240   : > { %v2175_v59 = vrot.slane %v2173_v5, 5  ;;  %v2562_v20 = vor.u32 %v2561_v42, %v2558_v19  ;;  %v2987_v53 = vrot.slane %v14274_v7, %v14046_v31  ;;  %v2998_v30 = vrot.slane %v14276_v14, %v14046_v31 }
 0x241   : > { %v3326_v60 = vshrl.u32 %v10366_v1, 16  ;;  %v3329_v28 = vshll.u32 %v10366_v1, 16  ;;  %v10367_v27 = vcombine.low %v2965_v44, %v2976_v23  ;;  %v3009_v46 = vrot.slane %v14316_v22, %v14046_v31 }
 0x242   : > { %11447 = vmatpush3.bf16.msra.mxu1 %v12320_v41  ;;  %v2204_v41 = vmul.bf16 %v14350_v63, %v14179_v6  ;;  %v14419_v26 = vpop.permute.xlu0 %3099  ;;  %v3020_v5 = vrot.slane %v14318_v40, %v14046_v31  ;;  %v3031_v39 = vrot.slane %v14336_v36, %v14046_v31  ;;  %v2554_v45 = vsel %vm2492_vm5, %v2544_v12, %v2553_v2 }
 0x243   : > { %11480 = vmatprep.subr.bf16.mxu1 %v14387_v38  ;;  %v2567_v7 = vrot.slane %v2565_v15, 3  ;;  %v2570_v25 = vrot.slane %v2568_v21, 4  ;;  %v2205_v14 = vmul.bf16 %v14382_v32, %v14193_v43  ;;  %v2563_v22 = vsel %vm2492_vm5, %v2553_v2, %v2562_v20 }
 0x244   : > { %v2574_v62 = vshrl.u32 %v2204_v41, 16  ;;  %v2577_v55 = vshll.u32 %v2204_v41, 16  ;;  %v2206_v36 = vmul.bf16 %v14409_v37, %v14200_v8  ;;  %v3331_v19 = vrot.slane %v3329_v28, 4 }
 0x245   : > { %11417 = vmatmul.mubr.msk.bf16.gmra.mrb[8].mxu1 %vm502_vm1, %v2536_v34  ;;  %v10368_v42 = vcombine.low %v2987_v53, %v2998_v30  ;;  %v3042_v12 = vrot.slane %v14338_v29, %v14046_v31  ;;  %v14454_v41 = vor.u32 %v2175_v59, %v2172_v0  ;;  %v3335_v1 = vshrl.u32 %v10367_v27, 16 }
 0x246   : > { %11420 = vmatprep.mubr.msk.bf16.mxu1 %vm502_vm1, %v2545_v24  ;;  %v14442_v34 = vpop.permute.xlu0 %3121  ;;  %v2576_v33 = vrot.slane %v2574_v62, 3  ;;  %v2579_v40 = vrot.slane %v2577_v55, 4  ;;  %v3328_v24 = vrot.slane %v3326_v60, 3  ;;  %v3338_v44 = vshll.u32 %v10367_v27, 16  ;;  %v14466_v27 = vpop.permute.xlu1 %3132 }
 0x247   : > { %17475 = vst [vmem:[#allocation45_spill] sm:$0xff] %v14454_v41  ;;  %v10369_v23 = vcombine.low %v3009_v46, %v3020_v5  ;;  %v14458_v2 = vsel %vm2492_vm5, %v14120_v3, %v3323_v51  ;;  %v2571_v15 = vor.u32 %v2570_v25, %v2567_v7  ;;  %v2583_v21 = vshrl.u32 %v2205_v14, 16 }
 0x248   : > { %17476 = vst [vmem:[#allocation46_spill] sm:$0xff] %v14458_v2  ;;  %v2586_v62 = vshll.u32 %v2205_v14, 16  ;;  %v3053_v55 = vrot.slane %v14359_v11, %v14046_v31  ;;  %v2580_v60 = vor.u32 %v2579_v40, %v2576_v33  ;;  %v2592_v28 = vshrl.u32 %v2206_v36, 16 }
 0x249   : > { %v2595_v29 = vshll.u32 %v2206_v36, 16  ;;  %v14462_v53 = vor.u32 %v3331_v19, %v3328_v24  ;;  %v3344_v0 = vshrl.u32 %v10368_v42, 16  ;;  %v3347_v59 = vshll.u32 %v10368_v42, 16  ;;  %v17477_v36 = vld [vmem:[#allocation34_spill] sm:$0xff] }
 0x24a   : > { %v14464_v30 = vcombine.low %v3031_v39, %v3042_v12  ;;  %v14468_v46 = vpop.permute.xlu0 %3143  ;;  %v3337_v3 = vrot.slane %v3335_v1, 3  ;;  %v3340_v5 = vrot.slane %v3338_v44, 4  ;;  %v3356_v7 = vshll.u32 %v10369_v23, 16 }
 0x24b   : > { %v2572_v25 = vsel %vm2492_vm5, %v2562_v20, %v2571_v15  ;;  %v2585_v11 = vrot.slane %v2583_v21, 3  ;;  %v2588_v14 = vrot.slane %v2586_v62, 4  ;;  %v2581_v39 = vsel %vm2492_vm5, %v2571_v15, %v2580_v60  ;;  %v14489_v62 = vpop.permute.xlu1 %3154 }
 0x24c   : > { %v2594_v33 = vrot.slane %v2592_v28, 3  ;;  %v2597_v40 = vrot.slane %v2595_v29, 4  ;;  %v2208_v24 = vmul.bf16 %v14415_v9, %v17477_v36  ;;  %v14479_v19 = vsel %vm2492_vm5, %v3323_v51, %v14462_v53 }
 0x24d   : > { %11421 = vmatmul.mubr.msk.bf16.gmra.mrb[12].mxu1 %vm502_vm1, %v2554_v45  ;;  %v3353_v45 = vshrl.u32 %v10369_v23, 16  ;;  %17478 = vst [vmem:[#allocation34_spill] sm:$0xff] %v14479_v19  ;;  %v3346_v42 = vrot.slane %v3344_v0, 3  ;;  %v3362_v20 = vshrl.u32 %v14464_v30, 16  ;;  %v3064_v12 = vrot.slane %v14361_v16, %v14046_v31 }
 0x24e   : > { %11424 = vmatprep.mubr.msk.bf16.mxu1 %vm502_vm1, %v2563_v22  ;;  %v2207_v22 = vmul.bf16 %v14412_v17, %v14223_v48  ;;  %v3349_v1 = vrot.slane %v3347_v59, 4  ;;  %v3075_v23 = vrot.slane %v14389_v18, %v14046_v31  ;;  %v3086_v15 = vrot.slane %v14391_v35, %v14046_v31  ;;  %v14491_v51 = vpop.permute.xlu0 %3165 }
 0x24f   : > { %v3355_v44 = vrot.slane %v3353_v45, 3  ;;  %v3358_v21 = vrot.slane %v3356_v7, 4  ;;  %v2589_v28 = vor.u32 %v2588_v14, %v2585_v11  ;;  %v2598_v16 = vor.u32 %v2597_v40, %v2594_v33  ;;  %v17480_v33 = vld [vmem:[#allocation33_spill] sm:$0xff] }
 0x250   : > { %v2601_v29 = vshrl.u32 %v2207_v22, 16  ;;  %v2604_v0 = vshll.u32 %v2207_v22, 16  ;;  %v2610_v9 = vshrl.u32 %v2208_v24, 16  ;;  %v14493_v59 = vrot.slane %v3362_v20, 3 }
 0x251   : > { %v3365_v45 = vshll.u32 %v14464_v30, 16  ;;  %v10371_v18 = vcombine.low %v3053_v55, %v3064_v12  ;;  %v14499_v35 = vsel %vm2034_vm6, %v14393_v54, %v14454_v41  ;;  %v3350_v7 = vor.u32 %v3349_v1, %v3346_v42  ;;  %v3177_v12 = vpop.permute.xlu1 %3176 }
 0x252   : > { %17479 = vst [vmem:[#allocation47_spill] sm:$0xff] %v14499_v35  ;;  %v10372_v17 = vcombine.low %v3075_v23, %v3086_v15  ;;  %v3097_v11 = vrot.slane %v14417_v61, %v14046_v31  ;;  %v2603_v14 = vrot.slane %v2601_v29, 3  ;;  %v2606_v22 = vrot.slane %v2604_v0, 4  ;;  %v3188_v1 = vpop.permute.xlu0 %3187 }
 0x253   : > { %v2209_v55 = vmul.bf16 %v14424_v56, %v17480_v33  ;;  %v2599_v54 = vsel %vm2492_vm5, %v2589_v28, %v2598_v16  ;;  %v2612_v30 = vrot.slane %v2610_v9, 3  ;;  %v3371_v61 = vshrl.u32 %v10371_v18, 16 }
 0x254   : > { %v3374_v20 = vshll.u32 %v10371_v18, 16  ;;  %v14521_v9 = vor.u32 %v3358_v21, %v3355_v44  ;;  %v3380_v15 = vshrl.u32 %v10372_v17, 16  ;;  %v3367_v29 = vrot.slane %v3365_v45, 4 }
 0x255   : > { %11425 = vmatmul.mubr.msk.bf16.gmra.mrb[16].mxu1 %vm502_vm1, %v2572_v25  ;;  %v3341_v25 = vor.u32 %v3340_v5, %v3337_v3  ;;  %v3108_v3 = vrot.slane %v14419_v26, %v14046_v31  ;;  %v2590_v5 = vsel %vm2492_vm5, %v2580_v60, %v2589_v28  ;;  %v3119_v26 = vrot.slane %v14440_v50, %v14046_v31  ;;  %v3199_v21 = vpop.permute.xlu1 %3198 }
 0x256   : > { %11428 = vmatprep.mubr.msk.bf16.mxu1 %vm502_vm1, %v2581_v39  ;;  %v2613_v39 = vshll.u32 %v2208_v24, 16  ;;  %v17481_v24 = vld [vmem:[#allocation20_spill] sm:$0xff]  ;;  %v3130_v60 = vrot.slane %v14442_v34, %v14046_v31  ;;  %v3383_v28 = vshll.u32 %v10372_v17, 16  ;;  %v2607_v0 = vor.u32 %v2606_v22, %v2603_v14  ;;  %v3210_v45 = vpop.permute.xlu0 %3209 }
 0x257   : > { %v2210_v42 = vmul.bf16 %v14499_v35, %v17481_v24  ;;  %v14519_v23 = vsel %vm2492_vm5, %v14462_v53, %v3341_v25  ;;  %v2622_v18 = vshll.u32 %v2209_v55, 16  ;;  %v10373_v50 = vcombine.low %v3097_v11, %v3108_v3 }
 0x258   : > { %v2615_v40 = vrot.slane %v2613_v39, 4  ;;  %17482 = vst [vmem:[#allocation33_spill] sm:$0xff] %v14519_v23  ;;  %v2619_v39 = vshrl.u32 %v2209_v55, 16  ;;  %v14524_v56 = vsel %vm2492_vm5, %v3341_v25, %v3350_v7  ;;  %v3376_v37 = vrot.slane %v3374_v20, 4 }
 0x259   : > { %v2628_v35 = vshrl.u32 %v2210_v42, 16  ;;  %v2631_v34 = vshll.u32 %v2210_v42, 16  ;;  %17483 = vst [vmem:[#allocation20_spill] sm:$0xff] %v14524_v56  ;;  %v10374_v32 = vcombine.low %v3119_v26, %v3130_v60  ;;  %v3382_v53 = vrot.slane %v3380_v15, 3 }
 0x25a   : > { %v3385_v63 = vrot.slane %v3383_v28, 4  ;;  %v3141_v44 = vrot.slane %v14466_v27, %v14046_v31  ;;  %v3152_v17 = vrot.slane %v14468_v46, %v14046_v31  ;;  %v2211_v11 = vmul.bf16 %v14454_v41, %v14302_v52 }
 0x25b   : > { %v2608_v3 = vsel %vm2492_vm5, %v2598_v16, %v2607_v0  ;;  %v2621_v25 = vrot.slane %v2619_v39, 3  ;;  %v2624_v14 = vrot.slane %v2622_v18, 4  ;;  %v3389_v22 = vshrl.u32 %v10373_v50, 16 }
 0x25c   : > { %v3392_v27 = vshll.u32 %v10373_v50, 16  ;;  %v3398_v42 = vshrl.u32 %v10374_v32, 16  ;;  %v3163_v46 = vrot.slane %v14489_v62, %v14046_v31  ;;  %v3185_v52 = vrot.slane %v3177_v12, %v14046_v31 }
 0x25d   : > { %11429 = vmatmul.mubr.msk.bf16.gmra.mrb[20].mxu1 %vm502_vm1, %v2590_v5  ;;  %v2616_v5 = vor.u32 %v2615_v40, %v2612_v30  ;;  %v2630_v30 = vrot.slane %v2628_v35, 3  ;;  %v2633_v40 = vrot.slane %v2631_v34, 4  ;;  %v3196_v16 = vrot.slane %v3188_v1, %v14046_v31 }
 0x25e   : > { %11432 = vmatprep.mubr.msk.bf16.mxu1 %vm502_vm1, %v2599_v54  ;;  %v3373_v54 = vrot.slane %v3371_v61, 3  ;;  %v3174_v61 = vrot.slane %v14491_v51, %v14046_v31  ;;  %v3207_v20 = vrot.slane %v3199_v21, %v14046_v31  ;;  %v3218_v26 = vrot.slane %v3210_v45, %v14046_v31  ;;  %v14555_v45 = vld [vmem:[#allocation2 + $0x10] sm:$0xff] }
 0x25f   : > { %v2617_v55 = vsel %vm2492_vm5, %v2607_v0, %v2616_v5  ;;  %v14546_v35 = vsel %vm2492_vm5, %v3350_v7, %v14521_v9  ;;  %v2625_v60 = vor.u32 %v2624_v14, %v2621_v25  ;;  %v2637_v15 = vshrl.u32 %v2211_v11, 16  ;;  %17485 = vst [vmem:[#allocation49_spill] sm:$0xff] %v14555_v45  ;;  %v14567_v14 = vld [vmem:[#allocation2 + $0x20] sm:$0xff] }
 0x260   : > { %17484 = vst [vmem:[#allocation48_spill] sm:$0xff] %v14546_v35  ;;  %v2640_v62 = vshll.u32 %v2211_v11, 16  ;;  %v14549_v28 = vor.u32 %v3367_v29, %v14493_v59  ;;  %v3401_v51 = vshll.u32 %v10374_v32, 16  ;;  %v10375_v0 = vcombine.low %v3141_v44, %v3152_v17 }
 0x261   : > { %v2634_v39 = vor.u32 %v2633_v40, %v2630_v30  ;;  %v14551_v12 = vor.u32 %v3376_v37, %v3373_v54  ;;  %v3391_v1 = vrot.slane %v3389_v22, 3  ;;  %v3394_v18 = vrot.slane %v3392_v27, 4 }
 0x262   : > { %v10376_v50 = vcombine.low %v3163_v46, %v3174_v61  ;;  %v14553_v34 = vor.u32 %v3385_v63, %v3382_v53  ;;  %v3400_v31 = vrot.slane %v3398_v42, 3  ;;  %v10377_v21 = vcombine.low %v3185_v52, %v3196_v16  ;;  %v14562_v63 = vld [vmem:[#allocation2 + $0x18] sm:$0xff] }
 0x263   : > { %v10378_v7 = vcombine.low %v3207_v20, %v3218_v26  ;;  %v3461_v11 = vmul.bf16 %v14555_v45, %v14458_v2  ;;  %v2626_v59 = vsel %vm2492_vm5, %v2616_v5, %v2625_v60  ;;  %v2639_v32 = vrot.slane %v2637_v15, 3  ;;  %17486 = vst [vmem:[#allocation50_spill] sm:$0xff] %v14562_v63  ;;  %v14571_v26 = vld [vmem:[#allocation2 + $0x28] sm:$0xff] }
 0x264   : > { %v2642_v29 = vrot.slane %v2640_v62, 4  ;;  %v3403_v44 = vrot.slane %v3401_v51, 4  ;;  %v3407_v37 = vshrl.u32 %v10375_v0, 16  ;;  %v2635_v54 = vsel %vm2492_vm5, %v2625_v60, %v2634_v39 }
 0x265   : > { %11433 = vmatmul.mubr.msk.bf16.gmra.mrb[24].mxu1 %vm502_vm1, %v2608_v3  ;;  %v3462_v53 = vmul.bf16 %v14562_v63, %v14479_v19  ;;  %v3395_v17 = vor.u32 %v3394_v18, %v3391_v1  ;;  %v3410_v3 = vshll.u32 %v10375_v0, 16  ;;  %v3416_v25 = vshrl.u32 %v10376_v50, 16 }
 0x266   : > { %11436 = vmatprep.mubr.msk.bf16.mxu1 %vm502_vm1, %v2617_v55  ;;  %v3463_v5 = vmul.bf16 %v14567_v14, %v14519_v23  ;;  %v3419_v22 = vshll.u32 %v10376_v50, 16  ;;  %v3425_v55 = vshrl.u32 %v10377_v21, 16  ;;  %v3428_v30 = vshll.u32 %v10377_v21, 16 }
 0x267   : > { %v3434_v40 = vshrl.u32 %v10378_v7, 16  ;;  %v3437_v27 = vshll.u32 %v10378_v7, 16  ;;  %v2643_v42 = vor.u32 %v2642_v29, %v2639_v32  ;;  %v3498_v46 = vshrl.u32 %v3461_v11, 16 }
 0x268   : > { %v3501_v61 = vshll.u32 %v3461_v11, 16  ;;  %v3409_v52 = vrot.slane %v3407_v37, 3  ;;  %v3507_v16 = vshrl.u32 %v3462_v53, 16  ;;  %v3510_v20 = vshll.u32 %v3462_v53, 16 }
 0x269   : > { %v3464_v60 = vmul.bf16 %v14571_v26, %v14524_v56  ;;  %v3412_v15 = vrot.slane %v3410_v3, 4  ;;  %v3418_v62 = vrot.slane %v3416_v25, 3  ;;  %v3516_v51 = vshrl.u32 %v3463_v5, 16  ;;  %v17487_v3 = vld [vmem:[#allocation30_spill] sm:$0xff] }
 0x26a   : > { %v3519_v0 = vshll.u32 %v3463_v5, 16  ;;  %v3421_v1 = vrot.slane %v3419_v22, 4  ;;  %v3427_v18 = vrot.slane %v3425_v55, 3  ;;  %v3430_v50 = vrot.slane %v3428_v30, 4  ;;  %v14579_v22 = vld [vmem:[#allocation2 + $0x30] sm:$0xff] }
 0x26b   : > { %v3436_v21 = vrot.slane %v3434_v40, 3  ;;  %v3439_v7 = vrot.slane %v3437_v27, 4  ;;  %v3500_v11 = vrot.slane %v3498_v46, 4  ;;  %v3503_v32 = vrot.slane %v3501_v61, 5 }
 0x26c   : > { %v3509_v29 = vrot.slane %v3507_v16, 4  ;;  %v3512_v37 = vrot.slane %v3510_v20, 5  ;;  %v3528_v53 = vshll.u32 %v3464_v60, 16  ;;  %v3404_v41 = vor.u32 %v3403_v44, %v3400_v31 }
 0x26d   : > { %11437 = vmatmul.mubr.msk.bf16.gmra.mrb[28].mxu1 %vm502_vm1, %v2626_v59  ;;  %v2644_v59 = vsel %vm2492_vm5, %v2634_v39, %v2643_v42  ;;  %v3518_v25 = vrot.slane %v3516_v51, 4  ;;  %v3521_v5 = vrot.slane %v3519_v0, 5  ;;  %v3465_v55 = vmul.bf16 %v14579_v22, %v14546_v35  ;;  %v17497_v0 = vld [vmem:[#allocation29_spill] sm:$0xff] }
 0x26e   : > { %11440 = vmatprep.mubr.msk.bf16.mxu1 %vm502_vm1, %v2635_v54  ;;  %v3525_v54 = vshrl.u32 %v3464_v60, 16  ;;  %v14586_v39 = vsel %vm2492_vm5, %v14521_v9, %v14549_v28  ;;  %v3413_v30 = vor.u32 %v3412_v15, %v3409_v52  ;;  %v3422_v40 = vor.u32 %v3421_v1, %v3418_v62 }
 0x26f   : > { %17488 = vst [vmem:[#allocation30_spill] sm:$0xff] %v14586_v39  ;;  %v14591_v31 = vsel %vm2492_vm5, %v14549_v28, %v14551_v12  ;;  %v14596_v44 = vsel %vm2492_vm5, %v14551_v12, %v14553_v34  ;;  %v3431_v27 = vor.u32 %v3430_v50, %v3427_v18  ;;  %v3504_v42 = vor.u32 %v3503_v32, %v3500_v11 }
 0x270   : > { %17489 = vst [vmem:[#allocation51_spill] sm:$0xff] %v14591_v31  ;;  %17490 = vst [vmem:[#allocation52_spill] sm:$0xff] %v14596_v44  ;;  %v14598_v46 = vor.u32 %v3439_v7, %v3436_v21  ;;  %v3513_v61 = vor.u32 %v3512_v37, %v3509_v29  ;;  %v3527_v16 = vrot.slane %v3525_v54, 4  ;;  %v3530_v9 = vrot.slane %v3528_v53, 5 }
 0x271   : > { %v14602_v52 = vsel %vm2492_vm5, %v14553_v34, %v3395_v17  ;;  %v14605_v20 = vsel %vm2492_vm5, %v3395_v17, %v3404_v41  ;;  %v3522_v28 = vor.u32 %v3521_v5, %v3518_v25  ;;  %v3534_v60 = vshrl.u32 %v3465_v55, 16  ;;  %v12322_v34 = vld [vmem:[%s17176_s5 + $0x38] sm:$0xff]  }
 0x272   : > { %17491 = vst [vmem:[#allocation53_spill] sm:$0xff] %v14598_v46  ;;  %17492 = vst [vmem:[#allocation54_spill] sm:$0xff] %v14602_v52  ;;  %v14608_v15 = vsel %vm2492_vm5, %v3404_v41, %v3413_v30  ;;  %v14611_v12 = vsel %vm2492_vm5, %v3413_v30, %v3422_v40  ;;  %v3466_v62 = vmul.bf16 %v14586_v39, %v14165_v58  ;;  %v3537_v1 = vshll.u32 %v3465_v55, 16 }
 0x273   : > { %17493 = vst [vmem:[#allocation55_spill] sm:$0xff] %v14605_v20  ;;  %17494 = vst [vmem:[#allocation56_spill] sm:$0xff] %v14608_v15  ;;  %v3467_v51 = vmul.bf16 %v14591_v31, %v14175_v47  ;;  %v14621_v17 = vsel %vm2492_vm5, %v3422_v40, %v3431_v27  ;;  %v3505_v41 = vsel %vm2034_vm6, %v17497_v0, %v3504_v42  ;;  %v2866_v0 = vld [vmem:[#allocation2 + $0x80] sm:$0x1f] }
 0x274   : > { %17495 = vst [vmem:[#allocation57_spill] sm:$0xff] %v14611_v12  ;;  %17496 = vst [vmem:[#allocation58_spill] sm:$0xff] %v14621_v17  ;;  %v3468_v18 = vmul.bf16 %v14596_v44, %v14179_v6  ;;  %v3514_v58 = vsel %vm2034_vm6, %v3504_v42, %v3513_v61  ;;  %v14629_v50 = vor.u32 %v3530_v9, %v3527_v16  ;;  %v3536_v6 = vrot.slane %v3534_v60, 4 }
 0x275   : > { %11441 = vmatmul.mubr.msk.bf16.gmra.mrb[32].mxu1 %vm502_vm1, %v2644_v59  ;;  %v3469_v47 = vmul.bf16 %v14602_v52, %v14193_v43  ;;  %v14635_v21 = vsel %vm2492_vm5, %v3431_v27, %v14598_v46  ;;  %v3523_v7 = vsel %vm2034_vm6, %v3513_v61, %v3522_v28  ;;  %v3470_v59 = vmul.bf16 %v14605_v20, %v14200_v8 }
 0x276   : > { %11448 = vmatprep.mubr.msk.bf16.mxu1 %vm502_vm1, %v17487_v3  ;;  %17498 = vst [vmem:[#allocation29_spill] sm:$0xff] %v14635_v21  ;;  %v3471_v11 = vmul.bf16 %v14608_v15, %v14223_v48  ;;  %v3543_v32 = vshrl.u32 %v3466_v62, 16  ;;  %v3546_v29 = vshll.u32 %v3466_v62, 16  ;;  %v3552_v43 = vshrl.u32 %v3467_v51, 16 }
 0x277   : > { %v3555_v37 = vshll.u32 %v3467_v51, 16  ;;  %v3539_v54 = vrot.slane %v3537_v1, 5  ;;  %v3561_v53 = vshrl.u32 %v3468_v18, 16  ;;  %v3564_v3 = vshll.u32 %v3468_v18, 16 }
 0x278   : > { %v3472_v25 = vmul.bf16 %v14611_v12, %v17477_v36  ;;  %v3532_v8 = vsel %vm2034_vm6, %v3522_v28, %v14629_v50  ;;  %v3570_v48 = vshrl.u32 %v3469_v47, 16  ;;  %v3573_v5 = vshll.u32 %v3469_v47, 16 }
 0x279   : > { %v3473_v55 = vmul.bf16 %v14621_v17, %v17480_v33  ;;  %v3579_v30 = vshrl.u32 %v3470_v59, 16  ;;  %v3582_v40 = vshll.u32 %v3470_v59, 16  ;;  %v3588_v27 = vshrl.u32 %v3471_v11, 16 }
 0x27a   : > { %v3591_v42 = vshll.u32 %v3471_v11, 16  ;;  %v3545_v61 = vrot.slane %v3543_v32, 4  ;;  %v3548_v16 = vrot.slane %v3546_v29, 5  ;;  %v3554_v9 = vrot.slane %v3552_v43, 4 }
 0x27b   : > { %v3557_v60 = vrot.slane %v3555_v37, 5  ;;  %v3563_v36 = vrot.slane %v3561_v53, 4  ;;  %v3566_v62 = vrot.slane %v3564_v3, 5  ;;  %v3597_v51 = vshrl.u32 %v3472_v25, 16 }
 0x27c   : > { %v3600_v28 = vshll.u32 %v3472_v25, 16  ;;  %v3575_v33 = vrot.slane %v3573_v5, 5  ;;  %v3609_v1 = vshll.u32 %v3473_v55, 16  ;;  %v3581_v18 = vrot.slane %v3579_v30, 4  ;;  %v3885_v30 = vld [vmem:[#allocation2 + $0x8] sm:$0xf8] }
 0x27d   : > { %11449 = vmatmul.mubr.msk.bf16.vlgmr.msra.gmra.mrb[4].mxu1 %vm502_vm1, %v3505_v41  ;;  %v3572_v41 = vrot.slane %v3570_v48, 4  ;;  %v3590_v47 = vrot.slane %v3588_v27, 4  ;;  %v3593_v59 = vrot.slane %v3591_v42, 5  ;;  %v3540_v11 = vor.u32 %v3539_v54, %v3536_v6  ;;  %v14663_v42 = vld [vmem:[#allocation2 + $0x18] sm:$0xff] }
 0x27e   : > { %11481 = vmatpush3.bf16.msra.mxu1 %v14387_v38  ;;  %11452 = vmatprep.mubr.msk.bf16.mxu1 %vm502_vm1, %v3514_v58  ;;  %v14647_v38 = vld [vmem:[%s17176_s5 + $0x40] sm:$0xff]   ;;  %v3584_v58 = vrot.slane %v3582_v40, 5  ;;  %v3549_v32 = vor.u32 %v3548_v16, %v3545_v61  ;;  %v3474_v29 = vmul.bf16 %v14635_v21, %v17481_v24  ;;  %v3475_v43 = vmul.bf16 %v14598_v46, %v2866_v0  ;;  %v14679_v0 = vld [vmem:[#allocation2 + $0x28] sm:$0xff]  ;;  %v5079_v21 = vld [vmem:[#allocation2 + $0x90] sm:$0xf] }
 0x27f   : > { %11482 = vmatprep.subr.bf16.mxu1 %v12322_v34  ;;  %v3558_v37 = vor.u32 %v3557_v60, %v3554_v9  ;;  %v3567_v53 = vor.u32 %v3566_v62, %v3563_v36  ;;  %v3602_v3 = vrot.slane %v3600_v28, 5  ;;  %v3576_v25 = vor.u32 %v3575_v33, %v3572_v41  ;;  %17499 = vst [vmem:[#allocation59_spill] sm:$0xff] %v14663_v42  ;;  %v14665_v24 = vld [vmem:[#allocation2 + $0x20] sm:$0xff] }
 0x280   : > { %v3611_v5 = vrot.slane %v3609_v1, 5  ;;  %v3541_v40 = vsel %vm2034_vm6, %v14629_v50, %v3540_v11  ;;  %v3615_v6 = vshrl.u32 %v3474_v29, 16  ;;  %v3618_v54 = vshll.u32 %v3474_v29, 16  ;;  %17500 = vst [vmem:[#allocation60_spill] sm:$0xff] %v14665_v24  ;;  %17502 = vst [vmem:[#allocation61_spill] sm:$0xff] %v14679_v0  ;;  %v14698_v29 = vld [vmem:[#allocation2 + $0x38] sm:$0xff] }
 0x281   : > { %v3624_v27 = vshrl.u32 %v3475_v43, 16  ;;  %v3550_v61 = vsel %vm2034_vm6, %v3540_v11, %v3549_v32  ;;  %v3559_v16 = vsel %vm2034_vm6, %v3549_v32, %v3558_v37  ;;  %v3568_v9 = vsel %vm2034_vm6, %v3558_v37, %v3567_v53  ;;  %v17504_v11 = vld [vmem:[#allocation35_spill] sm:$0xff]  ;;  %17505 = vst [vmem:[#allocation63_spill] sm:$0xff] %v14698_v29  ;;  %v14702_v37 = vld [vmem:[#allocation2 + $0x48] sm:$0xff] }
 0x282   : > { %11483 = vmatpush3.bf16.msra.mxu1 %v12322_v34  ;;  %v3606_v34 = vshrl.u32 %v3473_v55, 16  ;;  %v3585_v55 = vor.u32 %v3584_v58, %v3581_v18  ;;  %v14672_v36 = vsel %vm2034_vm6, %v3567_v53, %v3576_v25  ;;  %v3627_v62 = vshll.u32 %v3475_v43, 16  ;;  %v14700_v43 = vld [vmem:[#allocation2 + $0x40] sm:$0xff] }
 0x283   : > { %11516 = vmatprep.subr.bf16.mxu1 %v14647_v38  ;;  %v17260_v1 = vrot.slane %v14663_v42, 4  ;;  %v5531_v18 = vrot.slane %v14665_v24, 4  ;;  %v3617_v58 = vrot.slane %v3615_v6, 4  ;;  %v14696_v32 = vmul.bf16 %v14555_v45, %v17504_v11  ;;  %17506 = vst [vmem:[#allocation64_spill] sm:$0xff] %v14700_v43  ;;  %v14728_v6 = vld [vmem:[#allocation2 + $0x60] sm:$0xff]  ;;  %v14743_v11 = vld [vmem:[#allocation2 + $0x78] sm:$0xff] }
 0x284   : > { %v3608_v48 = vrot.slane %v3606_v34, 4  ;;  %v14683_v41 = vsel %vm2034_vm6, %v3576_v25, %v3585_v55  ;;  %v14688_v34 = vld [vmem:[#allocation2 + $0x30] sm:$0xff] }
 0x285   : > { %11453 = vmatmul.mubr.msk.bf16.gmra.mrb[8].mxu1 %vm502_vm1, %v3523_v7  ;;  %v3599_v7 = vrot.slane %v3597_v51, 4  ;;  %v17501_v51 = vld [vmem:[#allocation31_spill] sm:$0xff]  ;;  %17503 = vst [vmem:[#allocation62_spill] sm:$0xff] %v14688_v34  ;;  %v14711_v25 = vld [vmem:[#allocation2 + $0x50] sm:$0xff] }
 0x286   : > { %11456 = vmatprep.mubr.msk.bf16.mxu1 %vm502_vm1, %v3532_v8  ;;  %v3594_v8 = vor.u32 %v3593_v59, %v3590_v47  ;;  %v14674_v50 = vor.u32 %v3611_v5, %v3608_v48  ;;  %v14677_v28 = vmul.bf16 %v3885_v30, %v17501_v51  ;;  %v3620_v47 = vrot.slane %v3618_v54, 5  ;;  %v14713_v48 = vld [vmem:[#allocation2 + $0x58] sm:$0xff]  ;;  %v14745_v51 = vld [vmem:[#allocation2 + $0x88] sm:$0xff] }
 0x287   : > { %v3603_v60 = vor.u32 %v3602_v3, %v3599_v7  ;;  %v14692_v59 = vrot.slane %v3624_v27, 4  ;;  %v17507_v7 = vld [vmem:[#allocation19_spill] sm:$0xff]  ;;  %v14718_v5 = vsel %vm1487_vm4, %v17260_v1, %v5531_v18  ;;  %v5535_v54 = vrot.slane %v14688_v34, 4  ;;  %v14731_v27 = vld [vmem:[#allocation2 + $0x68] sm:$0xff]  ;;  %17510 = vst [vmem:[#allocation67_spill] sm:$0xff] %v14745_v51 }
 0x288   : > { %v14686_v33 = vsel %vm2034_vm6, %v3585_v55, %v3594_v8  ;;  %v14709_v3 = vmul.bf16 %v14562_v63, %v17507_v7  ;;  %17508 = vst [vmem:[#allocation65_spill] sm:$0xff] %v14718_v5  ;;  %v5533_v55 = vrot.slane %v14679_v0, 4  ;;  %v5537_v1 = vrot.slane %v14698_v29, 4 }
 0x289   : > { %v14705_v53 = vsel %vm2034_vm6, %v3594_v8, %v3603_v60  ;;  %v14723_v30 = vsel %vm2034_vm6, %v3603_v60, %v14674_v50  ;;  %v14725_v8 = vrot.slane %v3627_v62, 5  ;;  %v5539_v5 = vrot.slane %v14700_v43, 4  ;;  %v14741_v62 = vld [vmem:[#allocation2 + $0x70] sm:$0xff] }
 0x28a   : > { %v5541_v60 = vrot.slane %v14702_v37, 4  ;;  %v14739_v7 = vor.u32 %v3620_v47, %v3617_v58  ;;  %v14748_v46 = vsel %vm1487_vm4, %v5533_v55, %v5535_v54  ;;  %v14753_v17 = vsel %vm1487_vm4, %v5535_v54, %v5537_v1 }
 0x28b   : > { %17511 = vst [vmem:[#allocation68_spill] sm:$0xff] %v14748_v46  ;;  %17512 = vst [vmem:[#allocation69_spill] sm:$0xff] %v14753_v17  ;;  %v14756_v58 = vsel %vm1487_vm4, %v5537_v1, %v5539_v5  ;;  %v5547_v63 = vrot.slane %v14728_v6, 4  ;;  %v5549_v54 = vrot.slane %v14731_v27, 4 }
 0x28c   : > { %17513 = vst [vmem:[#allocation70_spill] sm:$0xff] %v14756_v58  ;;  %v14759_v47 = vsel %vm1487_vm4, %v5539_v5, %v5541_v60  ;;  %v5551_v5 = vrot.slane %v14741_v62, 4 }
 0x28d   : > { %11457 = vmatmul.mubr.msk.bf16.gmra.mrb[12].mxu1 %vm502_vm1, %v3541_v40  ;;  %v3924_v40 = vshrl.u32 %v14677_v28, 16  ;;  %17514 = vst [vmem:[#allocation71_spill] sm:$0xff] %v14759_v47  ;;  %v17271_v47 = vrot.slane %v14743_v11, 4 }
 0x28e   : > { %11460 = vmatprep.mubr.msk.bf16.mxu1 %vm502_vm1, %v3550_v61  ;;  %v14734_v61 = vsel %vm1487_vm4, %v5531_v18, %v5533_v55  ;;  %v5543_v18 = vrot.slane %v14711_v25, 4  ;;  %v3927_v55 = vshll.u32 %v14677_v28, 16  ;;  %v3932_v28 = vshrl.u32 %v14696_v32, 16 }
 0x28f   : > { %17509 = vst [vmem:[#allocation66_spill] sm:$0xff] %v14734_v61  ;;  %v5545_v61 = vrot.slane %v14713_v48, 4  ;;  %v14784_v58 = vrot.slane %v3924_v40, 3  ;;  %v17522_v40 = vrot.slane %v14745_v51, 4  ;;  %v5820_v51 = vmul.bf16 %v14698_v29, %v14524_v56 }
 0x290   : > { %v14765_v46 = vsel %vm1487_vm4, %v5541_v60, %v5543_v18  ;;  %v14780_v60 = vsel %vm1487_vm4, %v5547_v63, %v5549_v54 }
 0x291   : > { %17515 = vst [vmem:[#allocation72_spill] sm:$0xff] %v14765_v46  ;;  %v14768_v45 = vsel %vm1487_vm4, %v5543_v18, %v5545_v61  ;;  %v14773_v1 = vsel %vm1487_vm4, %v5545_v61, %v5547_v63  ;;  %17518 = vst [vmem:[#allocation75_spill] sm:$0xff] %v14780_v60  ;;  %v5559_v18 = vrot.slane %v5079_v21, 4  ;;  %v14788_v61 = vsel %vm1487_vm4, %v5549_v54, %v5551_v5 }
 0x292   : > { %17516 = vst [vmem:[#allocation73_spill] sm:$0xff] %v14768_v45  ;;  %17517 = vst [vmem:[#allocation74_spill] sm:$0xff] %v14773_v1  ;;  %v17519_v45 = vld [vmem:[#allocation28_spill] sm:$0xff]  ;;  %v14798_v63 = vsel %vm2034_vm6, %v14674_v50, %v14739_v7  ;;  %v14800_v21 = vrot.slane %v3927_v55, 4  ;;  %v14813_v50 = vrot.slane %v3932_v28, 3 }
 0x293   : > { %v5816_v46 = vmul.bf16 %v14663_v42, %v17519_v45  ;;  %17520 = vst [vmem:[#allocation76_spill] sm:$0xff] %v14788_v61  ;;  %v14805_v60 = vsel %vm1487_vm4, %v17522_v40, %v5559_v18  ;;  %v5817_v61 = vmul.bf16 %v14665_v24, %v14458_v2  ;;  %v5821_v18 = vmul.bf16 %v14700_v43, %v14546_v35  ;;  %v17524_v35 = vld [vmem:[#allocation36_spill] sm:$0xff] }
 0x294   : > { %17523 = vst [vmem:[#allocation78_spill] sm:$0xff] %v14805_v60  ;;  %v5881_v42 = vshrl.u32 %v5820_v51, 16 }
 0x295   : > { %11461 = vmatmul.mubr.msk.bf16.gmra.mrb[16].mxu1 %vm502_vm1, %v3559_v16  ;;  %v14793_v16 = vsel %vm1487_vm4, %v5551_v5, %v17271_v47  ;;  %v5848_v54 = vshll.u32 %v5816_v46, 16  ;;  %v5818_v5 = vmul.bf16 %v14679_v0, %v14479_v19  ;;  %v5819_v47 = vmul.bf16 %v14688_v34, %v14519_v23 }
 0x296   : > { %11464 = vmatprep.mubr.msk.bf16.mxu1 %vm502_vm1, %v3568_v9  ;;  %v3935_v9 = vshll.u32 %v14696_v32, 16  ;;  %17521 = vst [vmem:[#allocation77_spill] sm:$0xff] %v14793_v16  ;;  %v5845_v32 = vshrl.u32 %v5816_v46, 16  ;;  %v5854_v46 = vshrl.u32 %v5817_v61, 16  ;;  %v5857_v60 = vshll.u32 %v5817_v61, 16 }
 0x297   : > { %v5850_v40 = vrot.slane %v5848_v54, 5  ;;  %v5863_v16 = vshrl.u32 %v5818_v5, 16  ;;  %v5866_v17 = vshll.u32 %v5818_v5, 16  ;;  %v5872_v34 = vshrl.u32 %v5819_v47, 16 }
 0x298   : > { %v5847_v55 = vrot.slane %v5845_v32, 4  ;;  %v14821_v1 = vrot.slane %v3935_v9, 4  ;;  %v5875_v28 = vshll.u32 %v5819_v47, 16  ;;  %v5856_v29 = vrot.slane %v5854_v46, 4 }
 0x299   : > { %v5859_v0 = vrot.slane %v5857_v60, 5  ;;  %v5865_v43 = vrot.slane %v5863_v16, 4  ;;  %v5868_v54 = vrot.slane %v5866_v17, 5  ;;  %v5874_v24 = vrot.slane %v5872_v34, 4 }
 0x29a   : > { %v14825_v32 = vor.u32 %v5850_v40, %v5847_v55  ;;  %v5877_v61 = vrot.slane %v5875_v28, 5  ;;  %v5884_v5 = vshll.u32 %v5820_v51, 16  ;;  %v5890_v56 = vshrl.u32 %v5821_v18, 16 }
 0x29b   : > { %v5860_v9 = vor.u32 %v5859_v0, %v5856_v29  ;;  %v5869_v47 = vor.u32 %v5868_v54, %v5865_v43  ;;  %v5883_v19 = vrot.slane %v5881_v42, 4  ;;  %v5822_v34 = vmul.bf16 %v14702_v37, %v14586_v39 }
 0x29c   : > { %v5878_v23 = vor.u32 %v5877_v61, %v5874_v24  ;;  %v5886_v16 = vrot.slane %v5884_v5, 5  ;;  %v5892_v17 = vrot.slane %v5890_v56, 4  ;;  %v5823_v42 = vmul.bf16 %v14711_v25, %v14591_v31 }
 0x29d   : > { %11465 = vmatmul.mubr.msk.bf16.gmra.mrb[20].mxu1 %vm502_vm1, %v14672_v36  ;;  %v14829_v36 = vmul.bf16 %v14567_v14, %v17524_v35  ;;  %v14833_v55 = vsel %vm2034_vm6, %v14825_v32, %v5860_v9  ;;  %v14838_v60 = vsel %vm2034_vm6, %v5860_v9, %v5869_v47  ;;  %v5899_v29 = vshrl.u32 %v5822_v34, 16 }
 0x29e   : > { %11468 = vmatprep.mubr.msk.bf16.mxu1 %vm502_vm1, %v14683_v41  ;;  %v5893_v41 = vshll.u32 %v5821_v18, 16  ;;  %v14841_v0 = vsel %vm2034_vm6, %v5869_v47, %v5878_v23  ;;  %v5887_v24 = vor.u32 %v5886_v16, %v5883_v19  ;;  %v5902_v43 = vshll.u32 %v5822_v34, 16 }
 0x29f   : > { %v5824_v18 = vmul.bf16 %v14713_v48, %v14596_v44  ;;  %v5908_v37 = vshrl.u32 %v5823_v42, 16  ;;  %v5911_v40 = vshll.u32 %v5823_v42, 16  ;;  %v5825_v46 = vmul.bf16 %v14728_v6, %v14602_v52 }
 0x2a0   : > { %v5895_v51 = vrot.slane %v5893_v41, 5  ;;  %v14854_v25 = vsel %vm2034_vm6, %v5878_v23, %v5887_v24  ;;  %v5901_v19 = vrot.slane %v5899_v29, 4  ;;  %v5904_v28 = vrot.slane %v5902_v43, 5 }
 0x2a1   : > { %17525 = vst [vmem:[#allocation79_spill] sm:$0xff] %v14854_v25  ;;  %v5917_v54 = vshrl.u32 %v5824_v18, 16  ;;  %v5910_v61 = vrot.slane %v5908_v37, 4  ;;  %v5920_v9 = vshll.u32 %v5824_v18, 16  ;;  %v5926_v41 = vshrl.u32 %v5825_v46, 16 }
 0x2a2   : > { %v5896_v56 = vor.u32 %v5895_v51, %v5892_v17  ;;  %v5905_v5 = vor.u32 %v5904_v28, %v5901_v19  ;;  %v5929_v16 = vshll.u32 %v5825_v46, 16  ;;  %v5827_v23 = vmul.bf16 %v14741_v62, %v14608_v15 }
 0x2a3   : > { %v5919_v47 = vrot.slane %v5917_v54, 4  ;;  %v5922_v17 = vrot.slane %v5920_v9, 5  ;;  %v5928_v51 = vrot.slane %v5926_v41, 4 }
 0x2a4   : > { %v14857_v48 = vsel %vm2034_vm6, %v5887_v24, %v5896_v56  ;;  %v14864_v34 = vsel %vm2034_vm6, %v5896_v56, %v5905_v5  ;;  %v5931_v42 = vrot.slane %v5929_v16, 5  ;;  %v5828_v24 = vmul.bf16 %v14743_v11, %v14611_v12 }
 0x2a5   : > { %11469 = vmatmul.mubr.msk.bf16.gmra.mrb[24].mxu1 %vm502_vm1, %v14686_v33  ;;  %17526 = vst [vmem:[#allocation80_spill] sm:$0xff] %v14857_v48  ;;  %v5913_v33 = vrot.slane %v5911_v40, 5  ;;  %17527 = vst [vmem:[#allocation81_spill] sm:$0xff] %v14864_v34  ;;  %v5923_v43 = vor.u32 %v5922_v17, %v5919_v47  ;;  %v5944_v46 = vshrl.u32 %v5827_v23, 16  ;;  %v3630_v47 = vor.u32 %v14725_v8, %v14692_v59 }
 0x2a6   : > { %11472 = vmatprep.mubr.msk.bf16.mxu1 %vm502_vm1, %v14705_v53  ;;  %v5826_v53 = vmul.bf16 %v14731_v27, %v14605_v20  ;;  %v5932_v40 = vor.u32 %v5931_v42, %v5928_v51  ;;  %v5947_v27 = vshll.u32 %v5827_v23, 16  ;;  %v5953_v19 = vshrl.u32 %v5828_v24, 16 }
 0x2a7   : > { %v5914_v6 = vor.u32 %v5913_v33, %v5910_v61  ;;  %v5956_v54 = vshll.u32 %v5828_v24, 16  ;;  %v5946_v33 = vrot.slane %v5944_v46, 4  ;;  %v3938_v17 = vor.u32 %v14821_v1, %v14813_v50 }
 0x2a8   : > { %v5935_v18 = vshrl.u32 %v5826_v53, 16  ;;  %v5938_v37 = vshll.u32 %v5826_v53, 16  ;;  %v14879_v61 = vsel %vm2034_vm6, %v5923_v43, %v5932_v40  ;;  %v5949_v9 = vrot.slane %v5947_v27, 5 }
 0x2a9   : > { %v14869_v29 = vsel %vm2034_vm6, %v5905_v5, %v5914_v6  ;;  %v14874_v62 = vsel %vm2034_vm6, %v5914_v6, %v5923_v43  ;;  %17530 = vst [vmem:[#allocation84_spill] sm:$0xff] %v14879_v61  ;;  %v5955_v5 = vrot.slane %v5953_v19, 4  ;;  %v5958_v16 = vrot.slane %v5956_v54, 5 }
 0x2aa   : > { %17528 = vst [vmem:[#allocation82_spill] sm:$0xff] %v14869_v29  ;;  %17529 = vst [vmem:[#allocation83_spill] sm:$0xff] %v14874_v62  ;;  %v5937_v56 = vrot.slane %v5935_v18, 4  ;;  %v5940_v28 = vrot.slane %v5938_v37, 5  ;;  %v3930_v6 = vor.u32 %v14800_v21, %v14784_v58  ;;  %v5950_v53 = vor.u32 %v5949_v9, %v5946_v33  ;;  %v14916_v9 = vld [vmem:[#allocation2 + $0x38] sm:$0xff] }
 0x2ab   : > { %v3950_v23 = vshrl.u32 %v14829_v36, 16  ;;  %v3953_v51 = vshll.u32 %v14829_v36, 16  ;;  %v14894_v59 = vor.u32 %v5958_v16, %v5955_v5  ;;  %v3906_v50 = vmul.bf16 %v14571_v26, %v14272_v10  ;;  %v14922_v16 = vld [vmem:[#allocation2 + $0x40] sm:$0xff]  ;;  %v14982_v62 = vld [vmem:[#allocation2 + $0x88] sm:$0xf] }
 0x2ac   : > { %v5941_v41 = vor.u32 %v5940_v28, %v5937_v56  ;;  %v3939_v36 = vsel %vm2492_vm5, %v3930_v6, %v3938_v17  ;;  %v3907_v18 = vmul.bf16 %v14579_v22, %v14308_v49  ;;  %v12324_v56 = vld [vmem:[%s17176_s5 + $0x48] sm:$0xff]   ;;  %v3908_v5 = vmul.bf16 %v14916_v9, %v14311_v57 }
 0x2ad   : > { %11473 = vmatmul.mubr.msk.bf16.gmra.mrb[28].mxu1 %vm502_vm1, %v14723_v30  ;;  %v3941_v30 = vshrl.u32 %v14709_v3, 16  ;;  %17532 = vst [vmem:[#allocation86_spill] sm:$0xff] %v14894_v59  ;;  %v14901_v58 = vsel %vm2034_vm6, %v5950_v53, %v14894_v59  ;;  %v3952_v24 = vrot.slane %v3950_v23, 3  ;;  %v3955_v43 = vrot.slane %v3953_v51, 4 }
 0x2ae   : > { %11476 = vmatprep.mubr.msk.bf16.mxu1 %vm502_vm1, %v14798_v63  ;;  %v3944_v63 = vshll.u32 %v14709_v3, 16  ;;  %v14892_v42 = vsel %vm2034_vm6, %v5932_v40, %v5941_v41  ;;  %v14897_v8 = vsel %vm2034_vm6, %v5941_v41, %v5950_v53  ;;  %17534 = vst [vmem:[#allocation88_spill] sm:$0xff] %v14901_v58  ;;  %v3631_v3 = vsel %vm2034_vm6, %v14739_v7, %v3630_v47  ;;  %v14970_v58 = vld [vmem:[#allocation2 + $0x80] sm:$0xff] }
 0x2af   : > { %17531 = vst [vmem:[#allocation85_spill] sm:$0xff] %v14892_v42  ;;  %17533 = vst [vmem:[#allocation87_spill] sm:$0xff] %v14897_v8  ;;  %v3943_v1 = vrot.slane %v3941_v30, 3  ;;  %v3959_v40 = vshrl.u32 %v3906_v50, 16  ;;  %v3962_v46 = vshll.u32 %v3906_v50, 16  ;;  %v3956_v7 = vor.u32 %v3955_v43, %v3952_v24  ;;  %v17540_v8 = vld [vmem:[#allocation44_spill] sm:$0xff] }
 0x2b0   : > { %v3946_v21 = vrot.slane %v3944_v63, 4  ;;  %v3968_v27 = vshrl.u32 %v3907_v18, 16  ;;  %v3971_v19 = vshll.u32 %v3907_v18, 16  ;;  %v3909_v6 = vmul.bf16 %v14922_v16, %v14314_v4 }
 0x2b1   : > { %v3961_v54 = vrot.slane %v3959_v40, 3  ;;  %v3964_v33 = vrot.slane %v3962_v46, 4  ;;  %v3977_v53 = vshrl.u32 %v3908_v5, 16  ;;  %v3980_v23 = vshll.u32 %v3908_v5, 16  ;;  %v14941_v40 = vld [vmem:[#allocation2 + $0x50] sm:$0xff]  ;;  %v17535_v46 = vld [vmem:[#allocation39_spill] sm:$0xff] }
 0x2b2   : > { %v3947_v37 = vor.u32 %v3946_v21, %v3943_v1  ;;  %v3970_v30 = vrot.slane %v3968_v27, 3  ;;  %v3973_v41 = vrot.slane %v3971_v19, 4  ;;  %v3989_v1 = vshll.u32 %v3909_v6, 16 }
 0x2b3   : > { %v3965_v63 = vor.u32 %v3964_v33, %v3961_v54  ;;  %v3982_v50 = vrot.slane %v3980_v23, 4  ;;  %v3911_v27 = vmul.bf16 %v14941_v40, %v17535_v46 }
 0x2b4   : > { %v3948_v28 = vsel %vm2492_vm5, %v3938_v17, %v3947_v37  ;;  %v3957_v47 = vsel %vm2492_vm5, %v3947_v37, %v3956_v7  ;;  %v14931_v17 = vld [vmem:[%s17176_s5 + $0x50] sm:$0xff]   ;;  %v3974_v51 = vor.u32 %v3973_v41, %v3970_v30  ;;  %v3991_v37 = vrot.slane %v3989_v1, 4  ;;  %v14947_v41 = vld [vmem:[#allocation2 + $0x58] sm:$0xff]  ;;  %v14953_v1 = vld [vmem:[#allocation2 + $0x60] sm:$0xff] }
 0x2b5   : > { %11477 = vmatmul.mubr.msk.bf16.gmra.mrb[32].mxu1 %vm502_vm1, %v3631_v3  ;;  %v3986_v3 = vshrl.u32 %v3909_v6, 16  ;;  %v3966_v21 = vsel %vm2492_vm5, %v3956_v7, %v3965_v63  ;;  %v4004_v54 = vshrl.u32 %v3911_v27, 16  ;;  %v4007_v33 = vshll.u32 %v3911_v27, 16  ;;  %v17536_v6 = vld [vmem:[#allocation40_spill] sm:$0xff] }
 0x2b6   : > { %11484 = vmatprep.mubr.msk.bf16.mxu1 %vm502_vm1, %v3939_v36  ;;  %v14935_v36 = vld [vmem:[#allocation2 + $0x48] sm:$0xff]  ;;  %v3975_v43 = vsel %vm2492_vm5, %v3965_v63, %v3974_v51  ;;  %v3912_v63 = vmul.bf16 %v14947_v41, %v17536_v6 }
 0x2b7   : > { %v3910_v24 = vmul.bf16 %v14935_v36, %v14334_v13  ;;  %v3988_v18 = vrot.slane %v3986_v3, 3  ;;  %v4006_v23 = vrot.slane %v4004_v54, 3  ;;  %v4009_v3 = vrot.slane %v4007_v33, 4  ;;  %v17538_v54 = vld [vmem:[#allocation42_spill] sm:$0xff] }
 0x2b9   : > { %v3995_v19 = vshrl.u32 %v3910_v24, 16 }
 0x2bd   : > { %11485 = vmatmul.mubr.msk.bf16.vlgmr.msra.gmra.mrb[4].mxu1 %vm502_vm1, %v3948_v28  ;;  %v3992_v28 = vor.u32 %v3991_v37, %v3988_v18 }
 0x2be   : > { %11517 = vmatpush3.bf16.msra.mxu1 %v14647_v38  ;;  %11488 = vmatprep.mubr.msk.bf16.mxu1 %vm502_vm1, %v3957_v47  ;;  %v3979_v38 = vrot.slane %v3977_v53, 3  ;;  %v3997_v47 = vrot.slane %v3995_v19, 3 }
 0x2bf   : > { %11518 = vmatprep.subr.bf16.mxu1 %v12324_v56 }
 0x2c0   : > { %v3983_v7 = vor.u32 %v3982_v50, %v3979_v38  ;;  %v4013_v50 = vshrl.u32 %v3912_v63, 16 }
 0x2c2   : > { %11519 = vmatpush3.bf16.msra.mxu1 %v12324_v56  ;;  %v3998_v56 = vshll.u32 %v3910_v24, 16  ;;  %v3984_v5 = vsel %vm2492_vm5, %v3974_v51, %v3983_v7  ;;  %v3993_v53 = vsel %vm2492_vm5, %v3983_v7, %v3992_v28  ;;  %v4016_v24 = vshll.u32 %v3912_v63, 16  ;;  %v14959_v7 = vld [vmem:[#allocation2 + $0x68] sm:$0xff]  ;;  %v17539_v63 = vld [vmem:[#allocation43_spill] sm:$0xff] }
 0x2c3   : > { %11552 = vmatprep.subr.bf16.mxu1 %v14931_v17  ;;  %v4015_v19 = vrot.slane %v4013_v50, 3  ;;  %v3914_v33 = vmul.bf16 %v14959_v7, %v17538_v54 }
 0x2c4   : > { %v4000_v30 = vrot.slane %v3998_v56, 4  ;;  %v4018_v56 = vrot.slane %v4016_v24, 4 }
 0x2c5   : > { %11489 = vmatmul.mubr.msk.bf16.gmra.mrb[8].mxu1 %vm502_vm1, %v3966_v21  ;;  %v17537_v21 = vld [vmem:[#allocation41_spill] sm:$0xff] }
 0x2c6   : > { %11492 = vmatprep.mubr.msk.bf16.mxu1 %vm502_vm1, %v3975_v43  ;;  %v3913_v38 = vmul.bf16 %v14953_v1, %v17537_v21  ;;  %v4001_v51 = vor.u32 %v4000_v30, %v3997_v47  ;;  %v4010_v43 = vor.u32 %v4009_v3, %v4006_v23  ;;  %v14965_v30 = vld [vmem:[#allocation2 + $0x70] sm:$0xff]  ;;  %v4031_v3 = vshrl.u32 %v3914_v33, 16 }
 0x2c7   : > { %v3915_v23 = vmul.bf16 %v14965_v30, %v17539_v63 }
 0x2c8   : > { %v4022_v18 = vshrl.u32 %v3913_v38, 16  ;;  %v4025_v37 = vshll.u32 %v3913_v38, 16  ;;  %v4002_v27 = vsel %vm2492_vm5, %v3992_v28, %v4001_v51  ;;  %v4019_v28 = vor.u32 %v4018_v56, %v4015_v19 }
 0x2c9   : > { %v4034_v38 = vshll.u32 %v3914_v33, 16  ;;  %v4040_v24 = vshrl.u32 %v3915_v23, 16  ;;  %v4043_v59 = vshll.u32 %v3915_v23, 16 }
 0x2ca   : > { %v4027_v47 = vrot.slane %v4025_v37, 4  ;;  %v14973_v37 = vld [vmem:[#allocation2 + $0x78] sm:$0xff] }
 0x2cb   : > { %v3916_v42 = vmul.bf16 %v14973_v37, %v17540_v8  ;;  %v4042_v56 = vrot.slane %v4040_v24, 3  ;;  %v4045_v33 = vrot.slane %v4043_v59, 4 }
 0x2cd   : > { %11493 = vmatmul.mubr.msk.bf16.gmra.mrb[12].mxu1 %vm502_vm1, %v3984_v5  ;;  %v4011_v5 = vsel %vm2492_vm5, %v4001_v51, %v4010_v43  ;;  %v4033_v51 = vrot.slane %v4031_v3, 3  ;;  %v4052_v23 = vshll.u32 %v3916_v42, 16  ;;  %v4046_v3 = vor.u32 %v4045_v33, %v4042_v56 }
 0x2ce   : > { %11496 = vmatprep.mubr.msk.bf16.mxu1 %vm502_vm1, %v3993_v53  ;;  %v4024_v53 = vrot.slane %v4022_v18, 3  ;;  %v4036_v18 = vrot.slane %v4034_v38, 4 }
 0x2cf   : > { %v4054_v34 = vrot.slane %v4052_v23, 4 }
 0x2d0   : > { %v4028_v50 = vor.u32 %v4027_v47, %v4024_v53  ;;  %v4037_v47 = vor.u32 %v4036_v18, %v4033_v51 }
 0x2d2   : > { %v4029_v19 = vsel %vm2492_vm5, %v4019_v28, %v4028_v50  ;;  %v4038_v29 = vsel %vm2492_vm5, %v4028_v50, %v4037_v47  ;;  %v4047_v24 = vsel %vm2492_vm5, %v4037_v47, %v4046_v3 }
 0x2d5   : > { %11497 = vmatmul.mubr.msk.bf16.gmra.mrb[16].mxu1 %vm502_vm1, %v4002_v27  ;;  %v4020_v27 = vsel %vm2492_vm5, %v4010_v43, %v4019_v28  ;;  %v4049_v43 = vshrl.u32 %v3916_v42, 16  ;;  %v17542_v28 = vld [vmem:[#allocation45_spill] sm:$0xff] }
 0x2d6   : > { %11500 = vmatprep.mubr.msk.bf16.mxu1 %vm502_vm1, %v4011_v5  ;;  %v17541_v5 = vld [vmem:[#allocation47_spill] sm:$0xff]  ;;  %v3918_v59 = vmul.bf16 %v14982_v62, %v17542_v28 }
 0x2d7   : > { %v3917_v53 = vmul.bf16 %v14970_v58, %v17541_v5 }
 0x2d8   : > { %v4067_v18 = vshrl.u32 %v3918_v59, 16  ;;  %v4070_v56 = vshll.u32 %v3918_v59, 16 }
 0x2d9   : > { %v4058_v38 = vshrl.u32 %v3917_v53, 16  ;;  %v4061_v61 = vshll.u32 %v3917_v53, 16 }
 0x2da   : > { %v4069_v50 = vrot.slane %v4067_v18, 3  ;;  %v15012_v18 = vld [vmem:[%s17176_s5 + $0x60] sm:$0xff]  }
 0x2db   : > { %v4063_v51 = vrot.slane %v4061_v61, 4  ;;  %v17543_v61 = vld [vmem:[#allocation49_spill] sm:$0xff] }
 0x2dc   : > { %v4351_v48 = vrot.slane %v17543_v61, 4 }
 0x2dd   : > { %11501 = vmatmul.mubr.msk.bf16.gmra.mrb[20].mxu1 %vm502_vm1, %v4020_v27  ;;  %v4051_v27 = vrot.slane %v4049_v43, 3  ;;  %v4072_v43 = vrot.slane %v4070_v56, 4  ;;  %v4357_v56 = vrot.slane %v14571_v26, 4 }
 0x2de   : > { %11504 = vmatprep.mubr.msk.bf16.mxu1 %vm502_vm1, %v4029_v19  ;;  %v4060_v19 = vrot.slane %v4058_v38, 3 }
 0x2df   : > { %v4055_v42 = vor.u32 %v4054_v34, %v4051_v27  ;;  %v4073_v47 = vor.u32 %v4072_v43, %v4069_v50  ;;  %v4363_v50 = vrot.slane %v14922_v16, 4 }
 0x2e0   : > { %v4064_v33 = vor.u32 %v4063_v51, %v4060_v19  ;;  %v12326_v19 = vld [vmem:[%s17176_s5 + $0x58] sm:$0xff]  }
 0x2e1   : > { %v4056_v53 = vsel %vm2492_vm5, %v4046_v3, %v4055_v42  ;;  %v17544_v3 = vld [vmem:[#allocation50_spill] sm:$0xff] }
 0x2e2   : > { %v4065_v23 = vsel %vm2492_vm5, %v4055_v42, %v4064_v33  ;;  %v4074_v34 = vsel %vm2492_vm5, %v4064_v33, %v4073_v47  ;;  %v4353_v59 = vrot.slane %v17544_v3, 4  ;;  %v4359_v33 = vrot.slane %v14579_v22, 4 }
 0x2e3   : > { %v4365_v47 = vrot.slane %v14935_v36, 4 }
 0x2e4   : > { %v4354_v51 = vsel %vm1487_vm4, %v4351_v48, %v4353_v59 }
 0x2e5   : > { %11505 = vmatmul.mubr.msk.bf16.gmra.mrb[24].mxu1 %vm502_vm1, %v4038_v29  ;;  %v4328_v29 = vld [vmem:[#allocation2 + $0x8] sm:$0xf0] }
 0x2e6   : > { %11508 = vmatprep.mubr.msk.bf16.mxu1 %vm502_vm1, %v4047_v24  ;;  %v4350_v38 = vrot.slane %v4328_v29, 4  ;;  %v4355_v24 = vrot.slane %v14567_v14, 4 }
 0x2e8   : > { %v4352_v27 = vsel %vm1487_vm4, %v4350_v38, %v4351_v48  ;;  %v4356_v42 = vsel %vm1487_vm4, %v4353_v59, %v4355_v24  ;;  %v4358_v48 = vsel %vm1487_vm4, %v4355_v24, %v4357_v56  ;;  %v4367_v38 = vrot.slane %v14941_v40, 4 }
 0x2e9   : > { %v4369_v59 = vrot.slane %v14947_v41, 4  ;;  %v4371_v24 = vrot.slane %v14953_v1, 4 }
 0x2ed   : > { %11509 = vmatmul.mubr.msk.bf16.gmra.mrb[28].mxu1 %vm502_vm1, %v4056_v53  ;;  %v4361_v53 = vrot.slane %v14916_v9, 4 }
 0x2ee   : > { %11512 = vmatprep.mubr.msk.bf16.mxu1 %vm502_vm1, %v4065_v23 }
 0x2ef   : > { %v4362_v43 = vsel %vm1487_vm4, %v4359_v33, %v4361_v53  ;;  %v4364_v23 = vsel %vm1487_vm4, %v4361_v53, %v4363_v50  ;;  %v17547_v53 = vld [vmem:[#allocation23_spill] sm:$0xff] }
 0x2f5   : > { %11513 = vmatmul.mubr.msk.bf16.gmra.mrb[32].mxu1 %vm502_vm1, %v4074_v34  ;;  %v4366_v34 = vsel %vm1487_vm4, %v4363_v50, %v4365_v47  ;;  %v15048_v50 = vrot.slane %v14970_v58, 4 }
 0x2f6   : > { %11520 = vmatprep.mubr.msk.bf16.mxu1 %vm502_vm1, %v4352_v27  ;;  %v4368_v27 = vsel %vm1487_vm4, %v4365_v47, %v4367_v38 }
 0x2fd   : > { %11521 = vmatmul.mubr.msk.bf16.vlgmr.msra.gmra.mrb[4].mxu1 %vm502_vm1, %v4354_v51  ;;  %v4372_v51 = vsel %vm1487_vm4, %v4369_v59, %v4371_v24 }
 0x2fe   : > { %11553 = vmatpush3.bf16.msra.mxu1 %v14931_v17  ;;  %11524 = vmatprep.mubr.msk.bf16.mxu1 %vm502_vm1, %v4356_v42  ;;  %v4360_v17 = vsel %vm1487_vm4, %v4357_v56, %v4359_v33  ;;  %v17545_v42 = vld [vmem:[#allocation18_spill] sm:$0xff]  ;;  %v17546_v33 = vld [vmem:[#allocation27_spill] sm:$0xff] }
 0x2ff   : > { %11554 = vmatprep.subr.bf16.mxu1 %v12326_v19  ;;  %v4374_v56 = vsel %vm1487_vm4, %v4371_v24, %v17545_v42  ;;  %v17550_v24 = vld [vmem:[#allocation24_spill] sm:$0xff] }
 0x302   : > { %11555 = vmatpush3.bf16.msra.mxu1 %v12326_v19  ;;  %v4370_v19 = vsel %vm1487_vm4, %v4367_v38, %v4369_v59  ;;  %v17549_v59 = vld [vmem:[#allocation34_spill] sm:$0xff] }
 0x303   : > { %11588 = vmatprep.subr.bf16.mxu1 %v15012_v18 }
 0x305   : > { %11525 = vmatmul.mubr.msk.bf16.gmra.mrb[8].mxu1 %vm502_vm1, %v4358_v48  ;;  %v4637_v48 = vmul.bf16 %v4328_v29, %v17546_v33  ;;  %v4639_v29 = vmul.bf16 %v17544_v3, %v14458_v2 }
 0x306   : > { %11528 = vmatprep.mubr.msk.bf16.mxu1 %vm502_vm1, %v4360_v17  ;;  %v4638_v17 = vmul.bf16 %v17543_v61, %v17519_v45  ;;  %v4640_v61 = vmul.bf16 %v14567_v14, %v17549_v59 }
 0x308   : > { %v4667_v47 = vshrl.u32 %v4638_v17, 16  ;;  %v4670_v38 = vshll.u32 %v4638_v17, 16  ;;  %v4676_v17 = vshrl.u32 %v4639_v29, 16  ;;  %v4685_v25 = vshrl.u32 %v4640_v61, 16 }
 0x309   : > { %v4688_v3 = vshll.u32 %v4640_v61, 16 }
 0x30a   : > { %v4669_v42 = vrot.slane %v4667_v47, 4  ;;  %v4678_v59 = vrot.slane %v4676_v17, 4  ;;  %v4687_v47 = vrot.slane %v4685_v25, 4 }
 0x30d   : > { %11529 = vmatmul.mubr.msk.bf16.gmra.mrb[12].mxu1 %vm502_vm1, %v4362_v43  ;;  %v4659_v43 = vshrl.u32 %v4637_v48, 16 }
 0x30e   : > { %11532 = vmatprep.mubr.msk.bf16.mxu1 %vm502_vm1, %v4364_v23  ;;  %v4662_v23 = vshll.u32 %v4637_v48, 16  ;;  %v4381_v48 = vrot.slane %v14982_v62, 4  ;;  %v4690_v62 = vrot.slane %v4688_v3, 5  ;;  %v4644_v3 = vmul.bf16 %v14922_v16, %v14586_v39 }
 0x310   : > { %v4382_v14 = vsel %vm1487_vm4, %v15048_v50, %v4381_v48 }
 0x315   : > { %11533 = vmatmul.mubr.msk.bf16.gmra.mrb[16].mxu1 %vm502_vm1, %v4366_v34  ;;  %v17548_v34 = vld [vmem:[#allocation22_spill] sm:$0xff] }
 0x316   : > { %11536 = vmatprep.mubr.msk.bf16.mxu1 %vm502_vm1, %v4368_v27  ;;  %v4380_v27 = vsel %vm1487_vm4, %v17548_v34, %v15048_v50 }
 0x31d   : > { %11537 = vmatmul.mubr.msk.bf16.gmra.mrb[20].mxu1 %vm502_vm1, %v4370_v19  ;;  %v4661_v19 = vrot.slane %v4659_v43, 4 }
 0x31e   : > { %11540 = vmatprep.mubr.msk.bf16.mxu1 %vm502_vm1, %v4372_v51  ;;  %v4664_v51 = vrot.slane %v4662_v23, 5 }
 0x320   : > { %v4665_v34 = vor.u32 %v4664_v51, %v4661_v19  ;;  %v4691_v51 = vor.u32 %v4690_v62, %v4687_v47  ;;  %v4721_v47 = vshrl.u32 %v4644_v3, 16  ;;  %v4724_v62 = vshll.u32 %v4644_v3, 16 }
 0x325   : > { %11541 = vmatmul.mubr.msk.bf16.gmra.mrb[24].mxu1 %vm502_vm1, %v4374_v56  ;;  %v4672_v56 = vrot.slane %v4670_v38, 5  ;;  %v17552_v38 = vld [vmem:[#allocation20_spill] sm:$0xff] }
 0x326   : > { %11544 = vmatprep.mubr.msk.bf16.mxu1 %vm502_vm1, %v17547_v53  ;;  %v4679_v53 = vshll.u32 %v4639_v29, 16 }
 0x327   : > { %v4673_v45 = vor.u32 %v4672_v56, %v4669_v42 }
 0x328   : > { %v4681_v2 = vrot.slane %v4679_v53, 5  ;;  %v17553_v53 = vld [vmem:[#allocation48_spill] sm:$0xff] }
 0x329   : > { %v4674_v23 = vsel %vm2034_vm6, %v4665_v34, %v4673_v45  ;;  %v4643_v34 = vmul.bf16 %v14916_v9, %v17553_v53 }
 0x32a   : > { %v4682_v29 = vor.u32 %v4681_v2, %v4678_v59 }
 0x32c   : > { %v4683_v48 = vsel %vm2034_vm6, %v4673_v45, %v4682_v29  ;;  %v4692_v2 = vsel %vm2034_vm6, %v4682_v29, %v4691_v51  ;;  %v15085_v45 = vld [vmem:[%s17176_s5 + $0x70] sm:$0xff]   ;;  %v4645_v29 = vmul.bf16 %v14935_v36, %v14591_v31 }
 0x32d   : > { %11545 = vmatmul.mubr.msk.bf16.gmra.mrb[28].mxu1 %vm502_vm1, %v17550_v24  ;;  %v17551_v24 = vld [vmem:[#allocation33_spill] sm:$0xff] }
 0x32e   : > { %11548 = vmatprep.mubr.msk.bf16.mxu1 %vm502_vm1, %v4380_v27  ;;  %v4641_v43 = vmul.bf16 %v14571_v26, %v17551_v24  ;;  %v4642_v27 = vmul.bf16 %v14579_v22, %v17552_v38  ;;  %v12328_v26 = vld [vmem:[%s17176_s5 + $0x68] sm:$0xff]  }
 0x330   : > { %v4694_v61 = vshrl.u32 %v4641_v43, 16  ;;  %v4697_v19 = vshll.u32 %v4641_v43, 16  ;;  %v4703_v42 = vshrl.u32 %v4642_v27, 16  ;;  %v4706_v56 = vshll.u32 %v4642_v27, 16 }
 0x331   : > { %v4715_v43 = vshll.u32 %v4643_v34, 16 }
 0x332   : > { %v4696_v17 = vrot.slane %v4694_v61, 4  ;;  %v4699_v25 = vrot.slane %v4697_v19, 5  ;;  %v4705_v22 = vrot.slane %v4703_v42, 4  ;;  %v4708_v59 = vrot.slane %v4706_v56, 5 }
 0x333   : > { %v4717_v27 = vrot.slane %v4715_v43, 5  ;;  %v4723_v19 = vrot.slane %v4721_v47, 4  ;;  %v4726_v42 = vrot.slane %v4724_v62, 5  ;;  %v4646_v56 = vmul.bf16 %v14941_v40, %v14596_v44 }
 0x334   : > { %v4700_v9 = vor.u32 %v4699_v25, %v4696_v17  ;;  %v4733_v17 = vshll.u32 %v4645_v29, 16 }
 0x335   : > { %11549 = vmatmul.mubr.msk.bf16.gmra.mrb[32].mxu1 %vm502_vm1, %v4382_v14  ;;  %v4712_v14 = vshrl.u32 %v4643_v34, 16  ;;  %v4739_v25 = vshrl.u32 %v4646_v56, 16  ;;  %v4742_v34 = vshll.u32 %v4646_v56, 16  ;;  %v4650_v56 = vmul.bf16 %v14965_v30, %v14611_v12 }
 0x336   : > { %11556 = vmatprep.mubr.msk.bf16.mxu1 %vm502_vm1, %v4674_v23  ;;  %v4709_v23 = vor.u32 %v4708_v59, %v4705_v22  ;;  %v4701_v16 = vsel %vm2034_vm6, %v4691_v51, %v4700_v9  ;;  %v4727_v51 = vor.u32 %v4726_v42, %v4723_v19  ;;  %v4735_v22 = vrot.slane %v4733_v17, 5 }
 0x337   : > { %v4647_v59 = vmul.bf16 %v14947_v41, %v14602_v52  ;;  %v4741_v40 = vrot.slane %v4739_v25, 4  ;;  %v4775_v25 = vshrl.u32 %v4650_v56, 16 }
 0x338   : > { %v4710_v61 = vsel %vm2034_vm6, %v4700_v9, %v4709_v23  ;;  %v4744_v9 = vrot.slane %v4742_v34, 5  ;;  %v4778_v34 = vshll.u32 %v4650_v56, 16 }
 0x339   : > { %v4748_v47 = vshrl.u32 %v4647_v59, 16  ;;  %v4751_v62 = vshll.u32 %v4647_v59, 16 }
 0x33b   : > { %v4750_v41 = vrot.slane %v4748_v47, 4 }
 0x33d   : > { %11557 = vmatmul.mubr.msk.bf16.vlgmr.msra.gmra.mrb[4].mxu1 %vm502_vm1, %v4683_v48  ;;  %v4730_v48 = vshrl.u32 %v4645_v29, 16  ;;  %v4753_v29 = vrot.slane %v4751_v62, 5 }
 0x33e   : > { %11589 = vmatpush3.bf16.msra.mxu1 %v15012_v18  ;;  %11560 = vmatprep.mubr.msk.bf16.mxu1 %vm502_vm1, %v4692_v2  ;;  %v4714_v18 = vrot.slane %v4712_v14, 4  ;;  %v4648_v14 = vmul.bf16 %v14953_v1, %v14605_v20 }
 0x33f   : > { %11590 = vmatprep.subr.bf16.mxu1 %v12328_v26  ;;  %v4732_v36 = vrot.slane %v4730_v48, 4 }
 0x341   : > { %v4736_v43 = vor.u32 %v4735_v22, %v4732_v36 }
 0x342   : > { %11591 = vmatpush3.bf16.msra.mxu1 %v12328_v26  ;;  %v4718_v26 = vor.u32 %v4717_v27, %v4714_v18  ;;  %v4760_v18 = vshll.u32 %v4648_v14, 16 }
 0x343   : > { %11624 = vmatprep.subr.bf16.mxu1 %v15085_v45  ;;  %v4737_v27 = vsel %vm2034_vm6, %v4727_v51, %v4736_v43 }
 0x344   : > { %v4719_v2 = vsel %vm2034_vm6, %v4709_v23, %v4718_v26  ;;  %v4728_v3 = vsel %vm2034_vm6, %v4718_v26, %v4727_v51  ;;  %v4745_v23 = vor.u32 %v4744_v9, %v4741_v40  ;;  %v4762_v42 = vrot.slane %v4760_v18, 5  ;;  %v4636_v18 = vld [vmem:[#allocation2 + $0x88] sm:$0x1f] }
 0x345   : > { %11561 = vmatmul.mubr.msk.bf16.gmra.mrb[8].mxu1 %vm502_vm1, %v4701_v16  ;;  %v4757_v16 = vshrl.u32 %v4648_v14, 16  ;;  %v4754_v26 = vor.u32 %v4753_v29, %v4750_v41  ;;  %v4777_v9 = vrot.slane %v4775_v25, 4  ;;  %v4780_v14 = vrot.slane %v4778_v34, 5  ;;  %v17558_v25 = vld [vmem:[#allocation35_spill] sm:$0xff] }
 0x346   : > { %11564 = vmatprep.mubr.msk.bf16.mxu1 %vm502_vm1, %v4710_v61  ;;  %v4649_v61 = vmul.bf16 %v14959_v7, %v14608_v15  ;;  %v4746_v19 = vsel %vm2034_vm6, %v4736_v43, %v4745_v23  ;;  %v17559_v34 = vld [vmem:[#allocation59_spill] sm:$0xff] }
 0x347   : > { %v4759_v1 = vrot.slane %v4757_v16, 4  ;;  %v4755_v36 = vsel %vm2034_vm6, %v4745_v23, %v4754_v26  ;;  %v4781_v23 = vor.u32 %v4780_v14, %v4777_v9 }
 0x348   : > { %v4766_v48 = vshrl.u32 %v4649_v61, 16  ;;  %v4769_v17 = vshll.u32 %v4649_v61, 16  ;;  %v17556_v61 = vld [vmem:[#allocation53_spill] sm:$0xff] }
 0x349   : > { %v4763_v51 = vor.u32 %v4762_v42, %v4759_v1 }
 0x34a   : > { %v4768_v22 = vrot.slane %v4766_v48, 4  ;;  %v4771_v59 = vrot.slane %v4769_v17, 5 }
 0x34b   : > { %v4764_v30 = vsel %vm2034_vm6, %v4754_v26, %v4763_v51  ;;  %v17557_v26 = vld [vmem:[#allocation31_spill] sm:$0xff] }
 0x34c   : > { %v4772_v62 = vor.u32 %v4771_v59, %v4768_v22 }
 0x34d   : > { %11565 = vmatmul.mubr.msk.bf16.gmra.mrb[12].mxu1 %vm502_vm1, %v4719_v2  ;;  %v17554_v2 = vld [vmem:[#allocation58_spill] sm:$0xff] }
 0x34e   : > { %11568 = vmatprep.mubr.msk.bf16.mxu1 %vm502_vm1, %v4728_v3  ;;  %v4651_v7 = vmul.bf16 %v14973_v37, %v17554_v2  ;;  %v17555_v3 = vld [vmem:[#allocation29_spill] sm:$0xff]  ;;  %v4773_v1 = vsel %vm2034_vm6, %v4763_v51, %v4772_v62  ;;  %v4782_v17 = vsel %vm2034_vm6, %v4772_v62, %v4781_v23 }
 0x34f   : > { %v4652_v40 = vmul.bf16 %v14970_v58, %v17555_v3 }
 0x350   : > { %v4784_v43 = vshrl.u32 %v4651_v7, 16  ;;  %v4787_v47 = vshll.u32 %v4651_v7, 16  ;;  %v5081_v7 = vmul.bf16 %v17559_v34, %v17558_v25 }
 0x351   : > { %v4793_v16 = vshrl.u32 %v4652_v40, 16  ;;  %v4796_v37 = vshll.u32 %v4652_v40, 16 }
 0x352   : > { %v4786_v41 = vrot.slane %v4784_v43, 4  ;;  %v4789_v29 = vrot.slane %v4787_v47, 5  ;;  %v5110_v51 = vshrl.u32 %v5081_v7, 16  ;;  %v5113_v14 = vshll.u32 %v5081_v7, 16 }
 0x353   : > { %v4795_v42 = vrot.slane %v4793_v16, 4  ;;  %v4798_v56 = vrot.slane %v4796_v37, 5 }
 0x355   : > { %11569 = vmatmul.mubr.msk.bf16.gmra.mrb[16].mxu1 %vm502_vm1, %v4737_v27  ;;  %v5063_v27 = vld [vmem:[#allocation2 + $0x10] sm:$0xf8]  ;;  %v4799_v59 = vor.u32 %v4798_v56, %v4795_v42  ;;  %v5115_v42 = vrot.slane %v5113_v14, 4 }
 0x356   : > { %11572 = vmatprep.mubr.msk.bf16.mxu1 %vm502_vm1, %v4746_v19  ;;  %v4653_v19 = vmul.bf16 %v4636_v18, %v17556_v61  ;;  %v5080_v48 = vmul.bf16 %v5063_v27, %v17557_v26  ;;  %v17560_v18 = vld [vmem:[#allocation19_spill] sm:$0xff]  ;;  %v17561_v27 = vld [vmem:[#allocation60_spill] sm:$0xff] }
 0x358   : > { %v4802_v22 = vshrl.u32 %v4653_v19, 16  ;;  %v4805_v40 = vshll.u32 %v4653_v19, 16  ;;  %v5105_v9 = vshll.u32 %v5080_v48, 16  ;;  %v17562_v19 = vld [vmem:[#allocation61_spill] sm:$0xff] }
 0x359   : > { %v5083_v56 = vmul.bf16 %v17562_v19, %v17524_v35  ;;  %v12330_v19 = vld [vmem:[%s17176_s5 + $0x78] sm:$0xff]  }
 0x35a   : > { %v4804_v47 = vrot.slane %v4802_v22, 4  ;;  %v4807_v37 = vrot.slane %v4805_v40, 5 }
 0x35b   : > { %v5128_v22 = vshrl.u32 %v5083_v56, 16  ;;  %v5131_v40 = vshll.u32 %v5083_v56, 16 }
 0x35d   : > { %11573 = vmatmul.mubr.msk.bf16.gmra.mrb[20].mxu1 %vm502_vm1, %v4755_v36  ;;  %v4790_v36 = vor.u32 %v4789_v29, %v4786_v41  ;;  %v5107_v41 = vrot.slane %v5105_v9, 4  ;;  %v5112_v29 = vrot.slane %v5110_v51, 3  ;;  %v17563_v9 = vld [vmem:[#allocation62_spill] sm:$0xff] }
 0x35e   : > { %11576 = vmatprep.mubr.msk.bf16.mxu1 %vm502_vm1, %v4764_v30  ;;  %v5102_v30 = vshrl.u32 %v5080_v48, 16  ;;  %v4808_v48 = vor.u32 %v4807_v37, %v4804_v47  ;;  %v5084_v51 = vmul.bf16 %v17563_v9, %v14272_v10  ;;  %v17564_v47 = vld [vmem:[#allocation63_spill] sm:$0xff] }
 0x35f   : > { %v4791_v43 = vsel %vm2034_vm6, %v4781_v23, %v4790_v36  ;;  %v4800_v16 = vsel %vm2034_vm6, %v4790_v36, %v4799_v59  ;;  %v5116_v36 = vor.u32 %v5115_v42, %v5112_v29  ;;  %v5085_v37 = vmul.bf16 %v17564_v47, %v14308_v49 }
 0x360   : > { %v5104_v62 = vrot.slane %v5102_v30, 3  ;;  %v4809_v30 = vsel %vm2034_vm6, %v4799_v59, %v4808_v48 }
 0x361   : > { %v5146_v29 = vshrl.u32 %v5085_v37, 16  ;;  %v5149_v42 = vshll.u32 %v5085_v37, 16 }
 0x362   : > { %v5108_v7 = vor.u32 %v5107_v41, %v5104_v62  ;;  %v5140_v41 = vshll.u32 %v5084_v51, 16 }
 0x364   : > { %v5117_v14 = vsel %vm2492_vm5, %v5108_v7, %v5116_v36 }
 0x365   : > { %11577 = vmatmul.mubr.msk.bf16.gmra.mrb[24].mxu1 %vm502_vm1, %v4773_v1  ;;  %v5082_v1 = vmul.bf16 %v17561_v27, %v17560_v18 }
 0x366   : > { %11580 = vmatprep.mubr.msk.bf16.mxu1 %vm502_vm1, %v4782_v17 }
 0x367   : > { %v5119_v23 = vshrl.u32 %v5082_v1, 16  ;;  %v5122_v17 = vshll.u32 %v5082_v1, 16  ;;  %v5137_v1 = vshrl.u32 %v5084_v51, 16 }
 0x369   : > { %v5121_v27 = vrot.slane %v5119_v23, 3  ;;  %v5124_v12 = vrot.slane %v5122_v17, 4  ;;  %v5139_v48 = vrot.slane %v5137_v1, 3  ;;  %v5142_v23 = vrot.slane %v5140_v41, 4  ;;  %v17565_v17 = vld [vmem:[#allocation64_spill] sm:$0xff]  ;;  %v12700_v1 = vld [vmem:[#allocation2 + $0x50] sm:$0xff] }
 0x36a   : > { %v5086_v7 = vmul.bf16 %v17565_v17, %v14311_v57  ;;  %v5088_v41 = vmul.bf16 %v12700_v1, %v14334_v13 }
 0x36b   : > { %v5125_v62 = vor.u32 %v5124_v12, %v5121_v27  ;;  %v5143_v9 = vor.u32 %v5142_v23, %v5139_v48  ;;  %v12701_v48 = vld [vmem:[#allocation2 + $0x58] sm:$0xff] }
 0x36c   : > { %v5155_v51 = vshrl.u32 %v5086_v7, 16  ;;  %v5089_v23 = vmul.bf16 %v12701_v48, %v17535_v46  ;;  %v5173_v17 = vshrl.u32 %v5088_v41, 16 }
 0x36d   : > { %11581 = vmatmul.mubr.msk.bf16.gmra.mrb[28].mxu1 %vm502_vm1, %v4791_v43  ;;  %v5130_v43 = vrot.slane %v5128_v22, 3  ;;  %v5126_v56 = vsel %vm2492_vm5, %v5116_v36, %v5125_v62  ;;  %v5148_v22 = vrot.slane %v5146_v29, 3  ;;  %v15158_v36 = vld [vmem:[%s17176_s5 + $0x80] sm:$0xff]  }
 0x36e   : > { %11584 = vmatprep.mubr.msk.bf16.mxu1 %vm502_vm1, %v4800_v16  ;;  %v5133_v16 = vrot.slane %v5131_v40, 4  ;;  %v5151_v40 = vrot.slane %v5149_v42, 4 }
 0x370   : > { %v5134_v59 = vor.u32 %v5133_v16, %v5130_v43  ;;  %v5152_v43 = vor.u32 %v5151_v40, %v5148_v22  ;;  %v5185_v22 = vshll.u32 %v5089_v23, 16 }
 0x372   : > { %v5135_v12 = vsel %vm2492_vm5, %v5125_v62, %v5134_v59  ;;  %v5144_v37 = vsel %vm2492_vm5, %v5134_v59, %v5143_v9  ;;  %v5153_v29 = vsel %vm2492_vm5, %v5143_v9, %v5152_v43 }
 0x375   : > { %11585 = vmatmul.mubr.msk.bf16.gmra.mrb[32].mxu1 %vm502_vm1, %v4809_v30  ;;  %v12699_v30 = vld [vmem:[#allocation2 + $0x48] sm:$0xff] }
 0x376   : > { %11592 = vmatprep.mubr.msk.bf16.mxu1 %vm502_vm1, %v5117_v14  ;;  %v5087_v27 = vmul.bf16 %v12699_v30, %v14314_v4  ;;  %v5158_v14 = vshll.u32 %v5086_v7, 16  ;;  %v5176_v7 = vshll.u32 %v5088_v41, 16  ;;  %v5175_v30 = vrot.slane %v5173_v17, 3  ;;  %v12704_v17 = vld [vmem:[#allocation2 + $0x70] sm:$0xff] }
 0x378   : > { %v5164_v16 = vshrl.u32 %v5087_v27, 16  ;;  %v5167_v47 = vshll.u32 %v5087_v27, 16  ;;  %v5160_v62 = vrot.slane %v5158_v14, 4  ;;  %v5178_v27 = vrot.slane %v5176_v7, 4 }
 0x37a   : > { %v5166_v42 = vrot.slane %v5164_v16, 3 }
 0x37d   : > { %11593 = vmatmul.mubr.msk.bf16.vlgmr.msra.gmra.mrb[4].mxu1 %vm502_vm1, %v5126_v56  ;;  %v5169_v56 = vrot.slane %v5167_v47, 4  ;;  %v5187_v47 = vrot.slane %v5185_v22, 4 }
 0x37e   : > { %11625 = vmatpush3.bf16.msra.mxu1 %v15085_v45  ;;  %11596 = vmatprep.mubr.msk.bf16.mxu1 %vm502_vm1, %v5135_v12  ;;  %v5157_v45 = vrot.slane %v5155_v51, 3  ;;  %v5182_v12 = vshrl.u32 %v5089_v23, 16  ;;  %v12702_v51 = vld [vmem:[#allocation2 + $0x60] sm:$0xff] }
 0x37f   : > { %11626 = vmatprep.subr.bf16.mxu1 %v12330_v19  ;;  %v5170_v59 = vor.u32 %v5169_v56, %v5166_v42  ;;  %v5090_v9 = vmul.bf16 %v12702_v51, %v17536_v6 }
 0x380   : > { %v5184_v16 = vrot.slane %v5182_v12, 3 }
 0x381   : > { %v5191_v1 = vshrl.u32 %v5090_v9, 16  ;;  %v5194_v41 = vshll.u32 %v5090_v9, 16 }
 0x382   : > { %11627 = vmatpush3.bf16.msra.mxu1 %v12330_v19  ;;  %v5161_v19 = vor.u32 %v5160_v62, %v5157_v45  ;;  %v5179_v62 = vor.u32 %v5178_v27, %v5175_v30 }
 0x383   : > { %11660 = vmatprep.subr.bf16.mxu1 %v15158_v36  ;;  %v5193_v48 = vrot.slane %v5191_v1, 3  ;;  %v5196_v23 = vrot.slane %v5194_v41, 4 }
 0x384   : > { %v5162_v40 = vsel %vm2492_vm5, %v5152_v43, %v5161_v19  ;;  %v5171_v14 = vsel %vm2492_vm5, %v5161_v19, %v5170_v59  ;;  %v5188_v43 = vor.u32 %v5187_v47, %v5184_v16  ;;  %v5180_v56 = vsel %vm2492_vm5, %v5170_v59, %v5179_v62 }
 0x385   : > { %11597 = vmatmul.mubr.msk.bf16.gmra.mrb[8].mxu1 %vm502_vm1, %v5144_v37  ;;  %v12703_v37 = vld [vmem:[#allocation2 + $0x68] sm:$0xff]  ;;  %v5092_v19 = vmul.bf16 %v12704_v17, %v17538_v54  ;;  %v5197_v27 = vor.u32 %v5196_v23, %v5193_v48 }
 0x386   : > { %11600 = vmatprep.mubr.msk.bf16.mxu1 %vm502_vm1, %v5153_v29  ;;  %v5091_v45 = vmul.bf16 %v12703_v37, %v17537_v21  ;;  %v5189_v7 = vsel %vm2492_vm5, %v5179_v62, %v5188_v43  ;;  %v5094_v62 = vmul.bf16 %v14970_v58, %v17540_v8 }
 0x387   : > { %v5209_v51 = vshrl.u32 %v5092_v19, 16  ;;  %v5212_v9 = vshll.u32 %v5092_v19, 16  ;;  %v5198_v47 = vsel %vm2492_vm5, %v5188_v43, %v5197_v27 }
 0x388   : > { %v5200_v29 = vshrl.u32 %v5091_v45, 16  ;;  %v5203_v42 = vshll.u32 %v5091_v45, 16  ;;  %v5227_v43 = vshrl.u32 %v5094_v62, 16  ;;  %v5230_v23 = vshll.u32 %v5094_v62, 16 }
 0x389   : > { %v5211_v37 = vrot.slane %v5209_v51, 3  ;;  %v5214_v45 = vrot.slane %v5212_v9, 4 }
 0x38a   : > { %v5202_v12 = vrot.slane %v5200_v29, 3  ;;  %v5205_v22 = vrot.slane %v5203_v42, 4  ;;  %v15184_v42 = vld [vmem:[#allocation2 + $0x88] sm:$0xff] }
 0x38b   : > { %v5215_v48 = vor.u32 %v5214_v45, %v5211_v37 }
 0x38c   : > { %v5206_v59 = vor.u32 %v5205_v22, %v5202_v12  ;;  %v5229_v22 = vrot.slane %v5227_v43, 3 }
 0x38d   : > { %11601 = vmatmul.mubr.msk.bf16.gmra.mrb[12].mxu1 %vm502_vm1, %v5162_v40  ;;  %v12705_v40 = vld [vmem:[#allocation2 + $0x78] sm:$0xff] }
 0x38e   : > { %11604 = vmatprep.mubr.msk.bf16.mxu1 %vm502_vm1, %v5171_v14  ;;  %v5093_v30 = vmul.bf16 %v12705_v40, %v17539_v63  ;;  %v5207_v1 = vsel %vm2492_vm5, %v5197_v27, %v5206_v59  ;;  %v5216_v12 = vsel %vm2492_vm5, %v5206_v59, %v5215_v48  ;;  %v5232_v40 = vrot.slane %v5230_v23, 4 }
 0x38f   : > { %v17566_v23 = vrot.slane %v17559_v34, 4  ;;  %v17570_v34 = vld [vmem:[#allocation69_spill] sm:$0xff] }
 0x390   : > { %v5218_v14 = vshrl.u32 %v5093_v30, 16  ;;  %v5221_v16 = vshll.u32 %v5093_v30, 16  ;;  %v12707_v30 = vld [vmem:[#allocation2 + $0x90] sm:$0xf] }
 0x391   : > { %v5096_v27 = vmul.bf16 %v12707_v30, %v17542_v28  ;;  %v17572_v30 = vld [vmem:[#allocation71_spill] sm:$0xff] }
 0x392   : > { %v5220_v41 = vrot.slane %v5218_v14, 3  ;;  %v5223_v29 = vrot.slane %v5221_v16, 4  ;;  %v5233_v16 = vor.u32 %v5232_v40, %v5229_v22  ;;  %v17569_v22 = vld [vmem:[#allocation68_spill] sm:$0xff]  ;;  %v17571_v40 = vld [vmem:[#allocation70_spill] sm:$0xff] }
 0x393   : > { %v5248_v37 = vshll.u32 %v5096_v27, 16 }
 0x394   : > { %v5224_v17 = vor.u32 %v5223_v29, %v5220_v41  ;;  %v5506_v29 = vld [vmem:[#allocation2 + $0x10] sm:$0xf0] }
 0x395   : > { %11605 = vmatmul.mubr.msk.bf16.gmra.mrb[16].mxu1 %vm502_vm1, %v5180_v56  ;;  %v5095_v56 = vmul.bf16 %v15184_v42, %v17541_v5 }
 0x396   : > { %11608 = vmatprep.mubr.msk.bf16.mxu1 %vm502_vm1, %v5189_v7  ;;  %v5225_v51 = vsel %vm2492_vm5, %v5215_v48, %v5224_v17  ;;  %v5234_v62 = vsel %vm2492_vm5, %v5224_v17, %v5233_v16  ;;  %v5528_v48 = vrot.slane %v5506_v29, 4  ;;  %v12332_v17 = vld [vmem:[%s17176_s5 + $0x88] sm:$0xff]  }
 0x397   : > { %v5236_v19 = vshrl.u32 %v5095_v56, 16  ;;  %v5239_v7 = vshll.u32 %v5095_v56, 16 }
 0x399   : > { %v5238_v9 = vrot.slane %v5236_v19, 3  ;;  %v5241_v14 = vrot.slane %v5239_v7, 4  ;;  %v5530_v19 = vsel %vm1487_vm4, %v5528_v48, %v17566_v23  ;;  %v17567_v7 = vld [vmem:[#allocation65_spill] sm:$0xff]  ;;  %v17582_v23 = vld [vmem:[#allocation78_spill] sm:$0xff] }
 0x39b   : > { %v5242_v45 = vor.u32 %v5241_v14, %v5238_v9  ;;  %v17576_v9 = vld [vmem:[#allocation75_spill] sm:$0xff]  ;;  %v5815_v14 = vmul.bf16 %v5506_v29, %v17546_v33 }
 0x39d   : > { %11609 = vmatmul.mubr.msk.bf16.gmra.mrb[20].mxu1 %vm502_vm1, %v5198_v47  ;;  %v5245_v47 = vshrl.u32 %v5096_v27, 16  ;;  %v5243_v41 = vsel %vm2492_vm5, %v5233_v16, %v5242_v45  ;;  %v17573_v27 = vld [vmem:[#allocation72_spill] sm:$0xff] }
 0x39e   : > { %11612 = vmatprep.mubr.msk.bf16.mxu1 %vm502_vm1, %v5207_v1  ;;  %v5250_v1 = vrot.slane %v5248_v37, 4  ;;  %v17577_v16 = vld [vmem:[#allocation76_spill] sm:$0xff]  ;;  %v5837_v37 = vshrl.u32 %v5815_v14, 16 }
 0x39f   : > { %v5247_v59 = vrot.slane %v5245_v47, 3  ;;  %v17578_v47 = vld [vmem:[#allocation77_spill] sm:$0xff] }
 0x3a1   : > { %v5251_v56 = vor.u32 %v5250_v1, %v5247_v59  ;;  %v17580_v1 = vld [vmem:[#allocation67_spill] sm:$0xff] }
 0x3a3   : > { %v5252_v43 = vsel %vm2492_vm5, %v5242_v45, %v5251_v56  ;;  %v5840_v45 = vshll.u32 %v5815_v14, 16  ;;  %v5839_v56 = vrot.slane %v5837_v37, 4  ;;  %v17590_v14 = vld [vmem:[#allocation87_spill] sm:$0xff] }
 0x3a5   : > { %11613 = vmatmul.mubr.msk.bf16.gmra.mrb[24].mxu1 %vm502_vm1, %v5216_v12  ;;  %v17568_v12 = vld [vmem:[#allocation66_spill] sm:$0xff]  ;;  %v5842_v48 = vrot.slane %v5840_v45, 5 }
 0x3a6   : > { %11616 = vmatprep.mubr.msk.bf16.mxu1 %vm502_vm1, %v5225_v51  ;;  %v17575_v51 = vld [vmem:[#allocation74_spill] sm:$0xff] }
 0x3ad   : > { %11617 = vmatmul.mubr.msk.bf16.gmra.mrb[28].mxu1 %vm502_vm1, %v5234_v62  ;;  %v17579_v62 = vrot.slane %v14743_v11, 4 }
 0x3ae   : > { %11620 = vmatprep.mubr.msk.bf16.mxu1 %vm502_vm1, %v5243_v41  ;;  %v17581_v41 = vrot.slane %v17580_v1, 4 }
 0x3af   : > { %v5556_v59 = vsel %vm1487_vm4, %v17579_v62, %v15048_v50 }
 0x3b0   : > { %v5558_v29 = vsel %vm1487_vm4, %v15048_v50, %v17581_v41  ;;  %v17583_v50 = vld [vmem:[#allocation79_spill] sm:$0xff] }
 0x3b5   : > { %11621 = vmatmul.mubr.msk.bf16.gmra.mrb[32].mxu1 %vm502_vm1, %v5252_v43  ;;  %v5843_v43 = vor.u32 %v5842_v48, %v5839_v56 }
 0x3b6   : > { %11628 = vmatprep.mubr.msk.bf16.mxu1 %vm502_vm1, %v5530_v19  ;;  %v17584_v19 = vld [vmem:[#allocation80_spill] sm:$0xff] }
 0x3b7   : > { %v5852_v11 = vsel %vm2034_vm6, %v5843_v43, %v14825_v32  ;;  %v17586_v32 = vld [vmem:[#allocation82_spill] sm:$0xff] }
 0x3bd   : > { %11629 = vmatmul.mubr.msk.bf16.vlgmr.msra.gmra.mrb[4].mxu1 %vm502_vm1, %v17567_v7  ;;  %v17587_v7 = vld [vmem:[#allocation83_spill] sm:$0xff] }
 0x3be   : > { %11661 = vmatpush3.bf16.msra.mxu1 %v15158_v36  ;;  %11632 = vmatprep.mubr.msk.bf16.mxu1 %vm502_vm1, %v17568_v12  ;;  %v17574_v36 = vld [vmem:[#allocation73_spill] sm:$0xff] }
 0x3bf   : > { %11662 = vmatprep.subr.bf16.mxu1 %v12332_v17  ;;  %v17589_v12 = vld [vmem:[#allocation85_spill] sm:$0xff] }
 0x3c2   : > { %11663 = vmatpush3.bf16.msra.mxu1 %v12332_v17  ;;  %v17585_v17 = vld [vmem:[#allocation81_spill] sm:$0xff] }
 0x3c5   : > { %11633 = vmatmul.mubr.msk.bf16.gmra.mrb[8].mxu1 %vm502_vm1, %v17569_v22 }
 0x3c6   : > { %11636 = vmatprep.mubr.msk.bf16.mxu1 %vm502_vm1, %v17570_v34 }
 0x3cd   : > { %11637 = vmatmul.mubr.msk.bf16.gmra.mrb[12].mxu1 %vm502_vm1, %v17571_v40 }
 0x3ce   : > { %11640 = vmatprep.mubr.msk.bf16.mxu1 %vm502_vm1, %v17572_v30 }
 0x3d5   : > { %11641 = vmatmul.mubr.msk.bf16.gmra.mrb[16].mxu1 %vm502_vm1, %v17573_v27  ;;  %v5814_v27 = vld [vmem:[#allocation2 + $0x90] sm:$0x1f] }
 0x3d6   : > { %11644 = vmatprep.mubr.msk.bf16.mxu1 %vm502_vm1, %v17574_v36 }
 0x3dd   : > { %11645 = vmatmul.mubr.msk.bf16.gmra.mrb[20].mxu1 %vm502_vm1, %v17575_v51 }
 0x3de   : > { %11648 = vmatprep.mubr.msk.bf16.mxu1 %vm502_vm1, %v17576_v9  ;;  %v5831_v9 = vmul.bf16 %v5814_v27, %v17556_v61  ;;  %v12714_v27 = vld [vmem:[%s13111_s23 + $0x30] sm:$0xff] }
 0x3e0   : > { %v5980_v37 = vshrl.u32 %v5831_v9, 16  ;;  %v5983_v45 = vshll.u32 %v5831_v9, 16  ;;  %v6284_v9 = vld [vmem:[%s17178_s7 + $0x10] sm:$0xff] }
 0x3e2   : > { %v5982_v41 = vrot.slane %v5980_v37, 4  ;;  %v12718_v37 = vld [vmem:[%s13111_s23 + $0x50] sm:$0xff] }
 0x3e5   : > { %11649 = vmatmul.mubr.msk.bf16.gmra.mrb[24].mxu1 %vm502_vm1, %v17577_v16 }
 0x3e6   : > { %11652 = vmatprep.mubr.msk.bf16.mxu1 %vm502_vm1, %v17578_v47  ;;  %v17591_v47 = vld [vmem:[#allocation88_spill] sm:$0xff] }
 0x3ed   : > { %11653 = vmatmul.mubr.msk.bf16.gmra.mrb[28].mxu1 %vm502_vm1, %v5556_v59  ;;  %v17592_v59 = vld [vmem:[#allocation86_spill] sm:$0xff] }
 0x3ee   : > { %11656 = vmatprep.mubr.msk.bf16.mxu1 %vm502_vm1, %v5558_v29  ;;  %v5985_v29 = vrot.slane %v5983_v45, 5  ;;  %v12719_v45 = vld [vmem:[%s13111_s23 + $0x58] sm:$0xff] }
 0x3f0   : > { %v5986_v48 = vor.u32 %v5985_v29, %v5982_v41  ;;  %v12720_v29 = vld [vmem:[%s13111_s23 + $0x60] sm:$0xff] }
 0x3f5   : > { %11657 = vmatmul.mubr.msk.bf16.gmra.mrb[32].mxu1 %vm502_vm1, %v17582_v23  ;;  %v12333_v23 = vld [vmem:[%s17183_s12] sm:$0xff]  }
 0x3f6   : > { %11664 = vmatprep.mubr.msk.bf16.mxu1 %vm502_vm1, %v5852_v11  ;;  %11314 = vmatprep.subr.bf16.mxu0 %v12333_v23  ;;  %v12334_v11 = vld [vmem:[%s17183_s12 + $0x8] sm:$0xff]  }
 0x3f7   : > { %11315 = vmatpush3.bf16.msra.mxu0 %v12333_v23  ;;  %v12723_v23 = vld [vmem:[%s13111_s23 + $0x78] sm:$0xff] }
 0x3f8   : > { %11316 = vmatprep.subr.bf16.mxu0 %v12334_v11 }
 0x3fb   : > { %11317 = vmatpush3.bf16.msra.mxu0 %v12334_v11 }
 0x3fd   : > { %11665 = vmatmul.mubr.msk.bf16.vlgmr.msra.gmra.mrb[4].mxu1 %vm502_vm1, %v14833_v55  ;;  %v5829_v55 = vmul.bf16 %v14970_v58, %v17554_v2 }
 0x3fe   : > { %11668 = vmatprep.mubr.msk.bf16.mxu1 %vm502_vm1, %v14838_v60  ;;  %v17588_v60 = vld [vmem:[#allocation84_spill] sm:$0xff] }
 0x3ff   : > { %v5962_v22 = vshrl.u32 %v5829_v55, 16  ;;  %v5965_v34 = vshll.u32 %v5829_v55, 16  ;;  %v12711_v55 = vld [vmem:[%s13111_s23 + $0x18] sm:$0xff] }
 0x401   : > { %v5964_v36 = vrot.slane %v5962_v22, 4  ;;  %v5967_v51 = vrot.slane %v5965_v34, 5  ;;  %v12712_v34 = vld [vmem:[%s13111_s23 + $0x20] sm:$0xff] }
 0x405   : > { %11669 = vmatmul.mubr.msk.bf16.gmra.mrb[8].mxu1 %vm502_vm1, %v14841_v0  ;;  %v5830_v0 = vmul.bf16 %v15184_v42, %v17555_v3  ;;  %v5968_v42 = vor.u32 %v5967_v51, %v5964_v36  ;;  %v12715_v36 = vld [vmem:[%s13111_s23 + $0x38] sm:$0xff] }
 0x406   : > { %11672 = vmatprep.mubr.msk.bf16.mxu1 %vm502_vm1, %v17583_v50  ;;  %v12708_v50 = vld [vmem:[%s13111_s23] sm:$0xff]  ;;  %v580_v51 = vpack.c.bf16 %v12715_v36, %v12714_v27 }
 0x407   : > { %v5971_v40 = vshrl.u32 %v5830_v0, 16  ;;  %v5974_v30 = vshll.u32 %v5830_v0, 16  ;;  %v5969_v1 = vsel %vm2034_vm6, %v17592_v59, %v5968_v42  ;;  %v6282_v0 = vld [vmem:[%s17178_s7] sm:$0xff]  ;;  %v12728_v36 = vld [vmem:[%s13111_s23 + $0xa0] sm:$0xff] }
 0x408   : > { %v6286_v59 = vld [vmem:[%s17178_s7 + $0x20] sm:$0xff] }
 0x409   : > { %v5973_v58 = vrot.slane %v5971_v40, 4  ;;  %v5976_v16 = vrot.slane %v5974_v30, 5  ;;  %v12713_v40 = vld [vmem:[%s13111_s23 + $0x28] sm:$0xff] }
 0x40a   : > { %v579_v30 = vpack.c.bf16 %v12713_v40, %v12712_v34  ;;  %v6290_v40 = vld [vmem:[%s17178_s7 + $0x40] sm:$0xff] }
 0x40b   : > { %v5977_v62 = vor.u32 %v5976_v16, %v5973_v58  ;;  %v12716_v16 = vld [vmem:[%s13111_s23 + $0x40] sm:$0xff] }
 0x40d   : > { %11673 = vmatmul.mubr.msk.bf16.gmra.mrb[12].mxu1 %vm502_vm1, %v17584_v19  ;;  %v5978_v56 = vsel %vm2034_vm6, %v5968_v42, %v5977_v62  ;;  %v5987_v43 = vsel %vm2034_vm6, %v5977_v62, %v5986_v48  ;;  %v12709_v19 = vld [vmem:[%s13111_s23 + $0x8] sm:$0xff]  ;;  %v582_v62 = vpack.c.bf16 %v12719_v45, %v12718_v37 }
 0x40e   : > { %11676 = vmatprep.mubr.msk.bf16.mxu1 %vm502_vm1, %v17585_v17  ;;  %v577_v17 = vpack.c.bf16 %v12709_v19, %v12708_v50  ;;  %v6288_v50 = vld [vmem:[%s17178_s7 + $0x30] sm:$0xff]  ;;  %v6289_v19 = vld [vmem:[%s17178_s7 + $0x38] sm:$0xff] }
 0x40f   : > { %v6293_v37 = vld [vmem:[%s17178_s7 + $0x58] sm:$0xff] }
 0x410   : > { %11318 = vmatprep.mubr.msk.bf16.mxu0 %vm502_vm1, %v577_v17  ;;  %v15350_v17 = vpack.c.bf16 %v6289_v19, %v6288_v50  ;;  %v12737_v50 = vld [vmem:[%s13111_s23 + $0xe8] sm:$0xff] }
 0x415   : > { %11677 = vmatmul.mubr.msk.bf16.gmra.mrb[16].mxu1 %vm502_vm1, %v17586_v32  ;;  %v17593_v32 = vmov 0.0|0.0  }
 0x416   : > { %11680 = vmatprep.mubr.msk.bf16.mxu1 %vm502_vm1, %v17587_v7  ;;  %11826 = vmatprep.subr.bf16.mxu0 %v17593_v32  ;;  %v12710_v7 = vld [vmem:[%s13111_s23 + $0x10] sm:$0xff] }
 0x41d   : > { %11681 = vmatmul.mubr.msk.bf16.gmra.mrb[20].mxu1 %vm502_vm1, %v17588_v60  ;;  %v578_v60 = vpack.c.bf16 %v12711_v55, %v12710_v7  ;;  %v12724_v7 = vld [vmem:[%s13111_s23 + $0x80] sm:$0xff]  ;;  %v12725_v55 = vld [vmem:[%s13111_s23 + $0x88] sm:$0xff] }
 0x41e   : > { %11684 = vmatprep.mubr.msk.bf16.mxu1 %vm502_vm1, %v17589_v12  ;;  %v6283_v12 = vld [vmem:[%s17178_s7 + $0x8] sm:$0xff] }
 0x41f   : > { %v15302_v22 = vpack.c.bf16 %v6283_v12, %v6282_v0  ;;  %11319 = vmatmul.mubr.msk.bf16.vlgmr.msra.gmra.mrb[0].mxu0 %vm502_vm1, %v578_v60  ;;  %v585_v60 = vpack.c.bf16 %v12725_v55, %v12724_v7  ;;  %v12726_v0 = vld [vmem:[%s13111_s23 + $0x90] sm:$0xff]  ;;  %v12727_v12 = vld [vmem:[%s13111_s23 + $0x98] sm:$0xff]  ;;  %v6296_v55 = vld [vmem:[%s17178_s7 + $0x70] sm:$0xff] }
 0x420   : > { %11322 = vmatprep.mubr.msk.bf16.mxu0 %vm502_vm1, %v579_v30  ;;  %v586_v34 = vpack.c.bf16 %v12727_v12, %v12726_v0  ;;  %v6291_v30 = vld [vmem:[%s17178_s7 + $0x48] sm:$0xff]  ;;  %v12738_v12 = vld [vmem:[%s13111_s23 + $0xf0] sm:$0xff] }
 0x421   : > { %11828 = vmatpush3.bf16.msra.mxu0 %v15302_v22  ;;  %v15366_v27 = vpack.c.bf16 %v6291_v30, %v6290_v40  ;;  %v17594_v30 = vmov 0.0  }
 0x422   : > { %11829 = vmatprep.subr.bf16.mxu0 %v17593_v32 }
 0x425   : > { %11685 = vmatmul.mubr.msk.bf16.gmra.mrb[24].mxu1 %vm502_vm1, %v17590_v14  ;;  %v6285_v14 = vld [vmem:[%s17178_s7 + $0x18] sm:$0xff] }
 0x426   : > { %11688 = vmatprep.mubr.msk.bf16.mxu1 %vm502_vm1, %v17591_v47  ;;  %v15318_v58 = vpack.c.bf16 %v6285_v14, %v6284_v9  ;;  %v12717_v47 = vld [vmem:[%s13111_s23 + $0x48] sm:$0xff]  ;;  %v12730_v14 = vld [vmem:[%s13111_s23 + $0xb0] sm:$0xff] }
 0x427   : > { %11323 = vmatmul.mubr.msk.bf16.gmra.mrb[4].mxu0 %vm502_vm1, %v580_v51  ;;  %v581_v42 = vpack.c.bf16 %v12717_v47, %v12716_v16  ;;  %v12729_v51 = vld [vmem:[%s13111_s23 + $0xa8] sm:$0xff]  ;;  %v12731_v16 = vld [vmem:[%s13111_s23 + $0xb8] sm:$0xff] }
 0x428   : > { %11831 = vmatpush3.bf16.msra.mxu0 %v15318_v58  ;;  %v587_v9 = vpack.c.bf16 %v12729_v51, %v12728_v36  ;;  %v588_v47 = vpack.c.bf16 %v12731_v16, %v12730_v14  ;;  %v15424_v36 = vld [vmem:[%s17177_s6] ss:$0 sm:$0xff] }
 0x429   : > { %11832 = vmatprep.subr.bf16.mxu0 %v17593_v32  ;;  %11326 = vmatprep.mubr.msk.bf16.mxu0 %vm502_vm1, %v581_v42  ;;  %v6292_v42 = vld [vmem:[%s17178_s7 + $0x50] sm:$0xff] }
 0x42a   : > { %v15382_v45 = vpack.c.bf16 %v6293_v37, %v6292_v42 }
 0x42d   : > { %11689 = vmatmul.mubr.msk.bf16.gmra.mrb[28].mxu1 %vm502_vm1, %v5969_v1  ;;  %v6287_v1 = vld [vmem:[%s17178_s7 + $0x28] sm:$0xff] }
 0x42e   : > { %11692 = vmatprep.mubr.msk.bf16.mxu1 %vm502_vm1, %v5978_v56  ;;  %v15334_v41 = vpack.c.bf16 %v6287_v1, %v6286_v59  ;;  %v12721_v56 = vld [vmem:[%s13111_s23 + $0x68] sm:$0xff] }
 0x42f   : > { %11327 = vmatmul.mubr.msk.bf16.gmra.mrb[8].mxu0 %vm502_vm1, %v582_v62  ;;  %v583_v48 = vpack.c.bf16 %v12721_v56, %v12720_v29  ;;  %v12732_v62 = vld [vmem:[%s13111_s23 + $0xc0] sm:$0xff]  ;;  %v12733_v59 = vld [vmem:[%s13111_s23 + $0xc8] sm:$0xff]  ;;  %v12734_v29 = vld [vmem:[%s13111_s23 + $0xd0] sm:$0xff] }
 0x430   : > { %11834 = vmatpush3.bf16.msra.mxu0 %v15334_v41  ;;  %v589_v1 = vpack.c.bf16 %v12733_v59, %v12732_v62  ;;  %v12735_v56 = vld [vmem:[%s13111_s23 + $0xd8] sm:$0xff] }
 0x431   : > { %11835 = vmatprep.subr.bf16.mxu0 %v17593_v32  ;;  %11330 = vmatprep.mubr.msk.bf16.mxu0 %vm502_vm1, %v583_v48  ;;  %v590_v48 = vpack.c.bf16 %v12735_v56, %v12734_v29 }
 0x434   : > { %11837 = vmatpush3.bf16.msra.mxu0 %v15350_v17 }
 0x435   : > { %11693 = vmatmul.mubr.msk.bf16.gmra.mrb[32].mxu1 %vm502_vm1, %v5987_v43  ;;  %v12722_v43 = vld [vmem:[%s13111_s23 + $0x70] sm:$0xff]  ;;  %11838 = vmatprep.subr.bf16.mxu0 %v17593_v32 }
 0x436   : > { %v584_v11 = vpack.c.bf16 %v12723_v23, %v12722_v43  ;;  %v6294_v43 = vld [vmem:[%s17178_s7 + $0x60] sm:$0xff]  ;;  %v6295_v23 = vld [vmem:[%s17178_s7 + $0x68] sm:$0xff] }
 0x437   : > { %v15399_v7 = vpack.c.bf16 %v6295_v23, %v6294_v43 }
 0x438   : > { %11331 = vmatmul.mubr.msk.bf16.gmra.mrb[12].mxu0 %vm502_vm1, %v584_v11  ;;  %v12736_v11 = vld [vmem:[%s13111_s23 + $0xe0] sm:$0xff] }
 0x439   : > { %11334 = vmatprep.mubr.msk.bf16.mxu0 %vm502_vm1, %v585_v60  ;;  %11840 = vmatpush3.bf16.msra.mxu0 %v15366_v27  ;;  %v591_v19 = vpack.c.bf16 %v12737_v50, %v12736_v11  ;;  %v6297_v60 = vld [vmem:[%s17178_s7 + $0x78] sm:$0xff] }
 0x43a   : > { %11841 = vmatprep.subr.bf16.mxu0 %v17593_v32  ;;  %v15411_v0 = vpack.c.bf16 %v6297_v60, %v6296_v55 }
 0x43d   : > { %11843 = vmatpush3.bf16.msra.mxu0 %v15382_v45 }
 0x43e   : > { %11844 = vmatprep.subr.bf16.mxu0 %v17593_v32 }
 0x440   : > { %11335 = vmatmul.mubr.msk.bf16.gmra.mrb[16].mxu0 %vm502_vm1, %v586_v34  ;;  %v12739_v34 = vld [vmem:[%s13111_s23 + $0xf8] sm:$0xff]  ;;  %s10164_s23 = sshll.u32 %s17030_s9, 4  ;;  %s17124_s23 = int_to_ptr.vmem [resolvable:$true] %s10164_s23 }
 0x441   : > { %11338 = vmatprep.mubr.msk.bf16.mxu0 %vm502_vm1, %v587_v9  ;;  %11846 = vmatpush3.bf16.msra.mxu0 %v15399_v7  ;;  %v592_v40 = vpack.c.bf16 %v12739_v34, %v12738_v12  ;;  %s12804_s19 = scalar_lea.vmem %s17124_s23, 4096 }
 0x442   : > { %11847 = vmatprep.subr.bf16.mxu0 %v17593_v32  ;;  %p12805_p4 = scmp.ne.s32.totalorder %s17124_s23, %s12804_s19 }
 0x444   : > { %p12806_p6 = pnand %p12805_p4, %p13057_p12 }
 0x445   : > { %11849 = vmatpush3.bf16.msra.mxu0 %v15411_v0 }
 0x446   : > { %11850 = vmatprep.subr.bf16.mxu0 %v17593_v32  ;;  %p12807_p8 = pneg %p12806_p6 }
 0x448   : > { %11339 = vmatmul.mubr.msk.bf16.gmra.mrb[20].mxu0 %vm502_vm1, %v588_v47 }
 0x449   : > { %11342 = vmatprep.mubr.msk.bf16.mxu0 %vm502_vm1, %v589_v1 }
 0x450   : > { %11343 = vmatmul.mubr.msk.bf16.gmra.mrb[24].mxu0 %vm502_vm1, %v590_v48 }
 0x451   : > { %11346 = vmatprep.mubr.msk.bf16.mxu0 %vm502_vm1, %v591_v19 }
 0x458   : > { %11347 = vmatmul.mubr.msk.bf16.gmra.mrb[28].mxu0 %vm502_vm1, %v592_v40 }
 0x459   : > { %11728 = vmatprep.mubr.msk.f32.mxu0 %vm12883_vm0, %v17594_v30 }
 0x4d0   : > { %v11666_v51 = vpop.f32.mrb[4].mxu1 }
 0x4d1   : > { %v6082_v9 = vpop.f32.mrb[5].mxu1  ;;  %v15430_v42 = vadd.f32 %v11666_v51, %v15424_v36 }
 0x4d2   : > { %v15427_v14 = vadd.f32 %v15424_v36, %v6082_v9  ;;  %v11667_v16 = vpop.f32.mrb[6].mxu1 }
 0x4d3   : > { %v6085_v47 = vpop.f32.mrb[7].mxu1  ;;  %v15438_v59 = vadd.f32 %v11667_v16, %v15424_v36  ;;  %v6337_v56 = vmul.f32 %v15430_v42, %v15430_v42 }
 0x4d4   : > { %v15433_v37 = vadd.f32 %v15424_v36, %v6085_v47  ;;  %v6335_v62 = vmul.f32 %v15427_v14, %v15427_v14 }
 0x4d5   : > { %v6338_v50 = vmul.f32 %v15438_v59, %v15438_v59 }
 0x4d6   : > { %v6298_v1 = vadd.f32 %v15433_v37, %v15427_v14  ;;  %v6336_v29 = vmul.f32 %v15433_v37, %v15433_v37 }
 0x4d8   : > { %v6299_v48 = vadd.f32 %v6298_v1, %v15430_v42  ;;  %v6367_v43 = vadd.f32 %v6336_v29, %v6335_v62  ;;  %v11670_v23 = vpop.f32.mrb[8].mxu1 }
 0x4d9   : > { %v6098_v11 = vpop.f32.mrb[9].mxu1  ;;  %v15454_v34 = vadd.f32 %v11670_v23, %v15424_v36 }
 0x4da   : > { %v6368_v19 = vadd.f32 %v6367_v43, %v6337_v56  ;;  %v15450_v55 = vadd.f32 %v15424_v36, %v6098_v11  ;;  %v6300_v60 = vadd.f32 %v6299_v48, %v15438_v59  ;;  %v11671_v12 = vpop.f32.mrb[10].mxu1 }
 0x4db   : > { %v6101_v40 = vpop.f32.mrb[11].mxu1  ;;  %v15463_v1 = vadd.f32 %v11671_v12, %v15424_v36  ;;  %v6341_v48 = vmul.f32 %v15454_v34, %v15454_v34 }
 0x4dc   : > { %v6301_v51 = vadd.f32 %v6300_v60, %v15450_v55  ;;  %v6339_v9 = vmul.f32 %v15450_v55, %v15450_v55  ;;  %v6369_v16 = vadd.f32 %v6368_v19, %v6338_v50  ;;  %v15460_v47 = vadd.f32 %v15424_v36, %v6101_v40 }
 0x4dd   : > { %v6342_v19 = vmul.f32 %v15463_v1, %v15463_v1 }
 0x4de   : > { %v6370_v62 = vadd.f32 %v6369_v16, %v6339_v9  ;;  %v6302_v29 = vadd.f32 %v6301_v51, %v15460_v47  ;;  %v6340_v56 = vmul.f32 %v15460_v47, %v15460_v47 }
 0x4e0   : > { %v6303_v43 = vadd.f32 %v6302_v29, %v15454_v34  ;;  %v6371_v23 = vadd.f32 %v6370_v62, %v6340_v56  ;;  %v11674_v11 = vpop.f32.mrb[12].mxu1 }
 0x4e1   : > { %v6114_v50 = vpop.f32.mrb[13].mxu1  ;;  %v15478_v9 = vadd.f32 %v11674_v11, %v15424_v36 }
 0x4e2   : > { %v6372_v60 = vadd.f32 %v6371_v23, %v6341_v48  ;;  %v15474_v12 = vadd.f32 %v15424_v36, %v6114_v50  ;;  %v6304_v40 = vadd.f32 %v6303_v43, %v15463_v1  ;;  %v11675_v51 = vpop.f32.mrb[14].mxu1 }
 0x4e3   : > { %v6117_v16 = vpop.f32.mrb[15].mxu1  ;;  %v15487_v23 = vadd.f32 %v11675_v51, %v15424_v36  ;;  %v6345_v50 = vmul.f32 %v15478_v9, %v15478_v9 }
 0x4e4   : > { %v6305_v61 = vadd.f32 %v6304_v40, %v15474_v12  ;;  %v6343_v62 = vmul.f32 %v15474_v12, %v15474_v12  ;;  %v6373_v29 = vadd.f32 %v6372_v60, %v6342_v19  ;;  %v15484_v56 = vadd.f32 %v15424_v36, %v6117_v16 }
 0x4e5   : > { %v6346_v60 = vmul.f32 %v15487_v23, %v15487_v23 }
 0x4e6   : > { %v6374_v48 = vadd.f32 %v6373_v29, %v6343_v62  ;;  %v6306_v43 = vadd.f32 %v6305_v61, %v15484_v56  ;;  %v6344_v11 = vmul.f32 %v15484_v56, %v15484_v56 }
 0x4e8   : > { %v6307_v40 = vadd.f32 %v6306_v43, %v15478_v9  ;;  %v6375_v3 = vadd.f32 %v6374_v48, %v6344_v11  ;;  %v11678_v2 = vpop.f32.mrb[16].mxu1 }
 0x4e9   : > { %v6130_v19 = vpop.f32.mrb[17].mxu1  ;;  %v15502_v29 = vadd.f32 %v11678_v2, %v15424_v36 }
 0x4ea   : > { %v6376_v16 = vadd.f32 %v6375_v3, %v6345_v50  ;;  %v15498_v51 = vadd.f32 %v15424_v36, %v6130_v19  ;;  %v6308_v61 = vadd.f32 %v6307_v40, %v15487_v23  ;;  %v11679_v62 = vpop.f32.mrb[18].mxu1 }
 0x4eb   : > { %v6133_v15 = vpop.f32.mrb[19].mxu1  ;;  %v15511_v50 = vadd.f32 %v11679_v62, %v15424_v36  ;;  %v6349_v19 = vmul.f32 %v15502_v29, %v15502_v29 }
 0x4ec   : > { %v6309_v20 = vadd.f32 %v6308_v61, %v15498_v51  ;;  %v6347_v48 = vmul.f32 %v15498_v51, %v15498_v51  ;;  %v6377_v43 = vadd.f32 %v6376_v16, %v6346_v60  ;;  %v15508_v11 = vadd.f32 %v15424_v36, %v6133_v15 }
 0x4ed   : > { %v6350_v15 = vmul.f32 %v15511_v50, %v15511_v50 }
 0x4ee   : > { %v6378_v3 = vadd.f32 %v6377_v43, %v6347_v48  ;;  %v6310_v40 = vadd.f32 %v6309_v20, %v15508_v11  ;;  %v6348_v2 = vmul.f32 %v15508_v11, %v15508_v11 }
 0x4f0   : > { %v6311_v61 = vadd.f32 %v6310_v40, %v15502_v29  ;;  %v6379_v52 = vadd.f32 %v6378_v3, %v6348_v2  ;;  %v11682_v44 = vpop.f32.mrb[20].mxu1 }
 0x4f1   : > { %v6146_v60 = vpop.f32.mrb[21].mxu1  ;;  %v15526_v43 = vadd.f32 %v11682_v44, %v15424_v36 }
 0x4f2   : > { %v6380_v16 = vadd.f32 %v6379_v52, %v6349_v19  ;;  %v15522_v62 = vadd.f32 %v15424_v36, %v6146_v60  ;;  %v6312_v20 = vadd.f32 %v6311_v61, %v15511_v50  ;;  %v11683_v48 = vpop.f32.mrb[22].mxu1 }
 0x4f3   : > { %v6149_v31 = vpop.f32.mrb[23].mxu1  ;;  %v15535_v19 = vadd.f32 %v11683_v48, %v15424_v36  ;;  %v6353_v60 = vmul.f32 %v15526_v43, %v15526_v43 }
 0x4f4   : > { %v6313_v39 = vadd.f32 %v6312_v20, %v15522_v62  ;;  %v6351_v3 = vmul.f32 %v15522_v62, %v15522_v62  ;;  %v6381_v40 = vadd.f32 %v6380_v16, %v6350_v15  ;;  %v15532_v2 = vadd.f32 %v15424_v36, %v6149_v31 }
 0x4f5   : > { %v6354_v31 = vmul.f32 %v15535_v19, %v15535_v19 }
 0x4f6   : > { %v6382_v52 = vadd.f32 %v6381_v40, %v6351_v3  ;;  %v6314_v61 = vadd.f32 %v6313_v39, %v15532_v2  ;;  %v6352_v44 = vmul.f32 %v15532_v2, %v15532_v2 }
 0x4f8   : > { %v6315_v20 = vadd.f32 %v6314_v61, %v15526_v43  ;;  %v6383_v33 = vadd.f32 %v6382_v52, %v6352_v44  ;;  %v11686_v53 = vpop.f32.mrb[24].mxu1 }
 0x4f9   : > { %v6162_v15 = vpop.f32.mrb[25].mxu1  ;;  %v15550_v40 = vadd.f32 %v11686_v53, %v15424_v36 }
 0x4fa   : > { %v6384_v16 = vadd.f32 %v6383_v33, %v6353_v60  ;;  %v15546_v48 = vadd.f32 %v15424_v36, %v6162_v15  ;;  %v6316_v39 = vadd.f32 %v6315_v20, %v15535_v19  ;;  %v11687_v3 = vpop.f32.mrb[26].mxu1 }
 0x4fb   : > { %v6165_v38 = vpop.f32.mrb[27].mxu1  ;;  %v6357_v53 = vmul.f32 %v15550_v40, %v15550_v40  ;;  %v15564_v15 = vadd.f32 %v11687_v3, %v15424_v36 }
 0x4fc   : > { %v6317_v24 = vadd.f32 %v6316_v39, %v15546_v48  ;;  %v6355_v52 = vmul.f32 %v15546_v48, %v15546_v48  ;;  %v6385_v61 = vadd.f32 %v6384_v16, %v6354_v31  ;;  %v15556_v44 = vadd.f32 %v15424_v36, %v6165_v38 }
 0x4fd   : > { %v6358_v4 = vmul.f32 %v15564_v15, %v15564_v15 }
 0x4fe   : > { %v6386_v33 = vadd.f32 %v6385_v61, %v6355_v52  ;;  %v6318_v60 = vadd.f32 %v6317_v24, %v15556_v44  ;;  %v6356_v20 = vmul.f32 %v15556_v44, %v15556_v44 }
 0x500   : > { %v6319_v39 = vadd.f32 %v6318_v60, %v15550_v40  ;;  %v6387_v28 = vadd.f32 %v6386_v33, %v6356_v20  ;;  %v11690_v13 = vpop.f32.mrb[28].mxu1 }
 0x501   : > { %v6178_v31 = vpop.f32.mrb[29].mxu1  ;;  %v15578_v33 = vadd.f32 %v11690_v13, %v15424_v36 }
 0x502   : > { %v6388_v16 = vadd.f32 %v6387_v28, %v6357_v53  ;;  %v15568_v38 = vadd.f32 %v15424_v36, %v6178_v31  ;;  %v6320_v24 = vadd.f32 %v6319_v39, %v15564_v15  ;;  %v11691_v52 = vpop.f32.mrb[30].mxu1 }
 0x503   : > { %v6181_v61 = vpop.f32.mrb[31].mxu1  ;;  %v15584_v53 = vadd.f32 %v11691_v52, %v15424_v36 }
 0x504   : > { %v6321_v5 = vadd.f32 %v6320_v24, %v15568_v38  ;;  %v15575_v3 = vadd.f32 %v15424_v36, %v6181_v61  ;;  %v6359_v28 = vmul.f32 %v15568_v38, %v15568_v38  ;;  %v6389_v60 = vadd.f32 %v6388_v16, %v6358_v4 }
 0x506   : > { %v6322_v20 = vadd.f32 %v6321_v5, %v15575_v3  ;;  %v6390_v24 = vadd.f32 %v6389_v60, %v6359_v28  ;;  %v6360_v61 = vmul.f32 %v15575_v3, %v15575_v3  ;;  %v6361_v60 = vmul.f32 %v15578_v33, %v15578_v33 }
 0x508   : > { %v6323_v39 = vadd.f32 %v6322_v20, %v15578_v33  ;;  %v11694_v31 = vpop.f32.mrb[32].mxu1  ;;  %v6391_v52 = vadd.f32 %v6390_v24, %v6360_v61 }
 0x509   : > { %v6194_v57 = vpop.f32.mrb[33].mxu1  ;;  %v15598_v20 = vadd.f32 %v11694_v31, %v15424_v36 }
 0x50a   : > { %v15590_v13 = vadd.f32 %v15424_v36, %v6194_v57  ;;  %v6324_v8 = vadd.f32 %v6323_v39, %v15584_v53  ;;  %v11695_v49 = vpop.f32.mrb[34].mxu1  ;;  %v6392_v63 = vadd.f32 %v6391_v52, %v6361_v60 }
 0x50b   : > { %v6197_v4 = vpop.f32.mrb[35].mxu1  ;;  %v15604_v57 = vadd.f32 %v11695_v49, %v15424_v36  ;;  %v6365_v60 = vmul.f32 %v15598_v20, %v15598_v20 }
 0x50c   : > { %v6325_v5 = vadd.f32 %v6324_v8, %v15590_v13  ;;  %v15595_v16 = vadd.f32 %v15424_v36, %v6197_v4  ;;  %v6362_v4 = vmul.f32 %v15584_v53, %v15584_v53  ;;  %v6363_v31 = vmul.f32 %v15590_v13, %v15590_v13 }
 0x50e   : > { %v6326_v28 = vadd.f32 %v6325_v5, %v15595_v16  ;;  %v6393_v61 = vadd.f32 %v6392_v63, %v6362_v4  ;;  %v6364_v49 = vmul.f32 %v15595_v16, %v15595_v16  ;;  %v12336_v4 = vld [vmem:[#allocation9] sm:$0xff]  }
 0x510   : > { %v6327_v39 = vadd.f32 %v6326_v28, %v15598_v20  ;;  %v6394_v54 = vadd.f32 %v6393_v61, %v6363_v31 }
 0x512   : > { %v6328_v8 = vadd.f32 %v6327_v39, %v15604_v57  ;;  %v6395_v28 = vadd.f32 %v6394_v54, %v6364_v49  ;;  %v12341_v49 = vld [vmem:[#allocation9 + $0x58] sm:$0xff]  }
 0x514   : > { %v6329_v24 = vrot.slane %v6328_v8, 4  ;;  %v6396_v63 = vadd.f32 %v6395_v28, %v6365_v60  ;;  %v12342_v28 = vld [vmem:[#allocation9 + $0x18] sm:$0xff]   ;;  %v12343_v60 = vld [vmem:[#allocation9 + $0x60] sm:$0xff]  }
 0x516   : > { %v6330_v5 = vadd.f32 %v6329_v24, %v6328_v8  ;;  %v12337_v24 = vld [vmem:[#allocation9 + $0x48] sm:$0xff]  }
 0x518   : > { %v6331_v10 = vrot.slane %v6330_v5, 2 }
 0x51a   : > { %v6332_v35 = vadd.f32 %v6331_v10, %v6330_v5  ;;  %v6366_v10 = vmul.f32 %v15604_v57, %v15604_v57 }
 0x51c   : > { %v6333_v36 = vrot.slane %v6332_v35, 1  ;;  %v6397_v39 = vadd.f32 %v6396_v63, %v6366_v10  ;;  %v12344_v63 = vld [vmem:[#allocation9 + $0x20] sm:$0xff]   ;;  %v12345_v10 = vld [vmem:[#allocation9 + $0x68] sm:$0xff]  }
 0x51e   : > { %v6334_v52 = vadd.f32 %v6333_v36, %v6332_v35  ;;  %v6398_v35 = vrot.slane %v6397_v39, 4 }
 0x520   : > { %11729 = vmatmul.mubr.f32.vlgmr.msra.gmra.mrb[32].mxu0 %v6334_v52  ;;  %v6399_v54 = vadd.f32 %v6398_v35, %v6397_v39  ;;  %v12346_v39 = vld [vmem:[#allocation9 + $0x28] sm:$0xff]   ;;  %v12347_v35 = vld [vmem:[#allocation9 + $0x70] sm:$0xff]  }
 0x521   : > { %11852 = vmatpush3.bf16.msra.mxu0 %v15302_v22  ;;  %11763 = vmatprep.mubr.msk.f32.mxu0 %vm12883_vm0, %v17594_v30 }
 0x522   : > { %11853 = vmatprep.subr.bf16.mxu0 %v17593_v32  ;;  %v6400_v22 = vrot.slane %v6399_v54, 2 }
 0x525   : > { %11855 = vmatpush3.bf16.msra.mxu0 %v15318_v58  ;;  %v6401_v58 = vadd.f32 %v6400_v22, %v6399_v54  ;;  %v6280_v54 = vld [vmem:[%s17179_s8] sm:$0x1] }
 0x526   : > { %11856 = vmatprep.subr.bf16.mxu0 %v17593_v32  ;;  %v12348_v22 = vld [vmem:[#allocation9 + $0x30] sm:$0xff]  }
 0x529   : > { %11858 = vmatpush3.bf16.msra.mxu0 %v15334_v41  ;;  %v6402_v41 = vrot.slane %v6401_v58, 1 }
 0x52a   : > { %11859 = vmatprep.subr.bf16.mxu0 %v17593_v32 }
 0x52d   : > { %11861 = vmatpush3.bf16.msra.mxu0 %v15350_v17  ;;  %v6403_v17 = vadd.f32 %v6402_v41, %v6401_v58  ;;  %v12349_v41 = vld [vmem:[#allocation9 + $0x78] sm:$0xff]  }
 0x52e   : > { %11862 = vmatprep.subr.bf16.mxu0 %v17593_v32 }
 0x531   : > { %11864 = vmatpush3.bf16.msra.mxu0 %v15366_v27  ;;  %v12335_v27 = vld [vmem:[#allocation9 + $0x40] sm:$0xff]  }
 0x532   : > { %11865 = vmatprep.subr.bf16.mxu0 %v17593_v32  ;;  %11874 = vmatprep.subr.bf16.mxu1 %v12335_v27 }
 0x533   : > { %11882 = vmatpush3.bf16.msra.mxu1 %v12336_v4 }
 0x534   : > { %11875 = vmatprep.subr.bf16.mxu1 %v12337_v24 }
 0x535   : > { %11867 = vmatpush3.bf16.msra.mxu0 %v15382_v45  ;;  %v12338_v45 = vld [vmem:[#allocation9 + $0x8] sm:$0xff]  }
 0x536   : > { %11868 = vmatprep.subr.bf16.mxu0 %v17593_v32 }
 0x537   : > { %11883 = vmatpush3.bf16.msra.mxu1 %v12338_v45 }
 0x539   : > { %11870 = vmatpush3.bf16.msra.mxu0 %v15399_v7  ;;  %v12339_v7 = vld [vmem:[#allocation9 + $0x50] sm:$0xff]  }
 0x53a   : > { %11871 = vmatprep.subr.bf16.mxu0 %v17593_v32  ;;  %11876 = vmatprep.subr.bf16.mxu1 %v12339_v7 }
 0x53d   : > { %11873 = vmatpush3.bf16.msra.mxu0 %v15411_v0  ;;  %v12340_v0 = vld [vmem:[#allocation9 + $0x10] sm:$0xff]  }
 0x53e   : > { %10842 = vmatprep.subr.bf16.mxu0 %v12335_v27  ;;  %11884 = vmatpush3.bf16.msra.mxu1 %v12340_v0 }
 0x53f   : > { %11877 = vmatprep.subr.bf16.mxu1 %v12341_v49 }
 0x540   : > { %11764 = vmatmul.mubr.f32.vlgmr.msra.gmra.mrb[34].mxu0 %v6403_v17 }
 0x541   : > { %10843 = vmatpush3.bf16.msra.mxu0 %v12336_v4  ;;  %v17596_v4 = vld [vmem:[#allocation32_spill] sm:$0xff] }
 0x542   : > { %10844 = vmatprep.subr.bf16.mxu0 %v12337_v24  ;;  %11885 = vmatpush3.bf16.msra.mxu1 %v12342_v28 }
 0x543   : > { %11878 = vmatprep.subr.bf16.mxu1 %v12343_v60 }
 0x545   : > { %10845 = vmatpush3.bf16.msra.mxu0 %v12338_v45  ;;  %v12350_v45 = vld [vmem:[#allocation9 + $0x38] sm:$0xff]  }
 0x546   : > { %10846 = vmatprep.subr.bf16.mxu0 %v12339_v7  ;;  %11886 = vmatpush3.bf16.msra.mxu1 %v12344_v63 }
 0x547   : > { %11879 = vmatprep.subr.bf16.mxu1 %v12345_v10 }
 0x549   : > { %10847 = vmatpush3.bf16.msra.mxu0 %v12340_v0 }
 0x54a   : > { %10848 = vmatprep.subr.bf16.mxu0 %v12341_v49  ;;  %11887 = vmatpush3.bf16.msra.mxu1 %v12346_v39 }
 0x54b   : > { %11880 = vmatprep.subr.bf16.mxu1 %v12347_v35 }
 0x54d   : > { %10849 = vmatpush3.bf16.msra.mxu0 %v12342_v28 }
 0x54e   : > { %10850 = vmatprep.subr.bf16.mxu0 %v12343_v60  ;;  %11888 = vmatpush3.bf16.msra.mxu1 %v12348_v22 }
 0x54f   : > { %11881 = vmatprep.subr.bf16.mxu1 %v12349_v41 }
 0x551   : > { %10851 = vmatpush3.bf16.msra.mxu0 %v12344_v63 }
 0x552   : > { %10852 = vmatprep.subr.bf16.mxu0 %v12345_v10  ;;  %11889 = vmatpush3.bf16.msra.mxu1 %v12350_v45 }
 0x555   : > { %10853 = vmatpush3.bf16.msra.mxu0 %v12346_v39 }
 0x556   : > { %10854 = vmatprep.subr.bf16.mxu0 %v12347_v35 }
 0x559   : > { %10855 = vmatpush3.bf16.msra.mxu0 %v12348_v22 }
 0x55a   : > { %10856 = vmatprep.subr.bf16.mxu0 %v12349_v41 }
 0x55d   : > { %10857 = vmatpush3.bf16.msra.mxu0 %v12350_v45 }
 0x5f3   : > { %v6470_v30 = vpop.f32.mrb[32].mxu0 }
 0x5f4   : > { %v11730_v8 = vpop.f32.mrb[33].mxu0  ;;  %v6544_v31 = vmul.f32 %v6470_v30, %v6470_v30 }
 0x5f5   : > { %v6281_v8 = vld [vmem:[%s17595_s18] sm:$0x1]  ;;  %s10151_s18 = scalar_lea.sflag [#allocation8], %s13105_s22 }
 0x613   : > { %v6540_v32 = vpop.f32.mrb[34].mxu0 }
 0x614   : > { %v6545_v61 = vsub.f32 %v6540_v32, %v6544_v31  ;;  %v11765_v5 = vpop.f32.mrb[35].mxu0 }
 0x616   : > { %v6546_v36 = vmax.f32 %v6545_v61, 0.0  ;;  %v12351_v61 = vld [vmem:[#allocation9 + $0xc0] sm:$0xff]  }
 0x617   : > { %10954 = vmatprep.subr.bf16.mxu0 %v12351_v61 }
 0x618   : > { %v6547_v52 = vadd.f32 1e-05, %v6546_v36 }
 0x61a   : > { %12537 = vrsqrt.f32 %v6547_v52 }
 0x624   : > { %v12538_v58 = vpop.eup %12537 }
 0x625   : > { %v6549_v17 = vmul.f32 %v12538_v58, %v6280_v54 }
 0x627   : > { %v6550_v27 = vmul.f32 %v6549_v17, %v6470_v30  ;;  %v6556_v24 = vrot.slane %v6549_v17, %v17596_v4 }
 0x629   : > { %v6551_v7 = vsub.f32 %v6281_v8, %v6550_v27  ;;  %v6558_v31 = vmul.f32 %v6556_v24, %v15427_v14  ;;  %v6559_v32 = vmul.f32 %v6556_v24, %v15433_v37  ;;  %v6560_v0 = vmul.f32 %v6556_v24, %v15430_v42 }
 0x62a   : > { %v6561_v5 = vmul.f32 %v6556_v24, %v15438_v59  ;;  %v6562_v49 = vmul.f32 %v6556_v24, %v15450_v55  ;;  %v6563_v30 = vmul.f32 %v6556_v24, %v15460_v47  ;;  %v6564_v36 = vmul.f32 %v6556_v24, %v15454_v34 }
 0x62b   : > { %v6594_v28 = vrot.slane %v6551_v7, %v17596_v4  ;;  %v6565_v52 = vmul.f32 %v6556_v24, %v15463_v1  ;;  %v6566_v60 = vmul.f32 %v6556_v24, %v15474_v12  ;;  %v6567_v14 = vmul.f32 %v6556_v24, %v15484_v56 }
 0x62c   : > { %v6568_v42 = vmul.f32 %v6556_v24, %v15478_v9  ;;  %v6569_v37 = vmul.f32 %v6556_v24, %v15487_v23  ;;  %v6570_v59 = vmul.f32 %v6556_v24, %v15498_v51  ;;  %v6571_v55 = vmul.f32 %v6556_v24, %v15508_v11 }
 0x62d   : > { %v6572_v34 = vmul.f32 %v6556_v24, %v15502_v29  ;;  %v6573_v47 = vmul.f32 %v6556_v24, %v15511_v50  ;;  %v6574_v1 = vmul.f32 %v6556_v24, %v15522_v62  ;;  %v6575_v12 = vmul.f32 %v6556_v24, %v15532_v2 }
 0x62e   : > { %v6576_v56 = vmul.f32 %v6556_v24, %v15526_v43  ;;  %v6577_v9 = vmul.f32 %v6556_v24, %v15535_v19  ;;  %v6578_v23 = vmul.f32 %v6556_v24, %v15546_v48  ;;  %v6579_v51 = vmul.f32 %v6556_v24, %v15556_v44 }
 0x62f   : > { %v6580_v11 = vmul.f32 %v6556_v24, %v15550_v40  ;;  %v6581_v63 = vmul.f32 %v6556_v24, %v15564_v15  ;;  %v6582_v29 = vmul.f32 %v6556_v24, %v15568_v38  ;;  %v6583_v50 = vmul.f32 %v6556_v24, %v15575_v3 }
 0x630   : > { %v6584_v62 = vmul.f32 %v6556_v24, %v15578_v33  ;;  %v6585_v2 = vmul.f32 %v6556_v24, %v15584_v53  ;;  %v6586_v43 = vmul.f32 %v6556_v24, %v15590_v13  ;;  %v6587_v19 = vmul.f32 %v6556_v24, %v15595_v16 }
 0x631   : > { %v6588_v48 = vmul.f32 %v6556_v24, %v15598_v20  ;;  %v6589_v44 = vmul.f32 %v6556_v24, %v15604_v57  ;;  %v15675_v10 = vadd.f32 %v6594_v28, %v6558_v31  ;;  %v15677_v40 = vadd.f32 %v6594_v28, %v6559_v32 }
 0x632   : > { %v15679_v15 = vadd.f32 %v6594_v28, %v6560_v0  ;;  %v15681_v38 = vadd.f32 %v6594_v28, %v6561_v5  ;;  %v15683_v3 = vadd.f32 %v6594_v28, %v6562_v49  ;;  %v15685_v33 = vadd.f32 %v6594_v28, %v6563_v30 }
 0x633   : > { %v15687_v53 = vadd.f32 %v6594_v28, %v6564_v36  ;;  %v15689_v13 = vadd.f32 %v6594_v28, %v6565_v52  ;;  %v15691_v16 = vadd.f32 %v6594_v28, %v6566_v60  ;;  %v15693_v20 = vadd.f32 %v6594_v28, %v6567_v14 }
 0x634   : > { %v15695_v57 = vadd.f32 %v6594_v28, %v6568_v42  ;;  %v15697_v39 = vadd.f32 %v6594_v28, %v6569_v37  ;;  %v15699_v35 = vadd.f32 %v6594_v28, %v6570_v59  ;;  %v15701_v54 = vadd.f32 %v6594_v28, %v6571_v55 }
 0x635   : > { %v15703_v22 = vadd.f32 %v6594_v28, %v6572_v34  ;;  %v15705_v58 = vadd.f32 %v6594_v28, %v6573_v47  ;;  %v15707_v41 = vadd.f32 %v6594_v28, %v6574_v1  ;;  %v15709_v17 = vadd.f32 %v6594_v28, %v6575_v12 }
 0x636   : > { %v15711_v8 = vadd.f32 %v6594_v28, %v6576_v56  ;;  %v15713_v27 = vadd.f32 %v6594_v28, %v6577_v9  ;;  %v15715_v4 = vadd.f32 %v6594_v28, %v6578_v23  ;;  %v15717_v24 = vadd.f32 %v6594_v28, %v6579_v51 }
 0x637   : > { %v15719_v45 = vadd.f32 %v6594_v28, %v6580_v11  ;;  %v15721_v7 = vadd.f32 %v6594_v28, %v6581_v63  ;;  %v15723_v31 = vadd.f32 %v6594_v28, %v6582_v29  ;;  %v15725_v32 = vadd.f32 %v6594_v28, %v6583_v50 }
 0x638   : > { %v15727_v0 = vadd.f32 %v6594_v28, %v6584_v62  ;;  %v15729_v61 = vadd.f32 %v6594_v28, %v6585_v2  ;;  %v15731_v5 = vadd.f32 %v6594_v28, %v6586_v43  ;;  %v15733_v49 = vadd.f32 %v6594_v28, %v6587_v19 }
 0x639   : > { %17597 = vst [vmem:[#allocation49_spill] sm:$0xff] %v15719_v45  ;;  %17598 = vst [vmem:[#allocation50_spill] sm:$0xff] %v15721_v7  ;;  %v15735_v30 = vadd.f32 %v6594_v28, %v6588_v48  ;;  %v15737_v36 = vadd.f32 %v6594_v28, %v6589_v44  ;;  %v10506_v52 = vmul.f32 -1.442695, %v15675_v10  ;;  %v10507_v60 = vmul.f32 -1.442695, %v15677_v40 }
 0x63a   : > { %17599 = vst [vmem:[#allocation18_spill] sm:$0xff] %v15723_v31  ;;  %17600 = vst [vmem:[#allocation23_spill] sm:$0xff] %v15725_v32  ;;  %v10508_v14 = vmul.f32 -1.442695, %v15679_v15  ;;  %v10509_v42 = vmul.f32 -1.442695, %v15681_v38 }
 0x63b   : > { %17601 = vst [vmem:[#allocation22_spill] sm:$0xff] %v15727_v0  ;;  %17602 = vst [vmem:[#allocation24_spill] sm:$0xff] %v15729_v61  ;;  %12539 = vpow2.f32 %v10506_v52  ;;  %v10510_v37 = vmul.f32 -1.442695, %v15683_v3  ;;  %v10511_v59 = vmul.f32 -1.442695, %v15685_v33 }
 0x63c   : > { %17603 = vst [vmem:[#allocation35_spill] sm:$0xff] %v15731_v5  ;;  %17604 = vst [vmem:[#allocation59_spill] sm:$0xff] %v15733_v49  ;;  %12541 = vpow2.f32 %v10507_v60  ;;  %v10512_v55 = vmul.f32 -1.442695, %v15687_v53  ;;  %v10513_v28 = vmul.f32 -1.442695, %v15689_v13 }
 0x63d   : > { %17605 = vst [vmem:[#allocation19_spill] sm:$0xff] %v15735_v30  ;;  %17606 = vst [vmem:[#allocation60_spill] sm:$0xff] %v15737_v36  ;;  %12543 = vpow2.f32 %v10508_v14  ;;  %v10514_v34 = vmul.f32 -1.442695, %v15691_v16  ;;  %v10515_v47 = vmul.f32 -1.442695, %v15693_v20 }
 0x63e   : > { %12545 = vpow2.f32 %v10509_v42  ;;  %v10516_v1 = vmul.f32 -1.442695, %v15695_v57  ;;  %v10517_v12 = vmul.f32 -1.442695, %v15697_v39  ;;  %v10518_v56 = vmul.f32 -1.442695, %v15699_v35 }
 0x63f   : > { %12547 = vpow2.f32 %v10510_v37  ;;  %v10519_v9 = vmul.f32 -1.442695, %v15701_v54  ;;  %v10520_v51 = vmul.f32 -1.442695, %v15703_v22  ;;  %v10521_v63 = vmul.f32 -1.442695, %v15705_v58 }
 0x640   : > { %12549 = vpow2.f32 %v10511_v59  ;;  %v10522_v50 = vmul.f32 -1.442695, %v15707_v41  ;;  %v10523_v2 = vmul.f32 -1.442695, %v15709_v17  ;;  %v10524_v19 = vmul.f32 -1.442695, %v15711_v8 }
 0x641   : > { %12551 = vpow2.f32 %v10512_v55  ;;  %v10525_v44 = vmul.f32 -1.442695, %v15713_v27  ;;  %v10526_v60 = vmul.f32 -1.442695, %v15715_v4  ;;  %v10527_v42 = vmul.f32 -1.442695, %v15717_v24 }
 0x642   : > { %12553 = vpow2.f32 %v10513_v28  ;;  %v10528_v59 = vmul.f32 -1.442695, %v15719_v45  ;;  %v10529_v28 = vmul.f32 -1.442695, %v15721_v7  ;;  %v10537_v6 = vmul.f32 -1.442695, %v15737_v36 }
 0x643   : > { %12555 = vpow2.f32 %v10514_v34 }
 0x644   : > { %12557 = vpow2.f32 %v10515_v47  ;;  %v10530_v47 = vmul.f32 -1.442695, %v15723_v31 }
 0x645   : > { %v12540_v23 = vpop.eup %12539  ;;  %12559 = vpow2.f32 %v10516_v1 }
 0x646   : > { %v12542_v11 = vpop.eup %12541  ;;  %12561 = vpow2.f32 %v10517_v12  ;;  %v10531_v12 = vmul.f32 -1.442695, %v15725_v32 }
 0x647   : > { %v12544_v29 = vpop.eup %12543  ;;  %12563 = vpow2.f32 %v10518_v56 }
 0x648   : > { %v12546_v62 = vpop.eup %12545  ;;  %12565 = vpow2.f32 %v10519_v9  ;;  %v10532_v9 = vmul.f32 -1.442695, %v15727_v0 }
 0x649   : > { %v12548_v43 = vpop.eup %12547  ;;  %12567 = vpow2.f32 %v10520_v51 }
 0x64a   : > { %v12550_v48 = vpop.eup %12549  ;;  %12569 = vpow2.f32 %v10521_v63  ;;  %v10533_v63 = vmul.f32 -1.442695, %v15729_v61  ;;  %v6724_v61 = vadd.f32 1.0, %v12540_v23 }
 0x64b   : > { %v12552_v52 = vpop.eup %12551  ;;  %12571 = vpow2.f32 %v10522_v50  ;;  %v6729_v7 = vadd.f32 1.0, %v12550_v48 }
 0x64c   : > { %v12554_v14 = vpop.eup %12553  ;;  %12573 = vpow2.f32 %v10523_v2  ;;  %v10534_v2 = vmul.f32 -1.442695, %v15731_v5  ;;  %v6725_v5 = vadd.f32 1.0, %v12542_v11 }
 0x64d   : > { %v12556_v37 = vpop.eup %12555  ;;  %12575 = vpow2.f32 %v10524_v19 }
 0x64e   : > { %v12558_v55 = vpop.eup %12557  ;;  %12577 = vpow2.f32 %v10525_v44  ;;  %v10535_v44 = vmul.f32 -1.442695, %v15733_v49  ;;  %v6726_v49 = vadd.f32 1.0, %v12544_v29 }
 0x64f   : > { %v12560_v34 = vpop.eup %12559  ;;  %12579 = vpow2.f32 %v10526_v60  ;;  %v6949_v60 = vld [vmem:[#allocation4] sm:$0xf8] }
 0x650   : > { %v12562_v1 = vpop.eup %12561  ;;  %12581 = vpow2.f32 %v10527_v42 }
 0x651   : > { %v12564_v56 = vpop.eup %12563  ;;  %12583 = vpow2.f32 %v10528_v59  ;;  %v10536_v59 = vmul.f32 -1.442695, %v15735_v30  ;;  %v6728_v30 = vadd.f32 1.0, %v12548_v43  ;;  %v15778_v43 = vld [vmem:[#allocation4] sm:$0xf0] }
 0x652   : > { %v15766_v51 = vpop.eup %12565  ;;  %12585 = vpow2.f32 %v10529_v28 }
 0x653   : > { %v12568_v50 = vpop.eup %12567  ;;  %12587 = vpow2.f32 %v10530_v47  ;;  %v6966_v47 = vmul.bf16 %v6949_v60, %v17557_v26 }
 0x654   : > { %v12570_v19 = vpop.eup %12569  ;;  %12589 = vpow2.f32 %v10531_v12 }
 0x655   : > { %v12572_v42 = vpop.eup %12571  ;;  %12591 = vpow2.f32 %v10532_v9  ;;  %v6727_v9 = vadd.f32 1.0, %v12546_v62  ;;  %v6987_v31 = vshll.u32 %v6966_v47, 16 }
 0x656   : > { %v12574_v21 = vpop.eup %12573  ;;  %12593 = vpow2.f32 %v10533_v63  ;;  %v6984_v63 = vshrl.u32 %v6966_v47, 16  ;;  %v6736_v47 = vadd.f32 1.0, %v12564_v56 }
 0x657   : > { %v12576_v28 = vpop.eup %12575  ;;  %12595 = vpow2.f32 %v10534_v2  ;;  %v6730_v2 = vadd.f32 1.0, %v12552_v52 }
 0x658   : > { %v12578_v46 = vpop.eup %12577  ;;  %12597 = vpow2.f32 %v10535_v44  ;;  %v6731_v44 = vadd.f32 1.0, %v12554_v14  ;;  %v15774_v29 = vrot.slane %v6984_v63, 3  ;;  %v6742_v26 = vadd.f32 1.0, %v12576_v28 }
 0x659   : > { %v12580_v12 = vpop.eup %12579  ;;  %12599 = vpow2.f32 %v10536_v59  ;;  %v6732_v59 = vadd.f32 1.0, %v12556_v37 }
 0x65a   : > { %v12582_v0 = vpop.eup %12581  ;;  %12601 = vpow2.f32 %v10537_v6  ;;  %v15776_v6 = vrot.slane %v6987_v31, 4  ;;  %v6744_v56 = vadd.f32 1.0, %v12580_v12 }
 0x65b   : > { %v12584_v32 = vpop.eup %12583  ;;  %12603 = vrcp.f32 %v6724_v61  ;;  %v6733_v61 = vadd.f32 1.0, %v12558_v55  ;;  %v6737_v55 = vadd.f32 1.0, %v15766_v51  ;;  %v6745_v45 = vadd.f32 1.0, %v12582_v0 }
 0x65c   : > { %v12586_v36 = vpop.eup %12585  ;;  %12605 = vrcp.f32 %v6725_v5  ;;  %v6734_v5 = vadd.f32 1.0, %v12560_v34  ;;  %v6740_v34 = vadd.f32 1.0, %v12572_v42  ;;  %v6746_v31 = vadd.f32 1.0, %v12584_v32 }
 0x65d   : > { %v12588_v23 = vpop.eup %12587  ;;  %12607 = vrcp.f32 %v6726_v49  ;;  %v6735_v49 = vadd.f32 1.0, %v12562_v1 }
 0x65e   : > { %v12590_v60 = vpop.eup %12589  ;;  %12609 = vrcp.f32 %v6727_v9  ;;  %v6739_v9 = vadd.f32 1.0, %v12570_v19  ;;  %v6747_v19 = vadd.f32 1.0, %v12586_v36 }
 0x65f   : > { %v12592_v11 = vpop.eup %12591  ;;  %12611 = vrcp.f32 %v6728_v30  ;;  %v6749_v28 = vadd.f32 1.0, %v12590_v60 }
 0x660   : > { %v12594_v62 = vpop.eup %12593  ;;  %12613 = vrcp.f32 %v6729_v7  ;;  %v6738_v7 = vadd.f32 1.0, %v12568_v50 }
 0x661   : > { %v12596_v48 = vpop.eup %12595  ;;  %12615 = vrcp.f32 %v6730_v2  ;;  %v6741_v2 = vadd.f32 1.0, %v12574_v21 }
 0x662   : > { %v12598_v52 = vpop.eup %12597  ;;  %12617 = vrcp.f32 %v6731_v44  ;;  %v6743_v44 = vadd.f32 1.0, %v12578_v46 }
 0x663   : > { %v12600_v14 = vpop.eup %12599  ;;  %12619 = vrcp.f32 %v6732_v59  ;;  %v15792_v60 = vadd.f32 1.0, %v12598_v52 }
 0x664   : > { %v12602_v37 = vpop.eup %12601  ;;  %12621 = vrcp.f32 %v6733_v61  ;;  %v6748_v61 = vadd.f32 1.0, %v12588_v23 }
 0x665   : > { %v12604_v63 = vpop.eup %12603  ;;  %12623 = vrcp.f32 %v6734_v5 }
 0x666   : > { %v12606_v1 = vpop.eup %12605  ;;  %12625 = vrcp.f32 %v6735_v49  ;;  %v6820_v59 = vmul.f32 %v12604_v63, %v15675_v10  ;;  %v6750_v10 = vadd.f32 1.0, %v12592_v11  ;;  %v15788_v49 = vadd.f32 1.0, %v12594_v62 }
 0x667   : > { %v12608_v30 = vpop.eup %12607  ;;  %12627 = vrcp.f32 %v6736_v47  ;;  %v6821_v51 = vmul.f32 %v12606_v1, %v15677_v40  ;;  %v6752_v47 = vadd.f32 1.0, %v12596_v48 }
 0x668   : > { %v12610_v50 = vpop.eup %12609  ;;  %12629 = vrcp.f32 %v6737_v55  ;;  %v6822_v21 = vmul.f32 %v12608_v30, %v15679_v15 }
 0x669   : > { %v12612_v42 = vpop.eup %12611  ;;  %12631 = vrcp.f32 %v6738_v7  ;;  %v6823_v46 = vmul.f32 %v12610_v50, %v15681_v38  ;;  %v6852_v12 = vpack.c.bf16 %v6821_v51, %v6820_v59  ;;  %v6754_v7 = vadd.f32 1.0, %v12600_v14 }
 0x66a   : > { %v12614_v5 = vpop.eup %12613  ;;  %12633 = vrcp.f32 %v6739_v9  ;;  %v6824_v32 = vmul.f32 %v12612_v42, %v15683_v3  ;;  %v15796_v9 = vadd.f32 1.0, %v12602_v37 }
 0x66b   : > { %v12616_v40 = vpop.eup %12615  ;;  %12635 = vrcp.f32 %v6740_v34  ;;  %v6825_v0 = vmul.f32 %v12614_v5, %v15685_v33  ;;  %v6853_v36 = vpack.c.bf16 %v6823_v46, %v6822_v21  ;;  %v6884_v23 = vrot.slane %v6852_v12, 4 }
 0x66c   : > { %v12618_v15 = vpop.eup %12617  ;;  %12637 = vrcp.f32 %v6741_v2  ;;  %v6826_v38 = vmul.f32 %v12616_v40, %v15687_v53 }
 0x66d   : > { %v12620_v30 = vpop.eup %12619  ;;  %12639 = vrcp.f32 %v6742_v26  ;;  %v6827_v11 = vmul.f32 %v12618_v15, %v15689_v13  ;;  %v6854_v62 = vpack.c.bf16 %v6825_v0, %v6824_v32  ;;  %v6885_v55 = vrot.slane %v6853_v36, 4  ;;  %6932 = vst [vmem:[#allocation4 + $0x8] sm:$0xf0] %v6884_v23 }
 0x66e   : > { %v12622_v3 = vpop.eup %12621  ;;  %12641 = vrcp.f32 %v6743_v44  ;;  %v6828_v33 = vmul.f32 %v12620_v30, %v15691_v16  ;;  %v17607_v36 = vrot.slane %v15778_v43, 4 }
 0x66f   : > { %v12624_v48 = vpop.eup %12623  ;;  %12643 = vrcp.f32 %v6744_v56  ;;  %v6829_v52 = vmul.f32 %v12622_v3, %v15693_v20  ;;  %v6855_v63 = vpack.c.bf16 %v6827_v11, %v6826_v38  ;;  %v15801_v53 = vsel %vm1487_vm4, %v6884_v23, %v6885_v55 }
 0x670   : > { %v12626_v26 = vpop.eup %12625  ;;  %12645 = vrcp.f32 %v6745_v45  ;;  %v6830_v13 = vmul.f32 %v12624_v48, %v15695_v57  ;;  %v6887_v34 = vrot.slane %v6854_v62, 4  ;;  %6933 = vst [vmem:[#allocation4 + $0x10] sm:$0xff] %v15801_v53  ;;  %v7204_v14 = vrot.slane %v15801_v53, 4 }
 0x671   : > { %v12628_v37 = vpop.eup %12627  ;;  %12647 = vrcp.f32 %v6746_v31  ;;  %v6831_v16 = vmul.f32 %v12626_v26, %v15697_v39  ;;  %v6856_v2 = vpack.c.bf16 %v6829_v52, %v6828_v33  ;;  %v6889_v1 = vrot.slane %v6855_v63, 4 }
 0x672   : > { %v12630_v20 = vpop.eup %12629  ;;  %12649 = vrcp.f32 %v6747_v19  ;;  %v6832_v44 = vmul.f32 %v12628_v37, %v15699_v35  ;;  %v15809_v56 = vsel %vm1487_vm4, %v6885_v55, %v6887_v34  ;;  %v15813_v57 = vmul.bf16 %v15801_v53, %v17560_v18 }
 0x673   : > { %v12632_v45 = vpop.eup %12631  ;;  %12651 = vrcp.f32 %v6748_v61  ;;  %v6833_v59 = vmul.f32 %v12630_v20, %v15701_v54  ;;  %v6857_v31 = vpack.c.bf16 %v6831_v16, %v6830_v13  ;;  %v15817_v39 = vsel %vm1487_vm4, %v6887_v34, %v6889_v1  ;;  %6934 = vst [vmem:[#allocation4 + $0x18] sm:$0xff] %v15809_v56 }
 0x674   : > { %v12634_v51 = vpop.eup %12633  ;;  %12653 = vrcp.f32 %v6749_v28  ;;  %v6834_v35 = vmul.f32 %v12632_v45, %v15703_v22  ;;  %v6891_v50 = vrot.slane %v6856_v2, 4  ;;  %6935 = vst [vmem:[#allocation4 + $0x20] sm:$0xff] %v15817_v39  ;;  %v15822_v19 = vld [vmem:[#allocation4 + $0x8] sm:$0xff]  ;;  %v7001_v21 = vshrl.u32 %v15813_v57, 16  ;;  %v17610_v2 = vld [vmem:[#allocation18_spill] sm:$0xff] }
 0x675   : > { %v12636_v61 = vpop.eup %12635  ;;  %12655 = vrcp.f32 %v6750_v10  ;;  %v6835_v54 = vmul.f32 %v12634_v51, %v15705_v58  ;;  %v6858_v42 = vpack.c.bf16 %v6833_v59, %v6832_v44  ;;  %v6893_v46 = vrot.slane %v6857_v31, 4  ;;  %v17611_v31 = vld [vmem:[#allocation23_spill] sm:$0xff] }
 0x676   : > { %v12638_v12 = vpop.eup %12637  ;;  %12657 = vrcp.f32 %v15788_v49  ;;  %v6836_v28 = vmul.f32 %v12636_v61, %v15707_v41  ;;  %v15829_v22 = vsel %vm1487_vm4, %v6889_v1, %v6891_v50  ;;  %v7202_v5 = vrot.slane %v15822_v19, 4 }
 0x677   : > { %v12640_v32 = vpop.eup %12639  ;;  %12659 = vrcp.f32 %v6752_v47  ;;  %v6837_v40 = vmul.f32 %v12638_v12, %v15709_v17  ;;  %v6859_v0 = vpack.c.bf16 %v6835_v54, %v6834_v35  ;;  %v15834_v10 = vsel %vm1487_vm4, %v6891_v50, %v6893_v46  ;;  %6936 = vst [vmem:[#allocation4 + $0x28] sm:$0xff] %v15829_v22 }
 0x678   : > { %v12642_v58 = vpop.eup %12641  ;;  %12661 = vrcp.f32 %v15792_v60  ;;  %v6838_v41 = vmul.f32 %v12640_v32, %v15711_v8  ;;  %v6895_v49 = vrot.slane %v6858_v42, 4  ;;  %6937 = vst [vmem:[#allocation4 + $0x30] sm:$0xff] %v15834_v10  ;;  %v7203_v23 = vsel %vm1487_vm4, %v17607_v36, %v7202_v5  ;;  %v17612_v42 = vld [vmem:[#allocation22_spill] sm:$0xff]  ;;  %v17613_v32 = vld [vmem:[#allocation39_spill] sm:$0xff] }
 0x679   : > { %v12644_v15 = vpop.eup %12643  ;;  %12663 = vrcp.f32 %v6754_v7  ;;  %v6839_v17 = vmul.f32 %v12642_v58, %v15713_v27  ;;  %v6860_v47 = vpack.c.bf16 %v6837_v40, %v6836_v28  ;;  %v6897_v38 = vrot.slane %v6859_v0, 4  ;;  %9313 = vmatprep.mubr.bf16.mxu0 %v7203_v23  ;;  %v17614_v58 = vld [vmem:[#allocation24_spill] sm:$0xff] }
 0x67a   : > { %v12646_v30 = vpop.eup %12645  ;;  %12665 = vrcp.f32 %v15796_v9  ;;  %v6840_v60 = vmul.f32 %v12644_v15, %v15715_v4  ;;  %v15847_v8 = vsel %vm1487_vm4, %v6893_v46, %v6895_v49  ;;  %v6967_v43 = vmul.bf16 %v15822_v19, %v17558_v25  ;;  %v17608_v9 = vld [vmem:[#allocation49_spill] sm:$0xff]  ;;  %v12353_v15 = vld [vmem:[#allocation9 + $0xc8] sm:$0xff]  }
 0x67b   : > { %v12648_v11 = vpop.eup %12647  ;;  %v6841_v62 = vmul.f32 %v12646_v30, %v15717_v24  ;;  %v6861_v55 = vpack.c.bf16 %v6839_v17, %v6838_v41  ;;  %v15853_v27 = vsel %vm1487_vm4, %v6895_v49, %v6897_v38  ;;  %v6899_v3 = vrot.slane %v6860_v47, 4  ;;  %6938 = vst [vmem:[#allocation4 + $0x38] sm:$0xff] %v15847_v8  ;;  %v17609_v24 = vld [vmem:[#allocation50_spill] sm:$0xff]  ;;  %v17615_v47 = vld [vmem:[#allocation35_spill] sm:$0xff] }
 0x67c   : > { %v12650_v7 = vpop.eup %12649  ;;  %v6842_v33 = vmul.f32 %v12648_v11, %v17608_v9  ;;  %6939 = vst [vmem:[#allocation4 + $0x40] sm:$0xff] %v15853_v27  ;;  %v6992_v4 = vshrl.u32 %v6967_v43, 16  ;;  %v6995_v48 = vshll.u32 %v6967_v43, 16  ;;  %v7205_v52 = vsel %vm1487_vm4, %v7202_v5, %v7204_v14  ;;  %v12352_v5 = vld [vmem:[#allocation9 + $0x80] sm:$0xff]   ;;  %v17617_v11 = vld [vmem:[#allocation40_spill] sm:$0xff] }
 0x67d   : > { %v12652_v63 = vpop.eup %12651  ;;  %v6843_v26 = vmul.f32 %v12650_v7, %v17609_v24  ;;  %v6862_v13 = vpack.c.bf16 %v6841_v62, %v6840_v60  ;;  %v15863_v34 = vsel %vm1487_vm4, %v6897_v38, %v6899_v3  ;;  %v6901_v37 = vrot.slane %v6861_v55, 4 }
 0x67e   : > { %v12654_v16 = vpop.eup %12653  ;;  %v6844_v1 = vmul.f32 %v12652_v63, %v17610_v2  ;;  %6940 = vst [vmem:[#allocation4 + $0x48] sm:$0xff] %v15863_v34  ;;  %v7218_v20 = vrot.slane %v15863_v34, 4  ;;  %v6994_v44 = vrot.slane %v6992_v4, 3  ;;  %v6997_v45 = vrot.slane %v6995_v48, 4  ;;  %v17619_v63 = vld [vmem:[#allocation19_spill] sm:$0xff] }
 0x67f   : > { %v12656_v59 = vpop.eup %12655  ;;  %v6845_v51 = vmul.f32 %v12654_v16, %v17611_v31  ;;  %v6863_v35 = vpack.c.bf16 %v6843_v26, %v6842_v33  ;;  %v15870_v50 = vsel %vm1487_vm4, %v6899_v3, %v6901_v37  ;;  %v6903_v61 = vrot.slane %v6862_v13, 4  ;;  %v17618_v3 = vld [vmem:[#allocation59_spill] sm:$0xff] }
 0x680   : > { %v12658_v54 = vpop.eup %12657  ;;  %v6846_v46 = vmul.f32 %v12656_v59, %v17612_v42  ;;  %6941 = vst [vmem:[#allocation4 + $0x50] sm:$0xff] %v15870_v50  ;;  %v7220_v12 = vrot.slane %v15870_v50, 4  ;;  %v15875_v28 = vor.u32 %v6997_v45, %v6994_v44  ;;  %v6975_v40 = vmul.bf16 %v15863_v34, %v17613_v32  ;;  %v12354_v13 = vld [vmem:[#allocation9 + $0x88] sm:$0xff]   ;;  %v12355_v45 = vld [vmem:[#allocation9 + $0xd0] sm:$0xff]  }
 0x681   : > { %v12660_v0 = vpop.eup %12659  ;;  %v6847_v41 = vmul.f32 %v12658_v54, %v17614_v58  ;;  %v6864_v49 = vpack.c.bf16 %v6845_v51, %v6844_v1  ;;  %v15881_v36 = vsel %vm1487_vm4, %v6901_v37, %v6903_v61  ;;  %v6905_v23 = vrot.slane %v6863_v35, 4  ;;  %v17620_v37 = vld [vmem:[#allocation60_spill] sm:$0xff] }
 0x682   : > { %v12662_v17 = vpop.eup %12661  ;;  %v6848_v38 = vmul.f32 %v12660_v0, %v17615_v47  ;;  %6942 = vst [vmem:[#allocation4 + $0x58] sm:$0xff] %v15881_v36  ;;  %v7221_v30 = vsel %vm1487_vm4, %v7218_v20, %v7220_v12  ;;  %v17616_v60 = vor.u32 %v15776_v6, %v15774_v29  ;;  %v6976_v62 = vmul.bf16 %v15870_v50, %v17617_v11  ;;  %v12356_v0 = vld [vmem:[#allocation9 + $0x90] sm:$0xff]  }
 0x683   : > { %v12664_v55 = vpop.eup %12663  ;;  %v6849_v7 = vmul.f32 %v12662_v17, %v17618_v3  ;;  %v6865_v9 = vpack.c.bf16 %v6847_v41, %v6846_v46  ;;  %v15897_v33 = vsel %vm1487_vm4, %v6903_v61, %v6905_v23  ;;  %v6907_v4 = vrot.slane %v6864_v49, 4  ;;  %9385 = vmatprep.mubr.bf16.mxu1 %v7221_v30 }
 0x684   : > { %v6999_v43 = vsel %vm2492_vm5, %v17616_v60, %v15875_v28  ;;  %v12666_v48 = vpop.eup %12665  ;;  %v6850_v24 = vmul.f32 %v12664_v55, %v17619_v63  ;;  %6943 = vst [vmem:[#allocation4 + $0x60] sm:$0xff] %v15897_v33  ;;  %v7064_v29 = vshrl.u32 %v6975_v40, 16  ;;  %v7067_v6 = vshll.u32 %v6975_v40, 16  ;;  %v17622_v60 = vld [vmem:[#allocation36_spill] sm:$0xff] }
 0x685   : > { %9314 = vmatmul.mubr.bf16.vlgmr.msra.gmra.mrb[36].mxu0 %v6999_v43  ;;  %v7073_v26 = vshrl.u32 %v6976_v62, 16  ;;  %v6851_v16 = vmul.f32 %v12666_v48, %v17620_v37  ;;  %v6866_v2 = vpack.c.bf16 %v6849_v7, %v6848_v38  ;;  %v15903_v1 = vsel %vm1487_vm4, %v6905_v23, %v6907_v4  ;;  %v17621_v38 = vld [vmem:[#allocation41_spill] sm:$0xff] }
 0x686   : > { %10955 = vmatpush3.bf16.msra.mxu0 %v12352_v5  ;;  %9321 = vmatprep.mubr.bf16.mxu0 %v7205_v52  ;;  %v6909_v44 = vrot.slane %v6865_v9, 4  ;;  %6944 = vst [vmem:[#allocation4 + $0x68] sm:$0xff] %v15903_v1  ;;  %v7066_v59 = vrot.slane %v7064_v29, 3  ;;  %v7069_v31 = vrot.slane %v7067_v6, 4  ;;  %v7076_v35 = vshll.u32 %v6976_v62, 16  ;;  %v12358_v9 = vld [vmem:[#allocation9 + $0x98] sm:$0xff]  }
 0x687   : > { %10956 = vmatprep.subr.bf16.mxu0 %v12353_v15  ;;  %v7075_v51 = vrot.slane %v7073_v26, 3  ;;  %v6867_v52 = vpack.c.bf16 %v6851_v16, %v6850_v24  ;;  %v6911_v61 = vrot.slane %v6866_v2, 4  ;;  %v7222_v54 = vrot.slane %v15881_v36, 4  ;;  %v12357_v15 = vld [vmem:[#allocation9 + $0xd8] sm:$0xff]   ;;  %v12359_v24 = vld [vmem:[#allocation9 + $0xe0] sm:$0xff]  }
 0x688   : > { %v15907_v50 = vsel %vm1487_vm4, %v6907_v4, %v6909_v44  ;;  %v15911_v42 = vor.u32 %v7069_v31, %v7066_v59  ;;  %v7078_v46 = vrot.slane %v7076_v35, 4  ;;  %v7003_v5 = vrot.slane %v7001_v21, 3 }
 0x689   : > { %6945 = vst [vmem:[#allocation4 + $0x70] sm:$0xff] %v15907_v50  ;;  %v7004_v40 = vshll.u32 %v15813_v57, 16  ;;  %v15917_v58 = vsel %vm1487_vm4, %v6909_v44, %v6911_v61  ;;  %v6913_v41 = vrot.slane %v6867_v52, 4  ;;  %v7223_v49 = vsel %vm1487_vm4, %v7220_v12, %v7222_v54 }
 0x68a   : > { %10957 = vmatpush3.bf16.msra.mxu0 %v12354_v13  ;;  %v7206_v23 = vrot.slane %v15809_v56, 4  ;;  %6946 = vst [vmem:[#allocation4 + $0x78] sm:$0xff] %v15917_v58  ;;  %v7079_v17 = vor.u32 %v7078_v46, %v7075_v51  ;;  %v6977_v21 = vmul.bf16 %v15881_v36, %v17621_v38  ;;  %v7224_v57 = vrot.slane %v15897_v33, 4  ;;  %v17623_v13 = vld [vmem:[#allocation42_spill] sm:$0xff] }
 0x68b   : > { %10958 = vmatprep.subr.bf16.mxu0 %v12355_v45  ;;  %v7006_v47 = vrot.slane %v7004_v40, 4  ;;  %v6914_v30 = vsel %vm1487_vm4, %v6911_v61, %v6913_v41  ;;  %6948 = vst [vmem:[#allocation4 + $0x88] sm:$0xf] %v6913_v41  ;;  %v6969_v43 = vmul.bf16 %v15809_v56, %v17622_v60  ;;  %v7208_v62 = vrot.slane %v15817_v39, 4  ;;  %v17624_v45 = vld [vmem:[#allocation21_spill] sm:$0xff] }
 0x68c   : > { %v7207_v12 = vsel %vm1487_vm4, %v7204_v14, %v7206_v23  ;;  %6947 = vst [vmem:[#allocation4 + $0x80] sm:$0xff] %v6914_v30  ;;  %v7080_v55 = vsel %vm2492_vm5, %v15911_v42, %v7079_v17  ;;  %v7082_v36 = vshrl.u32 %v6977_v21, 16  ;;  %v7085_v7 = vshll.u32 %v6977_v21, 16  ;;  %v17625_v21 = vld [vmem:[#allocation43_spill] sm:$0xff] }
 0x68d   : > { %v7007_v3 = vor.u32 %v7006_v47, %v7003_v5  ;;  %9386 = vmatmul.mubr.bf16.vlgmr.msra.gmra.mrb[36].mxu1 %v7080_v55  ;;  %v7225_v4 = vsel %vm1487_vm4, %v7222_v54, %v7224_v57  ;;  %v7010_v48 = vshrl.u32 %v6969_v43, 16  ;;  %v7013_v63 = vshll.u32 %v6969_v43, 16  ;;  %v12361_v5 = vld [vmem:[#allocation9 + $0xe8] sm:$0xff]   ;;  %v17626_v43 = vld [vmem:[#allocation25_spill] sm:$0xff] }
 0x68e   : > { %10959 = vmatpush3.bf16.msra.mxu0 %v12356_v0  ;;  %v7209_v14 = vsel %vm1487_vm4, %v7206_v23, %v7208_v62  ;;  %9393 = vmatprep.mubr.bf16.mxu1 %v7223_v49  ;;  %v7084_v6 = vrot.slane %v7082_v36, 3  ;;  %v7087_v26 = vrot.slane %v7085_v7, 4  ;;  %v6978_v37 = vmul.bf16 %v15897_v33, %v17623_v13  ;;  %v12362_v36 = vld [vmem:[#allocation9 + $0xa8] sm:$0xff]  }
 0x68f   : > { %10960 = vmatprep.subr.bf16.mxu0 %v12357_v15  ;;  %v7008_v29 = vsel %vm2492_vm5, %v15875_v28, %v7007_v3  ;;  %v7012_v16 = vrot.slane %v7010_v48, 3  ;;  %v7015_v2 = vrot.slane %v7013_v63, 4  ;;  %v7226_v44 = vrot.slane %v15903_v1, 4  ;;  %v12360_v28 = vld [vmem:[#allocation9 + $0xa0] sm:$0xff]   ;;  %v12363_v63 = vld [vmem:[#allocation9 + $0xf0] sm:$0xff]  }
 0x690   : > { %9322 = vmatmul.mubr.bf16.gmra.mrb[40].mxu0 %v7008_v29  ;;  %v6970_v59 = vmul.bf16 %v15817_v39, %v17624_v45  ;;  %v7088_v31 = vor.u32 %v7087_v26, %v7084_v6  ;;  %v7091_v51 = vshrl.u32 %v6978_v37, 16  ;;  %v7094_v35 = vshll.u32 %v6978_v37, 16 }
 0x691   : > { %9329 = vmatprep.mubr.bf16.mxu0 %v7207_v12  ;;  %v7210_v52 = vrot.slane %v15829_v22, 4  ;;  %v7016_v61 = vor.u32 %v7015_v2, %v7012_v16  ;;  %v15945_v54 = vsel %vm1487_vm4, %v7224_v57, %v7226_v44  ;;  %v6979_v30 = vmul.bf16 %v15903_v1, %v17625_v21 }
 0x692   : > { %10961 = vmatpush3.bf16.msra.mxu0 %v12358_v9  ;;  %v7019_v33 = vshrl.u32 %v6970_v59, 16  ;;  %v7022_v46 = vshll.u32 %v6970_v59, 16  ;;  %v7089_v40 = vsel %vm2492_vm5, %v7079_v17, %v7088_v31  ;;  %v7093_v0 = vrot.slane %v7091_v51, 3 }
 0x693   : > { %10962 = vmatprep.subr.bf16.mxu0 %v12359_v24  ;;  %v7096_v41 = vrot.slane %v7094_v35, 4  ;;  %v15949_v49 = vsel %vm1487_vm4, %v7208_v62, %v7210_v52  ;;  %v7017_v23 = vsel %vm2492_vm5, %v7007_v3, %v7016_v61  ;;  %v7228_v12 = vrot.slane %v15907_v50, 4  ;;  %v17627_v3 = vld [vmem:[#allocation44_spill] sm:$0xff] }
 0x694   : > { %v7021_v15 = vrot.slane %v7019_v33, 3  ;;  %v7024_v47 = vrot.slane %v7022_v46, 4  ;;  %v6971_v55 = vmul.bf16 %v15829_v22, %v17626_v43  ;;  %v7212_v17 = vrot.slane %v15834_v10, 4  ;;  %v12365_v46 = vld [vmem:[#allocation9 + $0xf8] sm:$0xff]  }
 0x695   : > { %v7097_v57 = vor.u32 %v7096_v41, %v7093_v0  ;;  %9394 = vmatmul.mubr.bf16.gmra.mrb[40].mxu1 %v7089_v40  ;;  %v7100_v7 = vshrl.u32 %v6979_v30, 16  ;;  %v7103_v9 = vshll.u32 %v6979_v30, 16  ;;  %v6980_v48 = vmul.bf16 %v15907_v50, %v17627_v3 }
 0x696   : > { %10963 = vmatpush3.bf16.msra.mxu0 %v12360_v28  ;;  %v7025_v62 = vor.u32 %v7024_v47, %v7021_v15  ;;  %9401 = vmatprep.mubr.bf16.mxu1 %v7225_v4  ;;  %v15962_v24 = vsel %vm1487_vm4, %v7226_v44, %v7228_v12  ;;  %v7028_v29 = vshrl.u32 %v6971_v55, 16  ;;  %v7031_v6 = vshll.u32 %v6971_v55, 16  ;;  %v17628_v28 = vld [vmem:[#allocation26_spill] sm:$0xff] }
 0x697   : > { %10964 = vmatprep.subr.bf16.mxu0 %v12361_v5  ;;  %v7098_v1 = vsel %vm2492_vm5, %v7088_v31, %v7097_v57  ;;  %v7102_v37 = vrot.slane %v7100_v7, 3  ;;  %v7105_v16 = vrot.slane %v7103_v9, 4  ;;  %v15966_v2 = vsel %vm1487_vm4, %v7210_v52, %v7212_v17  ;;  %v12364_v31 = vld [vmem:[#allocation9 + $0xb0] sm:$0xff]   ;;  %v12366_v9 = vld [vmem:[#allocation9 + $0xb8] sm:$0xff]  }
 0x698   : > { %9330 = vmatmul.mubr.bf16.gmra.mrb[44].mxu0 %v7017_v23  ;;  %v7026_v26 = vsel %vm2492_vm5, %v7016_v61, %v7025_v62  ;;  %v7030_v50 = vrot.slane %v7028_v29, 3  ;;  %v7033_v59 = vrot.slane %v7031_v6, 4  ;;  %v7109_v51 = vshrl.u32 %v6980_v48, 16  ;;  %v12367_v29 = vld [vmem:[#allocation9 + $0x140] sm:$0xff]  }
 0x699   : > { %9337 = vmatprep.mubr.bf16.mxu0 %v7209_v14  ;;  %v7112_v4 = vshll.u32 %v6980_v48, 16  ;;  %v7106_v35 = vor.u32 %v7105_v16, %v7102_v37  ;;  %v7230_v44 = vrot.slane %v15917_v58, 4  ;;  %v6972_v33 = vmul.bf16 %v15834_v10, %v17628_v28  ;;  %v17629_v14 = vld [vmem:[#allocation47_spill] sm:$0xff]  ;;  %v17630_v37 = vld [vmem:[#allocation37_spill] sm:$0xff] }
 0x69a   : > { %10965 = vmatpush3.bf16.msra.mxu0 %v12362_v36  ;;  %v7214_v61 = vrot.slane %v15847_v8, 4  ;;  %v7034_v5 = vor.u32 %v7033_v59, %v7030_v50  ;;  %v7111_v52 = vrot.slane %v7109_v51, 3  ;;  %v6981_v0 = vmul.bf16 %v15917_v58, %v17629_v14  ;;  %v6965_v16 = vld [vmem:[#allocation4 + $0x80] sm:$0xf] }
 0x69b   : > { %10966 = vmatprep.subr.bf16.mxu0 %v12363_v63  ;;  %v7114_v40 = vrot.slane %v7112_v4, 4  ;;  %v7107_v41 = vsel %vm2492_vm5, %v7097_v57, %v7106_v35  ;;  %v15978_v23 = vsel %vm1487_vm4, %v7228_v12, %v7230_v44  ;;  %v7037_v15 = vshrl.u32 %v6972_v33, 16 }
 0x69c   : > { %v7040_v47 = vshll.u32 %v6972_v33, 16  ;;  %v7035_v30 = vsel %vm2492_vm5, %v7025_v62, %v7034_v5  ;;  %v15982_v36 = vsel %vm1487_vm4, %v7212_v17, %v7214_v61  ;;  %v7118_v7 = vshrl.u32 %v6981_v0, 16 }
 0x69d   : > { %v7115_v55 = vor.u32 %v7114_v40, %v7111_v52  ;;  %9402 = vmatmul.mubr.bf16.gmra.mrb[44].mxu1 %v7098_v1  ;;  %v7039_v48 = vrot.slane %v7037_v15, 3  ;;  %v7121_v57 = vshll.u32 %v6981_v0, 16  ;;  %v6973_v62 = vmul.bf16 %v15847_v8, %v17630_v37  ;;  %v17632_v52 = vld [vmem:[#allocation45_spill] sm:$0xff] }
 0x69e   : > { %10967 = vmatpush3.bf16.msra.mxu0 %v12364_v31  ;;  %v7042_v63 = vrot.slane %v7040_v47, 4  ;;  %9409 = vmatprep.mubr.bf16.mxu1 %v15945_v54  ;;  %v7120_v6 = vrot.slane %v7118_v7, 3  ;;  %v7216_v17 = vrot.slane %v15853_v27, 4  ;;  %v17631_v54 = vld [vmem:[#allocation38_spill] sm:$0xff] }
 0x69f   : > { %10968 = vmatprep.subr.bf16.mxu0 %v12365_v46  ;;  %v7116_v12 = vsel %vm2492_vm5, %v7106_v35, %v7115_v55  ;;  %v7123_v59 = vrot.slane %v7121_v57, 4  ;;  %v7046_v1 = vshrl.u32 %v6973_v62, 16  ;;  %v7049_v51 = vshll.u32 %v6973_v62, 16  ;;  %v7183_v46 = vld [vmem:[#allocation4 + $0x80] sm:$0xf] }
 0x6a0   : > { %9338 = vmatmul.mubr.bf16.gmra.mrb[48].mxu0 %v7026_v26  ;;  %v7043_v50 = vor.u32 %v7042_v63, %v7039_v48  ;;  %v15991_v4 = vsel %vm1487_vm4, %v7214_v61, %v7216_v17  ;;  %v6974_v31 = vmul.bf16 %v15853_v27, %v17631_v54  ;;  %v6982_v26 = vmul.bf16 %v6965_v16, %v17632_v52  ;;  %v17633_v63 = vld [vmem:[#allocation28_spill] sm:$0xff] }
 0x6a1   : > { %9345 = vmatprep.mubr.bf16.mxu0 %v15949_v49  ;;  %v15996_v33 = vor.u32 %v7123_v59, %v7120_v6  ;;  %v7048_v40 = vrot.slane %v7046_v1, 3  ;;  %v7051_v0 = vrot.slane %v7049_v51, 4  ;;  %v16006_v27 = vsel %vm1487_vm4, %v7216_v17, %v7218_v20 }
 0x6a2   : > { %10969 = vmatpush3.bf16.msra.mxu0 %v12366_v9  ;;  %v7044_v35 = vsel %vm2492_vm5, %v7034_v5, %v7043_v50  ;;  %v7055_v49 = vshrl.u32 %v6974_v31, 16  ;;  %v7058_v15 = vshll.u32 %v6974_v31, 16  ;;  %v7232_v5 = vrot.slane %v7183_v46, 4  ;;  %v17634_v46 = vld [vmem:[#allocation46_spill] sm:$0xff] }
 0x6a3   : > { %11066 = vmatprep.subr.bf16.mxu0 %v12367_v29  ;;  %v16001_v61 = vsel %vm2492_vm5, %v7115_v55, %v15996_v33  ;;  %v7052_v47 = vor.u32 %v7051_v0, %v7048_v40  ;;  %v7502_v48 = vmul.bf16 %v15801_v53, %v17558_v25  ;;  %v7284_v57 = vmul.bf16 %v15822_v19, %v17633_v63  ;;  %v17635_v0 = vld [vmem:[#allocation34_spill] sm:$0xff] }
 0x6a4   : > { %v7057_v7 = vrot.slane %v7055_v49, 3  ;;  %v7060_v9 = vrot.slane %v7058_v15, 4  ;;  %v7127_v34 = vshrl.u32 %v6982_v26, 16  ;;  %v7503_v20 = vmul.bf16 %v15809_v56, %v17560_v18  ;;  %v7484_v49 = vld [vmem:[#allocation4 + $0x8] sm:$0xf8] }
 0x6a5   : > { %9410 = vmatmul.mubr.bf16.gmra.mrb[48].mxu1 %v7107_v41  ;;  %v16014_v55 = vsel %vm2492_vm5, %v7043_v50, %v7052_v47  ;;  %v7527_v6 = vshrl.u32 %v7502_v48, 16  ;;  %v7530_v62 = vshll.u32 %v7502_v48, 16  ;;  %v7309_v41 = vshrl.u32 %v7284_v57, 16 }
 0x6a6   : > { %9417 = vmatprep.mubr.bf16.mxu1 %v15962_v24  ;;  %v7061_v29 = vor.u32 %v7060_v9, %v7057_v7  ;;  %v7233_v19 = vsel %vm1487_vm4, %v7230_v44, %v7232_v5  ;;  %v7130_v17 = vshll.u32 %v6982_v26, 16  ;;  %v7312_v1 = vshll.u32 %v7284_v57, 16 }
 0x6a7   : > { %v7529_v50 = vrot.slane %v7527_v6, 3  ;;  %v7532_v59 = vrot.slane %v7530_v62, 4  ;;  %v16029_v51 = vrot.slane %v7127_v34, 3  ;;  %v7536_v31 = vshrl.u32 %v7503_v20, 16 }
 0x6a8   : > { %9346 = vmatmul.mubr.bf16.gmra.mrb[52].mxu0 %v7035_v30  ;;  %v16023_v24 = vsel %vm2492_vm5, %v7052_v47, %v7061_v29  ;;  %v16027_v16 = vsel %vm2492_vm5, %v7061_v29, %v15911_v42  ;;  %v7311_v30 = vrot.slane %v7309_v41, 4  ;;  %v7285_v58 = vmul.bf16 %v15801_v53, %v17634_v46 }
 0x6a9   : > { %9353 = vmatprep.mubr.bf16.mxu0 %v15966_v2  ;;  %v7539_v2 = vshll.u32 %v7503_v20, 16  ;;  %v16033_v44 = vor.u32 %v7532_v59, %v7529_v50  ;;  %v7314_v26 = vrot.slane %v7312_v1, 5  ;;  %v7504_v40 = vmul.bf16 %v15817_v39, %v17622_v60 }
 0x6aa   : > { %v7286_v42 = vmul.bf16 %v15809_v56, %v17635_v0  ;;  %v7538_v15 = vrot.slane %v7536_v31, 3  ;;  %v7318_v47 = vshrl.u32 %v7285_v58, 16  ;;  %v7321_v7 = vshll.u32 %v7285_v58, 16  ;;  %v17636_v56 = vld [vmem:[#allocation31_spill] sm:$0xff] }
 0x6ab   : > { %v7541_v5 = vrot.slane %v7539_v2, 4  ;;  %v16039_v9 = vrot.slane %v7130_v17, 4  ;;  %v16041_v48 = vor.u32 %v7314_v26, %v7311_v30  ;;  %v7545_v53 = vshrl.u32 %v7504_v40, 16 }
 0x6ac   : > { %v7548_v57 = vshll.u32 %v7504_v40, 16  ;;  %v7320_v29 = vrot.slane %v7318_v47, 4  ;;  %v7323_v20 = vrot.slane %v7321_v7, 5  ;;  %v7327_v6 = vshrl.u32 %v7286_v42, 16 }
 0x6ad   : > { %9418 = vmatmul.mubr.bf16.gmra.mrb[52].mxu1 %v7116_v12  ;;  %v7542_v34 = vor.u32 %v7541_v5, %v7538_v15  ;;  %v16045_v62 = vmul.bf16 %v7484_v49, %v17636_v56  ;;  %v7547_v41 = vrot.slane %v7545_v53, 3  ;;  %v7330_v59 = vshll.u32 %v7286_v42, 16  ;;  %v17638_v42 = vld [vmem:[#allocation20_spill] sm:$0xff] }
 0x6ae   : > { %9425 = vmatprep.mubr.bf16.mxu1 %v15978_v23  ;;  %v7550_v50 = vrot.slane %v7548_v57, 4  ;;  %v7324_v17 = vor.u32 %v7323_v20, %v7320_v29  ;;  %v7329_v30 = vrot.slane %v7327_v6, 4  ;;  %v7505_v23 = vmul.bf16 %v15829_v22, %v17624_v45  ;;  %v17653_v56 = vld [vmem:[#allocation56_spill] sm:$0xff] }
 0x6af   : > { %v16050_v12 = vsel %vm2492_vm5, %v16033_v44, %v7542_v34  ;;  %v7332_v31 = vrot.slane %v7330_v59, 5  ;;  %v7506_v58 = vmul.bf16 %v15834_v10, %v17626_v43  ;;  %v7288_v49 = vmul.bf16 %v15829_v22, %v17638_v42 }
 0x6b0   : > { %9354 = vmatmul.mubr.bf16.gmra.mrb[56].mxu0 %v7044_v35  ;;  %v7551_v1 = vor.u32 %v7550_v50, %v7547_v41  ;;  %v17637_v35 = vld [vmem:[#allocation33_spill] sm:$0xff]  ;;  %v7554_v26 = vshrl.u32 %v7505_v23, 16  ;;  %v7557_v40 = vshll.u32 %v7505_v23, 16 }
 0x6b1   : > { %9361 = vmatprep.mubr.bf16.mxu0 %v15982_v36  ;;  %v7287_v2 = vmul.bf16 %v15817_v39, %v17637_v35  ;;  %v16060_v36 = vsel %vm2034_vm6, %v16041_v48, %v7324_v17  ;;  %v7333_v5 = vor.u32 %v7332_v31, %v7329_v30  ;;  %v7563_v57 = vshrl.u32 %v7506_v58, 16 }
 0x6b2   : > { %v16065_v15 = vsel %vm2492_vm5, %v7542_v34, %v7551_v1  ;;  %v7556_v53 = vrot.slane %v7554_v26, 3  ;;  %v7559_v39 = vrot.slane %v7557_v40, 4  ;;  %v7566_v29 = vshll.u32 %v7506_v58, 16  ;;  %v17639_v58 = vld [vmem:[#allocation48_spill] sm:$0xff] }
 0x6b3   : > { %v7336_v47 = vshrl.u32 %v7287_v2, 16  ;;  %v7339_v7 = vshll.u32 %v7287_v2, 16  ;;  %v16069_v20 = vsel %vm2034_vm6, %v7324_v17, %v7333_v5  ;;  %v7345_v50 = vshrl.u32 %v7288_v49, 16 }
 0x6b4   : > { %v7560_v22 = vor.u32 %v7559_v39, %v7556_v53  ;;  %v7565_v59 = vrot.slane %v7563_v57, 3  ;;  %v7568_v34 = vrot.slane %v7566_v29, 4  ;;  %v7348_v23 = vshll.u32 %v7288_v49, 16 }
 0x6b5   : > { %9426 = vmatmul.mubr.bf16.gmra.mrb[56].mxu1 %v16001_v61  ;;  %v7338_v6 = vrot.slane %v7336_v47, 4  ;;  %v7341_v41 = vrot.slane %v7339_v7, 5  ;;  %v7347_v31 = vrot.slane %v7345_v50, 4  ;;  %v7507_v2 = vmul.bf16 %v15847_v8, %v17628_v28 }
 0x6b6   : > { %9433 = vmatprep.mubr.bf16.mxu1 %v7233_v19  ;;  %v7289_v61 = vmul.bf16 %v15834_v10, %v17639_v58  ;;  %v7133_v17 = vor.u32 %v16039_v9, %v16029_v51  ;;  %v16080_v19 = vsel %vm2492_vm5, %v7551_v1, %v7560_v22  ;;  %v7569_v26 = vor.u32 %v7568_v34, %v7565_v59 }
 0x6b7   : > { %v7342_v30 = vor.u32 %v7341_v41, %v7338_v6  ;;  %v7350_v40 = vrot.slane %v7348_v23, 5  ;;  %v7572_v49 = vshrl.u32 %v7507_v2, 16  ;;  %v7575_v47 = vshll.u32 %v7507_v2, 16  ;;  %v7266_v6 = vld [vmem:[#allocation4] sm:$0xf0] }
 0x6b8   : > { %9362 = vmatmul.mubr.bf16.gmra.mrb[60].mxu0 %v16014_v55  ;;  %v7354_v7 = vshrl.u32 %v7289_v61, 16  ;;  %v7519_v8 = vshrl.u32 %v16045_v62, 16  ;;  %v16087_v10 = vsel %vm2492_vm5, %v7560_v22, %v7569_v26  ;;  %v7357_v53 = vshll.u32 %v7289_v61, 16 }
 0x6b9   : > { %9369 = vmatprep.mubr.bf16.mxu0 %v15991_v4  ;;  %v16083_v55 = vsel %vm2034_vm6, %v7333_v5, %v7342_v30  ;;  %v7351_v4 = vor.u32 %v7350_v40, %v7347_v31  ;;  %v7522_v51 = vshll.u32 %v16045_v62, 16  ;;  %v7574_v9 = vrot.slane %v7572_v49, 3  ;;  %v12368_v40 = vld [vmem:[#allocation9 + $0x100] sm:$0xff]  }
 0x6ba   : > { %v7577_v1 = vrot.slane %v7575_v47, 4  ;;  %v7356_v39 = vrot.slane %v7354_v7, 4  ;;  %v7134_v57 = vsel %vm2492_vm5, %v15996_v33, %v7133_v17  ;;  %v7359_v29 = vrot.slane %v7357_v53, 5  ;;  %v17640_v33 = vld [vmem:[#allocation27_spill] sm:$0xff]  ;;  %v12371_v7 = vld [vmem:[#allocation9 + $0x150] sm:$0xff]   ;;  %v12375_v53 = vld [vmem:[#allocation9 + $0x160] sm:$0xff]  }
 0x6bb   : > { %v16093_v5 = vsel %vm2034_vm6, %v7342_v30, %v7351_v4  ;;  %v7521_v22 = vrot.slane %v7519_v8, 3  ;;  %v7524_v62 = vrot.slane %v7522_v51, 4  ;;  %v7283_v34 = vmul.bf16 %v7266_v6, %v17640_v33  ;;  %v12370_v47 = vld [vmem:[#allocation9 + $0x108] sm:$0xff]   ;;  %v17642_v51 = vld [vmem:[#allocation30_spill] sm:$0xff] }
 0x6bc   : > { %v16095_v41 = vor.u32 %v7577_v1, %v7574_v9  ;;  %v16097_v50 = vor.u32 %v7359_v29, %v7356_v39  ;;  %v16116_v8 = vld [vmem:[#allocation4 + $0x40] sm:$0xff]  ;;  %v16126_v1 = vld [vmem:[#allocation4 + $0x48] sm:$0xff]  ;;  %v12376_v39 = vld [vmem:[#allocation9 + $0x120] sm:$0xff]  }
 0x6bd   : > { %9434 = vmatmul.mubr.bf16.gmra.mrb[60].mxu1 %v7134_v57  ;;  %v7525_v30 = vor.u32 %v7524_v62, %v7521_v22  ;;  %v7301_v31 = vshrl.u32 %v7283_v34, 16  ;;  %v7304_v2 = vshll.u32 %v7283_v34, 16  ;;  %v7509_v29 = vmul.bf16 %v16126_v1, %v17631_v54  ;;  %v12378_v62 = vld [vmem:[#allocation9 + $0x128] sm:$0xff]  }
 0x6be   : > { %v16102_v59 = vsel %vm2492_vm5, %v7569_v26, %v16095_v41  ;;  %v16108_v23 = vsel %vm2034_vm6, %v7351_v4, %v16097_v50  ;;  %v16120_v4 = vld [vmem:[#allocation4 + $0x38] sm:$0xff] }
 0x6bf   : > { %v7303_v61 = vrot.slane %v7301_v31, 4  ;;  %v7306_v17 = vrot.slane %v7304_v2, 5  ;;  %17641 = vst [vmem:[#allocation61_spill] sm:$0xff] %v16120_v4  ;;  %v7290_v9 = vmul.bf16 %v16120_v4, %v17642_v51  ;;  %v16132_v31 = vld [vmem:[#allocation4 + $0x50] sm:$0xff]  ;;  %v12379_v2 = vld [vmem:[#allocation9 + $0x170] sm:$0xff]  }
 0x6c0   : > { %9370 = vmatmul.mubr.bf16.gmra.mrb[64].mxu0 %v16023_v24  ;;  %v7534_v24 = vsel %vm2492_vm5, %v7525_v30, %v16033_v44  ;;  %v12373_v44 = vld [vmem:[#allocation9 + $0x158] sm:$0xff]  }
 0x6c1   : > { %9377 = vmatprep.mubr.bf16.mxu0 %v16006_v27  ;;  %v7307_v26 = vor.u32 %v7306_v17, %v7303_v61  ;;  %v12369_v27 = vld [vmem:[#allocation9 + $0x148] sm:$0xff]   ;;  %v7363_v6 = vshrl.u32 %v7290_v9, 16  ;;  %v7366_v22 = vshll.u32 %v7290_v9, 16  ;;  %v7593_v61 = vshll.u32 %v7509_v29, 16 }
 0x6c2   : > { %v17643_v17 = vld [vmem:[#allocation51_spill] sm:$0xff] }
 0x6c3   : > { %v7316_v49 = vsel %vm2034_vm6, %v7307_v26, %v16041_v48  ;;  %v12374_v48 = vld [vmem:[#allocation9 + $0x118] sm:$0xff]   ;;  %v7291_v26 = vmul.bf16 %v16116_v8, %v17643_v17 }
 0x6c8   : > { %9378 = vmatmul.mubr.bf16.gmra.mrb[68].mxu0 %v16027_v16  ;;  %v12372_v16 = vld [vmem:[#allocation9 + $0x110] sm:$0xff]  }
 0x6c9   : > { %9474 = vmatprep.mubr.bf16.mxu0 %v7534_v24  ;;  %v7590_v24 = vshrl.u32 %v7509_v29, 16  ;;  %v7824_v29 = vmul.bf16 %v16120_v4, %v17639_v58 }
 0x6d0   : > { %9475 = vmatmul.mubr.bf16.vlgmr.msra.gmra.mrb[72].mxu0 %v7316_v49 }
 0x6d1   : > { %11067 = vmatpush3.bf16.msra.mxu0 %v12368_v40  ;;  %9482 = vmatprep.mubr.bf16.mxu0 %v16050_v12  ;;  %v7508_v12 = vmul.bf16 %v16116_v8, %v17630_v37  ;;  %v7365_v40 = vrot.slane %v7363_v6, 4 }
 0x6d2   : > { %11068 = vmatprep.subr.bf16.mxu0 %v12369_v27  ;;  %v7368_v27 = vrot.slane %v7366_v22, 5 }
 0x6d3   : > { %v7581_v57 = vshrl.u32 %v7508_v12, 16 }
 0x6d5   : > { %11069 = vmatpush3.bf16.msra.mxu0 %v12370_v47  ;;  %v7583_v34 = vrot.slane %v7581_v57, 3  ;;  %v12381_v47 = vld [vmem:[#allocation9 + $0x178] sm:$0xff]  }
 0x6d6   : > { %11070 = vmatprep.subr.bf16.mxu0 %v12371_v7  ;;  %v7592_v7 = vrot.slane %v7590_v24, 3  ;;  %v12382_v57 = vld [vmem:[#allocation9 + $0x138] sm:$0xff]  }
 0x6d8   : > { %9483 = vmatmul.mubr.bf16.gmra.mrb[76].mxu0 %v16060_v36  ;;  %v7584_v36 = vshll.u32 %v7508_v12, 16  ;;  %v16139_v12 = vor.u32 %v7368_v27, %v7365_v40  ;;  %v17340_v27 = vrot.slane %v16120_v4, 4 }
 0x6d9   : > { %9490 = vmatprep.mubr.bf16.mxu0 %v16065_v15  ;;  %11071 = vmatpush3.bf16.msra.mxu0 %v12372_v16  ;;  %v12377_v15 = vld [vmem:[#allocation9 + $0x168] sm:$0xff]   ;;  %v7595_v16 = vrot.slane %v7593_v61, 4 }
 0x6da   : > { %11072 = vmatprep.subr.bf16.mxu0 %v12373_v44  ;;  %v7586_v30 = vrot.slane %v7584_v36, 4  ;;  %v7372_v44 = vshrl.u32 %v7291_v26, 16 }
 0x6dc   : > { %v7587_v49 = vor.u32 %v7586_v30, %v7583_v34  ;;  %v7374_v6 = vrot.slane %v7372_v44, 4  ;;  %v16159_v34 = vsel %vm2034_vm6, %v16097_v50, %v16139_v12  ;;  %v7889_v30 = vshrl.u32 %v7824_v29, 16 }
 0x6dd   : > { %11073 = vmatpush3.bf16.msra.mxu0 %v12374_v48  ;;  %v7375_v48 = vshll.u32 %v7291_v26, 16  ;;  %v17645_v26 = vld [vmem:[#allocation54_spill] sm:$0xff] }
 0x6de   : > { %11074 = vmatprep.subr.bf16.mxu0 %v12375_v53  ;;  %v16146_v36 = vsel %vm2492_vm5, %v16095_v41, %v7587_v49  ;;  %v16171_v40 = vmul.bf16 %v16132_v31, %v17645_v26  ;;  %v7891_v50 = vrot.slane %v7889_v30, 4 }
 0x6df   : > { %v7377_v22 = vrot.slane %v7375_v48, 5  ;;  %v7826_v48 = vmul.bf16 %v16126_v1, %v17643_v17 }
 0x6e0   : > { %9491 = vmatmul.mubr.bf16.gmra.mrb[80].mxu0 %v16069_v20  ;;  %v7510_v20 = vmul.bf16 %v16132_v31, %v17613_v32 }
 0x6e1   : > { %9498 = vmatprep.mubr.bf16.mxu0 %v16080_v19  ;;  %11075 = vmatpush3.bf16.msra.mxu0 %v12376_v39  ;;  %v12380_v19 = vld [vmem:[#allocation9 + $0x130] sm:$0xff]   ;;  %v16142_v39 = vld [vmem:[#allocation4 + $0x58] sm:$0xff] }
 0x6e2   : > { %11076 = vmatprep.subr.bf16.mxu0 %v12377_v15  ;;  %v7599_v53 = vshrl.u32 %v7510_v20, 16  ;;  %v7602_v9 = vshll.u32 %v7510_v20, 16  ;;  %v12383_v15 = vld [vmem:[#allocation9 + $0x1c0] sm:$0xff]   ;;  %v16163_v41 = vmul.bf16 %v16142_v39, %v17617_v11 }
 0x6e4   : > { %v16165_v24 = vrot.slane %v7599_v53, 3  ;;  %v16167_v61 = vrot.slane %v7602_v9, 4 }
 0x6e5   : > { %11077 = vmatpush3.bf16.msra.mxu0 %v12378_v62 }
 0x6e6   : > { %11078 = vmatprep.subr.bf16.mxu0 %v12379_v2  ;;  %v7892_v2 = vshll.u32 %v7824_v29, 16  ;;  %v7910_v29 = vshll.u32 %v7826_v48, 16 }
 0x6e8   : > { %9499 = vmatmul.mubr.bf16.gmra.mrb[84].mxu0 %v16083_v55  ;;  %v16150_v55 = vor.u32 %v7595_v16, %v7592_v7  ;;  %v7894_v20 = vrot.slane %v7892_v2, 5  ;;  %v16181_v16 = vor.u32 %v7377_v22, %v7374_v6  ;;  %v7751_v6 = vrot.slane %v16126_v1, 4  ;;  %v16196_v22 = vld [vmem:[#allocation4 + $0x60] sm:$0xff] }
 0x6e9   : > { %9506 = vmatprep.mubr.bf16.mxu0 %v16087_v10  ;;  %11079 = vmatpush3.bf16.msra.mxu0 %v12380_v19  ;;  %v17644_v10 = vld [vmem:[#allocation52_spill] sm:$0xff]  ;;  %v7825_v19 = vmul.bf16 %v16116_v8, %v17642_v51  ;;  %v7757_v43 = vrot.slane %v16196_v22, 4 }
 0x6ea   : > { %11080 = vmatprep.subr.bf16.mxu0 %v12381_v47  ;;  %v16154_v62 = vmul.bf16 %v16126_v1, %v17644_v10  ;;  %v7749_v47 = vrot.slane %v16116_v8, 4  ;;  %v16179_v7 = vsel %vm2492_vm5, %v7587_v49, %v16150_v55  ;;  %v7828_v1 = vmul.bf16 %v16142_v39, %v17645_v26 }
 0x6eb   : > { %v7898_v9 = vshrl.u32 %v7825_v19, 16 }
 0x6ec   : > { %v16191_v8 = vsel %vm1487_vm4, %v17340_v27, %v7749_v47  ;;  %v7912_v27 = vrot.slane %v7910_v29, 5  ;;  %v16203_v44 = vsel %vm1487_vm4, %v7749_v47, %v7751_v6  ;;  %v16214_v29 = vld [vmem:[#allocation4 + $0x68] sm:$0xff] }
 0x6ed   : > { %11081 = vmatpush3.bf16.msra.mxu0 %v12382_v57  ;;  %v7901_v57 = vshll.u32 %v7825_v19, 16  ;;  %17646 = vst [vmem:[#allocation62_spill] sm:$0xff] %v16191_v8  ;;  %v7900_v30 = vrot.slane %v7898_v9, 4  ;;  %v7827_v19 = vmul.bf16 %v16132_v31, %v17644_v10  ;;  %17647 = vst [vmem:[#allocation63_spill] sm:$0xff] %v16203_v44  ;;  %v7755_v9 = vrot.slane %v16142_v39, 4 }
 0x6ee   : > { %11178 = vmatprep.subr.bf16.mxu0 %v12383_v15  ;;  %v7907_v15 = vshrl.u32 %v7826_v48, 16 }
 0x6ef   : > { %v7903_v2 = vrot.slane %v7901_v57, 5  ;;  %v7916_v48 = vshrl.u32 %v7827_v19, 16  ;;  %v7919_v11 = vshll.u32 %v7827_v19, 16  ;;  %v17649_v57 = vld [vmem:[#allocation55_spill] sm:$0xff]  ;;  %v16220_v19 = vld [vmem:[#allocation4 + $0x70] sm:$0xff] }
 0x6f0   : > { %9507 = vmatmul.mubr.bf16.gmra.mrb[88].mxu0 %v16093_v5  ;;  %v16198_v5 = vor.u32 %v7894_v20, %v7891_v50  ;;  %v7909_v53 = vrot.slane %v7907_v15, 4  ;;  %v7829_v15 = vmul.bf16 %v16196_v22, %v17649_v57  ;;  %v7761_v8 = vrot.slane %v16220_v19, 4 }
 0x6f1   : > { %9514 = vmatprep.mubr.bf16.mxu0 %v16102_v59  ;;  %v7753_v59 = vrot.slane %v16132_v31, 4  ;;  %v7904_v49 = vor.u32 %v7903_v2, %v7900_v30  ;;  %v7918_v47 = vrot.slane %v7916_v48, 4  ;;  %v7921_v30 = vrot.slane %v7919_v11, 5 }
 0x6f2   : > { %v7913_v50 = vor.u32 %v7912_v27, %v7909_v53  ;;  %v7925_v2 = vshrl.u32 %v7828_v1, 16  ;;  %v7928_v53 = vshll.u32 %v7828_v1, 16  ;;  %v7934_v32 = vshrl.u32 %v7829_v15, 16 }
 0x6f3   : > { %v16209_v20 = vsel %vm1487_vm4, %v7751_v6, %v7753_v59  ;;  %v16218_v31 = vsel %vm2034_vm6, %v16198_v5, %v7904_v49  ;;  %v16226_v6 = vsel %vm1487_vm4, %v7753_v59, %v7755_v9  ;;  %v7922_v54 = vor.u32 %v7921_v30, %v7918_v47 }
 0x6f4   : > { %17648 = vst [vmem:[#allocation64_spill] sm:$0xff] %v16209_v20  ;;  %17650 = vst [vmem:[#allocation65_spill] sm:$0xff] %v16218_v31  ;;  %v16223_v27 = vsel %vm2034_vm6, %v7904_v49, %v7913_v50  ;;  %v7927_v37 = vrot.slane %v7925_v2, 4  ;;  %v7937_v28 = vshll.u32 %v7829_v15, 16  ;;  %v7930_v11 = vrot.slane %v7928_v53, 5  ;;  %v16234_v20 = vld [vmem:[#allocation4 + $0x78] sm:$0xff] }
 0x6f5   : > { %17651 = vst [vmem:[#allocation66_spill] sm:$0xff] %v16223_v27  ;;  %17652 = vst [vmem:[#allocation68_spill] sm:$0xff] %v16226_v6  ;;  %v7936_v48 = vrot.slane %v7934_v32, 4  ;;  %v7830_v49 = vmul.bf16 %v16214_v29, %v17653_v56  ;;  %v7759_v1 = vrot.slane %v16214_v29, 4  ;;  %v16237_v59 = vsel %vm2034_vm6, %v7913_v50, %v7922_v54  ;;  %v17656_v15 = vld [vmem:[#allocation57_spill] sm:$0xff]  ;;  %v16248_v50 = vld [vmem:[#allocation4 + $0x80] sm:$0xff] }
 0x6f6   : > { %17654 = vst [vmem:[#allocation69_spill] sm:$0xff] %v16237_v59  ;;  %v16240_v47 = vsel %vm1487_vm4, %v7755_v9, %v7757_v43  ;;  %v7831_v30 = vmul.bf16 %v16220_v19, %v17656_v15  ;;  %v17659_v59 = vld [vmem:[#allocation58_spill] sm:$0xff]  ;;  %v7763_v31 = vrot.slane %v16234_v20, 4 }
 0x6f7   : > { %17655 = vst [vmem:[#allocation70_spill] sm:$0xff] %v16240_v47  ;;  %v7943_v2 = vshrl.u32 %v7830_v49, 16  ;;  %v7946_v32 = vshll.u32 %v7830_v49, 16  ;;  %v16245_v53 = vsel %vm1487_vm4, %v7757_v43, %v7759_v1 }
 0x6f8   : > { %9515 = vmatmul.mubr.bf16.gmra.mrb[92].mxu0 %v16108_v23  ;;  %v7939_v23 = vrot.slane %v7937_v28, 5  ;;  %17657 = vst [vmem:[#allocation71_spill] sm:$0xff] %v16245_v53  ;;  %v7952_v44 = vshrl.u32 %v7831_v30, 16  ;;  %v7955_v27 = vshll.u32 %v7831_v30, 16 }
 0x6f9   : > { %9522 = vmatprep.mubr.bf16.mxu0 %v16146_v36  ;;  %v7931_v36 = vor.u32 %v7930_v11, %v7927_v37  ;;  %v7945_v9 = vrot.slane %v7943_v2, 4  ;;  %v7948_v47 = vrot.slane %v7946_v32, 5  ;;  %v7832_v37 = vmul.bf16 %v16234_v20, %v17659_v59  ;;  %v17662_v32 = vld [vmem:[#allocation29_spill] sm:$0xff] }
 0x6fa   : > { %v7940_v6 = vor.u32 %v7939_v23, %v7936_v48  ;;  %v7954_v43 = vrot.slane %v7952_v44, 4  ;;  %v7957_v49 = vrot.slane %v7955_v27, 5  ;;  %v16259_v48 = vsel %vm1487_vm4, %v7759_v1, %v7761_v8 }
 0x6fb   : > { %v16251_v28 = vsel %vm2034_vm6, %v7922_v54, %v7931_v36  ;;  %17661 = vst [vmem:[#allocation74_spill] sm:$0xff] %v16259_v48  ;;  %v7949_v23 = vor.u32 %v7948_v47, %v7945_v9  ;;  %v7961_v30 = vshrl.u32 %v7832_v37, 16  ;;  %v7964_v53 = vshll.u32 %v7832_v37, 16 }
 0x6fc   : > { %17658 = vst [vmem:[#allocation72_spill] sm:$0xff] %v16251_v28  ;;  %v16256_v11 = vsel %vm2034_vm6, %v7931_v36, %v7940_v6  ;;  %v7611_v54 = vshll.u32 %v16163_v41, 16  ;;  %v7958_v2 = vor.u32 %v7957_v49, %v7954_v43  ;;  %v7833_v28 = vmul.bf16 %v16248_v50, %v17662_v32  ;;  %v16282_v49 = vld [vmem:[#allocation4 + $0x18] sm:$0xff] }
 0x6fd   : > { %17660 = vst [vmem:[#allocation73_spill] sm:$0xff] %v16256_v11  ;;  %v17347_v36 = vrot.slane %v16248_v50, 4  ;;  %v16269_v44 = vsel %vm2034_vm6, %v7940_v6, %v7949_v23  ;;  %v7963_v27 = vrot.slane %v7961_v30, 4  ;;  %v7966_v1 = vrot.slane %v7964_v53, 5  ;;  %v16288_v30 = vld [vmem:[#allocation4 + $0x20] sm:$0xff] }
 0x6fe   : > { %17663 = vst [vmem:[#allocation75_spill] sm:$0xff] %v16269_v44  ;;  %v16272_v47 = vsel %vm1487_vm4, %v7761_v8, %v7763_v31  ;;  %v7970_v9 = vshrl.u32 %v7833_v28, 16  ;;  %v7973_v37 = vshll.u32 %v7833_v28, 16  ;;  %v7605_v6 = vor.u32 %v16167_v61, %v16165_v24 }
 0x6ff   : > { %17664 = vst [vmem:[#allocation76_spill] sm:$0xff] %v16272_v47  ;;  %v16280_v43 = vsel %vm1487_vm4, %v7763_v31, %v17347_v36  ;;  %v17667_v53 = vshrl.u32 %v16154_v62, 16  ;;  %v17668_v48 = vshll.u32 %v16154_v62, 16  ;;  %v17669_v31 = vshrl.u32 %v16163_v41, 16 }
 0x700   : > { %9523 = vmatmul.mubr.bf16.gmra.mrb[96].mxu0 %v16159_v34  ;;  %v16275_v34 = vsel %vm2034_vm6, %v7949_v23, %v7958_v2  ;;  %17666 = vst [vmem:[#allocation67_spill] sm:$0xff] %v16280_v43  ;;  %v16290_v23 = vld [vmem:[#allocation4 + $0x28] sm:$0xff]  ;;  %v7972_v47 = vrot.slane %v7970_v9, 4  ;;  %v7975_v28 = vrot.slane %v7973_v37, 5  ;;  %v7613_v43 = vrot.slane %v7611_v54, 4 }
 0x701   : > { %9530 = vmatprep.mubr.bf16.mxu0 %v16179_v7  ;;  %17665 = vst [vmem:[#allocation77_spill] sm:$0xff] %v16275_v34  ;;  %v7967_v7 = vor.u32 %v7966_v1, %v7963_v27  ;;  %v7383_v8 = vrot.slane %v17667_v53, 4  ;;  %v7386_v34 = vrot.slane %v17668_v48, 5  ;;  %v7610_v36 = vrot.slane %v17669_v31, 3 }
 0x702   : > { %v7379_v24 = vsel %vm2034_vm6, %v16139_v12, %v16181_v16  ;;  %v7390_v61 = vshrl.u32 %v16171_v40, 16  ;;  %v16303_v1 = vor.u32 %v7975_v28, %v7972_v47  ;;  %v8037_v9 = vmul.bf16 %v16282_v49, %v17558_v25 }
 0x703   : > { %v16297_v27 = vsel %vm2034_vm6, %v7958_v2, %v7967_v7  ;;  %v7393_v62 = vshll.u32 %v16171_v40, 16  ;;  %v7512_v41 = vmul.bf16 %v16196_v22, %v17621_v38  ;;  %v8038_v48 = vmul.bf16 %v16288_v30, %v17560_v18  ;;  %v16316_v2 = vld [vmem:[#allocation4 + $0x30] sm:$0xff] }
 0x704   : > { %17670 = vst [vmem:[#allocation78_spill] sm:$0xff] %v16297_v27  ;;  %17671 = vst [vmem:[#allocation79_spill] sm:$0xff] %v16303_v1  ;;  %v8039_v54 = vmul.bf16 %v16290_v23, %v17622_v60  ;;  %v7606_v12 = vsel %vm2492_vm5, %v16150_v55, %v7605_v6  ;;  %v16320_v25 = vsel %vm2034_vm6, %v7967_v7, %v16303_v1  ;;  %v8062_v40 = vshrl.u32 %v8037_v9, 16 }
 0x705   : > { %v8065_v47 = vshll.u32 %v8037_v9, 16  ;;  %v7387_v37 = vor.u32 %v7386_v34, %v7383_v8  ;;  %v7614_v53 = vor.u32 %v7613_v43, %v7610_v36  ;;  %v8071_v28 = vshrl.u32 %v8038_v48, 16 }
 0x706   : > { %v8074_v18 = vshll.u32 %v8038_v48, 16  ;;  %v8064_v31 = vrot.slane %v8062_v40, 3  ;;  %v8080_v60 = vshrl.u32 %v8039_v54, 16  ;;  %v7617_v27 = vshrl.u32 %v7512_v41, 16 }
 0x707   : > { %v8067_v38 = vrot.slane %v8065_v47, 4  ;;  %v8073_v44 = vrot.slane %v8071_v28, 3  ;;  %v8040_v11 = vmul.bf16 %v16316_v2, %v17624_v45  ;;  %v7620_v4 = vshll.u32 %v7512_v41, 16 }
 0x708   : > { %9531 = vmatmul.mubr.bf16.gmra.mrb[100].mxu0 %v7379_v24  ;;  %v8083_v24 = vshll.u32 %v8039_v54, 16  ;;  %v8076_v55 = vrot.slane %v8074_v18, 4  ;;  %v8082_v1 = vrot.slane %v8080_v60, 3  ;;  %v7395_v8 = vrot.slane %v7393_v62, 5 }
 0x709   : > { %9538 = vmatprep.mubr.bf16.mxu0 %v7606_v12  ;;  %v16324_v7 = vor.u32 %v8067_v38, %v8064_v31  ;;  %v7392_v12 = vrot.slane %v7390_v61, 4  ;;  %v8089_v36 = vshrl.u32 %v8040_v11, 16  ;;  %v8092_v43 = vshll.u32 %v8040_v11, 16 }
 0x70a   : > { %v8085_v9 = vrot.slane %v8083_v24, 4  ;;  %v8077_v34 = vor.u32 %v8076_v55, %v8073_v44  ;;  %v7294_v48 = vmul.bf16 %v16142_v39, %v17649_v57  ;;  %v7513_v54 = vmul.bf16 %v16214_v29, %v17623_v13  ;;  %v7817_v13 = vld [vmem:[#allocation4 + $0x88] sm:$0x1f] }
 0x70b   : > { %v7388_v45 = vsel %vm2034_vm6, %v16181_v16, %v7387_v37  ;;  %v8091_v41 = vrot.slane %v8089_v36, 3  ;;  %v8094_v61 = vrot.slane %v8092_v43, 4  ;;  %v7615_v11 = vsel %vm2492_vm5, %v7605_v6, %v7614_v53 }
 0x70c   : > { %v8086_v40 = vor.u32 %v8085_v9, %v8082_v1  ;;  %v16334_v38 = vsel %vm2492_vm5, %v16324_v7, %v8077_v34  ;;  %v7619_v44 = vrot.slane %v7617_v27, 3  ;;  %v7622_v62 = vrot.slane %v7620_v4, 4 }
 0x70d   : > { %v16340_v47 = vor.u32 %v8094_v61, %v8091_v41  ;;  %v7396_v1 = vor.u32 %v7395_v8, %v7392_v12  ;;  %v7399_v28 = vshrl.u32 %v7294_v48, 16  ;;  %v7402_v16 = vshll.u32 %v7294_v48, 16 }
 0x70e   : > { %v16338_v39 = vsel %vm2492_vm5, %v8077_v34, %v8086_v40  ;;  %v7623_v31 = vor.u32 %v7622_v62, %v7619_v44  ;;  %v7626_v60 = vshrl.u32 %v7513_v54, 16  ;;  %v7629_v24 = vshll.u32 %v7513_v54, 16  ;;  %v7500_v62 = vld [vmem:[#allocation4 + $0x88] sm:$0xf] }
 0x70f   : > { %v16344_v18 = vsel %vm2492_vm5, %v8086_v40, %v16340_v47  ;;  %v7295_v6 = vmul.bf16 %v16196_v22, %v17653_v56  ;;  %v7397_v4 = vsel %vm2034_vm6, %v7387_v37, %v7396_v1  ;;  %v7401_v27 = vrot.slane %v7399_v28, 4 }
 0x710   : > { %9539 = vmatmul.mubr.bf16.gmra.mrb[104].mxu0 %v7388_v45  ;;  %v7404_v55 = vrot.slane %v7402_v16, 5  ;;  %v7624_v9 = vsel %vm2492_vm5, %v7614_v53, %v7623_v31  ;;  %v7628_v12 = vrot.slane %v7626_v60, 3  ;;  %v7631_v34 = vrot.slane %v7629_v24, 4 }
 0x711   : > { %9546 = vmatprep.mubr.bf16.mxu0 %v7615_v11  ;;  %v7514_v36 = vmul.bf16 %v16220_v19, %v17625_v21  ;;  %v7408_v43 = vshrl.u32 %v7295_v6, 16  ;;  %v7411_v8 = vshll.u32 %v7295_v6, 16  ;;  %v7296_v22 = vmul.bf16 %v16214_v29, %v17656_v15 }
 0x712   : > { %v7405_v48 = vor.u32 %v7404_v55, %v7401_v27  ;;  %v7632_v54 = vor.u32 %v7631_v34, %v7628_v12  ;;  %v7515_v37 = vmul.bf16 %v16234_v20, %v17627_v3  ;;  %v7297_v11 = vmul.bf16 %v16220_v19, %v17659_v59 }
 0x713   : > { %v7635_v40 = vshrl.u32 %v7514_v36, 16  ;;  %v7638_v45 = vshll.u32 %v7514_v36, 16  ;;  %v7410_v41 = vrot.slane %v7408_v43, 4  ;;  %v7413_v53 = vrot.slane %v7411_v8, 5  ;;  %v7282_v36 = vld [vmem:[#allocation4 + $0x80] sm:$0x1f] }
 0x714   : > { %v7406_v61 = vsel %vm2034_vm6, %v7396_v1, %v7405_v48  ;;  %v7516_v44 = vmul.bf16 %v16248_v50, %v17629_v14  ;;  %v7633_v28 = vsel %vm2492_vm5, %v7623_v31, %v7632_v54  ;;  %v7298_v29 = vmul.bf16 %v16234_v20, %v17662_v32 }
 0x715   : > { %v7637_v16 = vrot.slane %v7635_v40, 3  ;;  %v7640_v60 = vrot.slane %v7638_v45, 4  ;;  %v7417_v24 = vshrl.u32 %v7296_v22, 16  ;;  %v7420_v6 = vshll.u32 %v7296_v22, 16 }
 0x716   : > { %v7647_v1 = vshll.u32 %v7515_v37, 16  ;;  %v7414_v27 = vor.u32 %v7413_v53, %v7410_v41  ;;  %v7517_v19 = vmul.bf16 %v7500_v62, %v17632_v52  ;;  %v7426_v55 = vshrl.u32 %v7297_v11, 16  ;;  %v17672_v41 = vld [vmem:[#allocation53_spill] sm:$0xff] }
 0x717   : > { %v7653_v12 = vshrl.u32 %v7516_v44, 16  ;;  %v7656_v34 = vshll.u32 %v7516_v44, 16  ;;  %v7641_v43 = vor.u32 %v7640_v60, %v7637_v16  ;;  %v7435_v31 = vshrl.u32 %v7298_v29, 16 }
 0x718   : > { %9547 = vmatmul.mubr.bf16.gmra.mrb[108].mxu0 %v7397_v4  ;;  %v7644_v4 = vshrl.u32 %v7515_v37, 16  ;;  %v7438_v8 = vshll.u32 %v7298_v29, 16  ;;  %v7419_v40 = vrot.slane %v7417_v24, 4  ;;  %v7422_v45 = vrot.slane %v7420_v6, 5 }
 0x719   : > { %9554 = vmatprep.mubr.bf16.mxu0 %v7624_v9  ;;  %v7429_v9 = vshll.u32 %v7297_v11, 16  ;;  %v7649_v20 = vrot.slane %v7647_v1, 4  ;;  %v7415_v22 = vsel %vm2034_vm6, %v7405_v48, %v7414_v27  ;;  %v7662_v14 = vshrl.u32 %v7517_v19, 16 }
 0x71a   : > { %v7665_v37 = vshll.u32 %v7517_v19, 16  ;;  %v7299_v53 = vmul.bf16 %v7282_v36, %v17672_v41  ;;  %v7428_v62 = vrot.slane %v7426_v55, 4  ;;  %v7655_v11 = vrot.slane %v7653_v12, 3  ;;  %v16371_v12 = vld [vmem:[#allocation4 + $0x38] sm:$0xff] }
 0x71b   : > { %v7431_v52 = vrot.slane %v7429_v9, 5  ;;  %v7658_v3 = vrot.slane %v7656_v34, 4  ;;  %v7642_v44 = vsel %vm2492_vm5, %v7632_v54, %v7641_v43  ;;  %v7437_v16 = vrot.slane %v7435_v31, 4 }
 0x71c   : > { %v7440_v60 = vrot.slane %v7438_v8, 5  ;;  %v7423_v24 = vor.u32 %v7422_v45, %v7419_v40  ;;  %v7664_v48 = vrot.slane %v7662_v14, 3  ;;  %v7667_v1 = vrot.slane %v7665_v37, 4  ;;  %v16377_v8 = vld [vmem:[#allocation4 + $0x40] sm:$0xff]  ;;  %v16389_v37 = vld [vmem:[#allocation4 + $0x48] sm:$0xff] }
 0x71d   : > { %v7444_v19 = vshrl.u32 %v7299_v53, 16  ;;  %v7447_v36 = vshll.u32 %v7299_v53, 16  ;;  %v7432_v55 = vor.u32 %v7431_v52, %v7428_v62  ;;  %v7659_v9 = vor.u32 %v7658_v3, %v7655_v11 }
 0x71e   : > { %v16373_v34 = vor.u32 %v7440_v60, %v7437_v16  ;;  %v7424_v40 = vsel %vm2034_vm6, %v7414_v27, %v7423_v24  ;;  %v7668_v14 = vor.u32 %v7667_v1, %v7664_v48  ;;  %v8358_v3 = vmul.bf16 %v16371_v12, %v17638_v42  ;;  %v16399_v16 = vld [vmem:[#allocation4 + $0x50] sm:$0xff]  ;;  %v16406_v48 = vld [vmem:[#allocation4 + $0x58] sm:$0xff]  ;;  %v8247_v1 = vld [vmem:[#allocation4 + $0x60] sm:$0xff] }
 0x71f   : > { %v7433_v52 = vsel %vm2034_vm6, %v7423_v24, %v7432_v55  ;;  %v8359_v27 = vmul.bf16 %v16377_v8, %v17639_v58 }
 0x720   : > { %9555 = vmatmul.mubr.bf16.gmra.mrb[112].mxu0 %v7406_v61  ;;  %v7646_v61 = vrot.slane %v7644_v4, 3  ;;  %v16369_v4 = vld [vmem:[#allocation4 + $0x10] sm:$0xff]  ;;  %v8415_v11 = vshrl.u32 %v8358_v3, 16  ;;  %v8418_v60 = vshll.u32 %v8358_v3, 16 }
 0x721   : > { %9562 = vmatprep.mubr.bf16.mxu0 %v7633_v28  ;;  %v7801_v28 = vld [vmem:[#allocation4 + $0x8] sm:$0xf0]  ;;  %v7819_v54 = vmul.bf16 %v16369_v4, %v17633_v63  ;;  %v8427_v24 = vshll.u32 %v8359_v27, 16 }
 0x722   : > { %v7818_v29 = vmul.bf16 %v7801_v28, %v17640_v33  ;;  %v7650_v6 = vor.u32 %v7649_v20, %v7646_v61  ;;  %v16381_v61 = vrot.slane %v7444_v19, 4  ;;  %v16383_v20 = vrot.slane %v7447_v36, 5  ;;  %v8249_v33 = vld [vmem:[#allocation4 + $0x70] sm:$0xff] }
 0x723   : > { %v7844_v62 = vshrl.u32 %v7819_v54, 16  ;;  %v8417_v19 = vrot.slane %v8415_v11, 4  ;;  %v8360_v36 = vmul.bf16 %v16389_v37, %v17642_v51  ;;  %v8362_v11 = vmul.bf16 %v16406_v48, %v17644_v10 }
 0x724   : > { %v7836_v31 = vshrl.u32 %v7818_v29, 16  ;;  %v7651_v45 = vsel %vm2492_vm5, %v7641_v43, %v7650_v6  ;;  %v7660_v28 = vsel %vm2492_vm5, %v7650_v6, %v7659_v9  ;;  %v16395_v43 = vsel %vm2034_vm6, %v7432_v55, %v16373_v34 }
 0x725   : > { %v16402_v6 = vsel %vm2492_vm5, %v7659_v9, %v7668_v14  ;;  %v8433_v3 = vshrl.u32 %v8360_v36, 16  ;;  %v8436_v9 = vshll.u32 %v8360_v36, 16  ;;  %v8361_v14 = vmul.bf16 %v16399_v16, %v17643_v17 }
 0x726   : > { %v16397_v53 = vrot.slane %v7836_v31, 4  ;;  %v8363_v51 = vmul.bf16 %v8247_v1, %v17645_v26  ;;  %v8451_v17 = vshrl.u32 %v8362_v11, 16  ;;  %v8250_v26 = vld [vmem:[#allocation4 + $0x78] sm:$0xff] }
 0x727   : > { %v8435_v63 = vrot.slane %v8433_v3, 4 }
 0x728   : > { %9563 = vmatmul.mubr.bf16.gmra.mrb[116].mxu0 %v7415_v22  ;;  %v7839_v22 = vshll.u32 %v7818_v29, 16  ;;  %v8424_v29 = vshrl.u32 %v8359_v27, 16  ;;  %v8460_v10 = vshrl.u32 %v8363_v51, 16  ;;  %v8453_v1 = vrot.slane %v8451_v17, 4 }
 0x729   : > { %9570 = vmatprep.mubr.bf16.mxu0 %v7642_v44  ;;  %v7847_v44 = vshll.u32 %v7819_v54, 16  ;;  %v8420_v54 = vrot.slane %v8418_v60, 5  ;;  %v8438_v60 = vrot.slane %v8436_v9, 5  ;;  %v8463_v9 = vshll.u32 %v8363_v51, 16 }
 0x72a   : > { %v16410_v55 = vrot.slane %v7839_v22, 5  ;;  %v8426_v31 = vrot.slane %v8424_v29, 4  ;;  %v8248_v22 = vld [vmem:[#allocation4 + $0x68] sm:$0xff]  ;;  %v8442_v29 = vshrl.u32 %v8361_v14, 16 }
 0x72b   : > { %v16416_v27 = vor.u32 %v8420_v54, %v8417_v19  ;;  %v8454_v19 = vshll.u32 %v8362_v11, 16  ;;  %v8439_v54 = vor.u32 %v8438_v60, %v8435_v63 }
 0x72d   : > { %17673 = vst [vmem:[#allocation80_spill] sm:$0xff] %v16416_v27  ;;  %v8456_v3 = vrot.slane %v8454_v19, 5 }
 0x72f   : > { %v8457_v11 = vor.u32 %v8456_v3, %v8453_v1 }
 0x730   : > { %9571 = vmatmul.mubr.bf16.gmra.mrb[120].mxu0 %v7424_v40  ;;  %v8429_v40 = vrot.slane %v8427_v24, 5  ;;  %v8445_v24 = vshll.u32 %v8361_v14, 16  ;;  %v8364_v14 = vmul.bf16 %v8248_v22, %v17649_v57  ;;  %v8366_v57 = vmul.bf16 %v8250_v26, %v17656_v15 }
 0x731   : > { %9578 = vmatprep.mubr.bf16.mxu0 %v7651_v45  ;;  %v16412_v45 = vrot.slane %v7844_v62, 4  ;;  %v7849_v62 = vrot.slane %v7847_v44, 5 }
 0x732   : > { %v8430_v58 = vor.u32 %v8429_v40, %v8426_v31  ;;  %v8444_v31 = vrot.slane %v8442_v29, 4  ;;  %v8447_v40 = vrot.slane %v8445_v24, 5  ;;  %v8469_v63 = vshrl.u32 %v8364_v14, 16  ;;  %v8251_v29 = vld [vmem:[#allocation4 + $0x80] sm:$0xff]  ;;  %v8034_v24 = vld [vmem:[#allocation4 + $0x88] sm:$0xff] }
 0x733   : > { %v8472_v60 = vshll.u32 %v8364_v14, 16 }
 0x734   : > { %v16423_v36 = vsel %vm2034_vm6, %v16416_v27, %v8430_v58  ;;  %v16427_v44 = vsel %vm2034_vm6, %v8430_v58, %v8439_v54  ;;  %v8448_v21 = vor.u32 %v8447_v40, %v8444_v31  ;;  %v8462_v27 = vrot.slane %v8460_v10, 4 }
 0x735   : > { %17674 = vst [vmem:[#allocation81_spill] sm:$0xff] %v16423_v36  ;;  %17675 = vst [vmem:[#allocation82_spill] sm:$0xff] %v16427_v44  ;;  %v8365_v36 = vmul.bf16 %v8249_v33, %v17653_v56  ;;  %v8471_v19 = vrot.slane %v8469_v63, 4  ;;  %v8474_v31 = vrot.slane %v8472_v60, 5  ;;  %v8487_v40 = vshrl.u32 %v8366_v57, 16 }
 0x736   : > { %v16435_v58 = vsel %vm2034_vm6, %v8448_v21, %v8457_v11  ;;  %v8490_v10 = vshll.u32 %v8366_v57, 16  ;;  %v7850_v60 = vor.u32 %v7849_v62, %v16412_v45  ;;  %v7821_v45 = vmul.bf16 %v16288_v30, %v17635_v0 }
 0x737   : > { %v8478_v17 = vshrl.u32 %v8365_v36, 16  ;;  %v8481_v51 = vshll.u32 %v8365_v36, 16  ;;  %17677 = vst [vmem:[#allocation84_spill] sm:$0xff] %v16435_v58  ;;  %v8475_v3 = vor.u32 %v8474_v31, %v8471_v19  ;;  %v8368_v36 = vmul.bf16 %v8034_v24, %v17662_v32 }
 0x738   : > { %9579 = vmatmul.mubr.bf16.gmra.mrb[124].mxu0 %v7433_v52  ;;  %v8465_v52 = vrot.slane %v8463_v9, 5  ;;  %v8492_v26 = vrot.slane %v8490_v10, 5 }
 0x739   : > { %9586 = vmatprep.mubr.bf16.mxu0 %v7660_v28  ;;  %v16431_v28 = vsel %vm2034_vm6, %v8439_v54, %v8448_v21  ;;  %v8480_v56 = vrot.slane %v8478_v17, 4  ;;  %v8483_v33 = vrot.slane %v8481_v51, 5  ;;  %v8367_v54 = vmul.bf16 %v8251_v29, %v17659_v59 }
 0x73a   : > { %17676 = vst [vmem:[#allocation83_spill] sm:$0xff] %v16431_v28  ;;  %v8466_v22 = vor.u32 %v8465_v52, %v8462_v27  ;;  %v7820_v21 = vmul.bf16 %v16282_v49, %v17634_v46  ;;  %v8489_v27 = vrot.slane %v8487_v40, 4  ;;  %v8505_v52 = vshrl.u32 %v8368_v36, 16 }
 0x73b   : > { %v8484_v15 = vor.u32 %v8483_v33, %v8480_v56  ;;  %v8496_v14 = vshrl.u32 %v8367_v54, 16  ;;  %v7842_v59 = vor.u32 %v16410_v55, %v16397_v53  ;;  %v8508_v63 = vshll.u32 %v8368_v36, 16  ;;  %v7702_v33 = vld [vmem:[#allocation4 + $0x8] sm:$0xf0] }
 0x73c   : > { %v16438_v1 = vsel %vm2034_vm6, %v8457_v11, %v8466_v22  ;;  %v16447_v9 = vsel %vm2034_vm6, %v8466_v22, %v8475_v3  ;;  %v8499_v11 = vshll.u32 %v8367_v54, 16  ;;  %v8507_v17 = vrot.slane %v8505_v52, 4 }
 0x73d   : > { %17678 = vst [vmem:[#allocation85_spill] sm:$0xff] %v16438_v1  ;;  %17679 = vst [vmem:[#allocation87_spill] sm:$0xff] %v16447_v9  ;;  %v16452_v32 = vsel %vm2034_vm6, %v8475_v3, %v8484_v15  ;;  %v8498_v29 = vrot.slane %v8496_v14, 4  ;;  %v7856_v51 = vshll.u32 %v7820_v21, 16  ;;  %v8510_v22 = vrot.slane %v8508_v63, 5  ;;  %v17695_v1 = vld [vmem:[#allocation72_spill] sm:$0xff] }
 0x73e   : > { %17680 = vst [vmem:[#allocation88_spill] sm:$0xff] %v16452_v32  ;;  %v8501_v24 = vrot.slane %v8499_v11, 5  ;;  %v17683_v53 = vor.u32 %v16383_v20, %v16381_v61  ;;  %v7851_v56 = vsel %vm2034_vm6, %v7842_v59, %v7850_v60  ;;  %v7736_v61 = vrot.slane %v7702_v33, 4  ;;  %v12386_v59 = vld [vmem:[#allocation9 + $0x188] sm:$0xff]   ;;  %v12390_v33 = vld [vmem:[#allocation9 + $0x198] sm:$0xff]  }
 0x73f   : > { %v16458_v31 = vor.u32 %v8510_v22, %v8507_v17  ;;  %v7858_v10 = vrot.slane %v7856_v51, 5  ;;  %v7862_v54 = vshrl.u32 %v7821_v45, 16  ;;  %v7865_v36 = vshll.u32 %v7821_v45, 16  ;;  %v12388_v17 = vld [vmem:[#allocation9 + $0x190] sm:$0xff]  }
 0x740   : > { %9587 = vmatmul.mubr.bf16.gmra.mrb[128].mxu0 %v16395_v43  ;;  %v8493_v43 = vor.u32 %v8492_v26, %v8489_v27  ;;  %v8502_v19 = vor.u32 %v8501_v24, %v8498_v29  ;;  %v7451_v55 = vsel %vm2034_vm6, %v16373_v34, %v17683_v53  ;;  %v7737_v34 = vrot.slane %v16369_v4, 4  ;;  %v12387_v4 = vld [vmem:[#allocation9 + $0x1d0] sm:$0xff]  }
 0x741   : > { %9594 = vmatprep.mubr.bf16.mxu0 %v16402_v6  ;;  %v7853_v6 = vshrl.u32 %v7820_v21, 16  ;;  %17682 = vst [vmem:[#allocation32_spill] sm:$0xff] %v16458_v31  ;;  %v12384_v21 = vld [vmem:[#allocation9 + $0x180] sm:$0xff]   ;;  %v7864_v14 = vrot.slane %v7862_v54, 4  ;;  %v7867_v11 = vrot.slane %v7865_v36, 5  ;;  %v7822_v52 = vmul.bf16 %v16290_v23, %v17637_v35 }
 0x742   : > { %v16456_v57 = vsel %vm2034_vm6, %v8484_v15, %v8493_v43  ;;  %v16468_v62 = vsel %vm2034_vm6, %v8493_v43, %v8502_v19  ;;  %v16473_v3 = vsel %vm2034_vm6, %v8502_v19, %v16458_v31  ;;  %v12385_v15 = vld [vmem:[#allocation9 + $0x1c8] sm:$0xff]   ;;  %v7738_v27 = vsel %vm1487_vm4, %v7736_v61, %v7737_v34 }
 0x743   : > { %17681 = vst [vmem:[#allocation86_spill] sm:$0xff] %v16456_v57  ;;  %17684 = vst [vmem:[#allocation49_spill] sm:$0xff] %v16468_v62  ;;  %v7855_v40 = vrot.slane %v7853_v6, 4  ;;  %v16481_v43 = vrot.slane %v16282_v49, 4  ;;  %v7868_v63 = vor.u32 %v7867_v11, %v7864_v14  ;;  %v7871_v29 = vshrl.u32 %v7822_v52, 16  ;;  %v17692_v62 = vld [vmem:[#allocation69_spill] sm:$0xff] }
 0x744   : > { %17685 = vst [vmem:[#allocation50_spill] sm:$0xff] %v16473_v3  ;;  %v7874_v24 = vshll.u32 %v7822_v52, 16  ;;  %v7823_v49 = vmul.bf16 %v16316_v2, %v17638_v42  ;;  %v12393_v42 = vld [vmem:[#allocation9 + $0x1e8] sm:$0xff]  }
 0x745   : > { %v7859_v20 = vor.u32 %v7858_v10, %v7855_v40  ;;  %v7740_v6 = vsel %vm1487_vm4, %v7737_v34, %v16481_v43  ;;  %v7873_v53 = vrot.slane %v7871_v29, 4  ;;  %v12391_v10 = vld [vmem:[#allocation9 + $0x1e0] sm:$0xff]   ;;  %v7741_v34 = vrot.slane %v16288_v30, 4  ;;  %v12394_v30 = vld [vmem:[#allocation9 + $0x1a8] sm:$0xff]  }
 0x746   : > { %v7880_v54 = vshrl.u32 %v7823_v49, 16  ;;  %v7883_v36 = vshll.u32 %v7823_v49, 16  ;;  %v12397_v49 = vld [vmem:[#allocation9 + $0x1f8] sm:$0xff]  }
 0x747   : > { %v7860_v26 = vsel %vm2034_vm6, %v7850_v60, %v7859_v20  ;;  %v12389_v60 = vld [vmem:[#allocation9 + $0x1d8] sm:$0xff]   ;;  %v7869_v22 = vsel %vm2034_vm6, %v7859_v20, %v7868_v63 }
 0x748   : > { %9595 = vmatmul.mubr.bf16.gmra.mrb[132].mxu0 %v7451_v55  ;;  %v7876_v55 = vrot.slane %v7874_v24, 5  ;;  %v7885_v14 = vrot.slane %v7883_v36, 5  ;;  %v16513_v36 = vld [vmem:[#allocation9 + $0x200] sm:$0xff]  }
 0x749   : > { %9635 = vmatprep.mubr.bf16.mxu0 %v7851_v56 }
 0x74a   : > { %v7877_v20 = vor.u32 %v7876_v55, %v7873_v53  ;;  %v12396_v53 = vld [vmem:[#allocation9 + $0x1b0] sm:$0xff]  }
 0x750   : > { %9636 = vmatmul.mubr.bf16.vlgmr.msra.gmra.mrb[136].mxu0 %v7738_v27  ;;  %v7878_v27 = vsel %vm2034_vm6, %v7868_v63, %v7877_v20 }
 0x751   : > { %11179 = vmatpush3.bf16.msra.mxu0 %v12384_v21  ;;  %9643 = vmatprep.mubr.bf16.mxu0 %v7860_v26  ;;  %v12392_v21 = vld [vmem:[#allocation9 + $0x1a0] sm:$0xff]   ;;  %v7882_v26 = vrot.slane %v7880_v54, 4 }
 0x752   : > { %11180 = vmatprep.subr.bf16.mxu0 %v12385_v15  ;;  %v16495_v15 = vsel %vm1487_vm4, %v16481_v43, %v7741_v34 }
 0x755   : > { %11181 = vmatpush3.bf16.msra.mxu0 %v12386_v59  ;;  %v12395_v59 = vld [vmem:[#allocation9 + $0x1f0] sm:$0xff]  }
 0x756   : > { %11182 = vmatprep.subr.bf16.mxu0 %v12387_v4 }
 0x758   : > { %v10858_v51 = vpop.f32.mrb[36].mxu0  ;;  %9644 = vmatmul.mubr.bf16.gmra.mrb[140].mxu0 %v7740_v6 }
 0x759   : > { %v10859_v19 = vpop.f32.mrb[37].mxu0  ;;  %9651 = vmatprep.mubr.bf16.mxu0 %v7869_v22  ;;  %11183 = vmatpush3.bf16.msra.mxu0 %v12388_v17  ;;  %v7743_v17 = vrot.slane %v16290_v23, 4 }
 0x75a   : > { %v16488_v45 = vadd.f32 %v10859_v19, %v10858_v51  ;;  %v10861_v56 = vpop.f32.mrb[38].mxu0  ;;  %11184 = vmatprep.subr.bf16.mxu0 %v12389_v60  ;;  %v7886_v51 = vor.u32 %v7885_v14, %v7882_v26  ;;  %v16518_v26 = vrot.slane %v16316_v2, 4 }
 0x75b   : > { %v10862_v40 = vpop.f32.mrb[39].mxu0 }
 0x75c   : > { %v16490_v61 = vadd.f32 %v10862_v40, %v10861_v56  ;;  %v7887_v23 = vsel %vm2034_vm6, %v7877_v20, %v7886_v51  ;;  %v7896_v2 = vsel %vm2034_vm6, %v7886_v51, %v16198_v5 }
 0x75d   : > { %11185 = vmatpush3.bf16.msra.mxu0 %v12390_v33  ;;  %v16509_v33 = vsel %vm1487_vm4, %v7741_v34, %v7743_v17 }
 0x75e   : > { %11186 = vmatprep.subr.bf16.mxu0 %v12391_v10  ;;  %v12398_v10 = vld [vmem:[#allocation9 + $0x1b8] sm:$0xff]  }
 0x760   : > { %9652 = vmatmul.mubr.bf16.gmra.mrb[144].mxu0 %v16495_v15  ;;  %v10912_v11 = vpop.f32.mrb[36].mxu1 }
 0x761   : > { %9659 = vmatprep.mubr.bf16.mxu0 %v7878_v27  ;;  %11187 = vmatpush3.bf16.msra.mxu0 %v12392_v21  ;;  %v10913_v52 = vpop.f32.mrb[37].mxu1 }
 0x762   : > { %11188 = vmatprep.subr.bf16.mxu0 %v12393_v42  ;;  %v16499_v4 = vadd.f32 %v10913_v52, %v10912_v11  ;;  %v10915_v29 = vpop.f32.mrb[38].mxu1 }
 0x763   : > { %v10864_v24 = vpop.f32.mrb[40].mxu0  ;;  %v10916_v60 = vpop.f32.mrb[39].mxu1 }
 0x764   : > { %v10865_v6 = vpop.f32.mrb[41].mxu0  ;;  %v16502_v22 = vadd.f32 %v10916_v60, %v10915_v29  ;;  %v16529_v29 = vsel %vm1487_vm4, %v7743_v17, %v16518_v26 }
 0x765   : > { %v16504_v63 = vadd.f32 %v10865_v6, %v10864_v24  ;;  %v10867_v19 = vpop.f32.mrb[42].mxu0  ;;  %11189 = vmatpush3.bf16.msra.mxu0 %v12394_v30 }
 0x766   : > { %v10868_v55 = vpop.f32.mrb[43].mxu0  ;;  %11190 = vmatprep.subr.bf16.mxu0 %v12395_v59 }
 0x767   : > { %v16506_v56 = vadd.f32 %v10868_v55, %v10867_v19 }
 0x768   : > { %9660 = vmatmul.mubr.bf16.gmra.mrb[148].mxu0 %v16509_v33  ;;  %v10918_v40 = vpop.f32.mrb[40].mxu1 }
 0x769   : > { %9667 = vmatprep.mubr.bf16.mxu0 %v7887_v23  ;;  %11191 = vmatpush3.bf16.msra.mxu0 %v12396_v53  ;;  %v10919_v54 = vpop.f32.mrb[41].mxu1 }
 0x76a   : > { %11192 = vmatprep.subr.bf16.mxu0 %v12397_v49  ;;  %v16515_v21 = vadd.f32 %v10919_v54, %v10918_v40  ;;  %v10921_v42 = vpop.f32.mrb[42].mxu1 }
 0x76b   : > { %v10870_v27 = vpop.f32.mrb[44].mxu0  ;;  %v10922_v34 = vpop.f32.mrb[43].mxu1 }
 0x76c   : > { %v10871_v14 = vpop.f32.mrb[45].mxu0  ;;  %v16520_v11 = vadd.f32 %v10922_v34, %v10921_v42  ;;  %v17686_v42 = vld [vmem:[#allocation61_spill] sm:$0xff] }
 0x76d   : > { %v16522_v20 = vadd.f32 %v10871_v14, %v10870_v27  ;;  %v10873_v30 = vpop.f32.mrb[46].mxu0  ;;  %11193 = vmatpush3.bf16.msra.mxu0 %v12398_v10  ;;  %v17687_v27 = vrot.slane %v17686_v42, 4  ;;  %v17688_v34 = vld [vmem:[#allocation65_spill] sm:$0xff] }
 0x76e   : > { %v10874_v52 = vpop.f32.mrb[47].mxu0  ;;  %11766 = vmatprep.subr.bf16.mxu0 %v16513_v36 }
 0x76f   : > { %v16525_v59 = vadd.f32 %v10874_v52, %v10873_v30  ;;  %v7748_v5 = vsel %vm1487_vm4, %v16518_v26, %v17687_v27  ;;  %v17690_v27 = vld [vmem:[#allocation66_spill] sm:$0xff] }
 0x770   : > { %9668 = vmatmul.mubr.bf16.gmra.mrb[152].mxu0 %v16529_v29  ;;  %v10924_v24 = vpop.f32.mrb[44].mxu1 }
 0x771   : > { %9675 = vmatprep.mubr.bf16.mxu0 %v7896_v2  ;;  %v10925_v60 = vpop.f32.mrb[45].mxu1 }
 0x772   : > { %v16534_v6 = vadd.f32 %v10925_v60, %v10924_v24  ;;  %v10927_v19 = vpop.f32.mrb[46].mxu1 }
 0x773   : > { %v10876_v53 = vpop.f32.mrb[48].mxu0  ;;  %v10928_v55 = vpop.f32.mrb[47].mxu1 }
 0x774   : > { %v10877_v49 = vpop.f32.mrb[49].mxu0  ;;  %v16536_v23 = vadd.f32 %v10928_v55, %v10927_v19 }
 0x775   : > { %v16538_v40 = vadd.f32 %v10877_v49, %v10876_v53  ;;  %v10879_v17 = vpop.f32.mrb[50].mxu0 }
 0x776   : > { %v10880_v10 = vpop.f32.mrb[51].mxu0 }
 0x777   : > { %v16540_v54 = vadd.f32 %v10880_v10, %v10879_v17  ;;  %v17689_v10 = vld [vmem:[#allocation62_spill] sm:$0xff] }
 0x778   : > { %9676 = vmatmul.mubr.bf16.gmra.mrb[156].mxu0 %v7748_v5  ;;  %v10930_v51 = vpop.f32.mrb[48].mxu1 }
 0x779   : > { %9683 = vmatprep.mubr.bf16.mxu0 %v17688_v34  ;;  %v10931_v14 = vpop.f32.mrb[49].mxu1 }
 0x77a   : > { %v16547_v30 = vadd.f32 %v10931_v14, %v10930_v51  ;;  %v10933_v52 = vpop.f32.mrb[50].mxu1 }
 0x77b   : > { %v10882_v2 = vpop.f32.mrb[52].mxu0  ;;  %v10934_v24 = vpop.f32.mrb[51].mxu1 }
 0x77c   : > { %v10883_v60 = vpop.f32.mrb[53].mxu0  ;;  %v16549_v19 = vadd.f32 %v10934_v24, %v10933_v52 }
 0x77d   : > { %v16551_v53 = vadd.f32 %v10883_v60, %v10882_v2  ;;  %v10885_v55 = vpop.f32.mrb[54].mxu0 }
 0x77e   : > { %v10886_v49 = vpop.f32.mrb[55].mxu0 }
 0x77f   : > { %v16553_v17 = vadd.f32 %v10886_v49, %v10885_v55  ;;  %v17691_v49 = vld [vmem:[#allocation63_spill] sm:$0xff] }
 0x780   : > { %9684 = vmatmul.mubr.bf16.gmra.mrb[160].mxu0 %v17689_v10  ;;  %v10936_v42 = vpop.f32.mrb[52].mxu1 }
 0x781   : > { %9691 = vmatprep.mubr.bf16.mxu0 %v17690_v27  ;;  %v10937_v5 = vpop.f32.mrb[53].mxu1 }
 0x782   : > { %v16557_v51 = vadd.f32 %v10937_v5, %v10936_v42  ;;  %v10939_v34 = vpop.f32.mrb[54].mxu1 }
 0x783   : > { %v10888_v14 = vpop.f32.mrb[56].mxu0  ;;  %v10940_v31 = vpop.f32.mrb[55].mxu1 }
 0x784   : > { %v10889_v3 = vpop.f32.mrb[57].mxu0  ;;  %v16559_v52 = vadd.f32 %v10940_v31, %v10939_v34 }
 0x785   : > { %v16561_v2 = vadd.f32 %v10889_v3, %v10888_v14  ;;  %v10891_v24 = vpop.f32.mrb[58].mxu0 }
 0x786   : > { %v10892_v60 = vpop.f32.mrb[59].mxu0 }
 0x787   : > { %v16563_v55 = vadd.f32 %v10892_v60, %v10891_v24  ;;  %v17694_v60 = vld [vmem:[#allocation64_spill] sm:$0xff] }
 0x788   : > { %9692 = vmatmul.mubr.bf16.gmra.mrb[164].mxu0 %v17691_v49  ;;  %v10942_v10 = vpop.f32.mrb[56].mxu1 }
 0x789   : > { %9699 = vmatprep.mubr.bf16.mxu0 %v17692_v62  ;;  %v10943_v27 = vpop.f32.mrb[57].mxu1 }
 0x78a   : > { %v16567_v42 = vadd.f32 %v10943_v27, %v10942_v10  ;;  %v10945_v5 = vpop.f32.mrb[58].mxu1 }
 0x78b   : > { %v10894_v57 = vpop.f32.mrb[60].mxu0  ;;  %v10946_v32 = vpop.f32.mrb[59].mxu1 }
 0x78c   : > { %v10895_v9 = vpop.f32.mrb[61].mxu0  ;;  %v16569_v31 = vadd.f32 %v10946_v32, %v10945_v5 }
 0x78d   : > { %v16571_v3 = vadd.f32 %v10895_v9, %v10894_v57  ;;  %v10897_v34 = vpop.f32.mrb[62].mxu0 }
 0x78e   : > { %17693 = vst [vmem:[#allocation18_spill] sm:$0xff] %v16569_v31  ;;  %v10898_v14 = vpop.f32.mrb[63].mxu0 }
 0x78f   : > { %v16573_v24 = vadd.f32 %v10898_v14, %v10897_v34  ;;  %v17698_v14 = vld [vmem:[#allocation68_spill] sm:$0xff] }
 0x790   : > { %9700 = vmatmul.mubr.bf16.gmra.mrb[168].mxu0 %v17694_v60  ;;  %v10948_v49 = vpop.f32.mrb[60].mxu1  ;;  %v17699_v60 = vld [vmem:[#allocation73_spill] sm:$0xff] }
 0x791   : > { %9707 = vmatprep.mubr.bf16.mxu0 %v17695_v1  ;;  %v10949_v62 = vpop.f32.mrb[61].mxu1 }
 0x792   : > { %v16577_v10 = vadd.f32 %v10949_v62, %v10948_v49  ;;  %v10951_v27 = vpop.f32.mrb[62].mxu1 }
 0x793   : > { %v10900_v58 = vpop.f32.mrb[64].mxu0  ;;  %v10952_v28 = vpop.f32.mrb[63].mxu1 }
 0x794   : > { %17696 = vst [vmem:[#allocation23_spill] sm:$0xff] %v16577_v10  ;;  %v10901_v44 = vpop.f32.mrb[65].mxu0  ;;  %v16579_v32 = vadd.f32 %v10952_v28, %v10951_v27  ;;  %v17700_v28 = vld [vmem:[#allocation70_spill] sm:$0xff]  ;;  %v16596_v27 = vld [vmem:[%s17702_s14] ss:$0 sm:$0xff]  ;;  %s12808_s14 = sshll.u32 %s12888_s21, 4  ;;  %s12809_s14 = int_to_ptr.vmem [resolvable:$false] %s12808_s14 }
 0x795   : > { %v16581_v9 = vadd.f32 %v10901_v44, %v10900_v58  ;;  %v10903_v57 = vpop.f32.mrb[66].mxu0  ;;  %v17701_v44 = vld [vmem:[#allocation75_spill] sm:$0xff]  ;;  %s12810_s26 = scalar_lea.vmem %s12809_s14, 8192  ;;  %p12811_p10 = scmp.lt.s32.totalorder %s17124_s23, %s12809_s14 }
 0x796   : > { %17697 = vst [vmem:[#allocation22_spill] sm:$0xff] %v16579_v32  ;;  %v10904_v5 = vpop.f32.mrb[67].mxu0  ;;  %v17706_v32 = vld [vmem:[#allocation77_spill] sm:$0xff]  ;;  %p12812_p13 = scmp.lt.s32.totalorder %s12810_s26, %s12804_s19 }
 0x797   : > { %v16583_v34 = vadd.f32 %v10904_v5, %v10903_v57  ;;  %v9316_v5 = vadd.f32 %v16488_v45, %v16596_v27  ;;  %v9324_v45 = vadd.f32 %v16504_v63, %v16596_v27 }
 0x798   : > { %9708 = vmatmul.mubr.bf16.gmra.mrb[172].mxu0 %v17698_v14  ;;  %p12813_p3 = por %p12812_p13, %p12811_p10 }
 0x799   : > { %9715 = vmatprep.mubr.bf16.mxu0 %v17699_v60 }
 0x79a   : > { %p12814_p7 = pnand %p12813_p3, %p12807_p8 }
 0x79b   : > { %v10906_v1 = vpop.f32.mrb[68].mxu0 }
 0x79c   : > { %v10907_v35 = vpop.f32.mrb[69].mxu0 }
 0x79d   : > { %v16587_v49 = vadd.f32 %v10907_v35, %v10906_v1  ;;  %v10909_v62 = vpop.f32.mrb[70].mxu0 }
 0x79e   : > { %v10910_v0 = vpop.f32.mrb[71].mxu0 }
 0x79f   : > { %v16589_v46 = vadd.f32 %v10910_v0, %v10909_v62  ;;  %v9319_v0 = vadd.f32 %v16490_v61, %v16596_v27 }
 0x7a0   : > { %9716 = vmatmul.mubr.bf16.gmra.mrb[176].mxu0 %v17700_v28  ;;  %v17704_v28 = vld [vmem:[#allocation71_spill] sm:$0xff] }
 0x7a1   : > { %9723 = vmatprep.mubr.bf16.mxu0 %v17701_v44 }
 0x7a3   : > { %v10970_v58 = vpop.f32.mrb[72].mxu0 }
 0x7a4   : > { %v10971_v57 = vpop.f32.mrb[73].mxu0 }
 0x7a5   : > { %v10972_v35 = vadd.f32 %v10971_v57, %v10970_v58  ;;  %v10973_v14 = vpop.f32.mrb[74].mxu0 }
 0x7a6   : > { %v10974_v60 = vpop.f32.mrb[75].mxu0 }
 0x7a7   : > { %v16600_v1 = vadd.f32 %v10972_v35, %v9316_v5  ;;  %v10975_v62 = vadd.f32 %v10974_v60, %v10973_v14  ;;  %v9327_v35 = vadd.f32 %v16506_v56, %v16596_v27  ;;  %v17707_v60 = vld [vmem:[#allocation74_spill] sm:$0xff] }
 0x7a8   : > { %9724 = vmatmul.mubr.bf16.gmra.mrb[180].mxu0 %v17704_v28 }
 0x7a9   : > { %17703 = vst [vmem:[#allocation24_spill] sm:$0xff] %v16600_v1  ;;  %v16605_v44 = vadd.f32 %v10975_v62, %v9319_v0  ;;  %9731 = vmatprep.mubr.bf16.mxu0 %v17706_v32  ;;  %v7834_v0 = vmul.bf16 %v7817_v13, %v17672_v41  ;;  %v17708_v62 = vld [vmem:[#allocation78_spill] sm:$0xff] }
 0x7ab   : > { %17705 = vst [vmem:[#allocation35_spill] sm:$0xff] %v16605_v44  ;;  %v10976_v10 = vpop.f32.mrb[76].mxu0  ;;  %v9332_v44 = vadd.f32 %v16522_v20, %v16596_v27 }
 0x7ac   : > { %v10977_v31 = vpop.f32.mrb[77].mxu0 }
 0x7ad   : > { %v10978_v58 = vadd.f32 %v10977_v31, %v10976_v10  ;;  %v10979_v57 = vpop.f32.mrb[78].mxu0  ;;  %v7979_v31 = vshrl.u32 %v7834_v0, 16  ;;  %v7982_v10 = vshll.u32 %v7834_v0, 16 }
 0x7ae   : > { %v10980_v5 = vpop.f32.mrb[79].mxu0 }
 0x7af   : > { %v16612_v61 = vadd.f32 %v10978_v58, %v9324_v45  ;;  %v10981_v14 = vadd.f32 %v10980_v5, %v10979_v57  ;;  %v9335_v58 = vadd.f32 %v16525_v59, %v16596_v27  ;;  %v17709_v5 = vld [vmem:[#allocation76_spill] sm:$0xff] }
 0x7b0   : > { %9732 = vmatmul.mubr.bf16.gmra.mrb[184].mxu0 %v17707_v60 }
 0x7b1   : > { %v16616_v32 = vadd.f32 %v10981_v14, %v9327_v35  ;;  %9739 = vmatprep.mubr.bf16.mxu0 %v17708_v62  ;;  %v7981_v35 = vrot.slane %v7979_v31, 4  ;;  %v7984_v14 = vrot.slane %v7982_v10, 5  ;;  %v8019_v62 = vld [vmem:[#allocation4 + $0x10] sm:$0xf8]  ;;  %v9343_v31 = vadd.f32 %v16540_v54, %v16596_v27 }
 0x7b3   : > { %v10982_v28 = vpop.f32.mrb[80].mxu0 }
 0x7b4   : > { %v10983_v63 = vpop.f32.mrb[81].mxu0 }
 0x7b5   : > { %v10984_v1 = vadd.f32 %v10983_v63, %v10982_v28  ;;  %v10985_v56 = vpop.f32.mrb[82].mxu0  ;;  %v7985_v28 = vor.u32 %v7984_v14, %v7981_v35  ;;  %v9340_v63 = vadd.f32 %v16538_v40, %v16596_v27  ;;  %v8237_v40 = vld [vmem:[#allocation4 + $0x10] sm:$0xf0] }
 0x7b6   : > { %v10986_v45 = vpop.f32.mrb[83].mxu0 }
 0x7b7   : > { %v16623_v57 = vadd.f32 %v10984_v1, %v9332_v44  ;;  %v10987_v13 = vadd.f32 %v10986_v45, %v10985_v56  ;;  %v17711_v44 = vld [vmem:[#allocation31_spill] sm:$0xff] }
 0x7b8   : > { %9740 = vmatmul.mubr.bf16.gmra.mrb[188].mxu0 %v17709_v5  ;;  %v8036_v56 = vmul.bf16 %v8019_v62, %v17711_v44 }
 0x7b9   : > { %v16626_v60 = vadd.f32 %v10987_v13, %v9335_v58  ;;  %9747 = vmatprep.mubr.bf16.mxu0 %v16320_v25  ;;  %v7718_v58 = vld [vmem:[#allocation4 + $0x88] sm:$0xf]  ;;  %v17712_v25 = vld [vmem:[#allocation67_spill] sm:$0xff] }
 0x7ba   : > { %v17713_v13 = vld [vmem:[#allocation79_spill] sm:$0xff]  ;;  %v7767_v14 = vrot.slane %v7718_v58, 4  ;;  %v8057_v62 = vshll.u32 %v8036_v56, 16 }
 0x7bb   : > { %17710 = vst [vmem:[#allocation59_spill] sm:$0xff] %v16626_v60  ;;  %v10988_v0 = vpop.f32.mrb[84].mxu0  ;;  %v7986_v5 = vsel %vm2034_vm6, %v17713_v13, %v7985_v28  ;;  %v8271_v60 = vrot.slane %v8237_v40, 4 }
 0x7bc   : > { %v10989_v20 = vpop.f32.mrb[85].mxu0 }
 0x7bd   : > { %v10990_v41 = vadd.f32 %v10989_v20, %v10988_v0  ;;  %v10991_v59 = vpop.f32.mrb[86].mxu0  ;;  %v8054_v0 = vshrl.u32 %v8036_v56, 16  ;;  %v8059_v56 = vrot.slane %v8057_v62, 4  ;;  %v8273_v13 = vsel %vm1487_vm4, %v8271_v60, %v16481_v43 }
 0x7be   : > { %v10992_v1 = vpop.f32.mrb[87].mxu0  ;;  %v9359_v62 = vadd.f32 %v16563_v55, %v16596_v27  ;;  %v9364_v55 = vadd.f32 %v16571_v3, %v16596_v27  ;;  %v12403_v3 = vld [vmem:[#allocation9 + $0x220] sm:$0xff]  }
 0x7bf   : > { %v16634_v10 = vadd.f32 %v10990_v41, %v9340_v63  ;;  %v10993_v45 = vadd.f32 %v10992_v1, %v10991_v59  ;;  %v9348_v41 = vadd.f32 %v16551_v53, %v16596_v27  ;;  %v17714_v1 = vrot.slane %v16248_v50, 4 }
 0x7c0   : > { %9748 = vmatmul.mubr.bf16.gmra.mrb[192].mxu0 %v17712_v25 }
 0x7c1   : > { %v16639_v35 = vadd.f32 %v10993_v45, %v9343_v31  ;;  %9755 = vmatprep.mubr.bf16.mxu0 %v7986_v5  ;;  %v7768_v28 = vsel %vm1487_vm4, %v17714_v1, %v7767_v14  ;;  %v8056_v31 = vrot.slane %v8054_v0, 3  ;;  %v9351_v45 = vadd.f32 %v16553_v17, %v16596_v27 }
 0x7c2   : > { %v9356_v14 = vadd.f32 %v16561_v2, %v16596_v27  ;;  %v12401_v2 = vld [vmem:[#allocation9 + $0x210] sm:$0xff]  }
 0x7c3   : > { %v10994_v20 = vpop.f32.mrb[88].mxu0  ;;  %v8060_v40 = vor.u32 %v8059_v56, %v8056_v31 }
 0x7c4   : > { %v10995_v44 = vpop.f32.mrb[89].mxu0 }
 0x7c5   : > { %v10996_v54 = vadd.f32 %v10995_v44, %v10994_v20  ;;  %v10997_v63 = vpop.f32.mrb[90].mxu0  ;;  %v12400_v44 = vld [vmem:[#allocation9 + $0x208] sm:$0xff]   ;;  %v8069_v43 = vsel %vm2492_vm5, %v8060_v40, %v16324_v7  ;;  %v12402_v7 = vld [vmem:[#allocation9 + $0x218] sm:$0xff]  }
 0x7c6   : > { %v10998_v59 = vpop.f32.mrb[91].mxu0 }
 0x7c7   : > { %v16648_v58 = vadd.f32 %v10996_v54, %v9348_v41  ;;  %v10999_v25 = vadd.f32 %v10998_v59, %v10997_v63 }
 0x7c8   : > { %9756 = vmatmul.mubr.bf16.gmra.mrb[196].mxu0 %v7768_v28 }
 0x7c9   : > { %v16652_v53 = vadd.f32 %v10999_v25, %v9351_v45  ;;  %9796 = vmatprep.mubr.bf16.mxu0 %v8273_v13  ;;  %v9367_v45 = vadd.f32 %v16573_v24, %v16596_v27 }
 0x7cb   : > { %v11000_v5 = vpop.f32.mrb[92].mxu0 }
 0x7cc   : > { %v11001_v50 = vpop.f32.mrb[93].mxu0 }
 0x7cd   : > { %v11002_v0 = vadd.f32 %v11001_v50, %v11000_v5  ;;  %v11003_v20 = vpop.f32.mrb[94].mxu0  ;;  %v9372_v5 = vadd.f32 %v16581_v9, %v16596_v27 }
 0x7ce   : > { %v11004_v17 = vpop.f32.mrb[95].mxu0 }
 0x7cf   : > { %v16658_v41 = vadd.f32 %v11002_v0, %v9356_v14  ;;  %v11005_v54 = vadd.f32 %v11004_v17, %v11003_v20  ;;  %v17715_v14 = vld [vmem:[#allocation25_spill] sm:$0xff] }
 0x7d0   : > { %9797 = vmatmul.mubr.bf16.vlgmr.msra.gmra.mrb[200].mxu0 %v8069_v43  ;;  %v8041_v0 = vmul.bf16 %v16371_v12, %v17715_v14 }
 0x7d1   : > { %v16662_v60 = vadd.f32 %v11005_v54, %v9359_v62  ;;  %11767 = vmatpush3.bf16.msra.mxu0 %v16513_v36  ;;  %9804 = vmatprep.mubr.bf16.mxu0 %v16495_v15  ;;  %v12405_v62 = vld [vmem:[#allocation9 + $0x230] sm:$0xff]  }
 0x7d2   : > { %11768 = vmatprep.subr.bf16.mxu0 %v12400_v44  ;;  %v8098_v9 = vshrl.u32 %v8041_v0, 16  ;;  %v8101_v43 = vshll.u32 %v8041_v0, 16 }
 0x7d3   : > { %v11006_v63 = vpop.f32.mrb[96].mxu0 }
 0x7d4   : > { %v11007_v59 = vpop.f32.mrb[97].mxu0 }
 0x7d5   : > { %v11008_v1 = vadd.f32 %v11007_v59, %v11006_v63  ;;  %v11009_v28 = vpop.f32.mrb[98].mxu0  ;;  %11769 = vmatpush3.bf16.msra.mxu0 %v12400_v44  ;;  %v8280_v63 = vrot.slane %v16371_v12, 4  ;;  %v8103_v12 = vrot.slane %v8101_v43, 4 }
 0x7d6   : > { %v11010_v31 = vpop.f32.mrb[99].mxu0  ;;  %11770 = vmatprep.subr.bf16.mxu0 %v12401_v2 }
 0x7d7   : > { %v16670_v25 = vadd.f32 %v11008_v1, %v9364_v55  ;;  %v11011_v36 = vadd.f32 %v11010_v31, %v11009_v28  ;;  %v8100_v1 = vrot.slane %v8098_v9, 3  ;;  %v17716_v28 = vld [vmem:[#allocation26_spill] sm:$0xff]  ;;  %v12406_v31 = vld [vmem:[#allocation9 + $0x238] sm:$0xff]   ;;  %v9391_v9 = vadd.f32 %v16502_v22, %v16596_v27 }
 0x7d8   : > { %9805 = vmatmul.mubr.bf16.gmra.mrb[204].mxu0 %v16334_v38  ;;  %v12404_v38 = vld [vmem:[#allocation9 + $0x228] sm:$0xff]   ;;  %v9396_v22 = vadd.f32 %v16515_v21, %v16596_v27 }
 0x7d9   : > { %v16673_v15 = vadd.f32 %v11011_v36, %v9367_v45  ;;  %9812 = vmatprep.mubr.bf16.mxu0 %v16509_v33  ;;  %11771 = vmatpush3.bf16.msra.mxu0 %v12401_v2  ;;  %v9375_v33 = vadd.f32 %v16583_v34, %v16596_v27  ;;  %v9380_v34 = vadd.f32 %v16587_v49, %v16596_v27 }
 0x7da   : > { %11772 = vmatprep.subr.bf16.mxu0 %v12402_v7  ;;  %v8281_v49 = vsel %vm1487_vm4, %v16518_v26, %v8280_v63 }
 0x7db   : > { %v11012_v56 = vpop.f32.mrb[100].mxu0 }
 0x7dc   : > { %v11013_v13 = vpop.f32.mrb[101].mxu0 }
 0x7dd   : > { %v11014_v40 = vadd.f32 %v11013_v13, %v11012_v56  ;;  %v11015_v50 = vpop.f32.mrb[102].mxu0  ;;  %11773 = vmatpush3.bf16.msra.mxu0 %v12402_v7  ;;  %v9383_v7 = vadd.f32 %v16589_v46, %v16596_v27  ;;  %v8282_v46 = vrot.slane %v16377_v8, 4 }
 0x7de   : > { %v11016_v24 = vpop.f32.mrb[103].mxu0  ;;  %11774 = vmatprep.subr.bf16.mxu0 %v12403_v3 }
 0x7df   : > { %v16682_v20 = vadd.f32 %v11014_v40, %v9372_v5  ;;  %v11017_v17 = vadd.f32 %v11016_v24, %v11015_v50  ;;  %v8104_v40 = vor.u32 %v8103_v12, %v8100_v1  ;;  %v9388_v24 = vadd.f32 %v16499_v4, %v16596_v27 }
 0x7e0   : > { %9813 = vmatmul.mubr.bf16.gmra.mrb[208].mxu0 %v16338_v39  ;;  %v8283_v4 = vsel %vm1487_vm4, %v8280_v63, %v8282_v46  ;;  %v8284_v1 = vrot.slane %v16389_v37, 4  ;;  %v9399_v12 = vadd.f32 %v16520_v11, %v16596_v27  ;;  %v9404_v11 = vadd.f32 %v16534_v6, %v16596_v27 }
 0x7e1   : > { %v16685_v44 = vadd.f32 %v11017_v17, %v9375_v33  ;;  %9820 = vmatprep.mubr.bf16.mxu0 %v16529_v29  ;;  %11775 = vmatpush3.bf16.msra.mxu0 %v12403_v3  ;;  %v8042_v29 = vmul.bf16 %v16377_v8, %v17716_v28  ;;  %v17717_v33 = vld [vmem:[#allocation37_spill] sm:$0xff]  ;;  %v8105_v8 = vsel %vm2492_vm5, %v16340_v47, %v8104_v40 }
 0x7e2   : > { %11776 = vmatprep.subr.bf16.mxu0 %v12404_v38  ;;  %v8043_v17 = vmul.bf16 %v16389_v37, %v17717_v33  ;;  %v8285_v37 = vsel %vm1487_vm4, %v8282_v46, %v8284_v1  ;;  %v17719_v46 = vld [vmem:[#allocation39_spill] sm:$0xff] }
 0x7e3   : > { %v11018_v54 = vpop.f32.mrb[104].mxu0  ;;  %v8107_v56 = vshrl.u32 %v8042_v29, 16  ;;  %v8110_v13 = vshll.u32 %v8042_v29, 16 }
 0x7e4   : > { %v11019_v2 = vpop.f32.mrb[105].mxu0 }
 0x7e5   : > { %v11020_v59 = vadd.f32 %v11019_v2, %v11018_v54  ;;  %v11021_v55 = vpop.f32.mrb[106].mxu0  ;;  %11777 = vmatpush3.bf16.msra.mxu0 %v12404_v38  ;;  %v8109_v26 = vrot.slane %v8107_v56, 3  ;;  %v8112_v38 = vrot.slane %v8110_v13, 4  ;;  %v8116_v2 = vshrl.u32 %v8043_v17, 16 }
 0x7e6   : > { %v11022_v39 = vpop.f32.mrb[107].mxu0  ;;  %11778 = vmatprep.subr.bf16.mxu0 %v12405_v62 }
 0x7e7   : > { %v16695_v45 = vadd.f32 %v11020_v59, %v9380_v34  ;;  %v11023_v36 = vadd.f32 %v11022_v39, %v11021_v55  ;;  %v8119_v34 = vshll.u32 %v8043_v17, 16  ;;  %v8113_v55 = vor.u32 %v8112_v38, %v8109_v26 }
 0x7e8   : > { %9821 = vmatmul.mubr.bf16.gmra.mrb[212].mxu0 %v16344_v18  ;;  %v8118_v47 = vrot.slane %v8116_v2, 3 }
 0x7e9   : > { %v16700_v3 = vadd.f32 %v11023_v36, %v9383_v7  ;;  %9828 = vmatprep.mubr.bf16.mxu0 %v8281_v49  ;;  %11779 = vmatpush3.bf16.msra.mxu0 %v12405_v62  ;;  %v8121_v7 = vrot.slane %v8119_v34, 4  ;;  %v17718_v36 = vld [vmem:[#allocation38_spill] sm:$0xff]  ;;  %v8114_v13 = vsel %vm2492_vm5, %v8104_v40, %v8113_v55 }
 0x7ea   : > { %11780 = vmatprep.subr.bf16.mxu0 %v12406_v31  ;;  %v8044_v63 = vmul.bf16 %v16399_v16, %v17718_v36 }
 0x7eb   : > { %v11024_v5 = vpop.f32.mrb[108].mxu0 }
 0x7ec   : > { %v11025_v50 = vpop.f32.mrb[109].mxu0 }
 0x7ed   : > { %v11026_v14 = vadd.f32 %v11025_v50, %v11024_v5  ;;  %v11027_v18 = vpop.f32.mrb[110].mxu0  ;;  %11781 = vmatpush3.bf16.msra.mxu0 %v12406_v31  ;;  %v8122_v5 = vor.u32 %v8121_v7, %v8118_v47  ;;  %v8125_v50 = vshrl.u32 %v8044_v63, 16 }
 0x7ee   : > { %v11028_v0 = vpop.f32.mrb[111].mxu0 }
 0x7ef   : > { %v16709_v62 = vadd.f32 %v11026_v14, %v9388_v24  ;;  %v11029_v54 = vadd.f32 %v11028_v0, %v11027_v18  ;;  %v8128_v14 = vshll.u32 %v8044_v63, 16  ;;  %v8286_v0 = vrot.slane %v16399_v16, 4  ;;  %v12740_v63 = vld [vmem:[#allocation4 + $0x60] sm:$0xff] }
 0x7f0   : > { %9829 = vmatmul.mubr.bf16.gmra.mrb[216].mxu0 %v8105_v8  ;;  %v8123_v40 = vsel %vm2492_vm5, %v8113_v55, %v8122_v5  ;;  %v8127_v17 = vrot.slane %v8125_v50, 3 }
 0x7f1   : > { %v16714_v43 = vadd.f32 %v11029_v54, %v9391_v9  ;;  %9836 = vmatprep.mubr.bf16.mxu0 %v8283_v4  ;;  %v8045_v9 = vmul.bf16 %v16406_v48, %v17719_v46  ;;  %v9407_v54 = vadd.f32 %v16536_v23, %v16596_v27  ;;  %v8130_v2 = vrot.slane %v8128_v14, 4 }
 0x7f2   : > { %v8287_v16 = vsel %vm1487_vm4, %v8284_v1, %v8286_v0  ;;  %v9412_v23 = vadd.f32 %v16547_v30, %v16596_v27  ;;  %v17720_v1 = vld [vmem:[#allocation40_spill] sm:$0xff] }
 0x7f3   : > { %v11030_v59 = vpop.f32.mrb[112].mxu0  ;;  %v8134_v34 = vshrl.u32 %v8045_v9, 16 }
 0x7f4   : > { %v11031_v39 = vpop.f32.mrb[113].mxu0 }
 0x7f5   : > { %v11032_v28 = vadd.f32 %v11031_v39, %v11030_v59  ;;  %v11033_v29 = vpop.f32.mrb[114].mxu0  ;;  %v8137_v59 = vshll.u32 %v8045_v9, 16  ;;  %v8131_v39 = vor.u32 %v8130_v2, %v8127_v17  ;;  %v8136_v7 = vrot.slane %v8134_v34, 3  ;;  %v12741_v9 = vld [vmem:[#allocation4 + $0x68] sm:$0xff] }
 0x7f6   : > { %v11034_v31 = vpop.f32.mrb[115].mxu0 }
 0x7f7   : > { %v16723_v49 = vadd.f32 %v11032_v28, %v9396_v22  ;;  %v11035_v56 = vadd.f32 %v11034_v31, %v11033_v29  ;;  %v8288_v28 = vrot.slane %v16406_v48, 4  ;;  %v8139_v36 = vrot.slane %v8137_v59, 4 }
 0x7f8   : > { %9837 = vmatmul.mubr.bf16.gmra.mrb[220].mxu0 %v8114_v13  ;;  %v8132_v50 = vsel %vm2492_vm5, %v8122_v5, %v8131_v39 }
 0x7f9   : > { %v16727_v21 = vadd.f32 %v11035_v56, %v9399_v12  ;;  %9844 = vmatprep.mubr.bf16.mxu0 %v8285_v37  ;;  %v8046_v12 = vmul.bf16 %v12740_v63, %v17720_v1  ;;  %v9415_v56 = vadd.f32 %v16549_v19, %v16596_v27  ;;  %v8289_v48 = vsel %vm1487_vm4, %v8286_v0, %v8288_v28 }
 0x7fa   : > { %v9420_v19 = vadd.f32 %v16557_v51, %v16596_v27 }
 0x7fb   : > { %v11036_v24 = vpop.f32.mrb[116].mxu0  ;;  %v8146_v14 = vshll.u32 %v8046_v12, 16 }
 0x7fc   : > { %v11037_v18 = vpop.f32.mrb[117].mxu0 }
 0x7fd   : > { %v11038_v26 = vadd.f32 %v11037_v18, %v11036_v24  ;;  %v11039_v38 = vpop.f32.mrb[118].mxu0  ;;  %v8143_v24 = vshrl.u32 %v8046_v12, 16  ;;  %v8148_v5 = vrot.slane %v8146_v14, 4  ;;  %v12742_v12 = vld [vmem:[#allocation4 + $0x70] sm:$0xff] }
 0x7fe   : > { %v11040_v33 = vpop.f32.mrb[119].mxu0 }
 0x7ff   : > { %v16737_v8 = vadd.f32 %v11038_v26, %v9404_v11  ;;  %v11041_v4 = vadd.f32 %v11040_v33, %v11039_v38  ;;  %v8140_v11 = vor.u32 %v8139_v36, %v8136_v7  ;;  %v8290_v38 = vrot.slane %v12740_v63, 4 }
 0x800   : > { %9845 = vmatmul.mubr.bf16.gmra.mrb[224].mxu0 %v8123_v40  ;;  %v8145_v46 = vrot.slane %v8143_v24, 3 }
 0x801   : > { %v16740_v6 = vadd.f32 %v11041_v4, %v9407_v54  ;;  %9852 = vmatprep.mubr.bf16.mxu0 %v8287_v16  ;;  %v17721_v54 = vld [vmem:[#allocation41_spill] sm:$0xff]  ;;  %v9423_v4 = vadd.f32 %v16559_v52, %v16596_v27  ;;  %v8141_v34 = vsel %vm2492_vm5, %v8131_v39, %v8140_v11  ;;  %v8291_v59 = vsel %vm1487_vm4, %v8288_v28, %v8290_v38 }
 0x802   : > { %v8047_v0 = vmul.bf16 %v12741_v9, %v17721_v54  ;;  %v9428_v52 = vadd.f32 %v16567_v42, %v16596_v27 }
 0x803   : > { %v11042_v55 = vpop.f32.mrb[120].mxu0 }
 0x804   : > { %v11043_v22 = vpop.f32.mrb[121].mxu0 }
 0x805   : > { %v11044_v29 = vadd.f32 %v11043_v22, %v11042_v55  ;;  %v11045_v31 = vpop.f32.mrb[122].mxu0  ;;  %v8152_v55 = vshrl.u32 %v8047_v0, 16  ;;  %v8155_v22 = vshll.u32 %v8047_v0, 16 }
 0x806   : > { %v11046_v47 = vpop.f32.mrb[123].mxu0 }
 0x807   : > { %v16748_v13 = vadd.f32 %v11044_v29, %v9412_v23  ;;  %v11047_v37 = vadd.f32 %v11046_v47, %v11045_v31  ;;  %v8149_v29 = vor.u32 %v8148_v5, %v8145_v46  ;;  %v8292_v47 = vrot.slane %v12741_v9, 4  ;;  %v17724_v5 = vld [vmem:[#allocation23_spill] sm:$0xff] }
 0x808   : > { %9853 = vmatmul.mubr.bf16.gmra.mrb[228].mxu0 %v8132_v50  ;;  %v8154_v1 = vrot.slane %v8152_v55, 3  ;;  %v8157_v39 = vrot.slane %v8155_v22, 4  ;;  %v8294_v46 = vrot.slane %v12742_v12, 4  ;;  %v9436_v9 = vadd.f32 %v17724_v5, %v16596_v27  ;;  %v17726_v55 = vld [vmem:[#allocation22_spill] sm:$0xff] }
 0x809   : > { %v16752_v30 = vadd.f32 %v11047_v37, %v9415_v56  ;;  %9860 = vmatprep.mubr.bf16.mxu0 %v8289_v48  ;;  %v17722_v56 = vld [vmem:[#allocation42_spill] sm:$0xff]  ;;  %v8150_v14 = vsel %vm2492_vm5, %v8140_v11, %v8149_v29  ;;  %v9439_v22 = vadd.f32 %v17726_v55, %v16596_v27 }
 0x80a   : > { %v8048_v28 = vmul.bf16 %v12742_v12, %v17722_v56  ;;  %v17723_v37 = vld [vmem:[#allocation18_spill] sm:$0xff] }
 0x80b   : > { %v11048_v18 = vpop.f32.mrb[124].mxu0  ;;  %v9431_v50 = vadd.f32 %v17723_v37, %v16596_v27 }
 0x80c   : > { %v11049_v26 = vpop.f32.mrb[125].mxu0 }
 0x80d   : > { %v11050_v33 = vadd.f32 %v11049_v26, %v11048_v18  ;;  %v11051_v40 = vpop.f32.mrb[126].mxu0  ;;  %v8293_v18 = vsel %vm1487_vm4, %v8290_v38, %v8292_v47  ;;  %v8158_v26 = vor.u32 %v8157_v39, %v8154_v1  ;;  %v17725_v38 = vld [vmem:[#allocation43_spill] sm:$0xff] }
 0x80e   : > { %v11052_v17 = vpop.f32.mrb[127].mxu0 }
 0x80f   : > { %v16759_v2 = vadd.f32 %v11050_v33, %v9420_v19  ;;  %v11053_v16 = vadd.f32 %v11052_v17, %v11051_v40  ;;  %v8161_v19 = vshrl.u32 %v8048_v28, 16  ;;  %v8164_v40 = vshll.u32 %v8048_v28, 16 }
 0x810   : > { %9861 = vmatmul.mubr.bf16.gmra.mrb[232].mxu0 %v8141_v34  ;;  %v8159_v11 = vsel %vm2492_vm5, %v8149_v29, %v8158_v26  ;;  %v12743_v34 = vld [vmem:[#allocation4 + $0x78] sm:$0xff] }
 0x811   : > { %v16763_v51 = vadd.f32 %v11053_v16, %v9423_v4  ;;  %9868 = vmatprep.mubr.bf16.mxu0 %v8291_v59  ;;  %v8163_v16 = vrot.slane %v8161_v19, 3  ;;  %v8049_v59 = vmul.bf16 %v12743_v34, %v17725_v38  ;;  %v8296_v56 = vrot.slane %v12743_v34, 4  ;;  %v17728_v19 = vld [vmem:[#allocation24_spill] sm:$0xff] }
 0x813   : > { %v11054_v23 = vpop.f32.mrb[128].mxu0  ;;  %v8173_v39 = vshll.u32 %v8049_v59, 16  ;;  %v8297_v5 = vsel %vm1487_vm4, %v8294_v46, %v8296_v56 }
 0x814   : > { %v11055_v31 = vpop.f32.mrb[129].mxu0 }
 0x815   : > { %v11056_v7 = vadd.f32 %v11055_v31, %v11054_v23  ;;  %v11057_v36 = vpop.f32.mrb[130].mxu0 }
 0x816   : > { %v11058_v63 = vpop.f32.mrb[131].mxu0 }
 0x817   : > { %v16770_v48 = vadd.f32 %v11056_v7, %v9428_v52  ;;  %v11059_v24 = vadd.f32 %v11058_v63, %v11057_v36  ;;  %v8166_v52 = vrot.slane %v8164_v40, 4  ;;  %v8295_v7 = vsel %vm1487_vm4, %v8292_v47, %v8294_v46 }
 0x818   : > { %9869 = vmatmul.mubr.bf16.gmra.mrb[236].mxu0 %v8150_v14  ;;  %v8170_v63 = vshrl.u32 %v8049_v59, 16  ;;  %v17727_v14 = vld [vmem:[#allocation44_spill] sm:$0xff] }
 0x819   : > { %v16774_v42 = vadd.f32 %v11059_v24, %v9431_v50  ;;  %9876 = vmatprep.mubr.bf16.mxu0 %v8293_v18  ;;  %v8167_v29 = vor.u32 %v8166_v52, %v8163_v16  ;;  %v12744_v24 = vld [vmem:[#allocation4 + $0x80] sm:$0xff] }
 0x81a   : > { %v8172_v27 = vrot.slane %v8170_v63, 3  ;;  %v8050_v18 = vmul.bf16 %v12744_v24, %v17727_v14  ;;  %v8298_v38 = vrot.slane %v12744_v24, 4  ;;  %v17730_v52 = vld [vmem:[#allocation47_spill] sm:$0xff]  ;;  %v8035_v14 = vld [vmem:[#allocation4 + $0x90] sm:$0xf] }
 0x81b   : > { %v11060_v33 = vpop.f32.mrb[132].mxu0  ;;  %v8168_v40 = vsel %vm2492_vm5, %v8158_v26, %v8167_v29 }
 0x81c   : > { %v11061_v17 = vpop.f32.mrb[133].mxu0  ;;  %v8182_v16 = vshll.u32 %v8050_v18, 16 }
 0x81d   : > { %v11062_v54 = vadd.f32 %v11061_v17, %v11060_v33  ;;  %v11063_v0 = vpop.f32.mrb[134].mxu0  ;;  %v8175_v17 = vrot.slane %v8173_v39, 4 }
 0x81e   : > { %v11064_v4 = vpop.f32.mrb[135].mxu0  ;;  %v8184_v39 = vrot.slane %v8182_v16, 4 }
 0x81f   : > { %v16782_v23 = vadd.f32 %v11062_v54, %v9436_v9  ;;  %v11065_v31 = vadd.f32 %v11064_v4, %v11063_v0  ;;  %v17729_v9 = vld [vmem:[#allocation35_spill] sm:$0xff]  ;;  %v8179_v0 = vshrl.u32 %v8050_v18, 16 }
 0x820   : > { %9877 = vmatmul.mubr.bf16.gmra.mrb[240].mxu0 %v8159_v11  ;;  %v8176_v11 = vor.u32 %v8175_v17, %v8172_v27  ;;  %v8337_v17 = vld [vmem:[#allocation4 + $0x18] sm:$0xff] }
 0x821   : > { %v16785_v36 = vadd.f32 %v11065_v31, %v9439_v22  ;;  %9884 = vmatprep.mubr.bf16.mxu0 %v8295_v7  ;;  %v12745_v31 = vld [vmem:[#allocation4 + $0x88] sm:$0xff]  ;;  %v8181_v7 = vrot.slane %v8179_v0, 3 }
 0x822   : > { %v8051_v26 = vmul.bf16 %v12745_v31, %v17730_v52 }
 0x823   : > { %v11082_v1 = vpop.f32.mrb[136].mxu0  ;;  %v8185_v27 = vor.u32 %v8184_v39, %v8181_v7 }
 0x824   : > { %v11083_v12 = vpop.f32.mrb[137].mxu0  ;;  %v8191_v24 = vshll.u32 %v8051_v26, 16 }
 0x825   : > { %v11084_v28 = vadd.f32 %v11083_v12, %v11082_v1  ;;  %v11085_v37 = vpop.f32.mrb[138].mxu0  ;;  %v8177_v1 = vsel %vm2492_vm5, %v8167_v29, %v8176_v11  ;;  %v8299_v12 = vsel %vm1487_vm4, %v8296_v56, %v8298_v38 }
 0x826   : > { %v11086_v50 = vpop.f32.mrb[139].mxu0  ;;  %v8193_v16 = vrot.slane %v8191_v24, 4 }
 0x827   : > { %v16789_v33 = vadd.f32 %v11084_v28, %v17728_v19  ;;  %v11087_v47 = vadd.f32 %v11086_v50, %v11085_v37  ;;  %v8188_v37 = vshrl.u32 %v8051_v26, 16  ;;  %v8300_v19 = vrot.slane %v12745_v31, 4  ;;  %v17733_v31 = vld [vmem:[#allocation28_spill] sm:$0xff]  ;;  %v17734_v26 = vld [vmem:[#allocation59_spill] sm:$0xff] }
 0x828   : > { %9885 = vmatmul.mubr.bf16.gmra.mrb[244].mxu0 %v8168_v40  ;;  %v8336_v40 = vld [vmem:[#allocation4 + $0x10] sm:$0xf0]  ;;  %v8354_v52 = vmul.bf16 %v8337_v17, %v17733_v31 }
 0x829   : > { %v16794_v54 = vadd.f32 %v11087_v47, %v17729_v9  ;;  %9892 = vmatprep.mubr.bf16.mxu0 %v8297_v5  ;;  %v8190_v5 = vrot.slane %v8188_v37, 3  ;;  %v17731_v9 = vld [vmem:[#allocation45_spill] sm:$0xff]  ;;  %v8338_v37 = vld [vmem:[#allocation4 + $0x20] sm:$0xff] }
 0x82a   : > { %v8052_v0 = vmul.bf16 %v8035_v14, %v17731_v9  ;;  %v8379_v14 = vshrl.u32 %v8354_v52, 16 }
 0x82b   : > { %v11088_v4 = vpop.f32.mrb[140].mxu0  ;;  %v8194_v39 = vor.u32 %v8193_v16, %v8190_v5 }
 0x82c   : > { %v11089_v34 = vpop.f32.mrb[141].mxu0  ;;  %v8381_v31 = vrot.slane %v8379_v14, 4  ;;  %v17737_v14 = vld [vmem:[#allocation33_spill] sm:$0xff] }
 0x82d   : > { %v11090_v59 = vadd.f32 %v11089_v34, %v11088_v4  ;;  %v11091_v55 = vpop.f32.mrb[142].mxu0  ;;  %v8186_v4 = vsel %vm2492_vm5, %v8176_v11, %v8185_v27  ;;  %v8253_v34 = vld [vmem:[#allocation4 + $0x90] sm:$0xf] }
 0x82e   : > { %v11092_v22 = vpop.f32.mrb[143].mxu0 }
 0x82f   : > { %v16798_v63 = vadd.f32 %v11090_v59, %v16612_v61  ;;  %v11093_v46 = vadd.f32 %v11092_v22, %v11091_v55  ;;  %v8301_v59 = vsel %vm1487_vm4, %v8298_v38, %v8300_v19  ;;  %v17732_v55 = vld [vmem:[#allocation27_spill] sm:$0xff]  ;;  %v8339_v38 = vld [vmem:[#allocation4 + $0x28] sm:$0xff] }
 0x830   : > { %9893 = vmatmul.mubr.bf16.gmra.mrb[248].mxu0 %v8177_v1  ;;  %v8353_v22 = vmul.bf16 %v8336_v40, %v17732_v55  ;;  %v8197_v1 = vshrl.u32 %v8052_v0, 16 }
 0x831   : > { %v16803_v28 = vadd.f32 %v11093_v46, %v16616_v32  ;;  %9900 = vmatprep.mubr.bf16.mxu0 %v8299_v12  ;;  %v8302_v46 = vrot.slane %v8253_v34, 4  ;;  %v17736_v34 = vld [vmem:[#allocation34_spill] sm:$0xff] }
 0x832   : > { %v8374_v24 = vshll.u32 %v8353_v22, 16 }
 0x833   : > { %v11094_v50 = vpop.f32.mrb[144].mxu0  ;;  %v8303_v17 = vsel %vm1487_vm4, %v8300_v19, %v8302_v46 }
 0x834   : > { %v11095_v18 = vpop.f32.mrb[145].mxu0 }
 0x835   : > { %v11096_v61 = vadd.f32 %v11095_v18, %v11094_v50  ;;  %v11097_v47 = vpop.f32.mrb[146].mxu0  ;;  %v8371_v50 = vshrl.u32 %v8353_v22, 16  ;;  %v8382_v18 = vshll.u32 %v8354_v52, 16  ;;  %v8376_v22 = vrot.slane %v8374_v24, 5 }
 0x836   : > { %v11098_v29 = vpop.f32.mrb[147].mxu0 }
 0x837   : > { %v16807_v56 = vadd.f32 %v11096_v61, %v16623_v57  ;;  %v11099_v32 = vadd.f32 %v11098_v29, %v11097_v47  ;;  %v8200_v57 = vshll.u32 %v8052_v0, 16  ;;  %v8199_v29 = vrot.slane %v8197_v1, 3 }
 0x838   : > { %9901 = vmatmul.mubr.bf16.gmra.mrb[252].mxu0 %v8186_v4  ;;  %v8195_v0 = vsel %vm2492_vm5, %v8185_v27, %v8194_v39  ;;  %v8373_v55 = vrot.slane %v8371_v50, 4  ;;  %v8384_v52 = vrot.slane %v8382_v18, 5  ;;  %v8340_v27 = vld [vmem:[#allocation4 + $0x30] sm:$0xff] }
 0x839   : > { %v16814_v7 = vadd.f32 %v11099_v32, %v17734_v26  ;;  %9908 = vmatprep.mubr.bf16.mxu0 %v8301_v59  ;;  %v8202_v9 = vrot.slane %v8200_v57, 4  ;;  %v17735_v32 = vld [vmem:[#allocation46_spill] sm:$0xff]  ;;  %v8356_v59 = vmul.bf16 %v8339_v38, %v17736_v34  ;;  %v8357_v18 = vmul.bf16 %v8340_v27, %v17737_v14  ;;  %v17738_v14 = vld [vmem:[#allocation80_spill] sm:$0xff] }
 0x83a   : > { %v8355_v4 = vmul.bf16 %v8338_v37, %v17735_v32  ;;  %v8385_v37 = vor.u32 %v8384_v52, %v8381_v31 }
 0x83b   : > { %v11100_v12 = vpop.f32.mrb[148].mxu0  ;;  %v8203_v46 = vor.u32 %v8202_v9, %v8199_v29 }
 0x83c   : > { %v11101_v11 = vpop.f32.mrb[149].mxu0  ;;  %v8388_v1 = vshrl.u32 %v8355_v4, 16  ;;  %v8391_v57 = vshll.u32 %v8355_v4, 16 }
 0x83d   : > { %v11102_v61 = vadd.f32 %v11101_v11, %v11100_v12  ;;  %v11103_v47 = vpop.f32.mrb[150].mxu0  ;;  %v8397_v11 = vshrl.u32 %v8356_v59, 16  ;;  %v8204_v24 = vsel %vm2492_vm5, %v8194_v39, %v8203_v46 }
 0x83e   : > { %v11104_v40 = vpop.f32.mrb[151].mxu0  ;;  %v8393_v29 = vrot.slane %v8391_v57, 5 }
 0x83f   : > { %v16820_v5 = vadd.f32 %v11102_v61, %v16634_v10  ;;  %v11105_v16 = vadd.f32 %v11104_v40, %v11103_v47  ;;  %v8377_v10 = vor.u32 %v8376_v22, %v8373_v55  ;;  %v8400_v61 = vshll.u32 %v8356_v59, 16 }
 0x840   : > { %9909 = vmatmul.mubr.bf16.gmra.mrb[32].mxu0 %v8195_v0  ;;  %v8399_v32 = vrot.slane %v8397_v11, 4  ;;  %v8409_v59 = vshll.u32 %v8357_v18, 16 }
 0x841   : > { %v16824_v26 = vadd.f32 %v11105_v16, %v16639_v35  ;;  %9916 = vmatprep.mubr.bf16.mxu0 %v8303_v17  ;;  %v8390_v17 = vrot.slane %v8388_v1, 4  ;;  %v8386_v9 = vsel %vm2034_vm6, %v8377_v10, %v8385_v37  ;;  %v8402_v4 = vrot.slane %v8400_v61, 5 }
 0x842   : > { %v8406_v16 = vshrl.u32 %v8357_v18, 16  ;;  %v8411_v27 = vrot.slane %v8409_v59, 5 }
 0x843   : > { %v11106_v19 = vpop.f32.mrb[152].mxu0  ;;  %v8394_v39 = vor.u32 %v8393_v29, %v8390_v17  ;;  %v8403_v22 = vor.u32 %v8402_v4, %v8399_v32 }
 0x844   : > { %v11107_v12 = vpop.f32.mrb[153].mxu0 }
 0x845   : > { %v11108_v38 = vadd.f32 %v11107_v12, %v11106_v19  ;;  %v11109_v47 = vpop.f32.mrb[154].mxu0  ;;  %v8408_v19 = vrot.slane %v8406_v16, 4  ;;  %v8395_v57 = vsel %vm2034_vm6, %v8385_v37, %v8394_v39  ;;  %v17739_v16 = vld [vmem:[#allocation81_spill] sm:$0xff] }
 0x846   : > { %v11110_v50 = vpop.f32.mrb[155].mxu0 }
 0x847   : > { %v16829_v35 = vadd.f32 %v11108_v38, %v16648_v58  ;;  %v11111_v40 = vadd.f32 %v11110_v50, %v11109_v47  ;;  %v8412_v11 = vor.u32 %v8411_v27, %v8408_v19  ;;  %v17741_v19 = vld [vmem:[#allocation83_spill] sm:$0xff] }
 0x848   : > { %9917 = vmatmul.mubr.bf16.gmra.mrb[36].mxu0 %v8204_v24 }
 0x849   : > { %v16833_v0 = vadd.f32 %v11111_v40, %v16652_v53  ;;  %11782 = vmatprep.mubr.bf16.mxu0 %v8386_v9  ;;  %v8404_v53 = vsel %vm2034_vm6, %v8394_v39, %v8403_v22  ;;  %v8413_v37 = vsel %vm2034_vm6, %v8403_v22, %v8412_v11  ;;  %v8422_v18 = vsel %vm2034_vm6, %v8412_v11, %v17738_v14  ;;  %v17740_v39 = vld [vmem:[#allocation82_spill] sm:$0xff] }
 0x84b   : > { %v11112_v34 = vpop.f32.mrb[156].mxu0 }
 0x84c   : > { %v11113_v55 = vpop.f32.mrb[157].mxu0 }
 0x84d   : > { %v11114_v58 = vadd.f32 %v11113_v55, %v11112_v34  ;;  %v11115_v31 = vpop.f32.mrb[158].mxu0 }
 0x84e   : > { %v11116_v52 = vpop.f32.mrb[159].mxu0 }
 0x84f   : > { %v16836_v46 = vadd.f32 %v11114_v58, %v16658_v41  ;;  %v11117_v1 = vadd.f32 %v11116_v52, %v11115_v31 }
 0x850   : > { %11783 = vmatmul.mubr.bf16.vlgmr.msra.gmra.mrb[0].mxu0 %v8395_v57 }
 0x851   : > { %v16841_v12 = vadd.f32 %v11117_v1, %v16662_v60  ;;  %11786 = vmatprep.mubr.bf16.mxu0 %v8404_v53  ;;  %v17742_v1 = vld [vmem:[#allocation84_spill] sm:$0xff] }
 0x853   : > { %v11118_v10 = vpop.f32.mrb[160].mxu0 }
 0x854   : > { %v11119_v61 = vpop.f32.mrb[161].mxu0 }
 0x855   : > { %v11120_v38 = vadd.f32 %v11119_v61, %v11118_v10  ;;  %v11121_v47 = vpop.f32.mrb[162].mxu0 }
 0x856   : > { %v11122_v50 = vpop.f32.mrb[163].mxu0 }
 0x857   : > { %v16844_v41 = vadd.f32 %v11120_v38, %v16670_v25  ;;  %v11123_v24 = vadd.f32 %v11122_v50, %v11121_v47  ;;  %v17743_v38 = vld [vmem:[#allocation85_spill] sm:$0xff]  ;;  %v17744_v47 = vld [vmem:[#allocation87_spill] sm:$0xff] }
 0x858   : > { %11787 = vmatmul.mubr.bf16.gmra.mrb[4].mxu0 %v8413_v37 }
 0x859   : > { %v16850_v60 = vadd.f32 %v11123_v24, %v16673_v15  ;;  %11790 = vmatprep.mubr.bf16.mxu0 %v8422_v18  ;;  %v8352_v18 = vld [vmem:[#allocation4 + $0x90] sm:$0x1f] }
 0x85b   : > { %v11124_v40 = vpop.f32.mrb[164].mxu0 }
 0x85c   : > { %v11125_v17 = vpop.f32.mrb[165].mxu0 }
 0x85d   : > { %v11126_v29 = vadd.f32 %v11125_v17, %v11124_v40  ;;  %v11127_v9 = vpop.f32.mrb[166].mxu0 }
 0x85e   : > { %v11128_v32 = vpop.f32.mrb[167].mxu0 }
 0x85f   : > { %v16853_v4 = vadd.f32 %v11126_v29, %v16682_v20  ;;  %v11129_v25 = vadd.f32 %v11128_v32, %v11127_v9  ;;  %v17746_v9 = vld [vmem:[#allocation86_spill] sm:$0xff] }
 0x860   : > { %11791 = vmatmul.mubr.bf16.gmra.mrb[8].mxu0 %v17739_v16 }
 0x861   : > { %v16857_v34 = vadd.f32 %v11129_v25, %v16685_v44  ;;  %11794 = vmatprep.mubr.bf16.mxu0 %v17740_v39 }
 0x863   : > { %v11130_v59 = vpop.f32.mrb[168].mxu0 }
 0x864   : > { %v11131_v15 = vpop.f32.mrb[169].mxu0 }
 0x865   : > { %v11132_v55 = vadd.f32 %v11131_v15, %v11130_v59  ;;  %v11133_v22 = vpop.f32.mrb[170].mxu0 }
 0x866   : > { %v11134_v58 = vpop.f32.mrb[171].mxu0 }
 0x867   : > { %v16861_v31 = vadd.f32 %v11132_v55, %v16695_v45  ;;  %v11135_v52 = vadd.f32 %v11134_v58, %v11133_v22 }
 0x868   : > { %11795 = vmatmul.mubr.bf16.gmra.mrb[12].mxu0 %v17741_v19  ;;  %v17749_v19 = vld [vmem:[#allocation50_spill] sm:$0xff] }
 0x869   : > { %v16865_v20 = vadd.f32 %v11135_v52, %v16700_v3  ;;  %11798 = vmatprep.mubr.bf16.mxu0 %v17742_v1  ;;  %v17748_v52 = vld [vmem:[#allocation49_spill] sm:$0xff] }
 0x86b   : > { %v11136_v44 = vpop.f32.mrb[172].mxu0 }
 0x86c   : > { %v11137_v57 = vpop.f32.mrb[173].mxu0 }
 0x86d   : > { %v11138_v27 = vadd.f32 %v11137_v57, %v11136_v44  ;;  %v11139_v53 = vpop.f32.mrb[174].mxu0 }
 0x86e   : > { %v11140_v10 = vpop.f32.mrb[175].mxu0 }
 0x86f   : > { %v16869_v11 = vadd.f32 %v11138_v27, %v16709_v62  ;;  %v11141_v61 = vadd.f32 %v11140_v10, %v11139_v53  ;;  %v17745_v62 = vld [vmem:[#allocation88_spill] sm:$0xff] }
 0x870   : > { %11799 = vmatmul.mubr.bf16.gmra.mrb[16].mxu0 %v17743_v38 }
 0x871   : > { %v16873_v45 = vadd.f32 %v11141_v61, %v16714_v43  ;;  %11802 = vmatprep.mubr.bf16.mxu0 %v17744_v47  ;;  %v17747_v43 = vld [vmem:[#allocation53_spill] sm:$0xff] }
 0x872   : > { %v8369_v32 = vmul.bf16 %v8352_v18, %v17747_v43 }
 0x873   : > { %v11142_v3 = vpop.f32.mrb[176].mxu0 }
 0x874   : > { %v11143_v50 = vpop.f32.mrb[177].mxu0  ;;  %v8514_v15 = vshrl.u32 %v8369_v32, 16  ;;  %v8517_v55 = vshll.u32 %v8369_v32, 16 }
 0x875   : > { %v11144_v24 = vadd.f32 %v11143_v50, %v11142_v3  ;;  %v11145_v37 = vpop.f32.mrb[178].mxu0  ;;  %v17750_v3 = vld [vmem:[#allocation32_spill] sm:$0xff] }
 0x876   : > { %v11146_v14 = vpop.f32.mrb[179].mxu0  ;;  %v8516_v1 = vrot.slane %v8514_v15, 4  ;;  %v8519_v44 = vrot.slane %v8517_v55, 5 }
 0x877   : > { %v16877_v40 = vadd.f32 %v11144_v24, %v16723_v49  ;;  %v11147_v17 = vadd.f32 %v11146_v14, %v11145_v37 }
 0x878   : > { %11803 = vmatmul.mubr.bf16.gmra.mrb[20].mxu0 %v17745_v62  ;;  %v8520_v61 = vor.u32 %v8519_v44, %v8516_v1 }
 0x879   : > { %v16881_v29 = vadd.f32 %v11147_v17, %v16727_v21  ;;  %11806 = vmatprep.mubr.bf16.mxu0 %v17746_v9 }
 0x87a   : > { %v8521_v50 = vsel %vm2034_vm6, %v17750_v3, %v8520_v61 }
 0x87b   : > { %v11148_v25 = vpop.f32.mrb[180].mxu0 }
 0x87c   : > { %v11149_v16 = vpop.f32.mrb[181].mxu0 }
 0x87d   : > { %v11150_v39 = vadd.f32 %v11149_v16, %v11148_v25  ;;  %v11151_v59 = vpop.f32.mrb[182].mxu0 }
 0x87e   : > { %v11152_v22 = vpop.f32.mrb[183].mxu0 }
 0x87f   : > { %v16886_v49 = vadd.f32 %v11150_v39, %v16737_v8  ;;  %v11153_v58 = vadd.f32 %v11152_v22, %v11151_v59 }
 0x880   : > { %11807 = vmatmul.mubr.bf16.gmra.mrb[24].mxu0 %v17748_v52 }
 0x881   : > { %v16890_v21 = vadd.f32 %v11153_v58, %v16740_v6  ;;  %11810 = vmatprep.mubr.bf16.mxu0 %v17749_v19 }
 0x883   : > { %v11154_v57 = vpop.f32.mrb[184].mxu0 }
 0x884   : > { %v11155_v27 = vpop.f32.mrb[185].mxu0 }
 0x885   : > { %v11156_v53 = vadd.f32 %v11155_v27, %v11154_v57  ;;  %v11157_v10 = vpop.f32.mrb[186].mxu0 }
 0x886   : > { %v11158_v38 = vpop.f32.mrb[187].mxu0 }
 0x887   : > { %v16894_v47 = vadd.f32 %v11156_v53, %v16748_v13  ;;  %v11159_v8 = vadd.f32 %v11158_v38, %v11157_v10 }
 0x888   : > { %11811 = vmatmul.mubr.bf16.gmra.mrb[28].mxu0 %v8521_v50 }
 0x889   : > { %v16899_v6 = vadd.f32 %v11159_v8, %v16752_v30 }
 0x88b   : > { %v11160_v24 = vpop.f32.mrb[188].mxu0 }
 0x88c   : > { %v11161_v37 = vpop.f32.mrb[189].mxu0 }
 0x88d   : > { %v11162_v14 = vadd.f32 %v11161_v37, %v11160_v24  ;;  %v11163_v18 = vpop.f32.mrb[190].mxu0 }
 0x88e   : > { %v11164_v17 = vpop.f32.mrb[191].mxu0 }
 0x88f   : > { %v16902_v62 = vadd.f32 %v11162_v14, %v16759_v2  ;;  %v11165_v9 = vadd.f32 %v11164_v17, %v11163_v18 }
 0x891   : > { %v16905_v13 = vadd.f32 %v11165_v9, %v16763_v51 }
 0x893   : > { %v11166_v43 = vpop.f32.mrb[192].mxu0 }
 0x894   : > { %v11167_v32 = vpop.f32.mrb[193].mxu0 }
 0x895   : > { %v11168_v25 = vadd.f32 %v11167_v32, %v11166_v43  ;;  %v11169_v16 = vpop.f32.mrb[194].mxu0 }
 0x896   : > { %v11170_v39 = vpop.f32.mrb[195].mxu0 }
 0x897   : > { %v16908_v30 = vadd.f32 %v11168_v25, %v16770_v48  ;;  %v11171_v59 = vadd.f32 %v11170_v39, %v11169_v16 }
 0x899   : > { %v16911_v15 = vadd.f32 %v11171_v59, %v16774_v42 }
 0x89b   : > { %v11172_v55 = vpop.f32.mrb[196].mxu0 }
 0x89c   : > { %v11173_v22 = vpop.f32.mrb[197].mxu0 }
 0x89d   : > { %v11174_v2 = vadd.f32 %v11173_v22, %v11172_v55  ;;  %v11175_v58 = vpop.f32.mrb[198].mxu0 }
 0x89e   : > { %v11176_v52 = vpop.f32.mrb[199].mxu0 }
 0x89f   : > { %v16914_v51 = vadd.f32 %v11174_v2, %v16782_v23  ;;  %v11177_v19 = vadd.f32 %v11176_v52, %v11175_v58 }
 0x8a1   : > { %v16917_v1 = vadd.f32 %v11177_v19, %v16785_v36 }
 0x8a3   : > { %v11194_v44 = vpop.f32.mrb[200].mxu0 }
 0x8a4   : > { %v11195_v57 = vpop.f32.mrb[201].mxu0 }
 0x8a5   : > { %v11196_v48 = vadd.f32 %v11195_v57, %v11194_v44  ;;  %v11197_v27 = vpop.f32.mrb[202].mxu0 }
 0x8a6   : > { %v11198_v53 = vpop.f32.mrb[203].mxu0 }
 0x8a7   : > { %v16920_v42 = vadd.f32 %v11196_v48, %v16789_v33  ;;  %v11199_v10 = vadd.f32 %v11198_v53, %v11197_v27 }
 0x8a9   : > { %v16923_v61 = vadd.f32 %v11199_v10, %v16794_v54 }
 0x8ab   : > { %v11200_v38 = vpop.f32.mrb[204].mxu0 }
 0x8ac   : > { %v11201_v8 = vpop.f32.mrb[205].mxu0 }
 0x8ad   : > { %v11202_v23 = vadd.f32 %v11201_v8, %v11200_v38  ;;  %v11203_v3 = vpop.f32.mrb[206].mxu0 }
 0x8ae   : > { %v11204_v50 = vpop.f32.mrb[207].mxu0 }
 0x8af   : > { %v16926_v36 = vadd.f32 %v11202_v23, %v16798_v63  ;;  %v11205_v24 = vadd.f32 %v11204_v50, %v11203_v3 }
 0x8b1   : > { %v16929_v37 = vadd.f32 %v11205_v24, %v16803_v28 }
 0x8b3   : > { %v11206_v14 = vpop.f32.mrb[208].mxu0 }
 0x8b4   : > { %v11207_v18 = vpop.f32.mrb[209].mxu0 }
 0x8b5   : > { %v11208_v33 = vadd.f32 %v11207_v18, %v11206_v14  ;;  %v11209_v17 = vpop.f32.mrb[210].mxu0 }
 0x8b6   : > { %v11210_v9 = vpop.f32.mrb[211].mxu0 }
 0x8b7   : > { %v16932_v54 = vadd.f32 %v11208_v33, %v16807_v56  ;;  %v11211_v43 = vadd.f32 %v11210_v9, %v11209_v17 }
 0x8b9   : > { %v16935_v32 = vadd.f32 %v11211_v43, %v16814_v7 }
 0x8bb   : > { %v11212_v25 = vpop.f32.mrb[212].mxu0 }
 0x8bc   : > { %v11213_v16 = vpop.f32.mrb[213].mxu0 }
 0x8bd   : > { %v11214_v63 = vadd.f32 %v11213_v16, %v11212_v25  ;;  %v11215_v39 = vpop.f32.mrb[214].mxu0 }
 0x8be   : > { %v11216_v59 = vpop.f32.mrb[215].mxu0 }
 0x8bf   : > { %v16938_v28 = vadd.f32 %v11214_v63, %v16820_v5  ;;  %v11217_v55 = vadd.f32 %v11216_v59, %v11215_v39 }
 0x8c1   : > { %v16941_v22 = vadd.f32 %v11217_v55, %v16824_v26 }
 0x8c3   : > { %v11218_v2 = vpop.f32.mrb[216].mxu0 }
 0x8c4   : > { %v11219_v58 = vpop.f32.mrb[217].mxu0 }
 0x8c5   : > { %v11220_v56 = vadd.f32 %v11219_v58, %v11218_v2  ;;  %v11221_v52 = vpop.f32.mrb[218].mxu0 }
 0x8c6   : > { %v11222_v19 = vpop.f32.mrb[219].mxu0 }
 0x8c7   : > { %v16944_v7 = vadd.f32 %v11220_v56, %v16829_v35  ;;  %v11223_v44 = vadd.f32 %v11222_v19, %v11221_v52 }
 0x8c9   : > { %v16947_v57 = vadd.f32 %v11223_v44, %v16833_v0 }
 0x8cb   : > { %v11224_v48 = vpop.f32.mrb[220].mxu0 }
 0x8cc   : > { %v11225_v27 = vpop.f32.mrb[221].mxu0 }
 0x8cd   : > { %v11226_v5 = vadd.f32 %v11225_v27, %v11224_v48  ;;  %v11227_v53 = vpop.f32.mrb[222].mxu0 }
 0x8ce   : > { %v11228_v10 = vpop.f32.mrb[223].mxu0 }
 0x8cf   : > { %v16950_v26 = vadd.f32 %v11226_v5, %v16836_v46  ;;  %v11229_v38 = vadd.f32 %v11228_v10, %v11227_v53 }
 0x8d1   : > { %v16953_v8 = vadd.f32 %v11229_v38, %v16841_v12 }
 0x8d3   : > { %v11230_v23 = vpop.f32.mrb[224].mxu0 }
 0x8d4   : > { %v11231_v3 = vpop.f32.mrb[225].mxu0 }
 0x8d5   : > { %v11232_v35 = vadd.f32 %v11231_v3, %v11230_v23  ;;  %v11233_v50 = vpop.f32.mrb[226].mxu0 }
 0x8d6   : > { %v11234_v24 = vpop.f32.mrb[227].mxu0 }
 0x8d7   : > { %v16956_v0 = vadd.f32 %v11232_v35, %v16844_v41  ;;  %v11235_v14 = vadd.f32 %v11234_v24, %v11233_v50 }
 0x8d9   : > { %v16959_v18 = vadd.f32 %v11235_v14, %v16850_v60 }
 0x8db   : > { %v11236_v33 = vpop.f32.mrb[228].mxu0 }
 0x8dc   : > { %v11237_v17 = vpop.f32.mrb[229].mxu0 }
 0x8dd   : > { %v11238_v46 = vadd.f32 %v11237_v17, %v11236_v33  ;;  %v11239_v9 = vpop.f32.mrb[230].mxu0 }
 0x8de   : > { %v11240_v43 = vpop.f32.mrb[231].mxu0 }
 0x8df   : > { %v16962_v12 = vadd.f32 %v11238_v46, %v16853_v4  ;;  %v11241_v25 = vadd.f32 %v11240_v43, %v11239_v9 }
 0x8e1   : > { %v16965_v16 = vadd.f32 %v11241_v25, %v16857_v34 }
 0x8e3   : > { %v11242_v63 = vpop.f32.mrb[232].mxu0 }
 0x8e4   : > { %v11243_v39 = vpop.f32.mrb[233].mxu0 }
 0x8e5   : > { %v11244_v41 = vadd.f32 %v11243_v39, %v11242_v63  ;;  %v11245_v59 = vpop.f32.mrb[234].mxu0 }
 0x8e6   : > { %v11246_v55 = vpop.f32.mrb[235].mxu0 }
 0x8e7   : > { %v16968_v60 = vadd.f32 %v11244_v41, %v16861_v31  ;;  %v11247_v2 = vadd.f32 %v11246_v55, %v11245_v59 }
 0x8e9   : > { %v16971_v58 = vadd.f32 %v11247_v2, %v16865_v20 }
 0x8eb   : > { %v11248_v56 = vpop.f32.mrb[236].mxu0 }
 0x8ec   : > { %v11249_v52 = vpop.f32.mrb[237].mxu0 }
 0x8ed   : > { %v11250_v4 = vadd.f32 %v11249_v52, %v11248_v56  ;;  %v11251_v19 = vpop.f32.mrb[238].mxu0 }
 0x8ee   : > { %v11252_v44 = vpop.f32.mrb[239].mxu0 }
 0x8ef   : > { %v16974_v34 = vadd.f32 %v11250_v4, %v16869_v11  ;;  %v11253_v48 = vadd.f32 %v11252_v44, %v11251_v19 }
 0x8f1   : > { %v16977_v27 = vadd.f32 %v11253_v48, %v16873_v45 }
 0x8f3   : > { %v11254_v5 = vpop.f32.mrb[240].mxu0 }
 0x8f4   : > { %v11255_v53 = vpop.f32.mrb[241].mxu0 }
 0x8f5   : > { %v11256_v31 = vadd.f32 %v11255_v53, %v11254_v5  ;;  %v11257_v10 = vpop.f32.mrb[242].mxu0 }
 0x8f6   : > { %v11258_v38 = vpop.f32.mrb[243].mxu0 }
 0x8f7   : > { %v16980_v20 = vadd.f32 %v11256_v31, %v16877_v40  ;;  %v11259_v23 = vadd.f32 %v11258_v38, %v11257_v10 }
 0x8f9   : > { %v16983_v3 = vadd.f32 %v11259_v23, %v16881_v29 }
 0x8fb   : > { %v11260_v35 = vpop.f32.mrb[244].mxu0 }
 0x8fc   : > { %v11261_v50 = vpop.f32.mrb[245].mxu0 }
 0x8fd   : > { %v11262_v11 = vadd.f32 %v11261_v50, %v11260_v35  ;;  %v11263_v24 = vpop.f32.mrb[246].mxu0  ;;  %v17015_v50 = vld [vmem:[%s17751_s29] ss:$0 sm:$0xff] }
 0x8fe   : > { %v11264_v14 = vpop.f32.mrb[247].mxu0 }
 0x8ff   : > { %v16986_v45 = vadd.f32 %v11262_v11, %v16886_v49  ;;  %v11265_v33 = vadd.f32 %v11264_v14, %v11263_v24  ;;  %v11892_v24 = vadd.f32 %v17015_v50, %v16920_v42 }
 0x901   : > { %v16989_v17 = vadd.f32 %v11265_v33, %v16890_v21 }
 0x903   : > { %v11266_v46 = vpop.f32.mrb[248].mxu0 }
 0x904   : > { %v11267_v9 = vpop.f32.mrb[249].mxu0 }
 0x905   : > { %v11268_v40 = vadd.f32 %v11267_v9, %v11266_v46  ;;  %v11269_v43 = vpop.f32.mrb[250].mxu0 }
 0x906   : > { %v11270_v25 = vpop.f32.mrb[251].mxu0 }
 0x907   : > { %v16992_v29 = vadd.f32 %v11268_v40, %v16894_v47  ;;  %v11271_v63 = vadd.f32 %v11270_v25, %v11269_v43  ;;  %v11896_v40 = vadd.f32 %v17015_v50, %v16923_v61  ;;  %v11898_v61 = vadd.f32 %v17015_v50, %v16938_v28 }
 0x908   : > { %v11900_v43 = vadd.f32 %v17015_v50, %v16932_v54  ;;  %v11906_v54 = vadd.f32 %v17015_v50, %v16950_v26 }
 0x909   : > { %v16995_v39 = vadd.f32 %v11271_v63, %v16899_v6 }
 0x90b   : > { %v11272_v41 = vpop.f32.mrb[252].mxu0 }
 0x90c   : > { %v11273_v59 = vpop.f32.mrb[253].mxu0 }
 0x90d   : > { %v11274_v49 = vadd.f32 %v11273_v59, %v11272_v41  ;;  %v11275_v55 = vpop.f32.mrb[254].mxu0  ;;  %v11902_v41 = vadd.f32 %v17015_v50, %v16941_v22 }
 0x90e   : > { %v11276_v2 = vpop.f32.mrb[255].mxu0 }
 0x90f   : > { %v16998_v21 = vadd.f32 %v11274_v49, %v16902_v62  ;;  %v11277_v56 = vadd.f32 %v11276_v2, %v11275_v55  ;;  %v11904_v55 = vadd.f32 %v17015_v50, %v16935_v32 }
 0x911   : > { %v17001_v52 = vadd.f32 %v11277_v56, %v16905_v13 }
 0x913   : > { %v11278_v4 = vpop.f32.mrb[32].mxu0 }
 0x914   : > { %v11279_v19 = vpop.f32.mrb[33].mxu0 }
 0x915   : > { %v11280_v47 = vadd.f32 %v11279_v19, %v11278_v4  ;;  %v11281_v44 = vpop.f32.mrb[34].mxu0  ;;  %v11908_v4 = vadd.f32 %v17015_v50, %v16944_v7  ;;  %v11914_v7 = vadd.f32 %v17015_v50, %v16962_v12 }
 0x916   : > { %v11282_v48 = vpop.f32.mrb[35].mxu0 }
 0x917   : > { %v17004_v6 = vadd.f32 %v11280_v47, %v16908_v30  ;;  %v11283_v5 = vadd.f32 %v11282_v48, %v11281_v44  ;;  %v11910_v47 = vadd.f32 %v17015_v50, %v16953_v8 }
 0x919   : > { %v17007_v53 = vadd.f32 %v11283_v5, %v16911_v15  ;;  %v11890_v15 = vadd.f32 %v17015_v50, %v16926_v36  ;;  %v11912_v5 = vadd.f32 %v17015_v50, %v16947_v57 }
 0x91b   : > { %v11284_v31 = vpop.f32.mrb[36].mxu0 }
 0x91c   : > { %v11285_v10 = vpop.f32.mrb[37].mxu0 }
 0x91d   : > { %v11286_v62 = vadd.f32 %v11285_v10, %v11284_v31  ;;  %v11287_v38 = vpop.f32.mrb[38].mxu0 }
 0x91e   : > { %v11288_v23 = vpop.f32.mrb[39].mxu0 }
 0x91f   : > { %v17010_v13 = vadd.f32 %v11286_v62, %v16914_v51  ;;  %v11289_v35 = vadd.f32 %v11288_v23, %v11287_v38  ;;  %v11894_v51 = vadd.f32 %v17015_v50, %v16929_v37  ;;  %v11916_v62 = vadd.f32 %v17015_v50, %v16956_v0 }
 0x920   : > { %v11918_v23 = vadd.f32 %v17015_v50, %v16965_v16  ;;  %v11922_v0 = vadd.f32 %v17015_v50, %v16974_v34 }
 0x921   : > { %v17018_v30 = vadd.f32 %v11289_v35, %v16917_v1 }
 0x923   : > { %v11784_v11 = vpop.f32.mrb[0].mxu0 }
 0x924   : > { %v11891_v14 = vadd.f32 %v11890_v15, %v11784_v11  ;;  %v9959_v33 = vpop.f32.mrb[1].mxu0  ;;  %v11920_v11 = vadd.f32 %v17015_v50, %v16959_v18 }
 0x925   : > { %v11893_v46 = vadd.f32 %v11892_v24, %v9959_v33  ;;  %v11785_v9 = vpop.f32.mrb[2].mxu0  ;;  %v11924_v33 = vadd.f32 %v17015_v50, %v16968_v60  ;;  %v11930_v60 = vadd.f32 %v17015_v50, %v16986_v45 }
 0x926   : > { %10120 = vst [vmem:[%s17030_s9 + $0x10] sm:$0xff] %v11891_v14  ;;  %v11895_v1 = vadd.f32 %v11894_v51, %v11785_v9  ;;  %v9962_v42 = vpop.f32.mrb[3].mxu0 }
 0x927   : > { %10118 = vst [vmem:[%s17030_s9] sm:$0xff] %v11893_v46  ;;  %v11897_v36 = vadd.f32 %v11896_v40, %v9962_v42  ;;  %v11926_v46 = vadd.f32 %v17015_v50, %v16977_v27 }
 0x928   : > { %10121 = vst [vmem:[%s17030_s9 + $0x18] sm:$0xff] %v11895_v1  ;;  %v11928_v1 = vadd.f32 %v17015_v50, %v16971_v58 }
 0x929   : > { %10119 = vst [vmem:[%s17030_s9 + $0x8] sm:$0xff] %v11897_v36 }
 0x92b   : > { %v11788_v37 = vpop.f32.mrb[4].mxu0 }
 0x92c   : > { %v11899_v25 = vadd.f32 %v11898_v61, %v11788_v37  ;;  %v9975_v63 = vpop.f32.mrb[5].mxu0  ;;  %v11932_v61 = vadd.f32 %v17015_v50, %v16980_v20  ;;  %v11938_v20 = vadd.f32 %v17015_v50, %v16998_v21 }
 0x92d   : > { %v11901_v59 = vadd.f32 %v11900_v43, %v9975_v63  ;;  %v11789_v49 = vpop.f32.mrb[6].mxu0  ;;  %v11934_v43 = vadd.f32 %v17015_v50, %v16989_v17 }
 0x92e   : > { %10124 = vst [vmem:[%s17030_s9 + $0x30] sm:$0xff] %v11899_v25  ;;  %v11903_v2 = vadd.f32 %v11902_v41, %v11789_v49  ;;  %v9978_v56 = vpop.f32.mrb[7].mxu0  ;;  %v11936_v41 = vadd.f32 %v17015_v50, %v16983_v3 }
 0x92f   : > { %10122 = vst [vmem:[%s17030_s9 + $0x20] sm:$0xff] %v11901_v59  ;;  %v11905_v28 = vadd.f32 %v11904_v55, %v9978_v56  ;;  %v11940_v55 = vadd.f32 %v17015_v50, %v16992_v29  ;;  %v11942_v56 = vadd.f32 %v17015_v50, %v17001_v52  ;;  %v11946_v29 = vadd.f32 %v17015_v50, %v17010_v13 }
 0x930   : > { %10125 = vst [vmem:[%s17030_s9 + $0x38] sm:$0xff] %v11903_v2  ;;  %v11948_v52 = vadd.f32 %v17015_v50, %v17004_v6  ;;  %v11952_v13 = vadd.f32 %v17015_v50, %v17007_v53 }
 0x931   : > { %10123 = vst [vmem:[%s17030_s9 + $0x28] sm:$0xff] %v11905_v28 }
 0x933   : > { %v11792_v22 = vpop.f32.mrb[8].mxu0 }
 0x934   : > { %v11907_v19 = vadd.f32 %v11906_v54, %v11792_v22  ;;  %v9991_v32 = vpop.f32.mrb[9].mxu0  ;;  %v11944_v22 = vadd.f32 %v17015_v50, %v16995_v39 }
 0x935   : > { %v11909_v44 = vadd.f32 %v11908_v4, %v9991_v32  ;;  %v11793_v48 = vpop.f32.mrb[10].mxu0 }
 0x936   : > { %10128 = vst [vmem:[%s17030_s9 + $0x50] sm:$0xff] %v11907_v19  ;;  %v11911_v31 = vadd.f32 %v11910_v47, %v11793_v48  ;;  %v9994_v10 = vpop.f32.mrb[11].mxu0 }
 0x937   : > { %10126 = vst [vmem:[%s17030_s9 + $0x40] sm:$0xff] %v11909_v44  ;;  %v11913_v26 = vadd.f32 %v11912_v5, %v9994_v10  ;;  %v11950_v44 = vadd.f32 %v17015_v50, %v17018_v30 }
 0x938   : > { %10129 = vst [vmem:[%s17030_s9 + $0x58] sm:$0xff] %v11911_v31 }
 0x939   : > { %10127 = vst [vmem:[%s17030_s9 + $0x48] sm:$0xff] %v11913_v26 }
 0x93b   : > { %v11796_v8 = vpop.f32.mrb[12].mxu0 }
 0x93c   : > { %v11915_v38 = vadd.f32 %v11914_v7, %v11796_v8  ;;  %v10007_v57 = vpop.f32.mrb[13].mxu0 }
 0x93d   : > { %v11917_v35 = vadd.f32 %v11916_v62, %v10007_v57  ;;  %v11797_v15 = vpop.f32.mrb[14].mxu0 }
 0x93e   : > { %10132 = vst [vmem:[%s17030_s9 + $0x70] sm:$0xff] %v11915_v38  ;;  %v11919_v24 = vadd.f32 %v11918_v23, %v11797_v15  ;;  %v10010_v14 = vpop.f32.mrb[15].mxu0 }
 0x93f   : > { %10130 = vst [vmem:[%s17030_s9 + $0x60] sm:$0xff] %v11917_v35  ;;  %v11921_v12 = vadd.f32 %v11920_v11, %v10010_v14 }
 0x940   : > { %10133 = vst [vmem:[%s17030_s9 + $0x78] sm:$0xff] %v11919_v24 }
 0x941   : > { %10131 = vst [vmem:[%s17030_s9 + $0x68] sm:$0xff] %v11921_v12 }
 0x943   : > { %v11800_v16 = vpop.f32.mrb[16].mxu0 }
 0x944   : > { %v11923_v51 = vadd.f32 %v11922_v0, %v11800_v16  ;;  %v10023_v18 = vpop.f32.mrb[17].mxu0 }
 0x945   : > { %v11925_v9 = vadd.f32 %v11924_v33, %v10023_v18  ;;  %v11801_v40 = vpop.f32.mrb[18].mxu0 }
 0x946   : > { %10136 = vst [vmem:[%s17030_s9 + $0x90] sm:$0xff] %v11923_v51  ;;  %v11927_v42 = vadd.f32 %v11926_v46, %v11801_v40  ;;  %v10026_v36 = vpop.f32.mrb[19].mxu0 }
 0x947   : > { %10134 = vst [vmem:[%s17030_s9 + $0x80] sm:$0xff] %v11925_v9  ;;  %v11929_v34 = vadd.f32 %v11928_v1, %v10026_v36 }
 0x948   : > { %10137 = vst [vmem:[%s17030_s9 + $0x98] sm:$0xff] %v11927_v42 }
 0x949   : > { %10135 = vst [vmem:[%s17030_s9 + $0x88] sm:$0xff] %v11929_v34 }
 0x94b   : > { %v11804_v27 = vpop.f32.mrb[20].mxu0 }
 0x94c   : > { %v11931_v37 = vadd.f32 %v11930_v60, %v11804_v27  ;;  %v10039_v58 = vpop.f32.mrb[21].mxu0 }
 0x94d   : > { %v11933_v25 = vadd.f32 %v11932_v61, %v10039_v58  ;;  %v11805_v63 = vpop.f32.mrb[22].mxu0 }
 0x94e   : > { %10140 = vst [vmem:[%s17030_s9 + $0xb0] sm:$0xff] %v11931_v37  ;;  %v11935_v59 = vadd.f32 %v11934_v43, %v11805_v63  ;;  %v10042_v49 = vpop.f32.mrb[23].mxu0 }
 0x94f   : > { %10138 = vst [vmem:[%s17030_s9 + $0xa0] sm:$0xff] %v11933_v25  ;;  %v11937_v45 = vadd.f32 %v11936_v41, %v10042_v49 }
 0x950   : > { %10141 = vst [vmem:[%s17030_s9 + $0xb8] sm:$0xff] %v11935_v59 }
 0x951   : > { %10139 = vst [vmem:[%s17030_s9 + $0xa8] sm:$0xff] %v11937_v45 }
 0x953   : > { %v11808_v17 = vpop.f32.mrb[24].mxu0 }
 0x954   : > { %v11939_v2 = vadd.f32 %v11938_v20, %v11808_v17  ;;  %v10055_v3 = vpop.f32.mrb[25].mxu0 }
 0x955   : > { %v11941_v28 = vadd.f32 %v11940_v55, %v10055_v3  ;;  %v11809_v54 = vpop.f32.mrb[26].mxu0 }
 0x956   : > { %10144 = vst [vmem:[%s17030_s9 + $0xd0] sm:$0xff] %v11939_v2  ;;  %v11943_v4 = vadd.f32 %v11942_v56, %v11809_v54  ;;  %v10058_v19 = vpop.f32.mrb[27].mxu0 }
 0x957   : > { %10142 = vst [vmem:[%s17030_s9 + $0xc0] sm:$0xff] %v11941_v28  ;;  %v11945_v21 = vadd.f32 %v11944_v22, %v10058_v19 }
 0x958   : > { %10145 = vst [vmem:[%s17030_s9 + $0xd8] sm:$0xff] %v11943_v4 }
 0x959   : > { %10143 = vst [vmem:[%s17030_s9 + $0xc8] sm:$0xff] %v11945_v21 }
 0x95b   : > { %v11812_v32 = vpop.f32.mrb[28].mxu0 }
 0x95c   : > { %v11947_v39 = vadd.f32 %v11946_v29, %v11812_v32  ;;  %v10071_v47 = vpop.f32.mrb[29].mxu0 }
 0x95d   : > { %v11949_v48 = vadd.f32 %v11948_v52, %v10071_v47  ;;  %v11813_v5 = vpop.f32.mrb[30].mxu0 }
 0x95e   : > { %10148 = vst [vmem:[%s17030_s9 + $0xf0] sm:$0xff] %v11947_v39  ;;  %v11951_v31 = vadd.f32 %v11950_v44, %v11813_v5  ;;  %v10074_v10 = vpop.f32.mrb[31].mxu0 }
 0x95f   : > { %10146 = vst [vmem:[%s17030_s9 + $0xe0] sm:$0xff] %v11949_v48  ;;  %v11953_v6 = vadd.f32 %v11952_v13, %v10074_v10 }
 0x960   : > { %10149 = vst [vmem:[%s17030_s9 + $0xf8] sm:$0xff] %v11951_v31 }
 0x961   : > { %10147 = vst [vmem:[%s17030_s9 + $0xe8] sm:$0xff] %v11953_v6 }
 0x962   : > { %12817 = shalt.err (!%p12814_p7)
}
 0x963   : > { %s12818_s27 = scalar_lea.hbm %s17122_s20, 4096  ;;  %s12822_s24 = scalar_lea.hbm %s17752_s17, 8192 }
 0x964   : > { %p12819_p9 = scmp.ne.s32.totalorder %s17122_s20, %s12818_s27  ;;  %p12823_p5 = scmp.lt.u32.totalorder %s17122_s20, %s17752_s17 }
 0x965   : > { %p12824_p11 = scmp.lt.u32.totalorder %s12822_s24, %s12818_s27  ;;  %p12826_p4 = scmp.lt.u32.totalorder %s12818_s27, %s17122_s20 }
 0x966   : > { %p12820_p2 = pnand %p12819_p9, %p13057_p12 }
 0x967   : > { %p12825_p1 = por %p12824_p11, %p12823_p5 }
 0x968   : > { %p12821_p0 = pneg %p12820_p2 }
 0x969   : > { %p12827_p6 = por %p12826_p4, %p12825_p1 }
 0x96b   : > { %p12828_p8 = pnand %p12827_p6, %p12821_p0 }
 0x96d   : > { %12831 = shalt.err (!%p12828_p8)
}
 0x96e   : > { %s12889_s19 = smov 128   ;;  %s12890_s21 = smov 8  }
 0x96f   : > { %12248 = dma.vmem_to_hbm [thread:$0]  (%p13057_p12), %s17124_s23, 4096, %s17122_s20, %s10151_s18, %s12889_s19, %s12889_s19, %s12890_s21  }
 0x970 PF: > { %s17753_s14 = sld [smem:[#allocation15_spill]]  ;;  %s17754_s26 = sld [smem:[#allocation16_spill]] }
 0x971   : > { %p17756_p13 = scmp.ge.s32.totalorder %s12874_s16, 2 }
 0x976   : > { %s10179_s29 = sand.u32 1, %s17753_s14   ;;  %p17755_p10 = scmp.ne.s32.totalorder %s17754_s26, 0 }
 0x977   : > { %s10180_s27 = scalar_lea.sflag [#allocation8], %s10179_s29 }
 0x978   : > { %p12259_p3 = pnand %p17756_p13, %p17755_p10 }
 0x97a   : > { %12857 = dma.done.wait (!%p12259_p3), %s10180_s27, 4096  }
 0x97b   : > { %12859 = vsyncadd (!%p12259_p3), %s10180_s27, 4294963200  ;;  %s17757_s16 = sld [smem:[#allocation17_spill]]  ;;  %s17758_s29 = smov %s12866_s30 }
 0x97c   : > { %s17759_s30 = smov %s12870_s15  ;;  %s17760_s15 = smov %s13053_s25 }
 0x981   : > { %p28_p7 = scmp.ge.s32.totalorder %s17757_s16, 4  }
 0x983   :  { %30 = sbr.rel (!%p28_p7) target bundleno = 11 (0xb), region = 125 }
 0x98a   :  { %10185 = vsyncpa [#allocation7], 1 }
 0x98b   :  { %10187 = vsyncpa [#allocation7 + $0x1], 1 }
 0x98c   :  { %10188 = vsyncpa [#allocation10], 1 }
 0x98d   :  { %10189 = vsyncpa [#allocation8], 1 }
 0x98e   :  { %10191 = vsyncpa [#allocation8 + $0x1], 1 }

</bundles_post_ra>
